<compile_context>
chip_gen: v7x
topology: tpu7x:2x2x1
jax: 0.10.0
libtpu: 0.0.40
codegen_flags: <defaults>
</compile_context>

<pallas_src>
import jax
import jax.numpy as jnp
from jax import lax
from jax.experimental import pallas as pl
from jax.experimental.pallas import tpu as pltpu

IN_FEATURES = 20184
OUT_FEATURES = 15


def _linear_kernel(x_ref, w_ref, b_ref, o_ref):
    # x_ref: (TM, K)   activations tile (the only large per-step stream)
    # w_ref: (N, K)    native PyTorch layout, K on lanes (no transpose needed)
    # b_ref: (1, N)    broadcast row
    # o_ref: (TM, N)
    acc = lax.dot_general(
        x_ref[...], w_ref[...],
        dimension_numbers=(((1,), (1,)), ((), ())),   # contract K with K
        preferred_element_type=jnp.float32,
        precision=lax.Precision.HIGHEST,              # exact fp32 nn.Linear math
    )
    o_ref[...] = (acc + b_ref[...]).astype(o_ref.dtype)


def _round_up(v, m):
    return (v + m - 1) // m * m


def _vmem_capacity_bytes():
    """Best-effort physical VMEM query; conservative v7x floor on failure."""
    try:
        info = pltpu.get_tpu_info()
        for attr in ("vmem_capacity_bytes", "vmem_bytes", "vmem_size_bytes"):
            v = getattr(info, attr, None)
            if v:
                return int(v)
    except Exception:
        pass
    return 64 << 20   # v7x per-TensorCore VMEM (safe lower bound everywhere)


def _pick_tiling():
    """(tile_m, vmem_limit_bytes) per chip generation."""
    vmem = _vmem_capacity_bytes()
    if vmem >= (120 << 20):
        # v5e / v6e: 128 MiB VMEM -> 512-row tiles, ~81 MiB peak footprint.
        return 512, 100 << 20
    # v7x: 64 MiB / TC -> 256-row tiles, ~42 MiB peak footprint.
    return 256, 56 << 20


def svm_forward(x, weight, bias, *, tile_m=None, compute_dtype=None):
    """Pallas equivalent of SVM.forward.

    Args:
      x:      (B, ...) any trailing shape whose product is IN_FEATURES.
      weight: (OUT_FEATURES, IN_FEATURES)  -- PyTorch nn.Linear layout (no transpose!)
      bias:   (OUT_FEATURES,)
      tile_m: optional batch-tile override.
      compute_dtype: optional (e.g. jnp.bfloat16) fast path for the x/weight
        streams; accumulation stays f32. Numerics-changing, off by default.
    Returns:
      (B, OUT_FEATURES) f32
    """
    b = x.shape[0]
    x2d = x.reshape(b, -1)                      # x.view(x.size(0), -1)
    assert x2d.shape[1] == IN_FEATURES, x2d.shape

    auto_tm, vmem_limit = _pick_tiling()
    if tile_m is None:
        tile_m = auto_tm

    if compute_dtype is not None:
        x2d = x2d.astype(compute_dtype)
        weight = weight.astype(compute_dtype)

    sublane = 16 if jnp.dtype(x2d.dtype).itemsize == 2 else 8
    bias2d = bias.reshape(1, OUT_FEATURES).astype(jnp.float32)

    # Row tile: multiple of the sublane tile, capped at tile_m. For batches
    # bigger than a couple of sublane tiles, cap so the grid has >= 2 steps
    # (keeps both v7x TensorCores busy under "parallel" semantics).
    tm = min(tile_m, _round_up(max(b, 1), sublane))
    if b > 2 * sublane:
        tm = min(tm, _round_up(pl.cdiv(b, 2), sublane))
    grid_m = pl.cdiv(b, tm)

    itemsize = jnp.dtype(x2d.dtype).itemsize
    cost = pl.CostEstimate(
        flops=2 * b * IN_FEATURES * OUT_FEATURES,
        transcendentals=0,
        bytes_accessed=(b * IN_FEATURES * itemsize              # x stream
                        + OUT_FEATURES * IN_FEATURES * itemsize  # weight
                        + OUT_FEATURES * 4                       # bias
                        + b * OUT_FEATURES * 4),                 # output
    )

    out = pl.pallas_call(
        _linear_kernel,
        out_shape=jax.ShapeDtypeStruct((b, OUT_FEATURES), jnp.float32),
        grid=(grid_m,),
        in_specs=[
            # x: one batch tile per grid step (double-buffered by Pallas).
            pl.BlockSpec((tm, IN_FEATURES), lambda i: (i, 0)),
            # weight: full (15, 20184) slab, resident across all batch tiles.
            pl.BlockSpec((OUT_FEATURES, IN_FEATURES), lambda i: (0, 0)),
            # bias: resident (1, 15) row.
            pl.BlockSpec((1, OUT_FEATURES), lambda i: (0, 0)),
        ],
        out_specs=pl.BlockSpec((tm, OUT_FEATURES), lambda i: (i, 0)),
        compiler_params=pltpu.CompilerParams(
            dimension_semantics=("parallel",),   # batch tiles split across TCs on v7x
            vmem_limit_bytes=vmem_limit,
        ),
        cost_estimate=cost,
    )(x2d, weight, bias2d)
    return out


def init_params(key):
    # Deterministic init mirroring PyTorch's default nn.Linear init:
    # U(-1/sqrt(in_features), 1/sqrt(in_features)) for both weight and bias.
    kw, kb = jax.random.split(key)
    bound = 1.0 / jnp.sqrt(jnp.float32(IN_FEATURES))
    weight = jax.random.uniform(
        kw, (OUT_FEATURES, IN_FEATURES), jnp.float32, -bound, bound)
    bias = jax.random.uniform(
        kb, (OUT_FEATURES,), jnp.float32, -bound, bound)
    return weight, bias


if __name__ == "__main__":
    key = jax.random.PRNGKey(0)
    k_x, k_p = jax.random.split(key)

    batch = 2
    x = jax.random.normal(k_x, (batch, IN_FEATURES), dtype=jnp.float32)
    weight, bias = init_params(k_p)

    out = svm_forward(x, weight, bias)
    out = jax.block_until_ready(out)

    # Reference check against plain JAX at matching (full fp32) precision.
    ref = lax.dot_general(
        x.reshape(batch, -1), weight,
        dimension_numbers=(((1,), (1,)), ((), ())),
        preferred_element_type=jnp.float32,
        precision=lax.Precision.HIGHEST,
    ) + bias[None, :]

    assert out.shape == (batch, OUT_FEATURES)
    assert jnp.allclose(out, ref, atol=1e-4, rtol=1e-4), float(
        jnp.max(jnp.abs(out - ref)))

    print("KERNEL_OK")
</pallas_src>

<mosaic_0001>
module attributes {stable_mosaic.version = 11 : i64} {
  func.func @_linear_kernel(%arg0: i32, %arg1: memref<8x20184xf32, #tpu.memory_space<vmem>>, %arg2: memref<15x20184xf32, #tpu.memory_space<vmem>>, %arg3: memref<1x15xf32, #tpu.memory_space<vmem>>, %arg4: memref<8x15xf32, #tpu.memory_space<vmem>>) attributes {dimension_semantics = [#tpu.dimension_semantics<parallel>], iteration_bounds = array<i64: 1>, scalar_prefetch = 0 : i64, scratch_operands = 0 : i64, tpu.core_type = #tpu.core_type<tc>, window_params = [{transform_indices = @transform_0, window_bounds = array<i64: 8, 20184>}, {pipeline_mode = #tpu.pipeline_mode<synchronous>, transform_indices = @transform_1, window_bounds = array<i64: 15, 20184>}, {pipeline_mode = #tpu.pipeline_mode<synchronous>, transform_indices = @transform_2, window_bounds = array<i64: 1, 15>}, {transform_indices = @transform_3, window_bounds = array<i64: 8, 15>}]} {
    %c0 = arith.constant 0 : index
    %c0_0 = arith.constant 0 : index
    %0 = vector.load %arg1[%c0, %c0_0] : memref<8x20184xf32, #tpu.memory_space<vmem>>, vector<8x20184xf32>
    %c0_1 = arith.constant 0 : index
    %c0_2 = arith.constant 0 : index
    %1 = vector.load %arg2[%c0_1, %c0_2] : memref<15x20184xf32, #tpu.memory_space<vmem>>, vector<15x20184xf32>
    %cst = arith.constant dense<0.000000e+00> : vector<8x15xf32>
    %2 = tpu.matmul %0, %1, %cst {dimension_numbers = #tpu.dot_dimension_numbers<[1], [1], [0], [0], [0, 0, 1, 0], [], []>, precision = #tpu.contract_precision<fp32>} : vector<8x20184xf32>, vector<15x20184xf32>, vector<8x15xf32> -> vector<8x15xf32>
    %c0_3 = arith.constant 0 : index
    %c0_4 = arith.constant 0 : index
    %3 = vector.load %arg3[%c0_3, %c0_4] : memref<1x15xf32, #tpu.memory_space<vmem>>, vector<1x15xf32>
    %4 = vector.broadcast %3 : vector<1x15xf32> to vector<8x15xf32>
    %5 = arith.addf %2, %4 : vector<8x15xf32>
    %c0_5 = arith.constant 0 : index
    %c0_6 = arith.constant 0 : index
    %6 = vector.load %arg4[%c0_5, %c0_6] : memref<8x15xf32, #tpu.memory_space<vmem>>, vector<8x15xf32>
    tpu.vector_store %arg4[%c0_5, %c0_6], %5 {strides = array<i32>} : memref<8x15xf32, #tpu.memory_space<vmem>>, vector<8x15xf32>,
    return
  }
  func.func @transform_0(%arg0: i32) -> (i32, i32) {
    %c0_i32 = arith.constant 0 : i32
    %c0_i32_0 = arith.constant 0 : i32
    return %arg0, %c0_i32 : i32, i32
  }
  func.func @transform_1(%arg0: i32) -> (i32, i32) {
    %c0_i32 = arith.constant 0 : i32
    %c0_i32_0 = arith.constant 0 : i32
    %c0_i32_1 = arith.constant 0 : i32
    return %c0_i32, %c0_i32_0 : i32, i32
  }
  func.func @transform_2(%arg0: i32) -> (i32, i32) {
    %c0_i32 = arith.constant 0 : i32
    %c0_i32_0 = arith.constant 0 : i32
    %c0_i32_1 = arith.constant 0 : i32
    return %c0_i32, %c0_i32_0 : i32, i32
  }
  func.func @transform_3(%arg0: i32) -> (i32, i32) {
    %c0_i32 = arith.constant 0 : i32
    %c0_i32_0 = arith.constant 0 : i32
    return %arg0, %c0_i32 : i32, i32
  }
}

</mosaic_0001>

<bundles_post_ra>
// kernel: tpu_custom_call.1
= control target key start
LH: loop header
LB: loop body
LE: loop exit
PB: predicated region body
PF: predicated region fallthrough
CT: control target
= control target key end

     0   :  { %8 = vsyncpa [#allocation3], 0  ;;  %s51073_s0 = inlined_call_operand.hbm [shape: f32[2,20184], index: 0, kind: input, shape index: {}]   ;;  %s51074_s1 = inlined_call_operand.hbm [shape: f32[15,20184], index: 1, kind: input, shape index: {}]   ;;  %s51075_s2 = inlined_call_operand.hbm [shape: f32[1,15], index: 2, kind: input, shape index: {}]   ;;  %s51076_s3 = inlined_call_operand.hbm [shape: f32[2,15], index: 3, kind: output, shape index: {}]  }
   0x1   :  { %9 = vsyncpa [#allocation6], 0 }
   0x2   :  { %10 = vsyncpa [#allocation4], 0 }
   0x3   :  { %15 = vsyncadd [#allocation3], 15168  ;;  %s44831_s12 = smov [#allocation5]   ;;  %s44737_s16 = scalar_lea.hbm %s51074_s1, 40448 }
   0x4   :  { %s28_s13 = sshll.u32 %s44831_s12, 4  ;;  %p44738_p0 = scmp.ne.s32.totalorder %s51074_s1, %s44737_s16  ;;  %s29_s13 = int_to_ptr.vmem [resolvable:$true] %s28_s13 }
   0x5   :  { %p44741_p1 = scmp.lt.u32.totalorder %s44737_s16, %s51074_s1 }
   0x7   :  { %p44743_p2 = pnand %p44741_p1, %p44738_p0 }
   0x9   :  { %44746 = shalt.err (!%p44743_p2)
}
   0xa   :  { %s44747_s21 = scalar_lea.vmem %s29_s13, 40448  ;;  %p44752_p4 = scmp.lt.s32.totalorder %s29_s13, %s29_s13 }
   0xb   :  { %p44748_p3 = scmp.ne.s32.totalorder %s29_s13, %s44747_s21  ;;  %p44753_p5 = scmp.lt.s32.totalorder %s44747_s21, %s44747_s21 }
   0xd   :  { %p44754_p6 = por %p44753_p5, %p44752_p4 }
   0xf   :  { %p44755_p7 = pnand %p44754_p6, %p44748_p3 }
  0x11   :  { %44758 = shalt.err (!%p44755_p7)
}
  0x12   :  { %s44832_s22 = smov 20224   ;;  %s44833_s23 = smov 1264  }
  0x13   :  { %34 = dma.hbm_to_vmem [thread:$0]  %s51074_s1, 40448, %s29_s13, [#allocation6], %s44832_s22, %s44832_s22, %s44833_s23  }
  0x14   :  { %s44834_s26 = smov [#allocation2]   ;;  %s44759_s30 = scalar_lea.hbm %s51073_s0, 5056 }
  0x15   :  { %s16_s27 = sshll.u32 %s44834_s26, 4  ;;  %p44760_p8 = scmp.ne.s32.totalorder %s51073_s0, %s44759_s30  ;;  %s17_s27 = int_to_ptr.vmem [resolvable:$true] %s16_s27 }
  0x16   :  { %p44763_p9 = scmp.lt.u32.totalorder %s44759_s30, %s51073_s0 }
  0x18   :  { %p44765_p10 = pnand %p44763_p9, %p44760_p8 }
  0x1a   :  { %44768 = shalt.err (!%p44765_p10)
}
  0x1b   :  { %s44769_s8 = scalar_lea.vmem %s17_s27, 5056  ;;  %s44773_s1 = scalar_lea.vmem %s17_s27, 20224 }
  0x1c   :  { %p44770_p11 = scmp.ne.s32.totalorder %s17_s27, %s44769_s8  ;;  %p44774_p12 = scmp.lt.s32.totalorder %s17_s27, %s17_s27 }
  0x1d   :  { %p44775_p13 = scmp.lt.s32.totalorder %s44773_s1, %s44769_s8 }
  0x1f   :  { %p44776_p0 = por %p44775_p13, %p44774_p12 }
  0x21   :  { %p44777_p1 = pnand %p44776_p0, %p44770_p11 }
  0x23   :  { %44780 = shalt.err (!%p44777_p1)
}
  0x24   :  { %s44835_s9 = smov 5056   ;;  %s44836_s10 = smov 316  }
  0x25   :  { %22 = dma.hbm_to_vmem [thread:$0]  %s51073_s0, 5056, %s17_s27, [#allocation3], %s44835_s9, %s44835_s9, %s44836_s10  }
  0x26   :  { %s44837_s13 = smov [#allocation7]   ;;  %s44781_s17 = scalar_lea.hbm %s51075_s2, 16 }
  0x27   :  { %s41_s14 = sshll.u32 %s44837_s13, 4  ;;  %p44782_p2 = scmp.ne.s32.totalorder %s51075_s2, %s44781_s17  ;;  %s42_s14 = int_to_ptr.vmem [resolvable:$true] %s41_s14 }
  0x28   :  { %p44785_p3 = scmp.lt.u32.totalorder %s44781_s17, %s51075_s2 }
  0x2a   :  { %p44787_p4 = pnand %p44785_p3, %p44782_p2 }
  0x2c   :  { %44790 = shalt.err (!%p44787_p4)
}
  0x2d   :  { %s44791_s22 = scalar_lea.vmem %s42_s14, 16  ;;  %s44795_s0 = scalar_lea.vmem %s42_s14, 32 }
  0x2e   :  { %p44792_p5 = scmp.ne.s32.totalorder %s42_s14, %s44791_s22  ;;  %p44796_p6 = scmp.lt.s32.totalorder %s42_s14, %s42_s14 }
  0x2f   :  { %p44797_p7 = scmp.lt.s32.totalorder %s44795_s0, %s44791_s22 }
  0x31   :  { %p44798_p8 = por %p44797_p7, %p44796_p6 }
  0x33   :  { %p44799_p9 = pnand %p44798_p8, %p44792_p5 }
  0x35   :  { %44802 = shalt.err (!%p44799_p9)
}
  0x36   :  { %44 = dma.hbm_to_vmem [thread:$0]  %s51075_s2, 16, %s42_s14, [#allocation6]  }
  0x37   :  { %44825 = dma.done.wait [#allocation3], 20224  }
  0x38   :  { %44826 = vsyncadd [#allocation3], 4294947072 }
  0x39   :  { %44827 = dma.done.wait [#allocation6], 40464  }
  0x3a   :  { %44828 = vsyncadd [#allocation6], 4294926832  ;;  %v44838_v0 = vmov 1983009808   ;;  %v704_v2 = vlaneseq  ;;  %v293_v5 = vld [vmem:[#allocation5 + $0x278] sm:$0xff]  ;;  %v292_v7 = vld [vmem:[#allocation5 + $0x270] sm:$0xff] }
  0x3b   :  { %v702_v1 = vunpack.c.l.s4 %v44838_v0  ;;  %v451_v6 = vld [vmem:[#allocation5 + $0x768] sm:$0x7f]  ;;  %v21707_v8 = vand.u32 4294901760, %v293_v5  ;;  %v450_v10 = vld [vmem:[#allocation5 + $0x760] sm:$0x7f]  ;;  %v21709_v11 = vand.u32 4294901760, %v292_v7 }
  0x3c   :  { %v705_v4 = vshrl.u32 %v704_v2, 7  ;;  %v21711_v9 = vand.u32 4294901760, %v451_v6  ;;  %v215_v12 = vld [vmem:[#allocation5 + $0x8] sm:$0xff]  ;;  %v21713_v13 = vand.u32 4294901760, %v450_v10  ;;  %v373_v14 = vld [vmem:[#allocation5 + $0x4f8] sm:$0x7f] }
  0x3d   :  { %v703_v3 = vunpack.c.0.s8 %v702_v1  ;;  %v2285_v15 = vand.u32 4294901760, %v215_v12  ;;  %v214_v16 = vld [vmem:[#allocation5] sm:$0xff]  ;;  %v44902_v19 = vsub.f32 %v293_v5, %v21707_v8  ;;  %v372_v21 = vld [vmem:[#allocation5 + $0x4f0] sm:$0x7f]  ;;  %v44908_v23 = vsub.f32 %v292_v7, %v21709_v11  ;;  %v44503_v26 = vld [vmem:[#allocation2 + $0x9c] ss:$316 sps:$4 sm:$0xff]  }
  0x3e   :  { %v44900_v18 = vpack.c.bf16 %v21711_v9, %v21707_v8  ;;  %v44904_v20 = vsub.f32 %v451_v6, %v21711_v9  ;;  %v44906_v22 = vpack.c.bf16 %v21713_v13, %v21709_v11  ;;  %v2289_v24 = vand.u32 4294901760, %v373_v14  ;;  %v44506_v30 = vld [vmem:[#allocation2 + $0x314] ss:$316 sps:$4 sm:$0xff]   ;;  %v44507_v38 = vld [vmem:[#allocation2] ss:$316 sps:$4 sm:$0xff]  }
  0x3f   :  { %v44898_v17 = vsub.s32 %v703_v3, %v705_v4  ;;  %v44910_v25 = vsub.f32 %v215_v12, %v2285_v15  ;;  %v44913_v27 = vsub.f32 %v450_v10, %v21713_v13  ;;  %v2287_v28 = vand.u32 4294901760, %v214_v16  ;;  %v44510_v42 = vld [vmem:[#allocation2 + $0x278] ss:$316 sps:$4 sm:$0xff]   ;;  %v453_v4 = vld [vmem:[#allocation5 + $0x778] sm:$0x7f] }
  0x40   :  { %42597 = vmatprep.subr.bf16.mxu0 %v44900_v18  ;;  %v2291_v29 = vand.u32 4294901760, %v372_v21  ;;  %v44916_v31 = vpack.c.bf16 %v2289_v24, %v2285_v15  ;;  %v44918_v32 = vsub.f32 %v373_v14, %v2289_v24  ;;  %v21793_v34 = vand.u32 4294901760, %v44902_v19  ;;  %v295_v3 = vld [vmem:[#allocation5 + $0x288] sm:$0xff]  ;;  %v294_v11 = vld [vmem:[#allocation5 + $0x280] sm:$0xff]  ;;  %v452_v12 = vld [vmem:[#allocation5 + $0x770] sm:$0x7f] }
  0x41   :  { %42599 = vmatpush1.bf16.xpose.msra.mxu0 %v44906_v22  ;;  %v1398_v33 = vrot.slane %v44503_v26, %v44898_v17  ;;  %v44924_v36 = vsub.f32 %v214_v16, %v2287_v28  ;;  %v1412_v37 = vrot.slane %v44506_v30, %v44898_v17  ;;  %v21805_v40 = vand.u32 4294901760, %v44904_v20  ;;  %v44513_v15 = vld [vmem:[#allocation2 + $0xa0] ss:$316 sps:$4 sm:$0xff]   ;;  %v44515_v16 = vld [vmem:[#allocation2 + $0x318] ss:$316 sps:$4 sm:$0xff]  }
  0x42   :  { %v44922_v35 = vpack.c.bf16 %v2291_v29, %v2287_v28  ;;  %41649 = vmatprep.subr.bf16.mxu1 %v44916_v31  ;;  %v44928_v39 = vsub.f32 %v372_v21, %v2291_v29  ;;  %v21799_v41 = vand.u32 4294901760, %v44908_v23  ;;  %v2371_v43 = vand.u32 4294901760, %v44910_v25 }
  0x43   :  { %v1416_v44 = vcombine.high %v1398_v33, %v1412_v37  ;;  %v1415_v45 = vcombine.low %v1398_v33, %v1412_v37  ;;  %v707_v46 = vrot.slane %v44507_v38, %v44898_v17  ;;  %v2383_v47 = vand.u32 4294901760, %v44918_v32 }
  0x44   :  { %41651 = vmatpush1.bf16.xpose.msra.mxu1 %v44922_v35  ;;  %v42600_v48 = vpack.c.bf16 %v21805_v40, %v21793_v34  ;;  %v21811_v49 = vand.u32 4294901760, %v44913_v27  ;;  %v721_v50 = vrot.slane %v44510_v42, %v44898_v17  ;;  %v2372_v51 = vsub.f32 %v44910_v25, %v2371_v43 }
  0x45   :  { %v44945_v52 = vand.u32 4294901760, %v1416_v44  ;;  %v44947_v53 = vand.u32 4294901760, %v1415_v45  ;;  %v2384_v54 = vsub.f32 %v44918_v32, %v2383_v47  ;;  %v2377_v55 = vand.u32 4294901760, %v44924_v36 }
  0x46   :  { %42601 = vmatprep.subr.bf16.mxu0 %v42600_v48  ;;  %v730_v56 = vcombine.high %v707_v46, %v721_v50  ;;  %v2373_v57 = vand.u32 4294901760, %v2372_v51  ;;  %v729_v58 = vcombine.low %v707_v46, %v721_v50  ;;  %v2389_v59 = vand.u32 4294901760, %v44928_v39 }
  0x47   :  { %v44955_v60 = vsub.f32 %v1416_v44, %v44945_v52  ;;  %v44958_v61 = vsub.f32 %v1415_v45, %v44947_v53  ;;  %v2385_v62 = vand.u32 4294901760, %v2384_v54  ;;  %v2378_v1 = vsub.f32 %v44924_v36, %v2377_v55 }
  0x48   :  { %v44960_v63 = vand.u32 4294901760, %v730_v56  ;;  %v44962_v0 = vand.u32 4294901760, %v729_v58  ;;  %v2390_v2 = vsub.f32 %v44928_v39, %v2389_v59  ;;  %v42602_v7 = vpack.c.bf16 %v21811_v49, %v21799_v41 }
  0x49   :  { %v21777_v5 = vand.u32 4294901760, %v44955_v60  ;;  %v51077_v6 = vand.u32 4294901760, %v44958_v61  ;;  %v41652_v8 = vpack.c.bf16 %v2385_v62, %v2373_v57  ;;  %v22205_v13 = vand.u32 4294901760, %v295_v3 }
  0x4a   :  { %v44977_v9 = vsub.f32 %v730_v56, %v44960_v63  ;;  %v44980_v10 = vsub.f32 %v729_v58, %v44962_v0  ;;  %v22209_v14 = vand.u32 4294901760, %v453_v4  ;;  %v2379_v26 = vand.u32 4294901760, %v2378_v1 }
  0x4b   :  { %22036 = vmatprep.mubr.f32.mxu0 %v21777_v5  ;;  %41653 = vmatprep.subr.bf16.mxu1 %v41652_v8  ;;  %v2391_v28 = vand.u32 4294901760, %v2390_v2  ;;  %v44989_v29 = vsub.f32 %v295_v3, %v22205_v13  ;;  %v22207_v33 = vand.u32 4294901760, %v294_v11  ;;  %v22211_v42 = vand.u32 4294901760, %v452_v12 }
  0x4c   :  { %22040 = vmatmul.mubr.f32.vlgmr.msra.gmra.mrb[0].mxu0 %v51077_v6  ;;  %v2355_v21 = vand.u32 4294901760, %v44977_v9  ;;  %v2361_v24 = vand.u32 4294901760, %v44980_v10  ;;  %v44991_v30 = vsub.f32 %v453_v4, %v22209_v14  ;;  %v1427_v44 = vrot.slane %v44513_v15, %v44898_v17 }
  0x4d   :  { %42603 = vmatpush1.bf16.xpose.msra.mxu0 %v42602_v7  ;;  %22122 = vmatprep.mubr.f32.mxu0 %v44945_v52  ;;  %v1441_v45 = vrot.slane %v44515_v16, %v44898_v17  ;;  %v22291_v46 = vand.u32 4294901760, %v44989_v29  ;;  %v41654_v54 = vpack.c.bf16 %v2391_v28, %v2379_v26  ;;  %v45004_v56 = vsub.f32 %v294_v11, %v22207_v33 }
  0x4e   :  { %v2356_v37 = vsub.f32 %v44977_v9, %v2355_v21  ;;  %v2362_v38 = vsub.f32 %v44980_v10, %v2361_v24  ;;  %42605 = vmatprep.subr.bf16.mxu0 %v44900_v18  ;;  %v22303_v48 = vand.u32 4294901760, %v44991_v30  ;;  %v45006_v57 = vsub.f32 %v452_v12, %v22211_v42 }
  0x4f   :  { %v1450_v58 = vcombine.high %v1427_v44, %v1441_v45  ;;  %v1449_v62 = vcombine.low %v1427_v44, %v1441_v45  ;;  %v41656_v1 = vpack.c.bf16 %v44918_v32, %v44910_v25  ;;  %v45010_v2 = vpack.c.bf16 %v22209_v14, %v22205_v13  ;;  %v216_v32 = vld [vmem:[#allocation5 + $0x10] sm:$0xff] }
  0x50   :  { %v2357_v50 = vand.u32 4294901760, %v2356_v37  ;;  %v2363_v51 = vand.u32 4294901760, %v2362_v38  ;;  %v22292_v7 = vsub.f32 %v44989_v29, %v22291_v46  ;;  %v22304_v8 = vsub.f32 %v44991_v30, %v22303_v48 }
  0x51   :  { %v45012_v3 = vand.u32 4294901760, %v1450_v58  ;;  %v45014_v4 = vand.u32 4294901760, %v1449_v62  ;;  %v22297_v13 = vand.u32 4294901760, %v45004_v56  ;;  %v22309_v14 = vand.u32 4294901760, %v45006_v57 }
  0x52   :  { %2358 = vmatprep.mubr.f32.mxu1 %v2357_v50  ;;  %v22293_v16 = vand.u32 4294901760, %v22292_v7  ;;  %v22305_v26 = vand.u32 4294901760, %v22304_v8  ;;  %v41658_v28 = vpack.c.bf16 %v44928_v39, %v44924_v36  ;;  %v45039_v38 = vpack.c.bf16 %v22211_v42, %v22207_v33  ;;  %v44517_v39 = vld [vmem:[#allocation2 + $0xa4] ss:$316 sps:$4 sm:$0xff]  }
  0x53   :  { %2364 = vmatmul.mubr.f32.vlgmr.msra.gmra.mrb[0].mxu1 %v2363_v51  ;;  %v45026_v11 = vsub.f32 %v1450_v58, %v45012_v3  ;;  %v45029_v12 = vsub.f32 %v1449_v62, %v45014_v4  ;;  %v22298_v45 = vsub.f32 %v45004_v56, %v22297_v13  ;;  %v22310_v50 = vsub.f32 %v45006_v57, %v22309_v14  ;;  %v44509_v51 = vld [vmem:[#allocation2 + $0x4] ss:$316 sps:$4 sm:$0xff]  }
  0x54   :  { %41655 = vmatpush1.bf16.xpose.msra.mxu1 %v41654_v54  ;;  %22124 = vmatmul.mubr.f32.vlgmr.msra.gmra.mrb[0].mxu0 %v44947_v53  ;;  %v44512_v54 = vld [vmem:[#allocation2 + $0x27c] ss:$316 sps:$4 sm:$0xff]   ;;  %v42612_v62 = vpack.c.bf16 %v22305_v26, %v22293_v16  ;;  %v217_v16 = vld [vmem:[#allocation5 + $0x18] sm:$0xff]  ;;  %v41664_v6 = vpack.c.bf16 %v2383_v47, %v2371_v43  ;;  %v374_v43 = vld [vmem:[#allocation5 + $0x500] sm:$0x7f]  ;;  %v41666_v47 = vpack.c.bf16 %v2389_v59, %v2377_v55  ;;  %v2785_v36 = vand.u32 4294901760, %v216_v32 }
  0x55   :  { %42607 = vmatpush1.bf16.xpose.msra.mxu0 %v44906_v22  ;;  %2454 = vmatprep.mubr.f32.mxu1 %v44960_v63  ;;  %v22275_v15 = vand.u32 4294901760, %v45026_v11  ;;  %v22281_v37 = vand.u32 4294901760, %v45029_v12  ;;  %v22299_v42 = vand.u32 4294901760, %v22298_v45  ;;  %v375_v26 = vld [vmem:[#allocation5 + $0x508] sm:$0x7f]  ;;  %v42616_v45 = vpack.c.bf16 %v44991_v30, %v44989_v29 }
  0x56   :  { %41657 = vmatprep.subr.bf16.mxu1 %v41656_v1  ;;  %22198 = vmatprep.mubr.f32.mxu0 %v44945_v52  ;;  %v22311_v1 = vand.u32 4294901760, %v22310_v50  ;;  %v2783_v25 = vand.u32 4294901760, %v217_v16  ;;  %v44518_v55 = vld [vmem:[#allocation2 + $0x31c] ss:$316 sps:$4 sm:$0xff]   ;;  %vm2276_vm0 = vcmask 719872   ;;  %vm41627_vm1 = vcmask 121856  }
  0x57   :  { %42609 = vmatprep.subr.bf16.mxu0 %v45010_v2  ;;  %v22276_v44 = vsub.f32 %v45026_v11, %v22275_v15  ;;  %v22282_v33 = vsub.f32 %v45029_v12, %v22281_v37 }
  0x58   :  { %v42614_v8 = vpack.c.bf16 %v22311_v1, %v22299_v42  ;;  %v45097_v42 = vsub.f32 %v216_v32, %v2785_v36  ;;  %v455_v32 = vld [vmem:[#allocation5 + $0x788] sm:$0x7f] }
  0x59   :  { %v22277_v58 = vand.u32 4294901760, %v22276_v44  ;;  %v22283_v7 = vand.u32 4294901760, %v22282_v33  ;;  %v728_v44 = vrot.slane %v44512_v54, %v44898_v17  ;;  %v42618_v54 = vpack.c.bf16 %v45006_v57, %v45004_v56 }
  0x5b   :  { %2456 = vmatmul.mubr.f32.vlgmr.msra.gmra.mrb[0].mxu1 %v44962_v0 }
  0x5c   :  { %41659 = vmatpush1.bf16.xpose.msra.mxu1 %v41658_v28  ;;  %22200 = vmatmul.mubr.f32.vlgmr.msra.gmra.mrb[0].mxu0 %v44947_v53  ;;  %v714_v28 = vrot.slane %v44509_v51, %v44898_v17  ;;  %v2787_v51 = vand.u32 4294901760, %v375_v26 }
  0x5d   :  { %42611 = vmatpush1.bf16.xpose.msra.mxu0 %v45039_v38  ;;  %2535 = vmatprep.mubr.f32.mxu1 %v44977_v9  ;;  %v45079_v9 = vsub.f32 %v217_v16, %v2783_v25 }
  0x5e   :  { %41661 = vmatprep.subr.bf16.mxu1 %v44916_v31  ;;  %22278 = vmatprep.mubr.f32.mxu0 %v22277_v58  ;;  %v732_v50 = vcombine.high %v714_v28, %v728_v44 }
  0x5f   :  { %42613 = vmatprep.subr.bf16.mxu0 %v42612_v62  ;;  %v2789_v62 = vand.u32 4294901760, %v374_v43 }
  0x60   :  { %v45077_v58 = vand.u32 4294901760, %v732_v50 }
  0x61   :  { %v45099_v1 = vsub.f32 %v374_v43, %v2789_v62 }
  0x62   :  { %v45088_v59 = vsub.f32 %v732_v50, %v45077_v58 }
  0x63   :  { %2538 = vmatmul.mubr.f32.vlgmr.msra.gmra.mrb[0].mxu1 %v44980_v10  ;;  %v2869_v10 = vand.u32 4294901760, %v45079_v9 }
  0x64   :  { %41663 = vmatpush1.bf16.xpose.msra.mxu1 %v44922_v35  ;;  %22284 = vmatmul.mubr.f32.vlgmr.msra.gmra.mrb[0].mxu0 %v22283_v7  ;;  %v45101_v7 = vpack.c.bf16 %v2787_v51, %v2783_v25  ;;  %v2875_v25 = vand.u32 4294901760, %v45097_v42 }
  0x65   :  { %42615 = vmatpush1.bf16.xpose.msra.mxu0 %v42614_v8  ;;  %2614 = vmatprep.mubr.f32.mxu1 %v2355_v21  ;;  %v731_v21 = vcombine.low %v714_v28, %v728_v44  ;;  %v2853_v8 = vand.u32 4294901760, %v45088_v59  ;;  %v1434_v28 = vrot.slane %v44517_v39, %v44898_v17  ;;  %v1448_v44 = vrot.slane %v44518_v55, %v44898_v17 }
  0x66   :  { %41665 = vmatprep.subr.bf16.mxu1 %v41664_v6  ;;  %22374 = vmatprep.mubr.f32.mxu0 %v45012_v3  ;;  %v45081_v6 = vsub.f32 %v375_v26, %v2787_v51  ;;  %v297_v26 = vld [vmem:[#allocation5 + $0x298] sm:$0xff]  ;;  %v2887_v51 = vand.u32 4294901760, %v45099_v1  ;;  %v42626_v39 = vpack.c.bf16 %v22309_v14, %v22297_v13 }
  0x67   :  { %42617 = vmatprep.subr.bf16.mxu0 %v42616_v45  ;;  %v45095_v33 = vand.u32 4294901760, %v731_v21  ;;  %v42624_v45 = vpack.c.bf16 %v22303_v48, %v22291_v46  ;;  %v2854_v29 = vsub.f32 %v45088_v59, %v2853_v8  ;;  %v1452_v46 = vcombine.high %v1434_v28, %v1448_v44 }
  0x68   :  { %v22703_v43 = vand.u32 4294901760, %v297_v26  ;;  %v1451_v13 = vcombine.low %v1434_v28, %v1448_v44 }
  0x69   :  { %v45118_v50 = vsub.f32 %v731_v21, %v45095_v33  ;;  %v2888_v21 = vsub.f32 %v45099_v1, %v2887_v51  ;;  %v2855_v55 = vand.u32 4294901760, %v2854_v29 }
  0x6b   :  { %2618 = vmatmul.mubr.f32.vlgmr.msra.gmra.mrb[0].mxu1 %v2361_v24  ;;  %v2881_v24 = vand.u32 4294901760, %v45081_v6  ;;  %v2859_v48 = vand.u32 4294901760, %v45118_v50  ;;  %v2889_v57 = vand.u32 4294901760, %v2888_v21 }
  0x6c   :  { %41667 = vmatpush1.bf16.xpose.msra.mxu1 %v41666_v47  ;;  %22376 = vmatmul.mubr.f32.vlgmr.msra.gmra.mrb[0].mxu0 %v45014_v4  ;;  %v22707_v47 = vand.u32 4294901760, %v455_v32 }
  0x6d   :  { %42619 = vmatpush1.bf16.xpose.msra.mxu0 %v42618_v54  ;;  %2700 = vmatprep.mubr.f32.mxu1 %v44960_v63  ;;  %v2882_v16 = vsub.f32 %v45081_v6, %v2881_v24  ;;  %v45133_v54 = vpack.c.bf16 %v2789_v62, %v2785_v36  ;;  %v2860_v36 = vsub.f32 %v45118_v50, %v2859_v48 }
  0x6e   :  { %41669 = vmatprep.subr.bf16.mxu1 %v44916_v31  ;;  %22455 = vmatprep.mubr.f32.mxu0 %v45026_v11  ;;  %v2870_v31 = vsub.f32 %v45079_v9, %v2869_v10  ;;  %v296_v11 = vld [vmem:[#allocation5 + $0x290] sm:$0xff]  ;;  %v45151_v62 = vsub.f32 %v297_v26, %v22703_v43 }
  0x6f   :  { %42621 = vmatprep.subr.bf16.mxu0 %v45010_v2  ;;  %v2883_v30 = vand.u32 4294901760, %v2882_v16  ;;  %v45145_v16 = vand.u32 4294901760, %v1452_v46  ;;  %v22705_v14 = vand.u32 4294901760, %v296_v11 }
  0x70   :  { %v22789_v29 = vand.u32 4294901760, %v45151_v62 }
  0x71   :  { %v45160_v26 = vsub.f32 %v1452_v46, %v45145_v16  ;;  %v45167_v28 = vsub.f32 %v296_v11, %v22705_v14 }
  0x73   :  { %2702 = vmatmul.mubr.f32.vlgmr.msra.gmra.mrb[0].mxu1 %v44962_v0  ;;  %v22773_v46 = vand.u32 4294901760, %v45160_v26 }
  0x74   :  { %41671 = vmatpush1.bf16.xpose.msra.mxu1 %v44922_v35  ;;  %22458 = vmatmul.mubr.f32.vlgmr.msra.gmra.mrb[0].mxu0 %v45029_v12  ;;  %v2871_v35 = vand.u32 4294901760, %v2870_v31 }
  0x75   :  { %42623 = vmatpush1.bf16.xpose.msra.mxu0 %v45039_v38  ;;  %2776 = vmatprep.mubr.f32.mxu1 %v44960_v63  ;;  %v2876_v63 = vsub.f32 %v45097_v42, %v2875_v25 }
  0x76   :  { %41673 = vmatprep.subr.bf16.mxu1 %v45101_v7  ;;  %22534 = vmatprep.mubr.f32.mxu0 %v22275_v15  ;;  %v454_v15 = vld [vmem:[#allocation5 + $0x780] sm:$0x7f]  ;;  %v41676_v31 = vpack.c.bf16 %v2883_v30, %v2871_v35  ;;  %v45165_v35 = vand.u32 4294901760, %v1451_v13  ;;  %v41680_v30 = vpack.c.bf16 %v45081_v6, %v45079_v9 }
  0x77   :  { %42625 = vmatprep.subr.bf16.mxu0 %v42624_v45  ;;  %v45153_v45 = vsub.f32 %v455_v32, %v22707_v47  ;;  %v2877_v56 = vand.u32 4294901760, %v2876_v63  ;;  %v2861_v32 = vand.u32 4294901760, %v2860_v36  ;;  %v45174_v63 = vpack.c.bf16 %v22707_v47, %v22703_v43 }
  0x78   :  { %v45184_v11 = vsub.f32 %v1451_v13, %v45165_v35  ;;  %v22795_v43 = vand.u32 4294901760, %v45167_v28 }
  0x79   :  { %v22801_v12 = vand.u32 4294901760, %v45153_v45 }
  0x7b   :  { %2778 = vmatmul.mubr.f32.vlgmr.msra.gmra.mrb[0].mxu1 %v44962_v0  ;;  %v22709_v0 = vand.u32 4294901760, %v454_v15  ;;  %v22802_v21 = vsub.f32 %v45153_v45, %v22801_v12 }
  0x7c   :  { %41675 = vmatpush1.bf16.xpose.msra.mxu1 %v45133_v54  ;;  %22538 = vmatmul.mubr.f32.vlgmr.msra.gmra.mrb[0].mxu0 %v22281_v37  ;;  %v41678_v37 = vpack.c.bf16 %v2889_v57, %v2877_v56  ;;  %v22796_v56 = vsub.f32 %v45167_v28, %v22795_v43 }
  0x7d   :  { %42627 = vmatpush1.bf16.xpose.msra.mxu0 %v42626_v39  ;;  %2856 = vmatprep.mubr.f32.mxu1 %v2855_v55  ;;  %v45169_v44 = vsub.f32 %v454_v15, %v22709_v0  ;;  %v22774_v15 = vsub.f32 %v45160_v26, %v22773_v46  ;;  %v22803_v55 = vand.u32 4294901760, %v22802_v21  ;;  %v45198_v36 = vpack.c.bf16 %v22709_v0, %v22705_v14 }
  0x7e   :  { %41677 = vmatprep.subr.bf16.mxu1 %v41676_v31  ;;  %22620 = vmatprep.mubr.f32.mxu0 %v45012_v3  ;;  %v22779_v31 = vand.u32 4294901760, %v45184_v11  ;;  %v22797_v0 = vand.u32 4294901760, %v22796_v56  ;;  %v377_v56 = vld [vmem:[#allocation5 + $0x518] sm:$0x7f] }
  0x7f   :  { %42629 = vmatprep.subr.bf16.mxu0 %v45010_v2  ;;  %v22790_v2 = vsub.f32 %v45151_v62, %v22789_v29  ;;  %v22807_v47 = vand.u32 4294901760, %v45169_v44  ;;  %v22775_v57 = vand.u32 4294901760, %v22774_v15  ;;  %v3285_v6 = vand.u32 4294901760, %v377_v56 }
  0x80   :  { %v22780_v14 = vsub.f32 %v45184_v11, %v22779_v31 }
  0x81   :  { %v22791_v39 = vand.u32 4294901760, %v22790_v2 }
  0x82   :  { %v22781_v2 = vand.u32 4294901760, %v22780_v14 }
  0x83   :  { %2862 = vmatmul.mubr.f32.vlgmr.msra.gmra.mrb[0].mxu1 %v2861_v32  ;;  %v42636_v13 = vpack.c.bf16 %v22803_v55, %v22791_v39  ;;  %v41688_v39 = vpack.c.bf16 %v2881_v24, %v2869_v10  ;;  %v42640_v55 = vpack.c.bf16 %v45153_v45, %v45151_v62  ;;  %v41690_v10 = vpack.c.bf16 %v2887_v51, %v2875_v25 }
  0x84   :  { %41679 = vmatpush1.bf16.xpose.msra.mxu1 %v41678_v37  ;;  %22622 = vmatmul.mubr.f32.vlgmr.msra.gmra.mrb[0].mxu0 %v45014_v4  ;;  %v44519_v37 = vld [vmem:[#allocation2 + $0x8] ss:$316 sps:$4 sm:$0xff]   ;;  %v42642_v24 = vpack.c.bf16 %v45169_v44, %v45167_v28 }
  0x85   :  { %42631 = vmatpush1.bf16.xpose.msra.mxu0 %v45039_v38  ;;  %2952 = vmatprep.mubr.f32.mxu1 %v45077_v58  ;;  %v41682_v38 = vpack.c.bf16 %v45099_v1, %v45097_v42 }
  0x86   :  { %41681 = vmatprep.subr.bf16.mxu1 %v41680_v30  ;;  %22696 = vmatprep.mubr.f32.mxu0 %v45012_v3  ;;  %v22808_v3 = vsub.f32 %v45169_v44, %v22807_v47  ;;  %v44521_v30 = vld [vmem:[#allocation2 + $0x280] ss:$316 sps:$4 sm:$0xff]  }
  0x87   :  { %42633 = vmatprep.subr.bf16.mxu0 %v45174_v63  ;;  %v757_v15 = vrot.slane %v44521_v30, %v44898_v17 }
  0x88   :  { %v22809_v32 = vand.u32 4294901760, %v22808_v3 }
  0x8a   :  { %v42638_v21 = vpack.c.bf16 %v22809_v32, %v22797_v0  ;;  %v44525_v32 = vld [vmem:[#allocation2 + $0x320] ss:$316 sps:$4 sm:$0xff]  }
  0x8b   :  { %2954 = vmatmul.mubr.f32.vlgmr.msra.gmra.mrb[0].mxu1 %v45095_v33 }
  0x8c   :  { %41683 = vmatpush1.bf16.xpose.msra.mxu1 %v41682_v38  ;;  %22698 = vmatmul.mubr.f32.vlgmr.msra.gmra.mrb[0].mxu0 %v45014_v4  ;;  %v743_v4 = vrot.slane %v44519_v37, %v44898_v17  ;;  %v219_v38 = vld [vmem:[#allocation5 + $0x28] sm:$0xff] }
  0x8d   :  { %42635 = vmatpush1.bf16.xpose.msra.mxu0 %v45198_v36  ;;  %3033 = vmatprep.mubr.f32.mxu1 %v45088_v59  ;;  %v3281_v9 = vand.u32 4294901760, %v219_v38 }
  0x8e   :  { %41685 = vmatprep.subr.bf16.mxu1 %v45101_v7  ;;  %22776 = vmatprep.mubr.f32.mxu0 %v22775_v57  ;;  %v766_v3 = vcombine.high %v743_v4, %v757_v15  ;;  %v218_v57 = vld [vmem:[#allocation5 + $0x20] sm:$0xff]  ;;  %v765_v0 = vcombine.low %v743_v4, %v757_v15 }
  0x8f   :  { %42637 = vmatprep.subr.bf16.mxu0 %v42636_v13  ;;  %v376_v13 = vld [vmem:[#allocation5 + $0x510] sm:$0x7f]  ;;  %v45235_v59 = vsub.f32 %v219_v38, %v3281_v9  ;;  %v3283_v42 = vand.u32 4294901760, %v218_v57  ;;  %v42648_v38 = vpack.c.bf16 %v22801_v12, %v22789_v29 }
  0x90   :  { %v45233_v14 = vand.u32 4294901760, %v766_v3  ;;  %v3287_v1 = vand.u32 4294901760, %v376_v13  ;;  %v45251_v37 = vand.u32 4294901760, %v765_v0 }
  0x91   :  { %v3367_v51 = vand.u32 4294901760, %v45235_v59  ;;  %v45253_v30 = vsub.f32 %v218_v57, %v3283_v42 }
  0x92   :  { %v45244_v25 = vsub.f32 %v766_v3, %v45233_v14 }
  0x93   :  { %3036 = vmatmul.mubr.f32.vlgmr.msra.gmra.mrb[0].mxu1 %v45118_v50  ;;  %v3368_v4 = vsub.f32 %v45235_v59, %v3367_v51  ;;  %v3373_v3 = vand.u32 4294901760, %v45253_v30 }
  0x94   :  { %41687 = vmatpush1.bf16.xpose.msra.mxu1 %v45133_v54  ;;  %22782 = vmatmul.mubr.f32.vlgmr.msra.gmra.mrb[0].mxu0 %v22781_v2  ;;  %v45255_v2 = vsub.f32 %v376_v13, %v3287_v1  ;;  %v45289_v13 = vpack.c.bf16 %v3287_v1, %v3283_v42 }
  0x95   :  { %42639 = vmatpush1.bf16.xpose.msra.mxu0 %v42638_v21  ;;  %3112 = vmatprep.mubr.f32.mxu1 %v2853_v8  ;;  %v45237_v8 = vsub.f32 %v377_v56, %v3285_v6  ;;  %v45257_v21 = vpack.c.bf16 %v3285_v6, %v3281_v9  ;;  %v45274_v56 = vsub.f32 %v765_v0, %v45251_v37  ;;  %v299_v6 = vld [vmem:[#allocation5 + $0x2a8] sm:$0xff] }
  0x96   :  { %41689 = vmatprep.subr.bf16.mxu1 %v41688_v39  ;;  %22872 = vmatprep.mubr.f32.mxu0 %v45145_v16  ;;  %v3385_v9 = vand.u32 4294901760, %v45255_v2 }
  0x97   :  { %42641 = vmatprep.subr.bf16.mxu0 %v42640_v55  ;;  %v3379_v50 = vand.u32 4294901760, %v45237_v8  ;;  %v1477_v55 = vrot.slane %v44525_v32, %v44898_v17  ;;  %v3357_v12 = vand.u32 4294901760, %v45274_v56  ;;  %v298_v32 = vld [vmem:[#allocation5 + $0x2a0] sm:$0xff] }
  0x98   :  { %v3386_v0 = vsub.f32 %v45255_v2, %v3385_v9 }
  0x99   :  { %v3380_v15 = vsub.f32 %v45237_v8, %v3379_v50  ;;  %v3358_v42 = vsub.f32 %v45274_v56, %v3357_v12 }
  0x9a   :  { %v3387_v44 = vand.u32 4294901760, %v3386_v0 }
  0x9b   :  { %3116 = vmatmul.mubr.f32.vlgmr.msra.gmra.mrb[0].mxu1 %v2859_v48  ;;  %v44523_v48 = vld [vmem:[#allocation2 + $0xa8] ss:$316 sps:$4 sm:$0xff]   ;;  %v3381_v45 = vand.u32 4294901760, %v3380_v15 }
  0x9c   :  { %41691 = vmatpush1.bf16.xpose.msra.mxu1 %v41690_v10  ;;  %22874 = vmatmul.mubr.f32.vlgmr.msra.gmra.mrb[0].mxu0 %v45165_v35  ;;  %v1463_v39 = vrot.slane %v44523_v48, %v44898_v17  ;;  %v457_v10 = vld [vmem:[#allocation5 + $0x798] sm:$0x7f] }
  0x9d   :  { %42643 = vmatpush1.bf16.xpose.msra.mxu0 %v42642_v24  ;;  %3198 = vmatprep.mubr.f32.mxu1 %v45077_v58  ;;  %v23201_v24 = vand.u32 4294901760, %v299_v6  ;;  %v23205_v57 = vand.u32 4294901760, %v457_v10 }
  0x9e   :  { %41693 = vmatprep.subr.bf16.mxu1 %v45101_v7  ;;  %22953 = vmatprep.mubr.f32.mxu0 %v45160_v26  ;;  %v3351_v7 = vand.u32 4294901760, %v45244_v25  ;;  %v1486_v29 = vcombine.high %v1463_v39, %v1477_v55  ;;  %v42650_v26 = vpack.c.bf16 %v22807_v47, %v22795_v43  ;;  %v1485_v43 = vcombine.low %v1463_v39, %v1477_v55 }
  0x9f   :  { %42645 = vmatprep.subr.bf16.mxu0 %v45174_v63  ;;  %v45307_v1 = vsub.f32 %v299_v6, %v23201_v24  ;;  %v23203_v47 = vand.u32 4294901760, %v298_v32 }
  0xa0   :  { %v3352_v62 = vsub.f32 %v45244_v25, %v3351_v7  ;;  %v45301_v15 = vand.u32 4294901760, %v1486_v29 }
  0xa1   :  { %v45323_v39 = vsub.f32 %v298_v32, %v23203_v47 }
  0xa2   :  { %v45316_v6 = vsub.f32 %v1486_v29, %v45301_v15 }
  0xa3   :  { %3200 = vmatmul.mubr.f32.vlgmr.msra.gmra.mrb[0].mxu1 %v45095_v33 }
  0xa4   :  { %41695 = vmatpush1.bf16.xpose.msra.mxu1 %v45133_v54  ;;  %22956 = vmatmul.mubr.f32.vlgmr.msra.gmra.mrb[0].mxu0 %v45184_v11  ;;  %v3369_v54 = vand.u32 4294901760, %v3368_v4  ;;  %v456_v4 = vld [vmem:[#allocation5 + $0x790] sm:$0x7f]  ;;  %v23271_v29 = vand.u32 4294901760, %v45316_v6 }
  0xa5   :  { %42647 = vmatpush1.bf16.xpose.msra.mxu0 %v45198_v36  ;;  %3274 = vmatprep.mubr.f32.mxu1 %v45077_v58  ;;  %v3374_v58 = vsub.f32 %v45253_v30, %v3373_v3 }
  0xa6   :  { %41697 = vmatprep.subr.bf16.mxu1 %v45257_v21  ;;  %23032 = vmatprep.mubr.f32.mxu0 %v22773_v46  ;;  %v3353_v46 = vand.u32 4294901760, %v3352_v62  ;;  %v41700_v48 = vpack.c.bf16 %v3381_v45, %v3369_v54  ;;  %v23287_v62 = vand.u32 4294901760, %v45307_v1  ;;  %v45321_v54 = vand.u32 4294901760, %v1485_v43 }
  0xa7   :  { %42649 = vmatprep.subr.bf16.mxu0 %v42648_v38  ;;  %v45309_v38 = vsub.f32 %v457_v10, %v23205_v57  ;;  %v3375_v28 = vand.u32 4294901760, %v3374_v58  ;;  %v3359_v10 = vand.u32 4294901760, %v3358_v42  ;;  %v41704_v45 = vpack.c.bf16 %v45237_v8, %v45235_v59 }
  0xa8   :  { %v45330_v58 = vpack.c.bf16 %v23205_v57, %v23201_v24  ;;  %v23293_v24 = vand.u32 4294901760, %v45323_v39 }
  0xa9   :  { %v23299_v11 = vand.u32 4294901760, %v45309_v38 }
  0xab   :  { %3276 = vmatmul.mubr.f32.vlgmr.msra.gmra.mrb[0].mxu1 %v45095_v33  ;;  %v23207_v33 = vand.u32 4294901760, %v456_v4  ;;  %v23300_v0 = vsub.f32 %v45309_v38, %v23299_v11 }
  0xac   :  { %41699 = vmatpush1.bf16.xpose.msra.mxu1 %v45289_v13  ;;  %23036 = vmatmul.mubr.f32.vlgmr.msra.gmra.mrb[0].mxu0 %v22779_v31  ;;  %v41702_v31 = vpack.c.bf16 %v3387_v44, %v3375_v28  ;;  %v23294_v28 = vsub.f32 %v45323_v39, %v23293_v24 }
  0xad   :  { %42651 = vmatpush1.bf16.xpose.msra.mxu0 %v42650_v26  ;;  %3354 = vmatprep.mubr.f32.mxu1 %v3353_v46  ;;  %v45325_v55 = vsub.f32 %v456_v4, %v23207_v33  ;;  %v45340_v26 = vsub.f32 %v1485_v43, %v45321_v54  ;;  %v23272_v46 = vsub.f32 %v45316_v6, %v23271_v29  ;;  %v23301_v32 = vand.u32 4294901760, %v23300_v0 }
  0xae   :  { %41701 = vmatprep.subr.bf16.mxu1 %v41700_v48  ;;  %23118 = vmatprep.mubr.f32.mxu0 %v45145_v16  ;;  %v45354_v42 = vpack.c.bf16 %v23207_v33, %v23203_v47  ;;  %v23295_v33 = vand.u32 4294901760, %v23294_v28  ;;  %v379_v28 = vld [vmem:[#allocation5 + $0x528] sm:$0x7f] }
  0xaf   :  { %42653 = vmatprep.subr.bf16.mxu0 %v45174_v63  ;;  %v23288_v63 = vsub.f32 %v45307_v1, %v23287_v62  ;;  %v23305_v57 = vand.u32 4294901760, %v45325_v55  ;;  %v23277_v4 = vand.u32 4294901760, %v45340_v26  ;;  %v23273_v44 = vand.u32 4294901760, %v23272_v46 }
  0xb0   :  { %v3783_v8 = vand.u32 4294901760, %v379_v28 }
  0xb1   :  { %v23289_v48 = vand.u32 4294901760, %v23288_v63  ;;  %v23278_v47 = vsub.f32 %v45340_v26, %v23277_v4 }
  0xb3   :  { %3360 = vmatmul.mubr.f32.vlgmr.msra.gmra.mrb[0].mxu1 %v3359_v10  ;;  %v42660_v43 = vpack.c.bf16 %v23301_v32, %v23289_v48  ;;  %v23279_v63 = vand.u32 4294901760, %v23278_v47  ;;  %v41712_v48 = vpack.c.bf16 %v3379_v50, %v3367_v51  ;;  %v42664_v32 = vpack.c.bf16 %v45309_v38, %v45307_v1 }
  0xb4   :  { %41703 = vmatpush1.bf16.xpose.msra.mxu1 %v41702_v31  ;;  %23120 = vmatmul.mubr.f32.vlgmr.msra.gmra.mrb[0].mxu0 %v45165_v35  ;;  %v44527_v31 = vld [vmem:[#allocation2 + $0xc] ss:$316 sps:$4 sm:$0xff]   ;;  %v41714_v51 = vpack.c.bf16 %v3385_v9, %v3373_v3  ;;  %v42666_v50 = vpack.c.bf16 %v45325_v55, %v45323_v39 }
  0xb5   :  { %42655 = vmatpush1.bf16.xpose.msra.mxu0 %v45198_v36  ;;  %3450 = vmatprep.mubr.f32.mxu1 %v45233_v14  ;;  %v41706_v36 = vpack.c.bf16 %v45255_v2, %v45253_v30 }
  0xb6   :  { %41705 = vmatprep.subr.bf16.mxu1 %v41704_v45  ;;  %23194 = vmatprep.mubr.f32.mxu0 %v45145_v16  ;;  %v23306_v16 = vsub.f32 %v45325_v55, %v23305_v57  ;;  %v44528_v45 = vld [vmem:[#allocation2 + $0x284] ss:$316 sps:$4 sm:$0xff]  }
  0xb7   :  { %42657 = vmatprep.subr.bf16.mxu0 %v45330_v58  ;;  %v764_v46 = vrot.slane %v44528_v45, %v44898_v17 }
  0xb8   :  { %v23307_v10 = vand.u32 4294901760, %v23306_v16 }
  0xba   :  { %v42662_v0 = vpack.c.bf16 %v23307_v10, %v23295_v33  ;;  %v44530_v10 = vld [vmem:[#allocation2 + $0x324] ss:$316 sps:$4 sm:$0xff]  }
  0xbb   :  { %3452 = vmatmul.mubr.f32.vlgmr.msra.gmra.mrb[0].mxu1 %v45251_v37 }
  0xbc   :  { %41707 = vmatpush1.bf16.xpose.msra.mxu1 %v41706_v36  ;;  %23196 = vmatmul.mubr.f32.vlgmr.msra.gmra.mrb[0].mxu0 %v45165_v35  ;;  %v750_v35 = vrot.slane %v44527_v31, %v44898_v17  ;;  %v221_v36 = vld [vmem:[#allocation5 + $0x38] sm:$0xff] }
  0xbd   :  { %42659 = vmatpush1.bf16.xpose.msra.mxu0 %v45354_v42  ;;  %3531 = vmatprep.mubr.f32.mxu1 %v45244_v25  ;;  %v3779_v59 = vand.u32 4294901760, %v221_v36 }
  0xbe   :  { %41709 = vmatprep.subr.bf16.mxu1 %v45257_v21  ;;  %23274 = vmatprep.mubr.f32.mxu0 %v23273_v44  ;;  %v768_v16 = vcombine.high %v750_v35, %v764_v46  ;;  %v220_v44 = vld [vmem:[#allocation5 + $0x30] sm:$0xff]  ;;  %v767_v33 = vcombine.low %v750_v35, %v764_v46 }
  0xbf   :  { %42661 = vmatprep.subr.bf16.mxu0 %v42660_v43  ;;  %v378_v43 = vld [vmem:[#allocation5 + $0x520] sm:$0x7f]  ;;  %v45391_v25 = vsub.f32 %v221_v36, %v3779_v59  ;;  %v3781_v30 = vand.u32 4294901760, %v220_v44  ;;  %v42672_v36 = vpack.c.bf16 %v23299_v11, %v23287_v62 }
  0xc0   :  { %v45389_v47 = vand.u32 4294901760, %v768_v16  ;;  %v3785_v2 = vand.u32 4294901760, %v378_v43  ;;  %v45407_v31 = vand.u32 4294901760, %v767_v33 }
  0xc1   :  { %v3865_v9 = vand.u32 4294901760, %v45391_v25  ;;  %v45409_v45 = vsub.f32 %v220_v44, %v3781_v30 }
  0xc2   :  { %v45400_v3 = vsub.f32 %v768_v16, %v45389_v47 }
  0xc3   :  { %3534 = vmatmul.mubr.f32.vlgmr.msra.gmra.mrb[0].mxu1 %v45274_v56  ;;  %v3866_v35 = vsub.f32 %v45391_v25, %v3865_v9  ;;  %v3871_v16 = vand.u32 4294901760, %v45409_v45 }
  0xc4   :  { %41711 = vmatpush1.bf16.xpose.msra.mxu1 %v45289_v13  ;;  %23280 = vmatmul.mubr.f32.vlgmr.msra.gmra.mrb[0].mxu0 %v23279_v63  ;;  %v45411_v63 = vsub.f32 %v378_v43, %v3785_v2  ;;  %v45445_v43 = vpack.c.bf16 %v3785_v2, %v3781_v30 }
  0xc5   :  { %42663 = vmatpush1.bf16.xpose.msra.mxu0 %v42662_v0  ;;  %3610 = vmatprep.mubr.f32.mxu1 %v3351_v7  ;;  %v45393_v7 = vsub.f32 %v379_v28, %v3783_v8  ;;  %v45413_v0 = vpack.c.bf16 %v3783_v8, %v3779_v59  ;;  %v45430_v28 = vsub.f32 %v767_v33, %v45407_v31  ;;  %v301_v8 = vld [vmem:[#allocation5 + $0x2b8] sm:$0xff] }
  0xc6   :  { %41713 = vmatprep.subr.bf16.mxu1 %v41712_v48  ;;  %23370 = vmatprep.mubr.f32.mxu0 %v45301_v15  ;;  %v3883_v59 = vand.u32 4294901760, %v45411_v63 }
  0xc7   :  { %42665 = vmatprep.subr.bf16.mxu0 %v42664_v32  ;;  %v3877_v56 = vand.u32 4294901760, %v45393_v7  ;;  %v1484_v32 = vrot.slane %v44530_v10, %v44898_v17  ;;  %v3855_v11 = vand.u32 4294901760, %v45430_v28  ;;  %v300_v10 = vld [vmem:[#allocation5 + $0x2b0] sm:$0xff] }
  0xc8   :  { %v3884_v33 = vsub.f32 %v45411_v63, %v3883_v59 }
  0xc9   :  { %v3878_v46 = vsub.f32 %v45393_v7, %v3877_v56  ;;  %v3856_v30 = vsub.f32 %v45430_v28, %v3855_v11 }
  0xca   :  { %v3885_v55 = vand.u32 4294901760, %v3884_v33 }
  0xcb   :  { %3614 = vmatmul.mubr.f32.vlgmr.msra.gmra.mrb[0].mxu1 %v3357_v12  ;;  %v44529_v12 = vld [vmem:[#allocation2 + $0xac] ss:$316 sps:$4 sm:$0xff]   ;;  %v3879_v38 = vand.u32 4294901760, %v3878_v46 }
  0xcc   :  { %41715 = vmatpush1.bf16.xpose.msra.mxu1 %v41714_v51  ;;  %23372 = vmatmul.mubr.f32.vlgmr.msra.gmra.mrb[0].mxu0 %v45321_v54  ;;  %v1470_v48 = vrot.slane %v44529_v12, %v44898_v17  ;;  %v459_v51 = vld [vmem:[#allocation5 + $0x7a8] sm:$0x7f] }
  0xcd   :  { %42667 = vmatpush1.bf16.xpose.msra.mxu0 %v42666_v50  ;;  %3696 = vmatprep.mubr.f32.mxu1 %v45233_v14  ;;  %v23699_v50 = vand.u32 4294901760, %v301_v8  ;;  %v23703_v44 = vand.u32 4294901760, %v459_v51 }
  0xce   :  { %41717 = vmatprep.subr.bf16.mxu1 %v45257_v21  ;;  %23451 = vmatprep.mubr.f32.mxu0 %v45316_v6  ;;  %v3849_v21 = vand.u32 4294901760, %v45400_v3  ;;  %v1488_v62 = vcombine.high %v1470_v48, %v1484_v32  ;;  %v42674_v6 = vpack.c.bf16 %v23305_v57, %v23293_v24  ;;  %v1487_v24 = vcombine.low %v1470_v48, %v1484_v32 }
  0xcf   :  { %42669 = vmatprep.subr.bf16.mxu0 %v45330_v58  ;;  %v45463_v2 = vsub.f32 %v301_v8, %v23699_v50  ;;  %v23701_v57 = vand.u32 4294901760, %v300_v10 }
  0xd0   :  { %v3850_v1 = vsub.f32 %v45400_v3, %v3849_v21  ;;  %v45457_v46 = vand.u32 4294901760, %v1488_v62 }
  0xd1   :  { %v45479_v48 = vsub.f32 %v300_v10, %v23701_v57 }
  0xd2   :  { %v45472_v8 = vsub.f32 %v1488_v62, %v45457_v46 }
  0xd3   :  { %3698 = vmatmul.mubr.f32.vlgmr.msra.gmra.mrb[0].mxu1 %v45251_v37 }
  0xd4   :  { %41719 = vmatpush1.bf16.xpose.msra.mxu1 %v45289_v13  ;;  %23454 = vmatmul.mubr.f32.vlgmr.msra.gmra.mrb[0].mxu0 %v45340_v26  ;;  %v3867_v13 = vand.u32 4294901760, %v3866_v35  ;;  %v458_v35 = vld [vmem:[#allocation5 + $0x7a0] sm:$0x7f]  ;;  %v23769_v62 = vand.u32 4294901760, %v45472_v8 }
  0xd5   :  { %42671 = vmatpush1.bf16.xpose.msra.mxu0 %v45354_v42  ;;  %3772 = vmatprep.mubr.f32.mxu1 %v45233_v14  ;;  %v3872_v14 = vsub.f32 %v45409_v45, %v3871_v16 }
  0xd6   :  { %41721 = vmatprep.subr.bf16.mxu1 %v45413_v0  ;;  %23530 = vmatprep.mubr.f32.mxu0 %v23271_v29  ;;  %v3851_v29 = vand.u32 4294901760, %v3850_v1  ;;  %v41724_v12 = vpack.c.bf16 %v3879_v38, %v3867_v13  ;;  %v23785_v1 = vand.u32 4294901760, %v45463_v2  ;;  %v45477_v13 = vand.u32 4294901760, %v1487_v24 }
  0xd7   :  { %42673 = vmatprep.subr.bf16.mxu0 %v42672_v36  ;;  %v45465_v36 = vsub.f32 %v459_v51, %v23703_v44  ;;  %v3873_v39 = vand.u32 4294901760, %v3872_v14  ;;  %v3857_v51 = vand.u32 4294901760, %v3856_v30  ;;  %v41728_v38 = vpack.c.bf16 %v45393_v7, %v45391_v25 }
  0xd8   :  { %v45486_v14 = vpack.c.bf16 %v23703_v44, %v23699_v50  ;;  %v23791_v50 = vand.u32 4294901760, %v45479_v48 }
  0xd9   :  { %v23797_v26 = vand.u32 4294901760, %v45465_v36 }
  0xdb   :  { %3774 = vmatmul.mubr.f32.vlgmr.msra.gmra.mrb[0].mxu1 %v45251_v37  ;;  %v23705_v37 = vand.u32 4294901760, %v458_v35  ;;  %v23798_v33 = vsub.f32 %v45465_v36, %v23797_v26 }
  0xdc   :  { %41723 = vmatpush1.bf16.xpose.msra.mxu1 %v45445_v43  ;;  %23534 = vmatmul.mubr.f32.vlgmr.msra.gmra.mrb[0].mxu0 %v23277_v4  ;;  %v41726_v4 = vpack.c.bf16 %v3885_v55, %v3873_v39  ;;  %v23792_v39 = vsub.f32 %v45479_v48, %v23791_v50 }
  0xdd   :  { %42675 = vmatpush1.bf16.xpose.msra.mxu0 %v42674_v6  ;;  %3852 = vmatprep.mubr.f32.mxu1 %v3851_v29  ;;  %v45481_v32 = vsub.f32 %v458_v35, %v23705_v37  ;;  %v45496_v6 = vsub.f32 %v1487_v24, %v45477_v13  ;;  %v23770_v29 = vsub.f32 %v45472_v8, %v23769_v62  ;;  %v23799_v10 = vand.u32 4294901760, %v23798_v33 }
  0xde   :  { %41725 = vmatprep.subr.bf16.mxu1 %v41724_v12  ;;  %23616 = vmatprep.mubr.f32.mxu0 %v45301_v15  ;;  %v45510_v30 = vpack.c.bf16 %v23705_v37, %v23701_v57  ;;  %v23793_v37 = vand.u32 4294901760, %v23792_v39  ;;  %v381_v39 = vld [vmem:[#allocation5 + $0x538] sm:$0x7f] }
  0xdf   :  { %42677 = vmatprep.subr.bf16.mxu0 %v45330_v58  ;;  %v23786_v58 = vsub.f32 %v45463_v2, %v23785_v1  ;;  %v23803_v44 = vand.u32 4294901760, %v45481_v32  ;;  %v23775_v35 = vand.u32 4294901760, %v45496_v6  ;;  %v23771_v55 = vand.u32 4294901760, %v23770_v29 }
  0xe0   :  { %v4281_v7 = vand.u32 4294901760, %v381_v39 }
  0xe1   :  { %v23787_v12 = vand.u32 4294901760, %v23786_v58  ;;  %v23776_v57 = vsub.f32 %v45496_v6, %v23775_v35 }
  0xe3   :  { %3858 = vmatmul.mubr.f32.vlgmr.msra.gmra.mrb[0].mxu1 %v3857_v51  ;;  %v42684_v24 = vpack.c.bf16 %v23799_v10, %v23787_v12  ;;  %v23777_v58 = vand.u32 4294901760, %v23776_v57  ;;  %v41736_v12 = vpack.c.bf16 %v3877_v56, %v3865_v9  ;;  %v42688_v10 = vpack.c.bf16 %v45465_v36, %v45463_v2 }
  0xe4   :  { %41727 = vmatpush1.bf16.xpose.msra.mxu1 %v41726_v4  ;;  %23618 = vmatmul.mubr.f32.vlgmr.msra.gmra.mrb[0].mxu0 %v45321_v54  ;;  %v44531_v4 = vld [vmem:[#allocation2 + $0x10] ss:$316 sps:$4 sm:$0xff]   ;;  %v41738_v9 = vpack.c.bf16 %v3883_v59, %v3871_v16  ;;  %v42690_v56 = vpack.c.bf16 %v45481_v32, %v45479_v48 }
  0xe5   :  { %42679 = vmatpush1.bf16.xpose.msra.mxu0 %v45354_v42  ;;  %3948 = vmatprep.mubr.f32.mxu1 %v45389_v47  ;;  %v41730_v42 = vpack.c.bf16 %v45411_v63, %v45409_v45 }
  0xe6   :  { %41729 = vmatprep.subr.bf16.mxu1 %v41728_v38  ;;  %23692 = vmatprep.mubr.f32.mxu0 %v45301_v15  ;;  %v23804_v15 = vsub.f32 %v45481_v32, %v23803_v44  ;;  %v44533_v38 = vld [vmem:[#allocation2 + $0x288] ss:$316 sps:$4 sm:$0xff]  }
  0xe7   :  { %42681 = vmatprep.subr.bf16.mxu0 %v45486_v14  ;;  %v793_v29 = vrot.slane %v44533_v38, %v44898_v17 }
  0xe8   :  { %v23805_v51 = vand.u32 4294901760, %v23804_v15 }
  0xea   :  { %v42686_v33 = vpack.c.bf16 %v23805_v51, %v23793_v37  ;;  %v44537_v51 = vld [vmem:[#allocation2 + $0x328] ss:$316 sps:$4 sm:$0xff]  }
  0xeb   :  { %3950 = vmatmul.mubr.f32.vlgmr.msra.gmra.mrb[0].mxu1 %v45407_v31 }
  0xec   :  { %41731 = vmatpush1.bf16.xpose.msra.mxu1 %v41730_v42  ;;  %23694 = vmatmul.mubr.f32.vlgmr.msra.gmra.mrb[0].mxu0 %v45321_v54  ;;  %v779_v54 = vrot.slane %v44531_v4, %v44898_v17  ;;  %v223_v42 = vld [vmem:[#allocation5 + $0x48] sm:$0xff] }
  0xed   :  { %42683 = vmatpush1.bf16.xpose.msra.mxu0 %v45510_v30  ;;  %4029 = vmatprep.mubr.f32.mxu1 %v45400_v3  ;;  %v4277_v25 = vand.u32 4294901760, %v223_v42 }
  0xee   :  { %41733 = vmatprep.subr.bf16.mxu1 %v45413_v0  ;;  %23772 = vmatprep.mubr.f32.mxu0 %v23771_v55  ;;  %v802_v15 = vcombine.high %v779_v54, %v793_v29  ;;  %v222_v55 = vld [vmem:[#allocation5 + $0x40] sm:$0xff]  ;;  %v801_v37 = vcombine.low %v779_v54, %v793_v29 }
  0xef   :  { %42685 = vmatprep.subr.bf16.mxu0 %v42684_v24  ;;  %v380_v24 = vld [vmem:[#allocation5 + $0x530] sm:$0x7f]  ;;  %v45547_v3 = vsub.f32 %v223_v42, %v4277_v25  ;;  %v4279_v45 = vand.u32 4294901760, %v222_v55  ;;  %v42696_v42 = vpack.c.bf16 %v23797_v26, %v23785_v1 }
  0xf0   :  { %v45545_v57 = vand.u32 4294901760, %v802_v15  ;;  %v4283_v63 = vand.u32 4294901760, %v380_v24  ;;  %v45563_v4 = vand.u32 4294901760, %v801_v37 }
  0xf1   :  { %v4363_v59 = vand.u32 4294901760, %v45547_v3  ;;  %v45565_v38 = vsub.f32 %v222_v55, %v4279_v45 }
  0xf2   :  { %v45556_v16 = vsub.f32 %v802_v15, %v45545_v57 }
  0xf3   :  { %4032 = vmatmul.mubr.f32.vlgmr.msra.gmra.mrb[0].mxu1 %v45430_v28  ;;  %v4364_v54 = vsub.f32 %v45547_v3, %v4363_v59  ;;  %v4369_v15 = vand.u32 4294901760, %v45565_v38 }
  0xf4   :  { %41735 = vmatpush1.bf16.xpose.msra.mxu1 %v45445_v43  ;;  %23778 = vmatmul.mubr.f32.vlgmr.msra.gmra.mrb[0].mxu0 %v23777_v58  ;;  %v45567_v58 = vsub.f32 %v380_v24, %v4283_v63  ;;  %v45601_v24 = vpack.c.bf16 %v4283_v63, %v4279_v45 }
  0xf5   :  { %42687 = vmatpush1.bf16.xpose.msra.mxu0 %v42686_v33  ;;  %4108 = vmatprep.mubr.f32.mxu1 %v3849_v21  ;;  %v45549_v21 = vsub.f32 %v381_v39, %v4281_v7  ;;  %v45569_v33 = vpack.c.bf16 %v4281_v7, %v4277_v25  ;;  %v45586_v39 = vsub.f32 %v801_v37, %v45563_v4  ;;  %v303_v7 = vld [vmem:[#allocation5 + $0x2c8] sm:$0xff] }
  0xf6   :  { %41737 = vmatprep.subr.bf16.mxu1 %v41736_v12  ;;  %23868 = vmatprep.mubr.f32.mxu0 %v45457_v46  ;;  %v4381_v25 = vand.u32 4294901760, %v45567_v58 }
  0xf7   :  { %42689 = vmatprep.subr.bf16.mxu0 %v42688_v10  ;;  %v4375_v28 = vand.u32 4294901760, %v45549_v21  ;;  %v1513_v10 = vrot.slane %v44537_v51, %v44898_v17  ;;  %v4353_v26 = vand.u32 4294901760, %v45586_v39  ;;  %v302_v51 = vld [vmem:[#allocation5 + $0x2c0] sm:$0xff] }
  0xf8   :  { %v4382_v37 = vsub.f32 %v45567_v58, %v4381_v25 }
  0xf9   :  { %v4376_v29 = vsub.f32 %v45549_v21, %v4375_v28  ;;  %v4354_v45 = vsub.f32 %v45586_v39, %v4353_v26 }
  0xfa   :  { %v4383_v32 = vand.u32 4294901760, %v4382_v37 }
  0xfb   :  { %4112 = vmatmul.mubr.f32.vlgmr.msra.gmra.mrb[0].mxu1 %v3855_v11  ;;  %v44535_v11 = vld [vmem:[#allocation2 + $0xb0] ss:$316 sps:$4 sm:$0xff]   ;;  %v4377_v36 = vand.u32 4294901760, %v4376_v29 }
  0xfc   :  { %41739 = vmatpush1.bf16.xpose.msra.mxu1 %v41738_v9  ;;  %23870 = vmatmul.mubr.f32.vlgmr.msra.gmra.mrb[0].mxu0 %v45477_v13  ;;  %v1499_v12 = vrot.slane %v44535_v11, %v44898_v17  ;;  %v461_v9 = vld [vmem:[#allocation5 + $0x7b8] sm:$0x7f] }
  0xfd   :  { %42691 = vmatpush1.bf16.xpose.msra.mxu0 %v42690_v56  ;;  %4194 = vmatprep.mubr.f32.mxu1 %v45389_v47  ;;  %v24197_v56 = vand.u32 4294901760, %v303_v7  ;;  %v24201_v55 = vand.u32 4294901760, %v461_v9 }
  0xfe   :  { %41741 = vmatprep.subr.bf16.mxu1 %v45413_v0  ;;  %23949 = vmatprep.mubr.f32.mxu0 %v45472_v8  ;;  %v4347_v0 = vand.u32 4294901760, %v45556_v16  ;;  %v1522_v1 = vcombine.high %v1499_v12, %v1513_v10  ;;  %v42698_v8 = vpack.c.bf16 %v23803_v44, %v23791_v50  ;;  %v1521_v50 = vcombine.low %v1499_v12, %v1513_v10 }
  0xff   :  { %42693 = vmatprep.subr.bf16.mxu0 %v45486_v14  ;;  %v45619_v63 = vsub.f32 %v303_v7, %v24197_v56  ;;  %v24199_v44 = vand.u32 4294901760, %v302_v51 }
 0x100   :  { %v4348_v2 = vsub.f32 %v45556_v16, %v4347_v0  ;;  %v45613_v29 = vand.u32 4294901760, %v1522_v1 }
 0x101   :  { %v45635_v12 = vsub.f32 %v302_v51, %v24199_v44 }
 0x102   :  { %v45628_v7 = vsub.f32 %v1522_v1, %v45613_v29 }
 0x103   :  { %4196 = vmatmul.mubr.f32.vlgmr.msra.gmra.mrb[0].mxu1 %v45407_v31 }
 0x104   :  { %41743 = vmatpush1.bf16.xpose.msra.mxu1 %v45445_v43  ;;  %23952 = vmatmul.mubr.f32.vlgmr.msra.gmra.mrb[0].mxu0 %v45496_v6  ;;  %v4365_v43 = vand.u32 4294901760, %v4364_v54  ;;  %v460_v54 = vld [vmem:[#allocation5 + $0x7b0] sm:$0x7f]  ;;  %v24267_v1 = vand.u32 4294901760, %v45628_v7 }
 0x105   :  { %42695 = vmatpush1.bf16.xpose.msra.mxu0 %v45510_v30  ;;  %4270 = vmatprep.mubr.f32.mxu1 %v45389_v47  ;;  %v4370_v47 = vsub.f32 %v45565_v38, %v4369_v15 }
 0x106   :  { %41745 = vmatprep.subr.bf16.mxu1 %v45569_v33  ;;  %24028 = vmatprep.mubr.f32.mxu0 %v23769_v62  ;;  %v4349_v62 = vand.u32 4294901760, %v4348_v2  ;;  %v41748_v11 = vpack.c.bf16 %v4377_v36, %v4365_v43  ;;  %v24283_v2 = vand.u32 4294901760, %v45619_v63  ;;  %v45633_v43 = vand.u32 4294901760, %v1521_v50 }
 0x107   :  { %42697 = vmatprep.subr.bf16.mxu0 %v42696_v42  ;;  %v45621_v42 = vsub.f32 %v461_v9, %v24201_v55  ;;  %v4371_v48 = vand.u32 4294901760, %v4370_v47  ;;  %v4355_v9 = vand.u32 4294901760, %v4354_v45  ;;  %v41752_v36 = vpack.c.bf16 %v45549_v21, %v45547_v3 }
 0x108   :  { %v45642_v47 = vpack.c.bf16 %v24201_v55, %v24197_v56  ;;  %v24289_v56 = vand.u32 4294901760, %v45635_v12 }
 0x109   :  { %v24295_v6 = vand.u32 4294901760, %v45621_v42 }
 0x10b   :  { %4272 = vmatmul.mubr.f32.vlgmr.msra.gmra.mrb[0].mxu1 %v45407_v31  ;;  %v24203_v31 = vand.u32 4294901760, %v460_v54  ;;  %v24296_v37 = vsub.f32 %v45621_v42, %v24295_v6 }
 0x10c   :  { %41747 = vmatpush1.bf16.xpose.msra.mxu1 %v45601_v24  ;;  %24032 = vmatmul.mubr.f32.vlgmr.msra.gmra.mrb[0].mxu0 %v23775_v35  ;;  %v41750_v35 = vpack.c.bf16 %v4383_v32, %v4371_v48  ;;  %v24290_v48 = vsub.f32 %v45635_v12, %v24289_v56 }
 0x10d   :  { %42699 = vmatpush1.bf16.xpose.msra.mxu0 %v42698_v8  ;;  %4350 = vmatprep.mubr.f32.mxu1 %v4349_v62  ;;  %v45637_v10 = vsub.f32 %v460_v54, %v24203_v31  ;;  %v45652_v8 = vsub.f32 %v1521_v50, %v45633_v43  ;;  %v24268_v62 = vsub.f32 %v45628_v7, %v24267_v1  ;;  %v24297_v51 = vand.u32 4294901760, %v24296_v37 }
 0x10e   :  { %41749 = vmatprep.subr.bf16.mxu1 %v41748_v11  ;;  %24114 = vmatprep.mubr.f32.mxu0 %v45457_v46  ;;  %v45666_v45 = vpack.c.bf16 %v24203_v31, %v24199_v44  ;;  %v24291_v31 = vand.u32 4294901760, %v24290_v48  ;;  %v383_v48 = vld [vmem:[#allocation5 + $0x548] sm:$0x7f] }
 0x10f   :  { %42701 = vmatprep.subr.bf16.mxu0 %v45486_v14  ;;  %v24284_v14 = vsub.f32 %v45619_v63, %v24283_v2  ;;  %v24301_v55 = vand.u32 4294901760, %v45637_v10  ;;  %v24273_v54 = vand.u32 4294901760, %v45652_v8  ;;  %v24269_v32 = vand.u32 4294901760, %v24268_v62 }
 0x110   :  { %v4779_v21 = vand.u32 4294901760, %v383_v48 }
 0x111   :  { %v24285_v11 = vand.u32 4294901760, %v24284_v14  ;;  %v24274_v44 = vsub.f32 %v45652_v8, %v24273_v54 }
 0x113   :  { %4356 = vmatmul.mubr.f32.vlgmr.msra.gmra.mrb[0].mxu1 %v4355_v9  ;;  %v42708_v50 = vpack.c.bf16 %v24297_v51, %v24285_v11  ;;  %v24275_v14 = vand.u32 4294901760, %v24274_v44  ;;  %v41760_v11 = vpack.c.bf16 %v4375_v28, %v4363_v59  ;;  %v42712_v51 = vpack.c.bf16 %v45621_v42, %v45619_v63 }
 0x114   :  { %41751 = vmatpush1.bf16.xpose.msra.mxu1 %v41750_v35  ;;  %24116 = vmatmul.mubr.f32.vlgmr.msra.gmra.mrb[0].mxu0 %v45477_v13  ;;  %v44539_v35 = vld [vmem:[#allocation2 + $0x14] ss:$316 sps:$4 sm:$0xff]   ;;  %v41762_v59 = vpack.c.bf16 %v4381_v25, %v4369_v15  ;;  %v42714_v28 = vpack.c.bf16 %v45637_v10, %v45635_v12 }
 0x115   :  { %42703 = vmatpush1.bf16.xpose.msra.mxu0 %v45510_v30  ;;  %4446 = vmatprep.mubr.f32.mxu1 %v45545_v57  ;;  %v41754_v30 = vpack.c.bf16 %v45567_v58, %v45565_v38 }
 0x116   :  { %41753 = vmatprep.subr.bf16.mxu1 %v41752_v36  ;;  %24190 = vmatprep.mubr.f32.mxu0 %v45457_v46  ;;  %v24302_v46 = vsub.f32 %v45637_v10, %v24301_v55  ;;  %v44540_v36 = vld [vmem:[#allocation2 + $0x28c] ss:$316 sps:$4 sm:$0xff]  }
 0x117   :  { %42705 = vmatprep.subr.bf16.mxu0 %v45642_v47  ;;  %v800_v62 = vrot.slane %v44540_v36, %v44898_v17 }
 0x118   :  { %v24303_v9 = vand.u32 4294901760, %v24302_v46 }
 0x11a   :  { %v42710_v37 = vpack.c.bf16 %v24303_v9, %v24291_v31  ;;  %v44542_v9 = vld [vmem:[#allocation2 + $0x32c] ss:$316 sps:$4 sm:$0xff]  }
 0x11b   :  { %4448 = vmatmul.mubr.f32.vlgmr.msra.gmra.mrb[0].mxu1 %v45563_v4 }
 0x11c   :  { %41755 = vmatpush1.bf16.xpose.msra.mxu1 %v41754_v30  ;;  %24192 = vmatmul.mubr.f32.vlgmr.msra.gmra.mrb[0].mxu0 %v45477_v13  ;;  %v786_v13 = vrot.slane %v44539_v35, %v44898_v17  ;;  %v225_v30 = vld [vmem:[#allocation5 + $0x58] sm:$0xff] }
 0x11d   :  { %42707 = vmatpush1.bf16.xpose.msra.mxu0 %v45666_v45  ;;  %4527 = vmatprep.mubr.f32.mxu1 %v45556_v16  ;;  %v4775_v3 = vand.u32 4294901760, %v225_v30 }
 0x11e   :  { %41757 = vmatprep.subr.bf16.mxu1 %v45569_v33  ;;  %24270 = vmatprep.mubr.f32.mxu0 %v24269_v32  ;;  %v804_v46 = vcombine.high %v786_v13, %v800_v62  ;;  %v224_v32 = vld [vmem:[#allocation5 + $0x50] sm:$0xff]  ;;  %v803_v31 = vcombine.low %v786_v13, %v800_v62 }
 0x11f   :  { %42709 = vmatprep.subr.bf16.mxu0 %v42708_v50  ;;  %v382_v50 = vld [vmem:[#allocation5 + $0x540] sm:$0x7f]  ;;  %v45703_v16 = vsub.f32 %v225_v30, %v4775_v3  ;;  %v4777_v38 = vand.u32 4294901760, %v224_v32  ;;  %v42720_v30 = vpack.c.bf16 %v24295_v6, %v24283_v2 }
 0x120   :  { %v45701_v44 = vand.u32 4294901760, %v804_v46  ;;  %v4781_v58 = vand.u32 4294901760, %v382_v50  ;;  %v45719_v35 = vand.u32 4294901760, %v803_v31 }
 0x121   :  { %v4861_v25 = vand.u32 4294901760, %v45703_v16  ;;  %v45721_v36 = vsub.f32 %v224_v32, %v4777_v38 }
 0x122   :  { %v45712_v15 = vsub.f32 %v804_v46, %v45701_v44 }
 0x123   :  { %4530 = vmatmul.mubr.f32.vlgmr.msra.gmra.mrb[0].mxu1 %v45586_v39  ;;  %v4862_v13 = vsub.f32 %v45703_v16, %v4861_v25  ;;  %v4867_v46 = vand.u32 4294901760, %v45721_v36 }
 0x124   :  { %41759 = vmatpush1.bf16.xpose.msra.mxu1 %v45601_v24  ;;  %24276 = vmatmul.mubr.f32.vlgmr.msra.gmra.mrb[0].mxu0 %v24275_v14  ;;  %v45723_v14 = vsub.f32 %v382_v50, %v4781_v58  ;;  %v45757_v50 = vpack.c.bf16 %v4781_v58, %v4777_v38 }
 0x125   :  { %42711 = vmatpush1.bf16.xpose.msra.mxu0 %v42710_v37  ;;  %4606 = vmatprep.mubr.f32.mxu1 %v4347_v0  ;;  %v45705_v0 = vsub.f32 %v383_v48, %v4779_v21  ;;  %v45725_v37 = vpack.c.bf16 %v4779_v21, %v4775_v3  ;;  %v45742_v48 = vsub.f32 %v803_v31, %v45719_v35  ;;  %v305_v21 = vld [vmem:[#allocation5 + $0x2d8] sm:$0xff] }
 0x126   :  { %41761 = vmatprep.subr.bf16.mxu1 %v41760_v11  ;;  %24366 = vmatprep.mubr.f32.mxu0 %v45613_v29  ;;  %v4879_v3 = vand.u32 4294901760, %v45723_v14 }
 0x127   :  { %42713 = vmatprep.subr.bf16.mxu0 %v42712_v51  ;;  %v4873_v39 = vand.u32 4294901760, %v45705_v0  ;;  %v1520_v51 = vrot.slane %v44542_v9, %v44898_v17  ;;  %v4851_v6 = vand.u32 4294901760, %v45742_v48  ;;  %v304_v9 = vld [vmem:[#allocation5 + $0x2d0] sm:$0xff] }
 0x128   :  { %v4880_v31 = vsub.f32 %v45723_v14, %v4879_v3 }
 0x129   :  { %v4874_v62 = vsub.f32 %v45705_v0, %v4873_v39  ;;  %v4852_v38 = vsub.f32 %v45742_v48, %v4851_v6 }
 0x12a   :  { %v4881_v10 = vand.u32 4294901760, %v4880_v31 }
 0x12b   :  { %4610 = vmatmul.mubr.f32.vlgmr.msra.gmra.mrb[0].mxu1 %v4353_v26  ;;  %v44541_v26 = vld [vmem:[#allocation2 + $0xb4] ss:$316 sps:$4 sm:$0xff]   ;;  %v4875_v42 = vand.u32 4294901760, %v4874_v62 }
 0x12c   :  { %41763 = vmatpush1.bf16.xpose.msra.mxu1 %v41762_v59  ;;  %24368 = vmatmul.mubr.f32.vlgmr.msra.gmra.mrb[0].mxu0 %v45633_v43  ;;  %v1506_v11 = vrot.slane %v44541_v26, %v44898_v17  ;;  %v463_v59 = vld [vmem:[#allocation5 + $0x7c8] sm:$0x7f] }
 0x12d   :  { %42715 = vmatpush1.bf16.xpose.msra.mxu0 %v42714_v28  ;;  %4692 = vmatprep.mubr.f32.mxu1 %v45545_v57  ;;  %v24695_v28 = vand.u32 4294901760, %v305_v21  ;;  %v24699_v32 = vand.u32 4294901760, %v463_v59 }
 0x12e   :  { %41765 = vmatprep.subr.bf16.mxu1 %v45569_v33  ;;  %24447 = vmatprep.mubr.f32.mxu0 %v45628_v7  ;;  %v4845_v33 = vand.u32 4294901760, %v45712_v15  ;;  %v1524_v2 = vcombine.high %v1506_v11, %v1520_v51  ;;  %v42722_v7 = vpack.c.bf16 %v24301_v55, %v24289_v56  ;;  %v1523_v56 = vcombine.low %v1506_v11, %v1520_v51 }
 0x12f   :  { %42717 = vmatprep.subr.bf16.mxu0 %v45642_v47  ;;  %v45775_v58 = vsub.f32 %v305_v21, %v24695_v28  ;;  %v24697_v55 = vand.u32 4294901760, %v304_v9 }
 0x130   :  { %v4846_v63 = vsub.f32 %v45712_v15, %v4845_v33  ;;  %v45769_v62 = vand.u32 4294901760, %v1524_v2 }
 0x131   :  { %v45791_v11 = vsub.f32 %v304_v9, %v24697_v55 }
 0x132   :  { %v45784_v21 = vsub.f32 %v1524_v2, %v45769_v62 }
 0x133   :  { %4694 = vmatmul.mubr.f32.vlgmr.msra.gmra.mrb[0].mxu1 %v45563_v4 }
 0x134   :  { %41767 = vmatpush1.bf16.xpose.msra.mxu1 %v45601_v24  ;;  %24450 = vmatmul.mubr.f32.vlgmr.msra.gmra.mrb[0].mxu0 %v45652_v8  ;;  %v4863_v24 = vand.u32 4294901760, %v4862_v13  ;;  %v462_v13 = vld [vmem:[#allocation5 + $0x7c0] sm:$0x7f]  ;;  %v24765_v2 = vand.u32 4294901760, %v45784_v21 }
 0x135   :  { %42719 = vmatpush1.bf16.xpose.msra.mxu0 %v45666_v45  ;;  %4768 = vmatprep.mubr.f32.mxu1 %v45545_v57  ;;  %v4868_v57 = vsub.f32 %v45721_v36, %v4867_v46 }
 0x136   :  { %41769 = vmatprep.subr.bf16.mxu1 %v45725_v37  ;;  %24526 = vmatprep.mubr.f32.mxu0 %v24267_v1  ;;  %v4847_v1 = vand.u32 4294901760, %v4846_v63  ;;  %v41772_v26 = vpack.c.bf16 %v4875_v42, %v4863_v24  ;;  %v24781_v63 = vand.u32 4294901760, %v45775_v58  ;;  %v45789_v24 = vand.u32 4294901760, %v1523_v56 }
 0x137   :  { %42721 = vmatprep.subr.bf16.mxu0 %v42720_v30  ;;  %v45777_v30 = vsub.f32 %v463_v59, %v24699_v32  ;;  %v4869_v12 = vand.u32 4294901760, %v4868_v57  ;;  %v4853_v59 = vand.u32 4294901760, %v4852_v38  ;;  %v41776_v42 = vpack.c.bf16 %v45705_v0, %v45703_v16 }
 0x138   :  { %v45798_v57 = vpack.c.bf16 %v24699_v32, %v24695_v28  ;;  %v24787_v28 = vand.u32 4294901760, %v45791_v11 }
 0x139   :  { %v24793_v8 = vand.u32 4294901760, %v45777_v30 }
 0x13b   :  { %4770 = vmatmul.mubr.f32.vlgmr.msra.gmra.mrb[0].mxu1 %v45563_v4  ;;  %v24701_v4 = vand.u32 4294901760, %v462_v13  ;;  %v24794_v31 = vsub.f32 %v45777_v30, %v24793_v8 }
 0x13c   :  { %41771 = vmatpush1.bf16.xpose.msra.mxu1 %v45757_v50  ;;  %24530 = vmatmul.mubr.f32.vlgmr.msra.gmra.mrb[0].mxu0 %v24273_v54  ;;  %v41774_v54 = vpack.c.bf16 %v4881_v10, %v4869_v12  ;;  %v24788_v12 = vsub.f32 %v45791_v11, %v24787_v28 }
 0x13d   :  { %42723 = vmatpush1.bf16.xpose.msra.mxu0 %v42722_v7  ;;  %4848 = vmatprep.mubr.f32.mxu1 %v4847_v1  ;;  %v45793_v51 = vsub.f32 %v462_v13, %v24701_v4  ;;  %v45808_v7 = vsub.f32 %v1523_v56, %v45789_v24  ;;  %v24766_v1 = vsub.f32 %v45784_v21, %v24765_v2  ;;  %v24795_v9 = vand.u32 4294901760, %v24794_v31 }
 0x13e   :  { %41773 = vmatprep.subr.bf16.mxu1 %v41772_v26  ;;  %24612 = vmatprep.mubr.f32.mxu0 %v45613_v29  ;;  %v45822_v38 = vpack.c.bf16 %v24701_v4, %v24697_v55  ;;  %v24789_v4 = vand.u32 4294901760, %v24788_v12  ;;  %v385_v12 = vld [vmem:[#allocation5 + $0x558] sm:$0x7f] }
 0x13f   :  { %42725 = vmatprep.subr.bf16.mxu0 %v45642_v47  ;;  %v24782_v47 = vsub.f32 %v45775_v58, %v24781_v63  ;;  %v24799_v32 = vand.u32 4294901760, %v45793_v51  ;;  %v24771_v13 = vand.u32 4294901760, %v45808_v7  ;;  %v24767_v10 = vand.u32 4294901760, %v24766_v1 }
 0x140   :  { %v5277_v0 = vand.u32 4294901760, %v385_v12 }
 0x141   :  { %v24783_v26 = vand.u32 4294901760, %v24782_v47  ;;  %v24772_v55 = vsub.f32 %v45808_v7, %v24771_v13 }
 0x143   :  { %4854 = vmatmul.mubr.f32.vlgmr.msra.gmra.mrb[0].mxu1 %v4853_v59  ;;  %v42732_v56 = vpack.c.bf16 %v24795_v9, %v24783_v26  ;;  %v24773_v47 = vand.u32 4294901760, %v24772_v55  ;;  %v41784_v26 = vpack.c.bf16 %v4873_v39, %v4861_v25  ;;  %v42736_v9 = vpack.c.bf16 %v45777_v30, %v45775_v58 }
 0x144   :  { %41775 = vmatpush1.bf16.xpose.msra.mxu1 %v41774_v54  ;;  %24614 = vmatmul.mubr.f32.vlgmr.msra.gmra.mrb[0].mxu0 %v45633_v43  ;;  %v44543_v54 = vld [vmem:[#allocation2 + $0x18] ss:$316 sps:$4 sm:$0xff]   ;;  %v41786_v25 = vpack.c.bf16 %v4879_v3, %v4867_v46  ;;  %v42738_v39 = vpack.c.bf16 %v45793_v51, %v45791_v11 }
 0x145   :  { %42727 = vmatpush1.bf16.xpose.msra.mxu0 %v45666_v45  ;;  %4944 = vmatprep.mubr.f32.mxu1 %v45701_v44  ;;  %v41778_v45 = vpack.c.bf16 %v45723_v14, %v45721_v36 }
 0x146   :  { %41777 = vmatprep.subr.bf16.mxu1 %v41776_v42  ;;  %24688 = vmatprep.mubr.f32.mxu0 %v45613_v29  ;;  %v24800_v29 = vsub.f32 %v45793_v51, %v24799_v32  ;;  %v44545_v42 = vld [vmem:[#allocation2 + $0x290] ss:$316 sps:$4 sm:$0xff]  }
 0x147   :  { %42729 = vmatprep.subr.bf16.mxu0 %v45798_v57  ;;  %v829_v1 = vrot.slane %v44545_v42, %v44898_v17 }
 0x148   :  { %v24801_v59 = vand.u32 4294901760, %v24800_v29 }
 0x14a   :  { %v42734_v31 = vpack.c.bf16 %v24801_v59, %v24789_v4  ;;  %v44549_v59 = vld [vmem:[#allocation2 + $0x330] ss:$316 sps:$4 sm:$0xff]  }
 0x14b   :  { %4946 = vmatmul.mubr.f32.vlgmr.msra.gmra.mrb[0].mxu1 %v45719_v35 }
 0x14c   :  { %41779 = vmatpush1.bf16.xpose.msra.mxu1 %v41778_v45  ;;  %24690 = vmatmul.mubr.f32.vlgmr.msra.gmra.mrb[0].mxu0 %v45633_v43  ;;  %v815_v43 = vrot.slane %v44543_v54, %v44898_v17  ;;  %v227_v45 = vld [vmem:[#allocation5 + $0x68] sm:$0xff] }
 0x14d   :  { %42731 = vmatpush1.bf16.xpose.msra.mxu0 %v45822_v38  ;;  %5025 = vmatprep.mubr.f32.mxu1 %v45712_v15  ;;  %v5273_v16 = vand.u32 4294901760, %v227_v45 }
 0x14e   :  { %41781 = vmatprep.subr.bf16.mxu1 %v45725_v37  ;;  %24768 = vmatprep.mubr.f32.mxu0 %v24767_v10  ;;  %v838_v29 = vcombine.high %v815_v43, %v829_v1  ;;  %v226_v10 = vld [vmem:[#allocation5 + $0x60] sm:$0xff]  ;;  %v837_v4 = vcombine.low %v815_v43, %v829_v1 }
 0x14f   :  { %42733 = vmatprep.subr.bf16.mxu0 %v42732_v56  ;;  %v384_v56 = vld [vmem:[#allocation5 + $0x550] sm:$0x7f]  ;;  %v45859_v15 = vsub.f32 %v227_v45, %v5273_v16  ;;  %v5275_v36 = vand.u32 4294901760, %v226_v10  ;;  %v42744_v45 = vpack.c.bf16 %v24793_v8, %v24781_v63 }
 0x150   :  { %v45857_v55 = vand.u32 4294901760, %v838_v29  ;;  %v5279_v14 = vand.u32 4294901760, %v384_v56  ;;  %v45875_v54 = vand.u32 4294901760, %v837_v4 }
 0x151   :  { %v5359_v3 = vand.u32 4294901760, %v45859_v15  ;;  %v45877_v42 = vsub.f32 %v226_v10, %v5275_v36 }
 0x152   :  { %v45868_v46 = vsub.f32 %v838_v29, %v45857_v55 }
 0x153   :  { %5028 = vmatmul.mubr.f32.vlgmr.msra.gmra.mrb[0].mxu1 %v45742_v48  ;;  %v5360_v43 = vsub.f32 %v45859_v15, %v5359_v3  ;;  %v5365_v29 = vand.u32 4294901760, %v45877_v42 }
 0x154   :  { %41783 = vmatpush1.bf16.xpose.msra.mxu1 %v45757_v50  ;;  %24774 = vmatmul.mubr.f32.vlgmr.msra.gmra.mrb[0].mxu0 %v24773_v47  ;;  %v45879_v47 = vsub.f32 %v384_v56, %v5279_v14  ;;  %v45913_v56 = vpack.c.bf16 %v5279_v14, %v5275_v36 }
 0x155   :  { %42735 = vmatpush1.bf16.xpose.msra.mxu0 %v42734_v31  ;;  %5104 = vmatprep.mubr.f32.mxu1 %v4845_v33  ;;  %v45861_v33 = vsub.f32 %v385_v12, %v5277_v0  ;;  %v45881_v31 = vpack.c.bf16 %v5277_v0, %v5273_v16  ;;  %v45898_v12 = vsub.f32 %v837_v4, %v45875_v54  ;;  %v307_v0 = vld [vmem:[#allocation5 + $0x2e8] sm:$0xff] }
 0x156   :  { %41785 = vmatprep.subr.bf16.mxu1 %v41784_v26  ;;  %24864 = vmatprep.mubr.f32.mxu0 %v45769_v62  ;;  %v5377_v16 = vand.u32 4294901760, %v45879_v47 }
 0x157   :  { %42737 = vmatprep.subr.bf16.mxu0 %v42736_v9  ;;  %v5371_v48 = vand.u32 4294901760, %v45861_v33  ;;  %v1549_v9 = vrot.slane %v44549_v59, %v44898_v17  ;;  %v5349_v8 = vand.u32 4294901760, %v45898_v12  ;;  %v306_v59 = vld [vmem:[#allocation5 + $0x2e0] sm:$0xff] }
 0x158   :  { %v5378_v4 = vsub.f32 %v45879_v47, %v5377_v16 }
 0x159   :  { %v5372_v1 = vsub.f32 %v45861_v33, %v5371_v48  ;;  %v5350_v36 = vsub.f32 %v45898_v12, %v5349_v8 }
 0x15a   :  { %v5379_v51 = vand.u32 4294901760, %v5378_v4 }
 0x15b   :  { %5108 = vmatmul.mubr.f32.vlgmr.msra.gmra.mrb[0].mxu1 %v4851_v6  ;;  %v44547_v6 = vld [vmem:[#allocation2 + $0xb8] ss:$316 sps:$4 sm:$0xff]   ;;  %v5373_v30 = vand.u32 4294901760, %v5372_v1 }
 0x15c   :  { %41787 = vmatpush1.bf16.xpose.msra.mxu1 %v41786_v25  ;;  %24866 = vmatmul.mubr.f32.vlgmr.msra.gmra.mrb[0].mxu0 %v45789_v24  ;;  %v1535_v26 = vrot.slane %v44547_v6, %v44898_v17  ;;  %v465_v25 = vld [vmem:[#allocation5 + $0x7d8] sm:$0x7f] }
 0x15d   :  { %42739 = vmatpush1.bf16.xpose.msra.mxu0 %v42738_v39  ;;  %5190 = vmatprep.mubr.f32.mxu1 %v45701_v44  ;;  %v25193_v39 = vand.u32 4294901760, %v307_v0  ;;  %v25197_v10 = vand.u32 4294901760, %v465_v25 }
 0x15e   :  { %41789 = vmatprep.subr.bf16.mxu1 %v45725_v37  ;;  %24945 = vmatprep.mubr.f32.mxu0 %v45784_v21  ;;  %v5343_v37 = vand.u32 4294901760, %v45868_v46  ;;  %v1558_v63 = vcombine.high %v1535_v26, %v1549_v9  ;;  %v42746_v21 = vpack.c.bf16 %v24799_v32, %v24787_v28  ;;  %v1557_v28 = vcombine.low %v1535_v26, %v1549_v9 }
 0x15f   :  { %42741 = vmatprep.subr.bf16.mxu0 %v45798_v57  ;;  %v45931_v14 = vsub.f32 %v307_v0, %v25193_v39  ;;  %v25195_v32 = vand.u32 4294901760, %v306_v59 }
 0x160   :  { %v5344_v58 = vsub.f32 %v45868_v46, %v5343_v37  ;;  %v45925_v1 = vand.u32 4294901760, %v1558_v63 }
 0x161   :  { %v45947_v26 = vsub.f32 %v306_v59, %v25195_v32 }
 0x162   :  { %v45940_v0 = vsub.f32 %v1558_v63, %v45925_v1 }
 0x163   :  { %5192 = vmatmul.mubr.f32.vlgmr.msra.gmra.mrb[0].mxu1 %v45719_v35 }
 0x164   :  { %41791 = vmatpush1.bf16.xpose.msra.mxu1 %v45757_v50  ;;  %24948 = vmatmul.mubr.f32.vlgmr.msra.gmra.mrb[0].mxu0 %v45808_v7  ;;  %v5361_v50 = vand.u32 4294901760, %v5360_v43  ;;  %v464_v43 = vld [vmem:[#allocation5 + $0x7d0] sm:$0x7f]  ;;  %v25263_v63 = vand.u32 4294901760, %v45940_v0 }
 0x165   :  { %42743 = vmatpush1.bf16.xpose.msra.mxu0 %v45822_v38  ;;  %5266 = vmatprep.mubr.f32.mxu1 %v45701_v44  ;;  %v5366_v44 = vsub.f32 %v45877_v42, %v5365_v29 }
 0x166   :  { %41793 = vmatprep.subr.bf16.mxu1 %v45881_v31  ;;  %25024 = vmatprep.mubr.f32.mxu0 %v24765_v2  ;;  %v5345_v2 = vand.u32 4294901760, %v5344_v58  ;;  %v41796_v6 = vpack.c.bf16 %v5373_v30, %v5361_v50  ;;  %v25279_v58 = vand.u32 4294901760, %v45931_v14  ;;  %v45945_v50 = vand.u32 4294901760, %v1557_v28 }
 0x167   :  { %42745 = vmatprep.subr.bf16.mxu0 %v42744_v45  ;;  %v45933_v45 = vsub.f32 %v465_v25, %v25197_v10  ;;  %v5367_v11 = vand.u32 4294901760, %v5366_v44  ;;  %v5351_v25 = vand.u32 4294901760, %v5350_v36  ;;  %v41800_v30 = vpack.c.bf16 %v45861_v33, %v45859_v15 }
 0x168   :  { %v45954_v44 = vpack.c.bf16 %v25197_v10, %v25193_v39  ;;  %v25285_v39 = vand.u32 4294901760, %v45947_v26 }
 0x169   :  { %v25291_v7 = vand.u32 4294901760, %v45933_v45 }
 0x16b   :  { %5268 = vmatmul.mubr.f32.vlgmr.msra.gmra.mrb[0].mxu1 %v45719_v35  ;;  %v25199_v35 = vand.u32 4294901760, %v464_v43  ;;  %v25292_v4 = vsub.f32 %v45933_v45, %v25291_v7 }
 0x16c   :  { %41795 = vmatpush1.bf16.xpose.msra.mxu1 %v45913_v56  ;;  %25028 = vmatmul.mubr.f32.vlgmr.msra.gmra.mrb[0].mxu0 %v24771_v13  ;;  %v41798_v13 = vpack.c.bf16 %v5379_v51, %v5367_v11  ;;  %v25286_v11 = vsub.f32 %v45947_v26, %v25285_v39 }
 0x16d   :  { %42747 = vmatpush1.bf16.xpose.msra.mxu0 %v42746_v21  ;;  %5346 = vmatprep.mubr.f32.mxu1 %v5345_v2  ;;  %v45949_v9 = vsub.f32 %v464_v43, %v25199_v35  ;;  %v45964_v21 = vsub.f32 %v1557_v28, %v45945_v50  ;;  %v25264_v2 = vsub.f32 %v45940_v0, %v25263_v63  ;;  %v25293_v59 = vand.u32 4294901760, %v25292_v4 }
 0x16e   :  { %41797 = vmatprep.subr.bf16.mxu1 %v41796_v6  ;;  %25110 = vmatprep.mubr.f32.mxu0 %v45769_v62  ;;  %v45978_v36 = vpack.c.bf16 %v25199_v35, %v25195_v32  ;;  %v25287_v35 = vand.u32 4294901760, %v25286_v11  ;;  %v387_v11 = vld [vmem:[#allocation5 + $0x568] sm:$0x7f] }
 0x16f   :  { %42749 = vmatprep.subr.bf16.mxu0 %v45798_v57  ;;  %v25280_v57 = vsub.f32 %v45931_v14, %v25279_v58  ;;  %v25297_v10 = vand.u32 4294901760, %v45949_v9  ;;  %v25269_v43 = vand.u32 4294901760, %v45964_v21  ;;  %v25265_v51 = vand.u32 4294901760, %v25264_v2 }
 0x170   :  { %v5775_v33 = vand.u32 4294901760, %v387_v11 }
 0x171   :  { %v25281_v6 = vand.u32 4294901760, %v25280_v57  ;;  %v25270_v32 = vsub.f32 %v45964_v21, %v25269_v43 }
 0x173   :  { %5352 = vmatmul.mubr.f32.vlgmr.msra.gmra.mrb[0].mxu1 %v5351_v25  ;;  %v42756_v28 = vpack.c.bf16 %v25293_v59, %v25281_v6  ;;  %v25271_v57 = vand.u32 4294901760, %v25270_v32  ;;  %v41808_v6 = vpack.c.bf16 %v5371_v48, %v5359_v3  ;;  %v42760_v59 = vpack.c.bf16 %v45933_v45, %v45931_v14 }
 0x174   :  { %41799 = vmatpush1.bf16.xpose.msra.mxu1 %v41798_v13  ;;  %25112 = vmatmul.mubr.f32.vlgmr.msra.gmra.mrb[0].mxu0 %v45789_v24  ;;  %v44551_v13 = vld [vmem:[#allocation2 + $0x1c] ss:$316 sps:$4 sm:$0xff]   ;;  %v41810_v3 = vpack.c.bf16 %v5377_v16, %v5365_v29  ;;  %v42762_v48 = vpack.c.bf16 %v45949_v9, %v45947_v26 }
 0x175   :  { %42751 = vmatpush1.bf16.xpose.msra.mxu0 %v45822_v38  ;;  %5442 = vmatprep.mubr.f32.mxu1 %v45857_v55  ;;  %v41802_v38 = vpack.c.bf16 %v45879_v47, %v45877_v42 }
 0x176   :  { %41801 = vmatprep.subr.bf16.mxu1 %v41800_v30  ;;  %25186 = vmatprep.mubr.f32.mxu0 %v45769_v62  ;;  %v25298_v62 = vsub.f32 %v45949_v9, %v25297_v10  ;;  %v44552_v30 = vld [vmem:[#allocation2 + $0x294] ss:$316 sps:$4 sm:$0xff]  }
 0x177   :  { %42753 = vmatprep.subr.bf16.mxu0 %v45954_v44  ;;  %v836_v2 = vrot.slane %v44552_v30, %v44898_v17 }
 0x178   :  { %v25299_v25 = vand.u32 4294901760, %v25298_v62 }
 0x17a   :  { %v42758_v4 = vpack.c.bf16 %v25299_v25, %v25287_v35  ;;  %v44554_v25 = vld [vmem:[#allocation2 + $0x334] ss:$316 sps:$4 sm:$0xff]  }
 0x17b   :  { %5444 = vmatmul.mubr.f32.vlgmr.msra.gmra.mrb[0].mxu1 %v45875_v54 }
 0x17c   :  { %41803 = vmatpush1.bf16.xpose.msra.mxu1 %v41802_v38  ;;  %25188 = vmatmul.mubr.f32.vlgmr.msra.gmra.mrb[0].mxu0 %v45789_v24  ;;  %v822_v24 = vrot.slane %v44551_v13, %v44898_v17  ;;  %v229_v38 = vld [vmem:[#allocation5 + $0x78] sm:$0xff] }
 0x17d   :  { %42755 = vmatpush1.bf16.xpose.msra.mxu0 %v45978_v36  ;;  %5523 = vmatprep.mubr.f32.mxu1 %v45868_v46  ;;  %v5771_v15 = vand.u32 4294901760, %v229_v38 }
 0x17e   :  { %41805 = vmatprep.subr.bf16.mxu1 %v45881_v31  ;;  %25266 = vmatprep.mubr.f32.mxu0 %v25265_v51  ;;  %v840_v62 = vcombine.high %v822_v24, %v836_v2  ;;  %v228_v51 = vld [vmem:[#allocation5 + $0x70] sm:$0xff]  ;;  %v839_v35 = vcombine.low %v822_v24, %v836_v2 }
 0x17f   :  { %42757 = vmatprep.subr.bf16.mxu0 %v42756_v28  ;;  %v386_v28 = vld [vmem:[#allocation5 + $0x560] sm:$0x7f]  ;;  %v46015_v46 = vsub.f32 %v229_v38, %v5771_v15  ;;  %v5773_v42 = vand.u32 4294901760, %v228_v51  ;;  %v42768_v38 = vpack.c.bf16 %v25291_v7, %v25279_v58 }
 0x180   :  { %v46013_v32 = vand.u32 4294901760, %v840_v62  ;;  %v5777_v47 = vand.u32 4294901760, %v386_v28  ;;  %v46031_v13 = vand.u32 4294901760, %v839_v35 }
 0x181   :  { %v5857_v16 = vand.u32 4294901760, %v46015_v46  ;;  %v46033_v30 = vsub.f32 %v228_v51, %v5773_v42 }
 0x182   :  { %v46024_v29 = vsub.f32 %v840_v62, %v46013_v32 }
 0x183   :  { %5526 = vmatmul.mubr.f32.vlgmr.msra.gmra.mrb[0].mxu1 %v45898_v12  ;;  %v5858_v24 = vsub.f32 %v46015_v46, %v5857_v16  ;;  %v5863_v62 = vand.u32 4294901760, %v46033_v30 }
 0x184   :  { %41807 = vmatpush1.bf16.xpose.msra.mxu1 %v45913_v56  ;;  %25272 = vmatmul.mubr.f32.vlgmr.msra.gmra.mrb[0].mxu0 %v25271_v57  ;;  %v46035_v57 = vsub.f32 %v386_v28, %v5777_v47  ;;  %v46069_v28 = vpack.c.bf16 %v5777_v47, %v5773_v42 }
 0x185   :  { %42759 = vmatpush1.bf16.xpose.msra.mxu0 %v42758_v4  ;;  %5602 = vmatprep.mubr.f32.mxu1 %v5343_v37  ;;  %v46017_v37 = vsub.f32 %v387_v11, %v5775_v33  ;;  %v46037_v4 = vpack.c.bf16 %v5775_v33, %v5771_v15  ;;  %v46054_v11 = vsub.f32 %v839_v35, %v46031_v13  ;;  %v309_v33 = vld [vmem:[#allocation5 + $0x2f8] sm:$0xff] }
 0x186   :  { %41809 = vmatprep.subr.bf16.mxu1 %v41808_v6  ;;  %25362 = vmatprep.mubr.f32.mxu0 %v45925_v1  ;;  %v5875_v15 = vand.u32 4294901760, %v46035_v57 }
 0x187   :  { %42761 = vmatprep.subr.bf16.mxu0 %v42760_v59  ;;  %v5869_v12 = vand.u32 4294901760, %v46017_v37  ;;  %v1556_v59 = vrot.slane %v44554_v25, %v44898_v17  ;;  %v5847_v7 = vand.u32 4294901760, %v46054_v11  ;;  %v308_v25 = vld [vmem:[#allocation5 + $0x2f0] sm:$0xff] }
 0x188   :  { %v5876_v35 = vsub.f32 %v46035_v57, %v5875_v15 }
 0x189   :  { %v5870_v2 = vsub.f32 %v46017_v37, %v5869_v12  ;;  %v5848_v42 = vsub.f32 %v46054_v11, %v5847_v7 }
 0x18a   :  { %v5877_v9 = vand.u32 4294901760, %v5876_v35 }
 0x18b   :  { %5606 = vmatmul.mubr.f32.vlgmr.msra.gmra.mrb[0].mxu1 %v5349_v8  ;;  %v44553_v8 = vld [vmem:[#allocation2 + $0xbc] ss:$316 sps:$4 sm:$0xff]   ;;  %v5871_v45 = vand.u32 4294901760, %v5870_v2 }
 0x18c   :  { %41811 = vmatpush1.bf16.xpose.msra.mxu1 %v41810_v3  ;;  %25364 = vmatmul.mubr.f32.vlgmr.msra.gmra.mrb[0].mxu0 %v45945_v50  ;;  %v1542_v6 = vrot.slane %v44553_v8, %v44898_v17  ;;  %v467_v3 = vld [vmem:[#allocation5 + $0x7e8] sm:$0x7f] }
 0x18d   :  { %42763 = vmatpush1.bf16.xpose.msra.mxu0 %v42762_v48  ;;  %5688 = vmatprep.mubr.f32.mxu1 %v45857_v55  ;;  %v25691_v48 = vand.u32 4294901760, %v309_v33  ;;  %v25695_v51 = vand.u32 4294901760, %v467_v3 }
 0x18e   :  { %41813 = vmatprep.subr.bf16.mxu1 %v45881_v31  ;;  %25443 = vmatprep.mubr.f32.mxu0 %v45940_v0  ;;  %v5841_v31 = vand.u32 4294901760, %v46024_v29  ;;  %v1560_v58 = vcombine.high %v1542_v6, %v1556_v59  ;;  %v42770_v0 = vpack.c.bf16 %v25297_v10, %v25285_v39  ;;  %v1559_v39 = vcombine.low %v1542_v6, %v1556_v59 }
 0x18f   :  { %42765 = vmatprep.subr.bf16.mxu0 %v45954_v44  ;;  %v46087_v47 = vsub.f32 %v309_v33, %v25691_v48  ;;  %v25693_v10 = vand.u32 4294901760, %v308_v25 }
 0x190   :  { %v5842_v14 = vsub.f32 %v46024_v29, %v5841_v31  ;;  %v46081_v2 = vand.u32 4294901760, %v1560_v58 }
 0x191   :  { %v46103_v6 = vsub.f32 %v308_v25, %v25693_v10 }
 0x192   :  { %v46096_v33 = vsub.f32 %v1560_v58, %v46081_v2 }
 0x193   :  { %5690 = vmatmul.mubr.f32.vlgmr.msra.gmra.mrb[0].mxu1 %v45875_v54 }
 0x194   :  { %41815 = vmatpush1.bf16.xpose.msra.mxu1 %v45913_v56  ;;  %25446 = vmatmul.mubr.f32.vlgmr.msra.gmra.mrb[0].mxu0 %v45964_v21  ;;  %v5859_v56 = vand.u32 4294901760, %v5858_v24  ;;  %v466_v24 = vld [vmem:[#allocation5 + $0x7e0] sm:$0x7f]  ;;  %v25761_v58 = vand.u32 4294901760, %v46096_v33 }
 0x195   :  { %42767 = vmatpush1.bf16.xpose.msra.mxu0 %v45978_v36  ;;  %5764 = vmatprep.mubr.f32.mxu1 %v45857_v55  ;;  %v5864_v55 = vsub.f32 %v46033_v30, %v5863_v62 }
 0x196   :  { %41817 = vmatprep.subr.bf16.mxu1 %v46037_v4  ;;  %25522 = vmatprep.mubr.f32.mxu0 %v25263_v63  ;;  %v5843_v63 = vand.u32 4294901760, %v5842_v14  ;;  %v41820_v8 = vpack.c.bf16 %v5871_v45, %v5859_v56  ;;  %v25777_v14 = vand.u32 4294901760, %v46087_v47  ;;  %v46101_v56 = vand.u32 4294901760, %v1559_v39 }
 0x197   :  { %42769 = vmatprep.subr.bf16.mxu0 %v42768_v38  ;;  %v46089_v38 = vsub.f32 %v467_v3, %v25695_v51  ;;  %v5865_v26 = vand.u32 4294901760, %v5864_v55  ;;  %v5849_v3 = vand.u32 4294901760, %v5848_v42  ;;  %v41824_v45 = vpack.c.bf16 %v46017_v37, %v46015_v46 }
 0x198   :  { %v46110_v55 = vpack.c.bf16 %v25695_v51, %v25691_v48  ;;  %v25783_v48 = vand.u32 4294901760, %v46103_v6 }
 0x199   :  { %v25789_v21 = vand.u32 4294901760, %v46089_v38 }
 0x19b   :  { %5766 = vmatmul.mubr.f32.vlgmr.msra.gmra.mrb[0].mxu1 %v45875_v54  ;;  %v25697_v54 = vand.u32 4294901760, %v466_v24  ;;  %v25790_v35 = vsub.f32 %v46089_v38, %v25789_v21 }
 0x19c   :  { %41819 = vmatpush1.bf16.xpose.msra.mxu1 %v46069_v28  ;;  %25526 = vmatmul.mubr.f32.vlgmr.msra.gmra.mrb[0].mxu0 %v25269_v43  ;;  %v41822_v43 = vpack.c.bf16 %v5877_v9, %v5865_v26  ;;  %v25784_v26 = vsub.f32 %v46103_v6, %v25783_v48 }
 0x19d   :  { %42771 = vmatpush1.bf16.xpose.msra.mxu0 %v42770_v0  ;;  %5844 = vmatprep.mubr.f32.mxu1 %v5843_v63  ;;  %v46105_v59 = vsub.f32 %v466_v24, %v25697_v54  ;;  %v46120_v0 = vsub.f32 %v1559_v39, %v46101_v56  ;;  %v25762_v63 = vsub.f32 %v46096_v33, %v25761_v58  ;;  %v25791_v25 = vand.u32 4294901760, %v25790_v35 }
 0x19e   :  { %41821 = vmatprep.subr.bf16.mxu1 %v41820_v8  ;;  %25608 = vmatprep.mubr.f32.mxu0 %v45925_v1  ;;  %v46134_v42 = vpack.c.bf16 %v25697_v54, %v25693_v10  ;;  %v25785_v54 = vand.u32 4294901760, %v25784_v26  ;;  %v389_v26 = vld [vmem:[#allocation5 + $0x578] sm:$0x7f] }
 0x19f   :  { %42773 = vmatprep.subr.bf16.mxu0 %v45954_v44  ;;  %v25778_v44 = vsub.f32 %v46087_v47, %v25777_v14  ;;  %v25795_v51 = vand.u32 4294901760, %v46105_v59  ;;  %v25767_v24 = vand.u32 4294901760, %v46120_v0  ;;  %v25763_v9 = vand.u32 4294901760, %v25762_v63 }
 0x1a0   :  { %v6273_v37 = vand.u32 4294901760, %v389_v26 }
 0x1a1   :  { %v25779_v8 = vand.u32 4294901760, %v25778_v44  ;;  %v25768_v10 = vsub.f32 %v46120_v0, %v25767_v24 }
 0x1a3   :  { %5850 = vmatmul.mubr.f32.vlgmr.msra.gmra.mrb[0].mxu1 %v5849_v3  ;;  %v42780_v39 = vpack.c.bf16 %v25791_v25, %v25779_v8  ;;  %v25769_v44 = vand.u32 4294901760, %v25768_v10  ;;  %v41832_v8 = vpack.c.bf16 %v5869_v12, %v5857_v16  ;;  %v42784_v25 = vpack.c.bf16 %v46089_v38, %v46087_v47 }
 0x1a4   :  { %41823 = vmatpush1.bf16.xpose.msra.mxu1 %v41822_v43  ;;  %25610 = vmatmul.mubr.f32.vlgmr.msra.gmra.mrb[0].mxu0 %v45945_v50  ;;  %v44555_v43 = vld [vmem:[#allocation2 + $0x20] ss:$316 sps:$4 sm:$0xff]   ;;  %v41834_v16 = vpack.c.bf16 %v5875_v15, %v5863_v62  ;;  %v42786_v12 = vpack.c.bf16 %v46105_v59, %v46103_v6 }
 0x1a5   :  { %42775 = vmatpush1.bf16.xpose.msra.mxu0 %v45978_v36  ;;  %5940 = vmatprep.mubr.f32.mxu1 %v46013_v32  ;;  %v41826_v36 = vpack.c.bf16 %v46035_v57, %v46033_v30 }
 0x1a6   :  { %41825 = vmatprep.subr.bf16.mxu1 %v41824_v45  ;;  %25684 = vmatprep.mubr.f32.mxu0 %v45925_v1  ;;  %v25796_v1 = vsub.f32 %v46105_v59, %v25795_v51  ;;  %v44557_v45 = vld [vmem:[#allocation2 + $0x298] ss:$316 sps:$4 sm:$0xff]  }
 0x1a7   :  { %42777 = vmatprep.subr.bf16.mxu0 %v46110_v55  ;;  %v865_v63 = vrot.slane %v44557_v45, %v44898_v17 }
 0x1a8   :  { %v25797_v3 = vand.u32 4294901760, %v25796_v1 }
 0x1aa   :  { %v42782_v35 = vpack.c.bf16 %v25797_v3, %v25785_v54  ;;  %v44561_v3 = vld [vmem:[#allocation2 + $0x338] ss:$316 sps:$4 sm:$0xff]  }
 0x1ab   :  { %5942 = vmatmul.mubr.f32.vlgmr.msra.gmra.mrb[0].mxu1 %v46031_v13 }
 0x1ac   :  { %41827 = vmatpush1.bf16.xpose.msra.mxu1 %v41826_v36  ;;  %25686 = vmatmul.mubr.f32.vlgmr.msra.gmra.mrb[0].mxu0 %v45945_v50  ;;  %v851_v50 = vrot.slane %v44555_v43, %v44898_v17  ;;  %v231_v36 = vld [vmem:[#allocation5 + $0x88] sm:$0xff] }
 0x1ad   :  { %42779 = vmatpush1.bf16.xpose.msra.mxu0 %v46134_v42  ;;  %6021 = vmatprep.mubr.f32.mxu1 %v46024_v29  ;;  %v6269_v46 = vand.u32 4294901760, %v231_v36 }
 0x1ae   :  { %41829 = vmatprep.subr.bf16.mxu1 %v46037_v4  ;;  %25764 = vmatprep.mubr.f32.mxu0 %v25763_v9  ;;  %v874_v1 = vcombine.high %v851_v50, %v865_v63  ;;  %v230_v9 = vld [vmem:[#allocation5 + $0x80] sm:$0xff]  ;;  %v873_v54 = vcombine.low %v851_v50, %v865_v63 }
 0x1af   :  { %42781 = vmatprep.subr.bf16.mxu0 %v42780_v39  ;;  %v388_v39 = vld [vmem:[#allocation5 + $0x570] sm:$0x7f]  ;;  %v46171_v29 = vsub.f32 %v231_v36, %v6269_v46  ;;  %v6271_v30 = vand.u32 4294901760, %v230_v9  ;;  %v42792_v36 = vpack.c.bf16 %v25789_v21, %v25777_v14 }
 0x1b0   :  { %v46169_v10 = vand.u32 4294901760, %v874_v1  ;;  %v6275_v57 = vand.u32 4294901760, %v388_v39  ;;  %v46187_v43 = vand.u32 4294901760, %v873_v54 }
 0x1b1   :  { %v6355_v15 = vand.u32 4294901760, %v46171_v29  ;;  %v46189_v45 = vsub.f32 %v230_v9, %v6271_v30 }
 0x1b2   :  { %v46180_v62 = vsub.f32 %v874_v1, %v46169_v10 }
 0x1b3   :  { %6024 = vmatmul.mubr.f32.vlgmr.msra.gmra.mrb[0].mxu1 %v46054_v11  ;;  %v6356_v50 = vsub.f32 %v46171_v29, %v6355_v15  ;;  %v6361_v1 = vand.u32 4294901760, %v46189_v45 }
 0x1b4   :  { %41831 = vmatpush1.bf16.xpose.msra.mxu1 %v46069_v28  ;;  %25770 = vmatmul.mubr.f32.vlgmr.msra.gmra.mrb[0].mxu0 %v25769_v44  ;;  %v46191_v44 = vsub.f32 %v388_v39, %v6275_v57  ;;  %v46225_v39 = vpack.c.bf16 %v6275_v57, %v6271_v30 }
 0x1b5   :  { %42783 = vmatpush1.bf16.xpose.msra.mxu0 %v42782_v35  ;;  %6100 = vmatprep.mubr.f32.mxu1 %v5841_v31  ;;  %v46173_v31 = vsub.f32 %v389_v26, %v6273_v37  ;;  %v46193_v35 = vpack.c.bf16 %v6273_v37, %v6269_v46  ;;  %v46210_v26 = vsub.f32 %v873_v54, %v46187_v43  ;;  %v311_v37 = vld [vmem:[#allocation5 + $0x308] sm:$0xff] }
 0x1b6   :  { %41833 = vmatprep.subr.bf16.mxu1 %v41832_v8  ;;  %25860 = vmatprep.mubr.f32.mxu0 %v46081_v2  ;;  %v6373_v46 = vand.u32 4294901760, %v46191_v44 }
 0x1b7   :  { %42785 = vmatprep.subr.bf16.mxu0 %v42784_v25  ;;  %v6367_v11 = vand.u32 4294901760, %v46173_v31  ;;  %v1585_v25 = vrot.slane %v44561_v3, %v44898_v17  ;;  %v6345_v21 = vand.u32 4294901760, %v46210_v26  ;;  %v310_v3 = vld [vmem:[#allocation5 + $0x300] sm:$0xff] }
 0x1b8   :  { %v6374_v54 = vsub.f32 %v46191_v44, %v6373_v46 }
 0x1b9   :  { %v6368_v63 = vsub.f32 %v46173_v31, %v6367_v11  ;;  %v6346_v30 = vsub.f32 %v46210_v26, %v6345_v21 }
 0x1ba   :  { %v6375_v59 = vand.u32 4294901760, %v6374_v54 }
 0x1bb   :  { %6104 = vmatmul.mubr.f32.vlgmr.msra.gmra.mrb[0].mxu1 %v5847_v7  ;;  %v44559_v7 = vld [vmem:[#allocation2 + $0xc0] ss:$316 sps:$4 sm:$0xff]   ;;  %v6369_v38 = vand.u32 4294901760, %v6368_v63 }
 0x1bc   :  { %41835 = vmatpush1.bf16.xpose.msra.mxu1 %v41834_v16  ;;  %25862 = vmatmul.mubr.f32.vlgmr.msra.gmra.mrb[0].mxu0 %v46101_v56  ;;  %v1571_v8 = vrot.slane %v44559_v7, %v44898_v17  ;;  %v469_v16 = vld [vmem:[#allocation5 + $0x7f8] sm:$0x7f] }
 0x1bd   :  { %42787 = vmatpush1.bf16.xpose.msra.mxu0 %v42786_v12  ;;  %6186 = vmatprep.mubr.f32.mxu1 %v46013_v32  ;;  %v26189_v12 = vand.u32 4294901760, %v311_v37  ;;  %v26193_v9 = vand.u32 4294901760, %v469_v16 }
 0x1be   :  { %41837 = vmatprep.subr.bf16.mxu1 %v46037_v4  ;;  %25941 = vmatprep.mubr.f32.mxu0 %v46096_v33  ;;  %v6339_v4 = vand.u32 4294901760, %v46180_v62  ;;  %v1594_v14 = vcombine.high %v1571_v8, %v1585_v25  ;;  %v42794_v33 = vpack.c.bf16 %v25795_v51, %v25783_v48  ;;  %v1593_v48 = vcombine.low %v1571_v8, %v1585_v25 }
 0x1bf   :  { %42789 = vmatprep.subr.bf16.mxu0 %v46110_v55  ;;  %v46243_v57 = vsub.f32 %v311_v37, %v26189_v12  ;;  %v26191_v51 = vand.u32 4294901760, %v310_v3 }
 0x1c0   :  { %v6340_v47 = vsub.f32 %v46180_v62, %v6339_v4  ;;  %v46237_v63 = vand.u32 4294901760, %v1594_v14 }
 0x1c1   :  { %v46259_v8 = vsub.f32 %v310_v3, %v26191_v51 }
 0x1c2   :  { %v46252_v37 = vsub.f32 %v1594_v14, %v46237_v63 }
 0x1c3   :  { %6188 = vmatmul.mubr.f32.vlgmr.msra.gmra.mrb[0].mxu1 %v46031_v13 }
 0x1c4   :  { %41839 = vmatpush1.bf16.xpose.msra.mxu1 %v46069_v28  ;;  %25944 = vmatmul.mubr.f32.vlgmr.msra.gmra.mrb[0].mxu0 %v46120_v0  ;;  %v6357_v28 = vand.u32 4294901760, %v6356_v50  ;;  %v468_v50 = vld [vmem:[#allocation5 + $0x7f0] sm:$0x7f]  ;;  %v26259_v14 = vand.u32 4294901760, %v46252_v37 }
 0x1c5   :  { %42791 = vmatpush1.bf16.xpose.msra.mxu0 %v46134_v42  ;;  %6262 = vmatprep.mubr.f32.mxu1 %v46013_v32  ;;  %v6362_v32 = vsub.f32 %v46189_v45, %v6361_v1 }
 0x1c6   :  { %41841 = vmatprep.subr.bf16.mxu1 %v46193_v35  ;;  %26020 = vmatprep.mubr.f32.mxu0 %v25761_v58  ;;  %v6341_v58 = vand.u32 4294901760, %v6340_v47  ;;  %v41844_v7 = vpack.c.bf16 %v6369_v38, %v6357_v28  ;;  %v26275_v47 = vand.u32 4294901760, %v46243_v57  ;;  %v46257_v28 = vand.u32 4294901760, %v1593_v48 }
 0x1c7   :  { %42793 = vmatprep.subr.bf16.mxu0 %v42792_v36  ;;  %v46245_v36 = vsub.f32 %v469_v16, %v26193_v9  ;;  %v6363_v6 = vand.u32 4294901760, %v6362_v32  ;;  %v6347_v16 = vand.u32 4294901760, %v6346_v30  ;;  %v41848_v38 = vpack.c.bf16 %v46173_v31, %v46171_v29 }
 0x1c8   :  { %v46266_v32 = vpack.c.bf16 %v26193_v9, %v26189_v12  ;;  %v26281_v12 = vand.u32 4294901760, %v46259_v8 }
 0x1c9   :  { %v26287_v0 = vand.u32 4294901760, %v46245_v36 }
 0x1cb   :  { %6264 = vmatmul.mubr.f32.vlgmr.msra.gmra.mrb[0].mxu1 %v46031_v13  ;;  %v26195_v13 = vand.u32 4294901760, %v468_v50  ;;  %v26288_v54 = vsub.f32 %v46245_v36, %v26287_v0 }
 0x1cc   :  { %41843 = vmatpush1.bf16.xpose.msra.mxu1 %v46225_v39  ;;  %26024 = vmatmul.mubr.f32.vlgmr.msra.gmra.mrb[0].mxu0 %v25767_v24  ;;  %v41846_v24 = vpack.c.bf16 %v6375_v59, %v6363_v6  ;;  %v26282_v6 = vsub.f32 %v46259_v8, %v26281_v12 }
 0x1cd   :  { %42795 = vmatpush1.bf16.xpose.msra.mxu0 %v42794_v33  ;;  %6342 = vmatprep.mubr.f32.mxu1 %v6341_v58  ;;  %v46261_v25 = vsub.f32 %v468_v50, %v26195_v13  ;;  %v46276_v33 = vsub.f32 %v1593_v48, %v46257_v28  ;;  %v26260_v58 = vsub.f32 %v46252_v37, %v26259_v14  ;;  %v26289_v3 = vand.u32 4294901760, %v26288_v54 }
 0x1ce   :  { %41845 = vmatprep.subr.bf16.mxu1 %v41844_v7  ;;  %26106 = vmatprep.mubr.f32.mxu0 %v46081_v2  ;;  %v46290_v30 = vpack.c.bf16 %v26195_v13, %v26191_v51  ;;  %v26283_v13 = vand.u32 4294901760, %v26282_v6  ;;  %v391_v6 = vld [vmem:[#allocation5 + $0x588] sm:$0x7f] }
 0x1cf   :  { %42797 = vmatprep.subr.bf16.mxu0 %v46110_v55  ;;  %v26276_v55 = vsub.f32 %v46243_v57, %v26275_v47  ;;  %v26293_v9 = vand.u32 4294901760, %v46261_v25  ;;  %v26265_v50 = vand.u32 4294901760, %v46276_v33  ;;  %v26261_v59 = vand.u32 4294901760, %v26260_v58 }
 0x1d0   :  { %v6771_v31 = vand.u32 4294901760, %v391_v6 }
 0x1d1   :  { %v26277_v7 = vand.u32 4294901760, %v26276_v55  ;;  %v26266_v51 = vsub.f32 %v46276_v33, %v26265_v50 }
 0x1d3   :  { %6348 = vmatmul.mubr.f32.vlgmr.msra.gmra.mrb[0].mxu1 %v6347_v16  ;;  %v42804_v48 = vpack.c.bf16 %v26289_v3, %v26277_v7  ;;  %v26267_v55 = vand.u32 4294901760, %v26266_v51  ;;  %v41856_v7 = vpack.c.bf16 %v6367_v11, %v6355_v15  ;;  %v42808_v3 = vpack.c.bf16 %v46245_v36, %v46243_v57 }
 0x1d4   :  { %41847 = vmatpush1.bf16.xpose.msra.mxu1 %v41846_v24  ;;  %26108 = vmatmul.mubr.f32.vlgmr.msra.gmra.mrb[0].mxu0 %v46101_v56  ;;  %v44563_v24 = vld [vmem:[#allocation2 + $0x24] ss:$316 sps:$4 sm:$0xff]   ;;  %v41858_v15 = vpack.c.bf16 %v6373_v46, %v6361_v1  ;;  %v42810_v11 = vpack.c.bf16 %v46261_v25, %v46259_v8 }
 0x1d5   :  { %42799 = vmatpush1.bf16.xpose.msra.mxu0 %v46134_v42  ;;  %6438 = vmatprep.mubr.f32.mxu1 %v46169_v10  ;;  %v41850_v42 = vpack.c.bf16 %v46191_v44, %v46189_v45 }
 0x1d6   :  { %41849 = vmatprep.subr.bf16.mxu1 %v41848_v38  ;;  %26182 = vmatprep.mubr.f32.mxu0 %v46081_v2  ;;  %v26294_v2 = vsub.f32 %v46261_v25, %v26293_v9  ;;  %v44564_v38 = vld [vmem:[#allocation2 + $0x29c] ss:$316 sps:$4 sm:$0xff]  }
 0x1d7   :  { %42801 = vmatprep.subr.bf16.mxu0 %v46266_v32  ;;  %v872_v58 = vrot.slane %v44564_v38, %v44898_v17 }
 0x1d8   :  { %v26295_v16 = vand.u32 4294901760, %v26294_v2 }
 0x1da   :  { %v42806_v54 = vpack.c.bf16 %v26295_v16, %v26283_v13  ;;  %v44566_v16 = vld [vmem:[#allocation2 + $0x33c] ss:$316 sps:$4 sm:$0xff]  }
 0x1db   :  { %6440 = vmatmul.mubr.f32.vlgmr.msra.gmra.mrb[0].mxu1 %v46187_v43 }
 0x1dc   :  { %41851 = vmatpush1.bf16.xpose.msra.mxu1 %v41850_v42  ;;  %26184 = vmatmul.mubr.f32.vlgmr.msra.gmra.mrb[0].mxu0 %v46101_v56  ;;  %v858_v56 = vrot.slane %v44563_v24, %v44898_v17  ;;  %v233_v42 = vld [vmem:[#allocation5 + $0x98] sm:$0xff] }
 0x1dd   :  { %42803 = vmatpush1.bf16.xpose.msra.mxu0 %v46290_v30  ;;  %6519 = vmatprep.mubr.f32.mxu1 %v46180_v62  ;;  %v6767_v29 = vand.u32 4294901760, %v233_v42 }
 0x1de   :  { %41853 = vmatprep.subr.bf16.mxu1 %v46193_v35  ;;  %26262 = vmatprep.mubr.f32.mxu0 %v26261_v59  ;;  %v876_v2 = vcombine.high %v858_v56, %v872_v58  ;;  %v232_v59 = vld [vmem:[#allocation5 + $0x90] sm:$0xff]  ;;  %v875_v13 = vcombine.low %v858_v56, %v872_v58 }
 0x1df   :  { %42805 = vmatprep.subr.bf16.mxu0 %v42804_v48  ;;  %v390_v48 = vld [vmem:[#allocation5 + $0x580] sm:$0x7f]  ;;  %v46327_v62 = vsub.f32 %v233_v42, %v6767_v29  ;;  %v6769_v45 = vand.u32 4294901760, %v232_v59  ;;  %v42816_v42 = vpack.c.bf16 %v26287_v0, %v26275_v47 }
 0x1e0   :  { %v46325_v51 = vand.u32 4294901760, %v876_v2  ;;  %v6773_v44 = vand.u32 4294901760, %v390_v48  ;;  %v46343_v24 = vand.u32 4294901760, %v875_v13 }
 0x1e1   :  { %v6853_v46 = vand.u32 4294901760, %v46327_v62  ;;  %v46345_v38 = vsub.f32 %v232_v59, %v6769_v45 }
 0x1e2   :  { %v46336_v1 = vsub.f32 %v876_v2, %v46325_v51 }
 0x1e3   :  { %6522 = vmatmul.mubr.f32.vlgmr.msra.gmra.mrb[0].mxu1 %v46210_v26  ;;  %v6854_v56 = vsub.f32 %v46327_v62, %v6853_v46  ;;  %v6859_v2 = vand.u32 4294901760, %v46345_v38 }
 0x1e4   :  { %41855 = vmatpush1.bf16.xpose.msra.mxu1 %v46225_v39  ;;  %26268 = vmatmul.mubr.f32.vlgmr.msra.gmra.mrb[0].mxu0 %v26267_v55  ;;  %v46347_v55 = vsub.f32 %v390_v48, %v6773_v44  ;;  %v46381_v48 = vpack.c.bf16 %v6773_v44, %v6769_v45 }
 0x1e5   :  { %42807 = vmatpush1.bf16.xpose.msra.mxu0 %v42806_v54  ;;  %6598 = vmatprep.mubr.f32.mxu1 %v6339_v4  ;;  %v46329_v4 = vsub.f32 %v391_v6, %v6771_v31  ;;  %v46349_v54 = vpack.c.bf16 %v6771_v31, %v6767_v29  ;;  %v46366_v6 = vsub.f32 %v875_v13, %v46343_v24  ;;  %v313_v31 = vld [vmem:[#allocation5 + $0x318] sm:$0xff] }
 0x1e6   :  { %41857 = vmatprep.subr.bf16.mxu1 %v41856_v7  ;;  %26358 = vmatprep.mubr.f32.mxu0 %v46237_v63  ;;  %v6871_v29 = vand.u32 4294901760, %v46347_v55 }
 0x1e7   :  { %42809 = vmatprep.subr.bf16.mxu0 %v42808_v3  ;;  %v6865_v26 = vand.u32 4294901760, %v46329_v4  ;;  %v1592_v3 = vrot.slane %v44566_v16, %v44898_v17  ;;  %v6843_v0 = vand.u32 4294901760, %v46366_v6  ;;  %v312_v16 = vld [vmem:[#allocation5 + $0x310] sm:$0xff] }
 0x1e8   :  { %v6872_v13 = vsub.f32 %v46347_v55, %v6871_v29 }
 0x1e9   :  { %v6866_v58 = vsub.f32 %v46329_v4, %v6865_v26  ;;  %v6844_v45 = vsub.f32 %v46366_v6, %v6843_v0 }
 0x1ea   :  { %v6873_v25 = vand.u32 4294901760, %v6872_v13 }
 0x1eb   :  { %6602 = vmatmul.mubr.f32.vlgmr.msra.gmra.mrb[0].mxu1 %v6345_v21  ;;  %v44565_v21 = vld [vmem:[#allocation2 + $0xc4] ss:$316 sps:$4 sm:$0xff]   ;;  %v6867_v36 = vand.u32 4294901760, %v6866_v58 }
 0x1ec   :  { %41859 = vmatpush1.bf16.xpose.msra.mxu1 %v41858_v15  ;;  %26360 = vmatmul.mubr.f32.vlgmr.msra.gmra.mrb[0].mxu0 %v46257_v28  ;;  %v1578_v7 = vrot.slane %v44565_v21, %v44898_v17  ;;  %v471_v15 = vld [vmem:[#allocation5 + $0x808] sm:$0x7f] }
 0x1ed   :  { %42811 = vmatpush1.bf16.xpose.msra.mxu0 %v42810_v11  ;;  %6684 = vmatprep.mubr.f32.mxu1 %v46169_v10  ;;  %v26687_v11 = vand.u32 4294901760, %v313_v31  ;;  %v26691_v59 = vand.u32 4294901760, %v471_v15 }
 0x1ee   :  { %41861 = vmatprep.subr.bf16.mxu1 %v46193_v35  ;;  %26439 = vmatprep.mubr.f32.mxu0 %v46252_v37  ;;  %v6837_v35 = vand.u32 4294901760, %v46336_v1  ;;  %v1596_v47 = vcombine.high %v1578_v7, %v1592_v3  ;;  %v42818_v37 = vpack.c.bf16 %v26293_v9, %v26281_v12  ;;  %v1595_v12 = vcombine.low %v1578_v7, %v1592_v3 }
 0x1ef   :  { %42813 = vmatprep.subr.bf16.mxu0 %v46266_v32  ;;  %v46399_v44 = vsub.f32 %v313_v31, %v26687_v11  ;;  %v26689_v9 = vand.u32 4294901760, %v312_v16 }
 0x1f0   :  { %v6838_v57 = vsub.f32 %v46336_v1, %v6837_v35  ;;  %v46393_v58 = vand.u32 4294901760, %v1596_v47 }
 0x1f1   :  { %v46415_v7 = vsub.f32 %v312_v16, %v26689_v9 }
 0x1f2   :  { %v46408_v31 = vsub.f32 %v1596_v47, %v46393_v58 }
 0x1f3   :  { %6686 = vmatmul.mubr.f32.vlgmr.msra.gmra.mrb[0].mxu1 %v46187_v43 }
 0x1f4   :  { %41863 = vmatpush1.bf16.xpose.msra.mxu1 %v46225_v39  ;;  %26442 = vmatmul.mubr.f32.vlgmr.msra.gmra.mrb[0].mxu0 %v46276_v33  ;;  %v6855_v39 = vand.u32 4294901760, %v6854_v56  ;;  %v470_v56 = vld [vmem:[#allocation5 + $0x800] sm:$0x7f]  ;;  %v26757_v47 = vand.u32 4294901760, %v46408_v31 }
 0x1f5   :  { %42815 = vmatpush1.bf16.xpose.msra.mxu0 %v46290_v30  ;;  %6760 = vmatprep.mubr.f32.mxu1 %v46169_v10  ;;  %v6860_v10 = vsub.f32 %v46345_v38, %v6859_v2 }
 0x1f6   :  { %41865 = vmatprep.subr.bf16.mxu1 %v46349_v54  ;;  %26518 = vmatprep.mubr.f32.mxu0 %v26259_v14  ;;  %v6839_v14 = vand.u32 4294901760, %v6838_v57  ;;  %v41868_v21 = vpack.c.bf16 %v6867_v36, %v6855_v39  ;;  %v26773_v57 = vand.u32 4294901760, %v46399_v44  ;;  %v46413_v39 = vand.u32 4294901760, %v1595_v12 }
 0x1f7   :  { %42817 = vmatprep.subr.bf16.mxu0 %v42816_v42  ;;  %v46401_v42 = vsub.f32 %v471_v15, %v26691_v59  ;;  %v6861_v8 = vand.u32 4294901760, %v6860_v10  ;;  %v6845_v15 = vand.u32 4294901760, %v6844_v45  ;;  %v41872_v36 = vpack.c.bf16 %v46329_v4, %v46327_v62 }
 0x1f8   :  { %v46422_v10 = vpack.c.bf16 %v26691_v59, %v26687_v11  ;;  %v26779_v11 = vand.u32 4294901760, %v46415_v7 }
 0x1f9   :  { %v26785_v33 = vand.u32 4294901760, %v46401_v42 }
 0x1fb   :  { %6762 = vmatmul.mubr.f32.vlgmr.msra.gmra.mrb[0].mxu1 %v46187_v43  ;;  %v26693_v43 = vand.u32 4294901760, %v470_v56  ;;  %v26786_v13 = vsub.f32 %v46401_v42, %v26785_v33 }
 0x1fc   :  { %41867 = vmatpush1.bf16.xpose.msra.mxu1 %v46381_v48  ;;  %26522 = vmatmul.mubr.f32.vlgmr.msra.gmra.mrb[0].mxu0 %v26265_v50  ;;  %v41870_v50 = vpack.c.bf16 %v6873_v25, %v6861_v8  ;;  %v26780_v8 = vsub.f32 %v46415_v7, %v26779_v11 }
 0x1fd   :  { %42819 = vmatpush1.bf16.xpose.msra.mxu0 %v42818_v37  ;;  %6840 = vmatprep.mubr.f32.mxu1 %v6839_v14  ;;  %v46417_v3 = vsub.f32 %v470_v56, %v26693_v43  ;;  %v46432_v37 = vsub.f32 %v1595_v12, %v46413_v39  ;;  %v26758_v14 = vsub.f32 %v46408_v31, %v26757_v47  ;;  %v26787_v16 = vand.u32 4294901760, %v26786_v13 }
 0x1fe   :  { %41869 = vmatprep.subr.bf16.mxu1 %v41868_v21  ;;  %26604 = vmatprep.mubr.f32.mxu0 %v46237_v63  ;;  %v46446_v45 = vpack.c.bf16 %v26693_v43, %v26689_v9  ;;  %v26781_v43 = vand.u32 4294901760, %v26780_v8  ;;  %v393_v8 = vld [vmem:[#allocation5 + $0x598] sm:$0x7f] }
 0x1ff   :  { %42821 = vmatprep.subr.bf16.mxu0 %v46266_v32  ;;  %v26774_v32 = vsub.f32 %v46399_v44, %v26773_v57  ;;  %v26791_v59 = vand.u32 4294901760, %v46417_v3  ;;  %v26763_v56 = vand.u32 4294901760, %v46432_v37  ;;  %v26759_v25 = vand.u32 4294901760, %v26758_v14 }
 0x200   :  { %v7269_v4 = vand.u32 4294901760, %v393_v8 }
 0x201   :  { %v26775_v21 = vand.u32 4294901760, %v26774_v32  ;;  %v26764_v9 = vsub.f32 %v46432_v37, %v26763_v56 }
 0x203   :  { %6846 = vmatmul.mubr.f32.vlgmr.msra.gmra.mrb[0].mxu1 %v6845_v15  ;;  %v42828_v12 = vpack.c.bf16 %v26787_v16, %v26775_v21  ;;  %v26765_v32 = vand.u32 4294901760, %v26764_v9  ;;  %v41880_v21 = vpack.c.bf16 %v6865_v26, %v6853_v46  ;;  %v42832_v16 = vpack.c.bf16 %v46401_v42, %v46399_v44 }
 0x204   :  { %41871 = vmatpush1.bf16.xpose.msra.mxu1 %v41870_v50  ;;  %26606 = vmatmul.mubr.f32.vlgmr.msra.gmra.mrb[0].mxu0 %v46257_v28  ;;  %v44567_v50 = vld [vmem:[#allocation2 + $0x28] ss:$316 sps:$4 sm:$0xff]   ;;  %v41882_v46 = vpack.c.bf16 %v6871_v29, %v6859_v2  ;;  %v42834_v26 = vpack.c.bf16 %v46417_v3, %v46415_v7 }
 0x205   :  { %42823 = vmatpush1.bf16.xpose.msra.mxu0 %v46290_v30  ;;  %6936 = vmatprep.mubr.f32.mxu1 %v46325_v51  ;;  %v41874_v30 = vpack.c.bf16 %v46347_v55, %v46345_v38 }
 0x206   :  { %41873 = vmatprep.subr.bf16.mxu1 %v41872_v36  ;;  %26680 = vmatprep.mubr.f32.mxu0 %v46237_v63  ;;  %v26792_v63 = vsub.f32 %v46417_v3, %v26791_v59  ;;  %v44569_v36 = vld [vmem:[#allocation2 + $0x2a0] ss:$316 sps:$4 sm:$0xff]  }
 0x207   :  { %42825 = vmatprep.subr.bf16.mxu0 %v46422_v10  ;;  %v901_v14 = vrot.slane %v44569_v36, %v44898_v17 }
 0x208   :  { %v26793_v15 = vand.u32 4294901760, %v26792_v63 }
 0x20a   :  { %v42830_v13 = vpack.c.bf16 %v26793_v15, %v26781_v43  ;;  %v44573_v15 = vld [vmem:[#allocation2 + $0x340] ss:$316 sps:$4 sm:$0xff]  }
 0x20b   :  { %6938 = vmatmul.mubr.f32.vlgmr.msra.gmra.mrb[0].mxu1 %v46343_v24 }
 0x20c   :  { %41875 = vmatpush1.bf16.xpose.msra.mxu1 %v41874_v30  ;;  %26682 = vmatmul.mubr.f32.vlgmr.msra.gmra.mrb[0].mxu0 %v46257_v28  ;;  %v887_v28 = vrot.slane %v44567_v50, %v44898_v17  ;;  %v235_v30 = vld [vmem:[#allocation5 + $0xa8] sm:$0xff] }
 0x20d   :  { %42827 = vmatpush1.bf16.xpose.msra.mxu0 %v46446_v45  ;;  %7017 = vmatprep.mubr.f32.mxu1 %v46336_v1  ;;  %v7265_v62 = vand.u32 4294901760, %v235_v30 }
 0x20e   :  { %41877 = vmatprep.subr.bf16.mxu1 %v46349_v54  ;;  %26760 = vmatprep.mubr.f32.mxu0 %v26759_v25  ;;  %v910_v63 = vcombine.high %v887_v28, %v901_v14  ;;  %v234_v25 = vld [vmem:[#allocation5 + $0xa0] sm:$0xff]  ;;  %v909_v43 = vcombine.low %v887_v28, %v901_v14 }
 0x20f   :  { %42829 = vmatprep.subr.bf16.mxu0 %v42828_v12  ;;  %v392_v12 = vld [vmem:[#allocation5 + $0x590] sm:$0x7f]  ;;  %v46483_v1 = vsub.f32 %v235_v30, %v7265_v62  ;;  %v7267_v38 = vand.u32 4294901760, %v234_v25  ;;  %v42840_v30 = vpack.c.bf16 %v26785_v33, %v26773_v57 }
 0x210   :  { %v46481_v9 = vand.u32 4294901760, %v910_v63  ;;  %v7271_v55 = vand.u32 4294901760, %v392_v12  ;;  %v46499_v50 = vand.u32 4294901760, %v909_v43 }
 0x211   :  { %v7351_v29 = vand.u32 4294901760, %v46483_v1  ;;  %v46501_v36 = vsub.f32 %v234_v25, %v7267_v38 }
 0x212   :  { %v46492_v2 = vsub.f32 %v910_v63, %v46481_v9 }
 0x213   :  { %7020 = vmatmul.mubr.f32.vlgmr.msra.gmra.mrb[0].mxu1 %v46366_v6  ;;  %v7352_v28 = vsub.f32 %v46483_v1, %v7351_v29  ;;  %v7357_v63 = vand.u32 4294901760, %v46501_v36 }
 0x214   :  { %41879 = vmatpush1.bf16.xpose.msra.mxu1 %v46381_v48  ;;  %26766 = vmatmul.mubr.f32.vlgmr.msra.gmra.mrb[0].mxu0 %v26765_v32  ;;  %v46503_v32 = vsub.f32 %v392_v12, %v7271_v55  ;;  %v46537_v12 = vpack.c.bf16 %v7271_v55, %v7267_v38 }
 0x215   :  { %42831 = vmatpush1.bf16.xpose.msra.mxu0 %v42830_v13  ;;  %7096 = vmatprep.mubr.f32.mxu1 %v6837_v35  ;;  %v46485_v35 = vsub.f32 %v393_v8, %v7269_v4  ;;  %v46505_v13 = vpack.c.bf16 %v7269_v4, %v7265_v62  ;;  %v46522_v8 = vsub.f32 %v909_v43, %v46499_v50  ;;  %v315_v4 = vld [vmem:[#allocation5 + $0x328] sm:$0xff] }
 0x216   :  { %41881 = vmatprep.subr.bf16.mxu1 %v41880_v21  ;;  %26856 = vmatprep.mubr.f32.mxu0 %v46393_v58  ;;  %v7369_v62 = vand.u32 4294901760, %v46503_v32 }
 0x217   :  { %42833 = vmatprep.subr.bf16.mxu0 %v42832_v16  ;;  %v7363_v6 = vand.u32 4294901760, %v46485_v35  ;;  %v1621_v16 = vrot.slane %v44573_v15, %v44898_v17  ;;  %v7341_v33 = vand.u32 4294901760, %v46522_v8  ;;  %v314_v15 = vld [vmem:[#allocation5 + $0x320] sm:$0xff] }
 0x218   :  { %v7370_v43 = vsub.f32 %v46503_v32, %v7369_v62 }
 0x219   :  { %v7364_v14 = vsub.f32 %v46485_v35, %v7363_v6  ;;  %v7342_v38 = vsub.f32 %v46522_v8, %v7341_v33 }
 0x21a   :  { %v7371_v3 = vand.u32 4294901760, %v7370_v43 }
 0x21b   :  { %7100 = vmatmul.mubr.f32.vlgmr.msra.gmra.mrb[0].mxu1 %v6843_v0  ;;  %v44571_v0 = vld [vmem:[#allocation2 + $0xc8] ss:$316 sps:$4 sm:$0xff]   ;;  %v7365_v42 = vand.u32 4294901760, %v7364_v14 }
 0x21c   :  { %41883 = vmatpush1.bf16.xpose.msra.mxu1 %v41882_v46  ;;  %26858 = vmatmul.mubr.f32.vlgmr.msra.gmra.mrb[0].mxu0 %v46413_v39  ;;  %v1607_v21 = vrot.slane %v44571_v0, %v44898_v17  ;;  %v473_v46 = vld [vmem:[#allocation5 + $0x818] sm:$0x7f] }
 0x21d   :  { %42835 = vmatpush1.bf16.xpose.msra.mxu0 %v42834_v26  ;;  %7182 = vmatprep.mubr.f32.mxu1 %v46325_v51  ;;  %v27185_v26 = vand.u32 4294901760, %v315_v4  ;;  %v27189_v25 = vand.u32 4294901760, %v473_v46 }
 0x21e   :  { %41885 = vmatprep.subr.bf16.mxu1 %v46349_v54  ;;  %26937 = vmatprep.mubr.f32.mxu0 %v46408_v31  ;;  %v7335_v54 = vand.u32 4294901760, %v46492_v2  ;;  %v1630_v57 = vcombine.high %v1607_v21, %v1621_v16  ;;  %v42842_v31 = vpack.c.bf16 %v26791_v59, %v26779_v11  ;;  %v1629_v11 = vcombine.low %v1607_v21, %v1621_v16 }
 0x21f   :  { %42837 = vmatprep.subr.bf16.mxu0 %v46422_v10  ;;  %v46555_v55 = vsub.f32 %v315_v4, %v27185_v26  ;;  %v27187_v59 = vand.u32 4294901760, %v314_v15 }
 0x220   :  { %v7336_v44 = vsub.f32 %v46492_v2, %v7335_v54  ;;  %v46549_v14 = vand.u32 4294901760, %v1630_v57 }
 0x221   :  { %v46571_v21 = vsub.f32 %v314_v15, %v27187_v59 }
 0x222   :  { %v46564_v4 = vsub.f32 %v1630_v57, %v46549_v14 }
 0x223   :  { %7184 = vmatmul.mubr.f32.vlgmr.msra.gmra.mrb[0].mxu1 %v46343_v24 }
 0x224   :  { %41887 = vmatpush1.bf16.xpose.msra.mxu1 %v46381_v48  ;;  %26940 = vmatmul.mubr.f32.vlgmr.msra.gmra.mrb[0].mxu0 %v46432_v37  ;;  %v7353_v48 = vand.u32 4294901760, %v7352_v28  ;;  %v472_v28 = vld [vmem:[#allocation5 + $0x810] sm:$0x7f]  ;;  %v27255_v57 = vand.u32 4294901760, %v46564_v4 }
 0x225   :  { %42839 = vmatpush1.bf16.xpose.msra.mxu0 %v46446_v45  ;;  %7258 = vmatprep.mubr.f32.mxu1 %v46325_v51  ;;  %v7358_v51 = vsub.f32 %v46501_v36, %v7357_v63 }
 0x226   :  { %41889 = vmatprep.subr.bf16.mxu1 %v46505_v13  ;;  %27016 = vmatprep.mubr.f32.mxu0 %v26757_v47  ;;  %v7337_v47 = vand.u32 4294901760, %v7336_v44  ;;  %v41892_v0 = vpack.c.bf16 %v7365_v42, %v7353_v48  ;;  %v27271_v44 = vand.u32 4294901760, %v46555_v55  ;;  %v46569_v48 = vand.u32 4294901760, %v1629_v11 }
 0x227   :  { %42841 = vmatprep.subr.bf16.mxu0 %v42840_v30  ;;  %v46557_v30 = vsub.f32 %v473_v46, %v27189_v25  ;;  %v7359_v7 = vand.u32 4294901760, %v7358_v51  ;;  %v7343_v46 = vand.u32 4294901760, %v7342_v38  ;;  %v41896_v42 = vpack.c.bf16 %v46485_v35, %v46483_v1 }
 0x228   :  { %v46578_v51 = vpack.c.bf16 %v27189_v25, %v27185_v26  ;;  %v27277_v26 = vand.u32 4294901760, %v46571_v21 }
 0x229   :  { %v27283_v37 = vand.u32 4294901760, %v46557_v30 }
 0x22b   :  { %7260 = vmatmul.mubr.f32.vlgmr.msra.gmra.mrb[0].mxu1 %v46343_v24  ;;  %v27191_v24 = vand.u32 4294901760, %v472_v28  ;;  %v27284_v43 = vsub.f32 %v46557_v30, %v27283_v37 }
 0x22c   :  { %41891 = vmatpush1.bf16.xpose.msra.mxu1 %v46537_v12  ;;  %27020 = vmatmul.mubr.f32.vlgmr.msra.gmra.mrb[0].mxu0 %v26763_v56  ;;  %v41894_v56 = vpack.c.bf16 %v7371_v3, %v7359_v7  ;;  %v27278_v7 = vsub.f32 %v46571_v21, %v27277_v26 }
 0x22d   :  { %42843 = vmatpush1.bf16.xpose.msra.mxu0 %v42842_v31  ;;  %7338 = vmatprep.mubr.f32.mxu1 %v7337_v47  ;;  %v46573_v16 = vsub.f32 %v472_v28, %v27191_v24  ;;  %v46588_v31 = vsub.f32 %v1629_v11, %v46569_v48  ;;  %v27256_v47 = vsub.f32 %v46564_v4, %v27255_v57  ;;  %v27285_v15 = vand.u32 4294901760, %v27284_v43 }
 0x22e   :  { %41893 = vmatprep.subr.bf16.mxu1 %v41892_v0  ;;  %27102 = vmatprep.mubr.f32.mxu0 %v46393_v58  ;;  %v46602_v38 = vpack.c.bf16 %v27191_v24, %v27187_v59  ;;  %v27279_v24 = vand.u32 4294901760, %v27278_v7  ;;  %v395_v7 = vld [vmem:[#allocation5 + $0x5a8] sm:$0x7f] }
 0x22f   :  { %42845 = vmatprep.subr.bf16.mxu0 %v46422_v10  ;;  %v27272_v10 = vsub.f32 %v46555_v55, %v27271_v44  ;;  %v27289_v25 = vand.u32 4294901760, %v46573_v16  ;;  %v27261_v28 = vand.u32 4294901760, %v46588_v31  ;;  %v27257_v3 = vand.u32 4294901760, %v27256_v47 }
 0x230   :  { %v7767_v35 = vand.u32 4294901760, %v395_v7 }
 0x231   :  { %v27273_v0 = vand.u32 4294901760, %v27272_v10  ;;  %v27262_v59 = vsub.f32 %v46588_v31, %v27261_v28 }
 0x233   :  { %7344 = vmatmul.mubr.f32.vlgmr.msra.gmra.mrb[0].mxu1 %v7343_v46  ;;  %v42852_v11 = vpack.c.bf16 %v27285_v15, %v27273_v0  ;;  %v27263_v10 = vand.u32 4294901760, %v27262_v59  ;;  %v41904_v0 = vpack.c.bf16 %v7363_v6, %v7351_v29  ;;  %v42856_v15 = vpack.c.bf16 %v46557_v30, %v46555_v55 }
 0x234   :  { %41895 = vmatpush1.bf16.xpose.msra.mxu1 %v41894_v56  ;;  %27104 = vmatmul.mubr.f32.vlgmr.msra.gmra.mrb[0].mxu0 %v46413_v39  ;;  %v44575_v56 = vld [vmem:[#allocation2 + $0x2c] ss:$316 sps:$4 sm:$0xff]   ;;  %v41906_v29 = vpack.c.bf16 %v7369_v62, %v7357_v63  ;;  %v42858_v6 = vpack.c.bf16 %v46573_v16, %v46571_v21 }
 0x235   :  { %42847 = vmatpush1.bf16.xpose.msra.mxu0 %v46446_v45  ;;  %7434 = vmatprep.mubr.f32.mxu1 %v46481_v9  ;;  %v41898_v45 = vpack.c.bf16 %v46503_v32, %v46501_v36 }
 0x236   :  { %41897 = vmatprep.subr.bf16.mxu1 %v41896_v42  ;;  %27178 = vmatprep.mubr.f32.mxu0 %v46393_v58  ;;  %v27290_v58 = vsub.f32 %v46573_v16, %v27289_v25  ;;  %v44576_v42 = vld [vmem:[#allocation2 + $0x2a4] ss:$316 sps:$4 sm:$0xff]  }
 0x237   :  { %42849 = vmatprep.subr.bf16.mxu0 %v46578_v51  ;;  %v908_v47 = vrot.slane %v44576_v42, %v44898_v17 }
 0x238   :  { %v27291_v46 = vand.u32 4294901760, %v27290_v58 }
 0x23a   :  { %v42854_v43 = vpack.c.bf16 %v27291_v46, %v27279_v24  ;;  %v44578_v46 = vld [vmem:[#allocation2 + $0x344] ss:$316 sps:$4 sm:$0xff]  }
 0x23b   :  { %7436 = vmatmul.mubr.f32.vlgmr.msra.gmra.mrb[0].mxu1 %v46499_v50 }
 0x23c   :  { %41899 = vmatpush1.bf16.xpose.msra.mxu1 %v41898_v45  ;;  %27180 = vmatmul.mubr.f32.vlgmr.msra.gmra.mrb[0].mxu0 %v46413_v39  ;;  %v894_v39 = vrot.slane %v44575_v56, %v44898_v17  ;;  %v237_v45 = vld [vmem:[#allocation5 + $0xb8] sm:$0xff] }
 0x23d   :  { %42851 = vmatpush1.bf16.xpose.msra.mxu0 %v46602_v38  ;;  %7515 = vmatprep.mubr.f32.mxu1 %v46492_v2  ;;  %v7763_v1 = vand.u32 4294901760, %v237_v45 }
 0x23e   :  { %41901 = vmatprep.subr.bf16.mxu1 %v46505_v13  ;;  %27258 = vmatprep.mubr.f32.mxu0 %v27257_v3  ;;  %v912_v58 = vcombine.high %v894_v39, %v908_v47  ;;  %v236_v3 = vld [vmem:[#allocation5 + $0xb0] sm:$0xff]  ;;  %v911_v24 = vcombine.low %v894_v39, %v908_v47 }
 0x23f   :  { %42853 = vmatprep.subr.bf16.mxu0 %v42852_v11  ;;  %v394_v11 = vld [vmem:[#allocation5 + $0x5a0] sm:$0x7f]  ;;  %v46639_v2 = vsub.f32 %v237_v45, %v7763_v1  ;;  %v7765_v36 = vand.u32 4294901760, %v236_v3  ;;  %v42864_v45 = vpack.c.bf16 %v27283_v37, %v27271_v44 }
 0x240   :  { %v46637_v59 = vand.u32 4294901760, %v912_v58  ;;  %v7769_v32 = vand.u32 4294901760, %v394_v11  ;;  %v46655_v56 = vand.u32 4294901760, %v911_v24 }
 0x241   :  { %v7849_v62 = vand.u32 4294901760, %v46639_v2  ;;  %v46657_v42 = vsub.f32 %v236_v3, %v7765_v36 }
 0x242   :  { %v46648_v63 = vsub.f32 %v912_v58, %v46637_v59 }
 0x243   :  { %7518 = vmatmul.mubr.f32.vlgmr.msra.gmra.mrb[0].mxu1 %v46522_v8  ;;  %v7850_v39 = vsub.f32 %v46639_v2, %v7849_v62  ;;  %v7855_v58 = vand.u32 4294901760, %v46657_v42 }
 0x244   :  { %41903 = vmatpush1.bf16.xpose.msra.mxu1 %v46537_v12  ;;  %27264 = vmatmul.mubr.f32.vlgmr.msra.gmra.mrb[0].mxu0 %v27263_v10  ;;  %v46659_v10 = vsub.f32 %v394_v11, %v7769_v32  ;;  %v46693_v11 = vpack.c.bf16 %v7769_v32, %v7765_v36 }
 0x245   :  { %42855 = vmatpush1.bf16.xpose.msra.mxu0 %v42854_v43  ;;  %7594 = vmatprep.mubr.f32.mxu1 %v7335_v54  ;;  %v46641_v54 = vsub.f32 %v395_v7, %v7767_v35  ;;  %v46661_v43 = vpack.c.bf16 %v7767_v35, %v7763_v1  ;;  %v46678_v7 = vsub.f32 %v911_v24, %v46655_v56  ;;  %v317_v35 = vld [vmem:[#allocation5 + $0x338] sm:$0xff] }
 0x246   :  { %41905 = vmatprep.subr.bf16.mxu1 %v41904_v0  ;;  %27354 = vmatprep.mubr.f32.mxu0 %v46549_v14  ;;  %v7867_v1 = vand.u32 4294901760, %v46659_v10 }
 0x247   :  { %42857 = vmatprep.subr.bf16.mxu0 %v42856_v15  ;;  %v7861_v8 = vand.u32 4294901760, %v46641_v54  ;;  %v1628_v15 = vrot.slane %v44578_v46, %v44898_v17  ;;  %v7839_v37 = vand.u32 4294901760, %v46678_v7  ;;  %v316_v46 = vld [vmem:[#allocation5 + $0x330] sm:$0xff] }
 0x248   :  { %v7868_v24 = vsub.f32 %v46659_v10, %v7867_v1 }
 0x249   :  { %v7862_v47 = vsub.f32 %v46641_v54, %v7861_v8  ;;  %v7840_v36 = vsub.f32 %v46678_v7, %v7839_v37 }
 0x24a   :  { %v7869_v16 = vand.u32 4294901760, %v7868_v24 }
 0x24b   :  { %7598 = vmatmul.mubr.f32.vlgmr.msra.gmra.mrb[0].mxu1 %v7341_v33  ;;  %v44577_v33 = vld [vmem:[#allocation2 + $0xcc] ss:$316 sps:$4 sm:$0xff]   ;;  %v7863_v30 = vand.u32 4294901760, %v7862_v47 }
 0x24c   :  { %41907 = vmatpush1.bf16.xpose.msra.mxu1 %v41906_v29  ;;  %27356 = vmatmul.mubr.f32.vlgmr.msra.gmra.mrb[0].mxu0 %v46569_v48  ;;  %v1614_v0 = vrot.slane %v44577_v33, %v44898_v17  ;;  %v475_v29 = vld [vmem:[#allocation5 + $0x828] sm:$0x7f] }
 0x24d   :  { %42859 = vmatpush1.bf16.xpose.msra.mxu0 %v42858_v6  ;;  %7680 = vmatprep.mubr.f32.mxu1 %v46481_v9  ;;  %v27683_v6 = vand.u32 4294901760, %v317_v35  ;;  %v27687_v3 = vand.u32 4294901760, %v475_v29 }
 0x24e   :  { %41909 = vmatprep.subr.bf16.mxu1 %v46505_v13  ;;  %27435 = vmatprep.mubr.f32.mxu0 %v46564_v4  ;;  %v7833_v13 = vand.u32 4294901760, %v46648_v63  ;;  %v1632_v44 = vcombine.high %v1614_v0, %v1628_v15  ;;  %v42866_v4 = vpack.c.bf16 %v27289_v25, %v27277_v26  ;;  %v1631_v26 = vcombine.low %v1614_v0, %v1628_v15 }
 0x24f   :  { %42861 = vmatprep.subr.bf16.mxu0 %v46578_v51  ;;  %v46711_v32 = vsub.f32 %v317_v35, %v27683_v6  ;;  %v27685_v25 = vand.u32 4294901760, %v316_v46 }
 0x250   :  { %v7834_v55 = vsub.f32 %v46648_v63, %v7833_v13  ;;  %v46705_v47 = vand.u32 4294901760, %v1632_v44 }
 0x251   :  { %v46727_v0 = vsub.f32 %v316_v46, %v27685_v25 }
 0x252   :  { %v46720_v35 = vsub.f32 %v1632_v44, %v46705_v47 }
 0x253   :  { %7682 = vmatmul.mubr.f32.vlgmr.msra.gmra.mrb[0].mxu1 %v46499_v50 }
 0x254   :  { %41911 = vmatpush1.bf16.xpose.msra.mxu1 %v46537_v12  ;;  %27438 = vmatmul.mubr.f32.vlgmr.msra.gmra.mrb[0].mxu0 %v46588_v31  ;;  %v7851_v12 = vand.u32 4294901760, %v7850_v39  ;;  %v474_v39 = vld [vmem:[#allocation5 + $0x820] sm:$0x7f]  ;;  %v27753_v44 = vand.u32 4294901760, %v46720_v35 }
 0x255   :  { %42863 = vmatpush1.bf16.xpose.msra.mxu0 %v46602_v38  ;;  %7756 = vmatprep.mubr.f32.mxu1 %v46481_v9  ;;  %v7856_v9 = vsub.f32 %v46657_v42, %v7855_v58 }
 0x256   :  { %41913 = vmatprep.subr.bf16.mxu1 %v46661_v43  ;;  %27514 = vmatprep.mubr.f32.mxu0 %v27255_v57  ;;  %v7835_v57 = vand.u32 4294901760, %v7834_v55  ;;  %v41916_v33 = vpack.c.bf16 %v7863_v30, %v7851_v12  ;;  %v27769_v55 = vand.u32 4294901760, %v46711_v32  ;;  %v46725_v12 = vand.u32 4294901760, %v1631_v26 }
 0x257   :  { %42865 = vmatprep.subr.bf16.mxu0 %v42864_v45  ;;  %v46713_v45 = vsub.f32 %v475_v29, %v27687_v3  ;;  %v7857_v21 = vand.u32 4294901760, %v7856_v9  ;;  %v7841_v29 = vand.u32 4294901760, %v7840_v36  ;;  %v41920_v30 = vpack.c.bf16 %v46641_v54, %v46639_v2 }
 0x258   :  { %v46734_v9 = vpack.c.bf16 %v27687_v3, %v27683_v6  ;;  %v27775_v6 = vand.u32 4294901760, %v46727_v0 }
 0x259   :  { %v27781_v31 = vand.u32 4294901760, %v46713_v45 }
 0x25b   :  { %7758 = vmatmul.mubr.f32.vlgmr.msra.gmra.mrb[0].mxu1 %v46499_v50  ;;  %v27689_v50 = vand.u32 4294901760, %v474_v39  ;;  %v27782_v24 = vsub.f32 %v46713_v45, %v27781_v31 }
 0x25c   :  { %41915 = vmatpush1.bf16.xpose.msra.mxu1 %v46693_v11  ;;  %27518 = vmatmul.mubr.f32.vlgmr.msra.gmra.mrb[0].mxu0 %v27261_v28  ;;  %v41918_v28 = vpack.c.bf16 %v7869_v16, %v7857_v21  ;;  %v27776_v21 = vsub.f32 %v46727_v0, %v27775_v6 }
 0x25d   :  { %42867 = vmatpush1.bf16.xpose.msra.mxu0 %v42866_v4  ;;  %7836 = vmatprep.mubr.f32.mxu1 %v7835_v57  ;;  %v46729_v15 = vsub.f32 %v474_v39, %v27689_v50  ;;  %v46744_v4 = vsub.f32 %v1631_v26, %v46725_v12  ;;  %v27754_v57 = vsub.f32 %v46720_v35, %v27753_v44  ;;  %v27783_v46 = vand.u32 4294901760, %v27782_v24 }
 0x25e   :  { %41917 = vmatprep.subr.bf16.mxu1 %v41916_v33  ;;  %27600 = vmatprep.mubr.f32.mxu0 %v46549_v14  ;;  %v46758_v36 = vpack.c.bf16 %v27689_v50, %v27685_v25  ;;  %v27777_v50 = vand.u32 4294901760, %v27776_v21  ;;  %v397_v21 = vld [vmem:[#allocation5 + $0x5b8] sm:$0x7f] }
 0x25f   :  { %42869 = vmatprep.subr.bf16.mxu0 %v46578_v51  ;;  %v27770_v51 = vsub.f32 %v46711_v32, %v27769_v55  ;;  %v27787_v3 = vand.u32 4294901760, %v46729_v15  ;;  %v27759_v39 = vand.u32 4294901760, %v46744_v4  ;;  %v27755_v16 = vand.u32 4294901760, %v27754_v57 }
 0x260   :  { %v8265_v54 = vand.u32 4294901760, %v397_v21 }
 0x261   :  { %v27771_v33 = vand.u32 4294901760, %v27770_v51  ;;  %v27760_v25 = vsub.f32 %v46744_v4, %v27759_v39 }
 0x263   :  { %7842 = vmatmul.mubr.f32.vlgmr.msra.gmra.mrb[0].mxu1 %v7841_v29  ;;  %v42876_v26 = vpack.c.bf16 %v27783_v46, %v27771_v33  ;;  %v27761_v51 = vand.u32 4294901760, %v27760_v25  ;;  %v41928_v33 = vpack.c.bf16 %v7861_v8, %v7849_v62  ;;  %v42880_v46 = vpack.c.bf16 %v46713_v45, %v46711_v32 }
 0x264   :  { %41919 = vmatpush1.bf16.xpose.msra.mxu1 %v41918_v28  ;;  %27602 = vmatmul.mubr.f32.vlgmr.msra.gmra.mrb[0].mxu0 %v46569_v48  ;;  %v44579_v28 = vld [vmem:[#allocation2 + $0x30] ss:$316 sps:$4 sm:$0xff]   ;;  %v41930_v62 = vpack.c.bf16 %v7867_v1, %v7855_v58  ;;  %v42882_v8 = vpack.c.bf16 %v46729_v15, %v46727_v0 }
 0x265   :  { %42871 = vmatpush1.bf16.xpose.msra.mxu0 %v46602_v38  ;;  %7932 = vmatprep.mubr.f32.mxu1 %v46637_v59  ;;  %v41922_v38 = vpack.c.bf16 %v46659_v10, %v46657_v42 }
 0x266   :  { %41921 = vmatprep.subr.bf16.mxu1 %v41920_v30  ;;  %27676 = vmatprep.mubr.f32.mxu0 %v46549_v14  ;;  %v27788_v14 = vsub.f32 %v46729_v15, %v27787_v3  ;;  %v44581_v30 = vld [vmem:[#allocation2 + $0x2a8] ss:$316 sps:$4 sm:$0xff]  }
 0x267   :  { %42873 = vmatprep.subr.bf16.mxu0 %v46734_v9  ;;  %v937_v57 = vrot.slane %v44581_v30, %v44898_v17 }
 0x268   :  { %v27789_v29 = vand.u32 4294901760, %v27788_v14 }
 0x26a   :  { %v42878_v24 = vpack.c.bf16 %v27789_v29, %v27777_v50  ;;  %v44585_v29 = vld [vmem:[#allocation2 + $0x348] ss:$316 sps:$4 sm:$0xff]  }
 0x26b   :  { %7934 = vmatmul.mubr.f32.vlgmr.msra.gmra.mrb[0].mxu1 %v46655_v56 }
 0x26c   :  { %41923 = vmatpush1.bf16.xpose.msra.mxu1 %v41922_v38  ;;  %27678 = vmatmul.mubr.f32.vlgmr.msra.gmra.mrb[0].mxu0 %v46569_v48  ;;  %v923_v48 = vrot.slane %v44579_v28, %v44898_v17  ;;  %v239_v38 = vld [vmem:[#allocation5 + $0xc8] sm:$0xff] }
 0x26d   :  { %42875 = vmatpush1.bf16.xpose.msra.mxu0 %v46758_v36  ;;  %8013 = vmatprep.mubr.f32.mxu1 %v46648_v63  ;;  %v8261_v2 = vand.u32 4294901760, %v239_v38 }
 0x26e   :  { %41925 = vmatprep.subr.bf16.mxu1 %v46661_v43  ;;  %27756 = vmatprep.mubr.f32.mxu0 %v27755_v16  ;;  %v946_v14 = vcombine.high %v923_v48, %v937_v57  ;;  %v238_v16 = vld [vmem:[#allocation5 + $0xc0] sm:$0xff]  ;;  %v945_v50 = vcombine.low %v923_v48, %v937_v57 }
 0x26f   :  { %42877 = vmatprep.subr.bf16.mxu0 %v42876_v26  ;;  %v396_v26 = vld [vmem:[#allocation5 + $0x5b0] sm:$0x7f]  ;;  %v46795_v63 = vsub.f32 %v239_v38, %v8261_v2  ;;  %v8263_v42 = vand.u32 4294901760, %v238_v16  ;;  %v42888_v38 = vpack.c.bf16 %v27781_v31, %v27769_v55 }
 0x270   :  { %v46793_v25 = vand.u32 4294901760, %v946_v14  ;;  %v8267_v10 = vand.u32 4294901760, %v396_v26  ;;  %v46811_v28 = vand.u32 4294901760, %v945_v50 }
 0x271   :  { %v8347_v1 = vand.u32 4294901760, %v46795_v63  ;;  %v46813_v30 = vsub.f32 %v238_v16, %v8263_v42 }
 0x272   :  { %v46804_v58 = vsub.f32 %v946_v14, %v46793_v25 }
 0x273   :  { %8016 = vmatmul.mubr.f32.vlgmr.msra.gmra.mrb[0].mxu1 %v46678_v7  ;;  %v8348_v48 = vsub.f32 %v46795_v63, %v8347_v1  ;;  %v8353_v14 = vand.u32 4294901760, %v46813_v30 }
 0x274   :  { %41927 = vmatpush1.bf16.xpose.msra.mxu1 %v46693_v11  ;;  %27762 = vmatmul.mubr.f32.vlgmr.msra.gmra.mrb[0].mxu0 %v27761_v51  ;;  %v46815_v51 = vsub.f32 %v396_v26, %v8267_v10  ;;  %v46849_v26 = vpack.c.bf16 %v8267_v10, %v8263_v42 }
 0x275   :  { %42879 = vmatpush1.bf16.xpose.msra.mxu0 %v42878_v24  ;;  %8092 = vmatprep.mubr.f32.mxu1 %v7833_v13  ;;  %v46797_v13 = vsub.f32 %v397_v21, %v8265_v54  ;;  %v46817_v24 = vpack.c.bf16 %v8265_v54, %v8261_v2  ;;  %v46834_v21 = vsub.f32 %v945_v50, %v46811_v28  ;;  %v319_v54 = vld [vmem:[#allocation5 + $0x348] sm:$0xff] }
 0x276   :  { %41929 = vmatprep.subr.bf16.mxu1 %v41928_v33  ;;  %27852 = vmatprep.mubr.f32.mxu0 %v46705_v47  ;;  %v8365_v2 = vand.u32 4294901760, %v46815_v51 }
 0x277   :  { %42881 = vmatprep.subr.bf16.mxu0 %v42880_v46  ;;  %v8359_v7 = vand.u32 4294901760, %v46797_v13  ;;  %v1657_v46 = vrot.slane %v44585_v29, %v44898_v17  ;;  %v8337_v31 = vand.u32 4294901760, %v46834_v21  ;;  %v318_v29 = vld [vmem:[#allocation5 + $0x340] sm:$0xff] }
 0x278   :  { %v8366_v50 = vsub.f32 %v46815_v51, %v8365_v2 }
 0x279   :  { %v8360_v57 = vsub.f32 %v46797_v13, %v8359_v7  ;;  %v8338_v42 = vsub.f32 %v46834_v21, %v8337_v31 }
 0x27a   :  { %v8367_v15 = vand.u32 4294901760, %v8366_v50 }
 0x27b   :  { %8096 = vmatmul.mubr.f32.vlgmr.msra.gmra.mrb[0].mxu1 %v7839_v37  ;;  %v44583_v37 = vld [vmem:[#allocation2 + $0xd0] ss:$316 sps:$4 sm:$0xff]   ;;  %v8361_v45 = vand.u32 4294901760, %v8360_v57 }
 0x27c   :  { %41931 = vmatpush1.bf16.xpose.msra.mxu1 %v41930_v62  ;;  %27854 = vmatmul.mubr.f32.vlgmr.msra.gmra.mrb[0].mxu0 %v46725_v12  ;;  %v1643_v33 = vrot.slane %v44583_v37, %v44898_v17  ;;  %v477_v62 = vld [vmem:[#allocation5 + $0x838] sm:$0x7f] }
 0x27d   :  { %42883 = vmatpush1.bf16.xpose.msra.mxu0 %v42882_v8  ;;  %8178 = vmatprep.mubr.f32.mxu1 %v46637_v59  ;;  %v28181_v8 = vand.u32 4294901760, %v319_v54  ;;  %v28185_v16 = vand.u32 4294901760, %v477_v62 }
 0x27e   :  { %41933 = vmatprep.subr.bf16.mxu1 %v46661_v43  ;;  %27933 = vmatprep.mubr.f32.mxu0 %v46720_v35  ;;  %v8331_v43 = vand.u32 4294901760, %v46804_v58  ;;  %v1666_v55 = vcombine.high %v1643_v33, %v1657_v46  ;;  %v42890_v35 = vpack.c.bf16 %v27787_v3, %v27775_v6  ;;  %v1665_v6 = vcombine.low %v1643_v33, %v1657_v46 }
 0x27f   :  { %42885 = vmatprep.subr.bf16.mxu0 %v46734_v9  ;;  %v46867_v10 = vsub.f32 %v319_v54, %v28181_v8  ;;  %v28183_v3 = vand.u32 4294901760, %v318_v29 }
 0x280   :  { %v8332_v32 = vsub.f32 %v46804_v58, %v8331_v43  ;;  %v46861_v57 = vand.u32 4294901760, %v1666_v55 }
 0x281   :  { %v46883_v33 = vsub.f32 %v318_v29, %v28183_v3 }
 0x282   :  { %v46876_v54 = vsub.f32 %v1666_v55, %v46861_v57 }
 0x283   :  { %8180 = vmatmul.mubr.f32.vlgmr.msra.gmra.mrb[0].mxu1 %v46655_v56 }
 0x284   :  { %41935 = vmatpush1.bf16.xpose.msra.mxu1 %v46693_v11  ;;  %27936 = vmatmul.mubr.f32.vlgmr.msra.gmra.mrb[0].mxu0 %v46744_v4  ;;  %v8349_v11 = vand.u32 4294901760, %v8348_v48  ;;  %v476_v48 = vld [vmem:[#allocation5 + $0x830] sm:$0x7f]  ;;  %v28251_v55 = vand.u32 4294901760, %v46876_v54 }
 0x285   :  { %42887 = vmatpush1.bf16.xpose.msra.mxu0 %v46758_v36  ;;  %8254 = vmatprep.mubr.f32.mxu1 %v46637_v59  ;;  %v8354_v59 = vsub.f32 %v46813_v30, %v8353_v14 }
 0x286   :  { %41937 = vmatprep.subr.bf16.mxu1 %v46817_v24  ;;  %28012 = vmatprep.mubr.f32.mxu0 %v27753_v44  ;;  %v8333_v44 = vand.u32 4294901760, %v8332_v32  ;;  %v41940_v37 = vpack.c.bf16 %v8361_v45, %v8349_v11  ;;  %v28267_v32 = vand.u32 4294901760, %v46867_v10  ;;  %v46881_v11 = vand.u32 4294901760, %v1665_v6 }
 0x287   :  { %42889 = vmatprep.subr.bf16.mxu0 %v42888_v38  ;;  %v46869_v38 = vsub.f32 %v477_v62, %v28185_v16  ;;  %v8355_v0 = vand.u32 4294901760, %v8354_v59  ;;  %v8339_v62 = vand.u32 4294901760, %v8338_v42  ;;  %v41944_v45 = vpack.c.bf16 %v46797_v13, %v46795_v63 }
 0x288   :  { %v46890_v59 = vpack.c.bf16 %v28185_v16, %v28181_v8  ;;  %v28273_v8 = vand.u32 4294901760, %v46883_v33 }
 0x289   :  { %v28279_v4 = vand.u32 4294901760, %v46869_v38 }
 0x28b   :  { %8256 = vmatmul.mubr.f32.vlgmr.msra.gmra.mrb[0].mxu1 %v46655_v56  ;;  %v28187_v56 = vand.u32 4294901760, %v476_v48  ;;  %v28280_v50 = vsub.f32 %v46869_v38, %v28279_v4 }
 0x28c   :  { %41939 = vmatpush1.bf16.xpose.msra.mxu1 %v46849_v26  ;;  %28016 = vmatmul.mubr.f32.vlgmr.msra.gmra.mrb[0].mxu0 %v27759_v39  ;;  %v41942_v39 = vpack.c.bf16 %v8367_v15, %v8355_v0  ;;  %v28274_v0 = vsub.f32 %v46883_v33, %v28273_v8 }
 0x28d   :  { %42891 = vmatpush1.bf16.xpose.msra.mxu0 %v42890_v35  ;;  %8334 = vmatprep.mubr.f32.mxu1 %v8333_v44  ;;  %v46885_v46 = vsub.f32 %v476_v48, %v28187_v56  ;;  %v46900_v35 = vsub.f32 %v1665_v6, %v46881_v11  ;;  %v28252_v44 = vsub.f32 %v46876_v54, %v28251_v55  ;;  %v28281_v29 = vand.u32 4294901760, %v28280_v50 }
 0x28e   :  { %41941 = vmatprep.subr.bf16.mxu1 %v41940_v37  ;;  %28098 = vmatprep.mubr.f32.mxu0 %v46705_v47  ;;  %v46914_v42 = vpack.c.bf16 %v28187_v56, %v28183_v3  ;;  %v28275_v56 = vand.u32 4294901760, %v28274_v0  ;;  %v399_v0 = vld [vmem:[#allocation5 + $0x5c8] sm:$0x7f] }
 0x28f   :  { %42893 = vmatprep.subr.bf16.mxu0 %v46734_v9  ;;  %v28268_v9 = vsub.f32 %v46867_v10, %v28267_v32  ;;  %v28285_v16 = vand.u32 4294901760, %v46885_v46  ;;  %v28257_v48 = vand.u32 4294901760, %v46900_v35  ;;  %v28253_v15 = vand.u32 4294901760, %v28252_v44 }
 0x290   :  { %v8763_v13 = vand.u32 4294901760, %v399_v0 }
 0x291   :  { %v28269_v37 = vand.u32 4294901760, %v28268_v9  ;;  %v28258_v3 = vsub.f32 %v46900_v35, %v28257_v48 }
 0x293   :  { %8340 = vmatmul.mubr.f32.vlgmr.msra.gmra.mrb[0].mxu1 %v8339_v62  ;;  %v42900_v6 = vpack.c.bf16 %v28281_v29, %v28269_v37  ;;  %v28259_v9 = vand.u32 4294901760, %v28258_v3  ;;  %v41952_v37 = vpack.c.bf16 %v8359_v7, %v8347_v1  ;;  %v42904_v29 = vpack.c.bf16 %v46869_v38, %v46867_v10 }
 0x294   :  { %41943 = vmatpush1.bf16.xpose.msra.mxu1 %v41942_v39  ;;  %28100 = vmatmul.mubr.f32.vlgmr.msra.gmra.mrb[0].mxu0 %v46725_v12  ;;  %v44587_v39 = vld [vmem:[#allocation2 + $0x34] ss:$316 sps:$4 sm:$0xff]   ;;  %v41954_v1 = vpack.c.bf16 %v8365_v2, %v8353_v14  ;;  %v42906_v7 = vpack.c.bf16 %v46885_v46, %v46883_v33 }
 0x295   :  { %42895 = vmatpush1.bf16.xpose.msra.mxu0 %v46758_v36  ;;  %8430 = vmatprep.mubr.f32.mxu1 %v46793_v25  ;;  %v41946_v36 = vpack.c.bf16 %v46815_v51, %v46813_v30 }
 0x296   :  { %41945 = vmatprep.subr.bf16.mxu1 %v41944_v45  ;;  %28174 = vmatprep.mubr.f32.mxu0 %v46705_v47  ;;  %v28286_v47 = vsub.f32 %v46885_v46, %v28285_v16  ;;  %v44588_v45 = vld [vmem:[#allocation2 + $0x2ac] ss:$316 sps:$4 sm:$0xff]  }
 0x297   :  { %42897 = vmatprep.subr.bf16.mxu0 %v46890_v59  ;;  %v944_v44 = vrot.slane %v44588_v45, %v44898_v17 }
 0x298   :  { %v28287_v62 = vand.u32 4294901760, %v28286_v47 }
 0x29a   :  { %v42902_v50 = vpack.c.bf16 %v28287_v62, %v28275_v56  ;;  %v44590_v62 = vld [vmem:[#allocation2 + $0x34c] ss:$316 sps:$4 sm:$0xff]  }
 0x29b   :  { %8432 = vmatmul.mubr.f32.vlgmr.msra.gmra.mrb[0].mxu1 %v46811_v28 }
 0x29c   :  { %41947 = vmatpush1.bf16.xpose.msra.mxu1 %v41946_v36  ;;  %28176 = vmatmul.mubr.f32.vlgmr.msra.gmra.mrb[0].mxu0 %v46725_v12  ;;  %v930_v12 = vrot.slane %v44587_v39, %v44898_v17  ;;  %v241_v36 = vld [vmem:[#allocation5 + $0xd8] sm:$0xff] }
 0x29d   :  { %42899 = vmatpush1.bf16.xpose.msra.mxu0 %v46914_v42  ;;  %8511 = vmatprep.mubr.f32.mxu1 %v46804_v58  ;;  %v8759_v63 = vand.u32 4294901760, %v241_v36 }
 0x29e   :  { %41949 = vmatprep.subr.bf16.mxu1 %v46817_v24  ;;  %28254 = vmatprep.mubr.f32.mxu0 %v28253_v15  ;;  %v948_v47 = vcombine.high %v930_v12, %v944_v44  ;;  %v240_v15 = vld [vmem:[#allocation5 + $0xd0] sm:$0xff]  ;;  %v947_v56 = vcombine.low %v930_v12, %v944_v44 }
 0x29f   :  { %42901 = vmatprep.subr.bf16.mxu0 %v42900_v6  ;;  %v398_v6 = vld [vmem:[#allocation5 + $0x5c0] sm:$0x7f]  ;;  %v46951_v58 = vsub.f32 %v241_v36, %v8759_v63  ;;  %v8761_v30 = vand.u32 4294901760, %v240_v15  ;;  %v42912_v36 = vpack.c.bf16 %v28279_v4, %v28267_v32 }
 0x2a0   :  { %v46949_v3 = vand.u32 4294901760, %v948_v47  ;;  %v8765_v51 = vand.u32 4294901760, %v398_v6  ;;  %v46967_v39 = vand.u32 4294901760, %v947_v56 }
 0x2a1   :  { %v8845_v2 = vand.u32 4294901760, %v46951_v58  ;;  %v46969_v45 = vsub.f32 %v240_v15, %v8761_v30 }
 0x2a2   :  { %v46960_v14 = vsub.f32 %v948_v47, %v46949_v3 }
 0x2a3   :  { %8514 = vmatmul.mubr.f32.vlgmr.msra.gmra.mrb[0].mxu1 %v46834_v21  ;;  %v8846_v12 = vsub.f32 %v46951_v58, %v8845_v2  ;;  %v8851_v47 = vand.u32 4294901760, %v46969_v45 }
 0x2a4   :  { %41951 = vmatpush1.bf16.xpose.msra.mxu1 %v46849_v26  ;;  %28260 = vmatmul.mubr.f32.vlgmr.msra.gmra.mrb[0].mxu0 %v28259_v9  ;;  %v46971_v9 = vsub.f32 %v398_v6, %v8765_v51  ;;  %v47005_v6 = vpack.c.bf16 %v8765_v51, %v8761_v30 }
 0x2a5   :  { %42903 = vmatpush1.bf16.xpose.msra.mxu0 %v42902_v50  ;;  %8590 = vmatprep.mubr.f32.mxu1 %v8331_v43  ;;  %v46953_v43 = vsub.f32 %v399_v0, %v8763_v13  ;;  %v46973_v50 = vpack.c.bf16 %v8763_v13, %v8759_v63  ;;  %v46990_v0 = vsub.f32 %v947_v56, %v46967_v39  ;;  %v321_v13 = vld [vmem:[#allocation5 + $0x358] sm:$0xff] }
 0x2a6   :  { %41953 = vmatprep.subr.bf16.mxu1 %v41952_v37  ;;  %28350 = vmatprep.mubr.f32.mxu0 %v46861_v57  ;;  %v8863_v63 = vand.u32 4294901760, %v46971_v9 }
 0x2a7   :  { %42905 = vmatprep.subr.bf16.mxu0 %v42904_v29  ;;  %v8857_v21 = vand.u32 4294901760, %v46953_v43  ;;  %v1664_v29 = vrot.slane %v44590_v62, %v44898_v17  ;;  %v8835_v4 = vand.u32 4294901760, %v46990_v0  ;;  %v320_v62 = vld [vmem:[#allocation5 + $0x350] sm:$0xff] }
 0x2a8   :  { %v8864_v56 = vsub.f32 %v46971_v9, %v8863_v63 }
 0x2a9   :  { %v8858_v44 = vsub.f32 %v46953_v43, %v8857_v21  ;;  %v8836_v30 = vsub.f32 %v46990_v0, %v8835_v4 }
 0x2aa   :  { %v8865_v46 = vand.u32 4294901760, %v8864_v56 }
 0x2ab   :  { %8594 = vmatmul.mubr.f32.vlgmr.msra.gmra.mrb[0].mxu1 %v8337_v31  ;;  %v44589_v31 = vld [vmem:[#allocation2 + $0xd4] ss:$316 sps:$4 sm:$0xff]   ;;  %v8859_v38 = vand.u32 4294901760, %v8858_v44 }
 0x2ac   :  { %41955 = vmatpush1.bf16.xpose.msra.mxu1 %v41954_v1  ;;  %28352 = vmatmul.mubr.f32.vlgmr.msra.gmra.mrb[0].mxu0 %v46881_v11  ;;  %v1650_v37 = vrot.slane %v44589_v31, %v44898_v17  ;;  %v479_v1 = vld [vmem:[#allocation5 + $0x848] sm:$0x7f] }
 0x2ad   :  { %42907 = vmatpush1.bf16.xpose.msra.mxu0 %v42906_v7  ;;  %8676 = vmatprep.mubr.f32.mxu1 %v46793_v25  ;;  %v28679_v7 = vand.u32 4294901760, %v321_v13  ;;  %v28683_v15 = vand.u32 4294901760, %v479_v1 }
 0x2ae   :  { %41957 = vmatprep.subr.bf16.mxu1 %v46817_v24  ;;  %28431 = vmatprep.mubr.f32.mxu0 %v46876_v54  ;;  %v8829_v24 = vand.u32 4294901760, %v46960_v14  ;;  %v1668_v32 = vcombine.high %v1650_v37, %v1664_v29  ;;  %v42914_v54 = vpack.c.bf16 %v28285_v16, %v28273_v8  ;;  %v1667_v8 = vcombine.low %v1650_v37, %v1664_v29 }
 0x2af   :  { %42909 = vmatprep.subr.bf16.mxu0 %v46890_v59  ;;  %v47023_v51 = vsub.f32 %v321_v13, %v28679_v7  ;;  %v28681_v16 = vand.u32 4294901760, %v320_v62 }
 0x2b0   :  { %v8830_v10 = vsub.f32 %v46960_v14, %v8829_v24  ;;  %v47017_v44 = vand.u32 4294901760, %v1668_v32 }
 0x2b1   :  { %v47039_v37 = vsub.f32 %v320_v62, %v28681_v16 }
 0x2b2   :  { %v47032_v13 = vsub.f32 %v1668_v32, %v47017_v44 }
 0x2b3   :  { %8678 = vmatmul.mubr.f32.vlgmr.msra.gmra.mrb[0].mxu1 %v46811_v28 }
 0x2b4   :  { %41959 = vmatpush1.bf16.xpose.msra.mxu1 %v46849_v26  ;;  %28434 = vmatmul.mubr.f32.vlgmr.msra.gmra.mrb[0].mxu0 %v46900_v35  ;;  %v8847_v26 = vand.u32 4294901760, %v8846_v12  ;;  %v478_v12 = vld [vmem:[#allocation5 + $0x840] sm:$0x7f]  ;;  %v28749_v32 = vand.u32 4294901760, %v47032_v13 }
 0x2b5   :  { %42911 = vmatpush1.bf16.xpose.msra.mxu0 %v46914_v42  ;;  %8752 = vmatprep.mubr.f32.mxu1 %v46793_v25  ;;  %v8852_v25 = vsub.f32 %v46969_v45, %v8851_v47 }
 0x2b6   :  { %41961 = vmatprep.subr.bf16.mxu1 %v46973_v50  ;;  %28510 = vmatprep.mubr.f32.mxu0 %v28251_v55  ;;  %v8831_v55 = vand.u32 4294901760, %v8830_v10  ;;  %v41964_v31 = vpack.c.bf16 %v8859_v38, %v8847_v26  ;;  %v28765_v10 = vand.u32 4294901760, %v47023_v51  ;;  %v47037_v26 = vand.u32 4294901760, %v1667_v8 }
 0x2b7   :  { %42913 = vmatprep.subr.bf16.mxu0 %v42912_v36  ;;  %v47025_v36 = vsub.f32 %v479_v1, %v28683_v15  ;;  %v8853_v33 = vand.u32 4294901760, %v8852_v25  ;;  %v8837_v1 = vand.u32 4294901760, %v8836_v30  ;;  %v41968_v38 = vpack.c.bf16 %v46953_v43, %v46951_v58 }
 0x2b8   :  { %v47046_v25 = vpack.c.bf16 %v28683_v15, %v28679_v7  ;;  %v28771_v7 = vand.u32 4294901760, %v47039_v37 }
 0x2b9   :  { %v28777_v35 = vand.u32 4294901760, %v47025_v36 }
 0x2bb   :  { %8754 = vmatmul.mubr.f32.vlgmr.msra.gmra.mrb[0].mxu1 %v46811_v28  ;;  %v28685_v28 = vand.u32 4294901760, %v478_v12  ;;  %v28778_v56 = vsub.f32 %v47025_v36, %v28777_v35 }
 0x2bc   :  { %41963 = vmatpush1.bf16.xpose.msra.mxu1 %v47005_v6  ;;  %28514 = vmatmul.mubr.f32.vlgmr.msra.gmra.mrb[0].mxu0 %v28257_v48  ;;  %v41966_v48 = vpack.c.bf16 %v8865_v46, %v8853_v33  ;;  %v28772_v33 = vsub.f32 %v47039_v37, %v28771_v7 }
 0x2bd   :  { %42915 = vmatpush1.bf16.xpose.msra.mxu0 %v42914_v54  ;;  %8832 = vmatprep.mubr.f32.mxu1 %v8831_v55  ;;  %v47041_v29 = vsub.f32 %v478_v12, %v28685_v28  ;;  %v47056_v54 = vsub.f32 %v1667_v8, %v47037_v26  ;;  %v28750_v55 = vsub.f32 %v47032_v13, %v28749_v32  ;;  %v28779_v62 = vand.u32 4294901760, %v28778_v56 }
 0x2be   :  { %41965 = vmatprep.subr.bf16.mxu1 %v41964_v31  ;;  %28596 = vmatprep.mubr.f32.mxu0 %v46861_v57  ;;  %v47070_v30 = vpack.c.bf16 %v28685_v28, %v28681_v16  ;;  %v28773_v28 = vand.u32 4294901760, %v28772_v33  ;;  %v401_v33 = vld [vmem:[#allocation5 + $0x5d8] sm:$0x7f] }
 0x2bf   :  { %42917 = vmatprep.subr.bf16.mxu0 %v46890_v59  ;;  %v28766_v59 = vsub.f32 %v47023_v51, %v28765_v10  ;;  %v28783_v15 = vand.u32 4294901760, %v47041_v29  ;;  %v28755_v12 = vand.u32 4294901760, %v47056_v54  ;;  %v28751_v46 = vand.u32 4294901760, %v28750_v55 }
 0x2c0   :  { %v9261_v43 = vand.u32 4294901760, %v401_v33 }
 0x2c1   :  { %v28767_v31 = vand.u32 4294901760, %v28766_v59  ;;  %v28756_v16 = vsub.f32 %v47056_v54, %v28755_v12 }
 0x2c3   :  { %8838 = vmatmul.mubr.f32.vlgmr.msra.gmra.mrb[0].mxu1 %v8837_v1  ;;  %v42924_v8 = vpack.c.bf16 %v28779_v62, %v28767_v31  ;;  %v28757_v59 = vand.u32 4294901760, %v28756_v16  ;;  %v41976_v31 = vpack.c.bf16 %v8857_v21, %v8845_v2  ;;  %v42928_v62 = vpack.c.bf16 %v47025_v36, %v47023_v51 }
 0x2c4   :  { %41967 = vmatpush1.bf16.xpose.msra.mxu1 %v41966_v48  ;;  %28598 = vmatmul.mubr.f32.vlgmr.msra.gmra.mrb[0].mxu0 %v46881_v11  ;;  %v44591_v48 = vld [vmem:[#allocation2 + $0x38] ss:$316 sps:$4 sm:$0xff]   ;;  %v41978_v2 = vpack.c.bf16 %v8863_v63, %v8851_v47  ;;  %v42930_v21 = vpack.c.bf16 %v47041_v29, %v47039_v37 }
 0x2c5   :  { %42919 = vmatpush1.bf16.xpose.msra.mxu0 %v46914_v42  ;;  %8928 = vmatprep.mubr.f32.mxu1 %v46949_v3  ;;  %v41970_v42 = vpack.c.bf16 %v46971_v9, %v46969_v45 }
 0x2c6   :  { %41969 = vmatprep.subr.bf16.mxu1 %v41968_v38  ;;  %28672 = vmatprep.mubr.f32.mxu0 %v46861_v57  ;;  %v28784_v57 = vsub.f32 %v47041_v29, %v28783_v15  ;;  %v44593_v38 = vld [vmem:[#allocation2 + $0x2b0] ss:$316 sps:$4 sm:$0xff]  }
 0x2c7   :  { %42921 = vmatprep.subr.bf16.mxu0 %v47046_v25  ;;  %v973_v55 = vrot.slane %v44593_v38, %v44898_v17 }
 0x2c8   :  { %v28785_v1 = vand.u32 4294901760, %v28784_v57 }
 0x2ca   :  { %v42926_v56 = vpack.c.bf16 %v28785_v1, %v28773_v28  ;;  %v44597_v1 = vld [vmem:[#allocation2 + $0x350] ss:$316 sps:$4 sm:$0xff]  }
 0x2cb   :  { %8930 = vmatmul.mubr.f32.vlgmr.msra.gmra.mrb[0].mxu1 %v46967_v39 }
 0x2cc   :  { %41971 = vmatpush1.bf16.xpose.msra.mxu1 %v41970_v42  ;;  %28674 = vmatmul.mubr.f32.vlgmr.msra.gmra.mrb[0].mxu0 %v46881_v11  ;;  %v959_v11 = vrot.slane %v44591_v48, %v44898_v17  ;;  %v243_v42 = vld [vmem:[#allocation5 + $0xe8] sm:$0xff] }
 0x2cd   :  { %42923 = vmatpush1.bf16.xpose.msra.mxu0 %v47070_v30  ;;  %9009 = vmatprep.mubr.f32.mxu1 %v46960_v14  ;;  %v9257_v58 = vand.u32 4294901760, %v243_v42 }
 0x2ce   :  { %41973 = vmatprep.subr.bf16.mxu1 %v46973_v50  ;;  %28752 = vmatprep.mubr.f32.mxu0 %v28751_v46  ;;  %v982_v57 = vcombine.high %v959_v11, %v973_v55  ;;  %v242_v46 = vld [vmem:[#allocation5 + $0xe0] sm:$0xff]  ;;  %v981_v28 = vcombine.low %v959_v11, %v973_v55 }
 0x2cf   :  { %42925 = vmatprep.subr.bf16.mxu0 %v42924_v8  ;;  %v400_v8 = vld [vmem:[#allocation5 + $0x5d0] sm:$0x7f]  ;;  %v47107_v14 = vsub.f32 %v243_v42, %v9257_v58  ;;  %v9259_v45 = vand.u32 4294901760, %v242_v46  ;;  %v42936_v42 = vpack.c.bf16 %v28777_v35, %v28765_v10 }
 0x2d0   :  { %v47105_v16 = vand.u32 4294901760, %v982_v57  ;;  %v9263_v9 = vand.u32 4294901760, %v400_v8  ;;  %v47123_v48 = vand.u32 4294901760, %v981_v28 }
 0x2d1   :  { %v9343_v63 = vand.u32 4294901760, %v47107_v14  ;;  %v47125_v38 = vsub.f32 %v242_v46, %v9259_v45 }
 0x2d2   :  { %v47116_v47 = vsub.f32 %v982_v57, %v47105_v16 }
 0x2d3   :  { %9012 = vmatmul.mubr.f32.vlgmr.msra.gmra.mrb[0].mxu1 %v46990_v0  ;;  %v9344_v11 = vsub.f32 %v47107_v14, %v9343_v63  ;;  %v9349_v57 = vand.u32 4294901760, %v47125_v38 }
 0x2d4   :  { %41975 = vmatpush1.bf16.xpose.msra.mxu1 %v47005_v6  ;;  %28758 = vmatmul.mubr.f32.vlgmr.msra.gmra.mrb[0].mxu0 %v28757_v59  ;;  %v47127_v59 = vsub.f32 %v400_v8, %v9263_v9  ;;  %v47161_v8 = vpack.c.bf16 %v9263_v9, %v9259_v45 }
 0x2d5   :  { %42927 = vmatpush1.bf16.xpose.msra.mxu0 %v42926_v56  ;;  %9088 = vmatprep.mubr.f32.mxu1 %v8829_v24  ;;  %v47109_v24 = vsub.f32 %v401_v33, %v9261_v43  ;;  %v47129_v56 = vpack.c.bf16 %v9261_v43, %v9257_v58  ;;  %v47146_v33 = vsub.f32 %v981_v28, %v47123_v48  ;;  %v323_v43 = vld [vmem:[#allocation5 + $0x368] sm:$0xff] }
 0x2d6   :  { %41977 = vmatprep.subr.bf16.mxu1 %v41976_v31  ;;  %28848 = vmatprep.mubr.f32.mxu0 %v47017_v44  ;;  %v9361_v58 = vand.u32 4294901760, %v47127_v59 }
 0x2d7   :  { %42929 = vmatprep.subr.bf16.mxu0 %v42928_v62  ;;  %v9355_v0 = vand.u32 4294901760, %v47109_v24  ;;  %v1693_v62 = vrot.slane %v44597_v1, %v44898_v17  ;;  %v9333_v35 = vand.u32 4294901760, %v47146_v33  ;;  %v322_v1 = vld [vmem:[#allocation5 + $0x360] sm:$0xff] }
 0x2d8   :  { %v9362_v28 = vsub.f32 %v47127_v59, %v9361_v58 }
 0x2d9   :  { %v9356_v55 = vsub.f32 %v47109_v24, %v9355_v0  ;;  %v9334_v45 = vsub.f32 %v47146_v33, %v9333_v35 }
 0x2da   :  { %v9363_v29 = vand.u32 4294901760, %v9362_v28 }
 0x2db   :  { %9092 = vmatmul.mubr.f32.vlgmr.msra.gmra.mrb[0].mxu1 %v8835_v4  ;;  %v44595_v4 = vld [vmem:[#allocation2 + $0xd8] ss:$316 sps:$4 sm:$0xff]   ;;  %v9357_v36 = vand.u32 4294901760, %v9356_v55 }
 0x2dc   :  { %41979 = vmatpush1.bf16.xpose.msra.mxu1 %v41978_v2  ;;  %28850 = vmatmul.mubr.f32.vlgmr.msra.gmra.mrb[0].mxu0 %v47037_v26  ;;  %v1679_v31 = vrot.slane %v44595_v4, %v44898_v17  ;;  %v481_v2 = vld [vmem:[#allocation5 + $0x858] sm:$0x7f] }
 0x2dd   :  { %42931 = vmatpush1.bf16.xpose.msra.mxu0 %v42930_v21  ;;  %9174 = vmatprep.mubr.f32.mxu1 %v46949_v3  ;;  %v29177_v21 = vand.u32 4294901760, %v323_v43  ;;  %v29181_v46 = vand.u32 4294901760, %v481_v2 }
 0x2de   :  { %41981 = vmatprep.subr.bf16.mxu1 %v46973_v50  ;;  %28929 = vmatprep.mubr.f32.mxu0 %v47032_v13  ;;  %v9327_v50 = vand.u32 4294901760, %v47116_v47  ;;  %v1702_v10 = vcombine.high %v1679_v31, %v1693_v62  ;;  %v42938_v13 = vpack.c.bf16 %v28783_v15, %v28771_v7  ;;  %v1701_v7 = vcombine.low %v1679_v31, %v1693_v62 }
 0x2df   :  { %42933 = vmatprep.subr.bf16.mxu0 %v47046_v25  ;;  %v47179_v9 = vsub.f32 %v323_v43, %v29177_v21  ;;  %v29179_v15 = vand.u32 4294901760, %v322_v1 }
 0x2e0   :  { %v9328_v51 = vsub.f32 %v47116_v47, %v9327_v50  ;;  %v47173_v55 = vand.u32 4294901760, %v1702_v10 }
 0x2e1   :  { %v47195_v31 = vsub.f32 %v322_v1, %v29179_v15 }
 0x2e2   :  { %v47188_v43 = vsub.f32 %v1702_v10, %v47173_v55 }
 0x2e3   :  { %9176 = vmatmul.mubr.f32.vlgmr.msra.gmra.mrb[0].mxu1 %v46967_v39 }
 0x2e4   :  { %41983 = vmatpush1.bf16.xpose.msra.mxu1 %v47005_v6  ;;  %28932 = vmatmul.mubr.f32.vlgmr.msra.gmra.mrb[0].mxu0 %v47056_v54  ;;  %v9345_v6 = vand.u32 4294901760, %v9344_v11  ;;  %v480_v11 = vld [vmem:[#allocation5 + $0x850] sm:$0x7f]  ;;  %v29247_v10 = vand.u32 4294901760, %v47188_v43 }
 0x2e5   :  { %42935 = vmatpush1.bf16.xpose.msra.mxu0 %v47070_v30  ;;  %9250 = vmatprep.mubr.f32.mxu1 %v46949_v3  ;;  %v9350_v3 = vsub.f32 %v47125_v38, %v9349_v57 }
 0x2e6   :  { %41985 = vmatprep.subr.bf16.mxu1 %v47129_v56  ;;  %29008 = vmatprep.mubr.f32.mxu0 %v28749_v32  ;;  %v9329_v32 = vand.u32 4294901760, %v9328_v51  ;;  %v41988_v4 = vpack.c.bf16 %v9357_v36, %v9345_v6  ;;  %v29263_v51 = vand.u32 4294901760, %v47179_v9  ;;  %v47193_v6 = vand.u32 4294901760, %v1701_v7 }
 0x2e7   :  { %42937 = vmatprep.subr.bf16.mxu0 %v42936_v42  ;;  %v47181_v42 = vsub.f32 %v481_v2, %v29181_v46  ;;  %v9351_v37 = vand.u32 4294901760, %v9350_v3  ;;  %v9335_v2 = vand.u32 4294901760, %v9334_v45  ;;  %v41992_v36 = vpack.c.bf16 %v47109_v24, %v47107_v14 }
 0x2e8   :  { %v47202_v3 = vpack.c.bf16 %v29181_v46, %v29177_v21  ;;  %v29269_v21 = vand.u32 4294901760, %v47195_v31 }
 0x2e9   :  { %v29275_v54 = vand.u32 4294901760, %v47181_v42 }
 0x2eb   :  { %9252 = vmatmul.mubr.f32.vlgmr.msra.gmra.mrb[0].mxu1 %v46967_v39  ;;  %v29183_v39 = vand.u32 4294901760, %v480_v11  ;;  %v29276_v28 = vsub.f32 %v47181_v42, %v29275_v54 }
 0x2ec   :  { %41987 = vmatpush1.bf16.xpose.msra.mxu1 %v47161_v8  ;;  %29012 = vmatmul.mubr.f32.vlgmr.msra.gmra.mrb[0].mxu0 %v28755_v12  ;;  %v41990_v12 = vpack.c.bf16 %v9363_v29, %v9351_v37  ;;  %v29270_v37 = vsub.f32 %v47195_v31, %v29269_v21 }
 0x2ed   :  { %42939 = vmatpush1.bf16.xpose.msra.mxu0 %v42938_v13  ;;  %9330 = vmatprep.mubr.f32.mxu1 %v9329_v32  ;;  %v47197_v62 = vsub.f32 %v480_v11, %v29183_v39  ;;  %v47212_v13 = vsub.f32 %v1701_v7, %v47193_v6  ;;  %v29248_v32 = vsub.f32 %v47188_v43, %v29247_v10  ;;  %v29277_v1 = vand.u32 4294901760, %v29276_v28 }
 0x2ee   :  { %41989 = vmatprep.subr.bf16.mxu1 %v41988_v4  ;;  %29094 = vmatprep.mubr.f32.mxu0 %v47017_v44  ;;  %v47226_v45 = vpack.c.bf16 %v29183_v39, %v29179_v15  ;;  %v29271_v39 = vand.u32 4294901760, %v29270_v37  ;;  %v403_v37 = vld [vmem:[#allocation5 + $0x5e8] sm:$0x7f] }
 0x2ef   :  { %42941 = vmatprep.subr.bf16.mxu0 %v47046_v25  ;;  %v29264_v25 = vsub.f32 %v47179_v9, %v29263_v51  ;;  %v29281_v46 = vand.u32 4294901760, %v47197_v62  ;;  %v29253_v11 = vand.u32 4294901760, %v47212_v13  ;;  %v29249_v29 = vand.u32 4294901760, %v29248_v32 }
 0x2f0   :  { %v9759_v24 = vand.u32 4294901760, %v403_v37 }
 0x2f1   :  { %v29265_v4 = vand.u32 4294901760, %v29264_v25  ;;  %v29254_v15 = vsub.f32 %v47212_v13, %v29253_v11 }
 0x2f3   :  { %9336 = vmatmul.mubr.f32.vlgmr.msra.gmra.mrb[0].mxu1 %v9335_v2  ;;  %v42948_v7 = vpack.c.bf16 %v29277_v1, %v29265_v4  ;;  %v29255_v25 = vand.u32 4294901760, %v29254_v15  ;;  %v42000_v4 = vpack.c.bf16 %v9355_v0, %v9343_v63  ;;  %v42952_v1 = vpack.c.bf16 %v47181_v42, %v47179_v9 }
 0x2f4   :  { %41991 = vmatpush1.bf16.xpose.msra.mxu1 %v41990_v12  ;;  %29096 = vmatmul.mubr.f32.vlgmr.msra.gmra.mrb[0].mxu0 %v47037_v26  ;;  %v44599_v12 = vld [vmem:[#allocation2 + $0x3c] ss:$316 sps:$4 sm:$0xff]   ;;  %v42002_v63 = vpack.c.bf16 %v9361_v58, %v9349_v57  ;;  %v42954_v0 = vpack.c.bf16 %v47197_v62, %v47195_v31 }
 0x2f5   :  { %42943 = vmatpush1.bf16.xpose.msra.mxu0 %v47070_v30  ;;  %9426 = vmatprep.mubr.f32.mxu1 %v47105_v16  ;;  %v41994_v30 = vpack.c.bf16 %v47127_v59, %v47125_v38 }
 0x2f6   :  { %41993 = vmatprep.subr.bf16.mxu1 %v41992_v36  ;;  %29170 = vmatprep.mubr.f32.mxu0 %v47017_v44  ;;  %v29282_v44 = vsub.f32 %v47197_v62, %v29281_v46  ;;  %v44600_v36 = vld [vmem:[#allocation2 + $0x2b4] ss:$316 sps:$4 sm:$0xff]  }
 0x2f7   :  { %42945 = vmatprep.subr.bf16.mxu0 %v47202_v3  ;;  %v980_v32 = vrot.slane %v44600_v36, %v44898_v17 }
 0x2f8   :  { %v29283_v2 = vand.u32 4294901760, %v29282_v44 }
 0x2fa   :  { %v42950_v28 = vpack.c.bf16 %v29283_v2, %v29271_v39  ;;  %v44602_v2 = vld [vmem:[#allocation2 + $0x354] ss:$316 sps:$4 sm:$0xff]  }
 0x2fb   :  { %9428 = vmatmul.mubr.f32.vlgmr.msra.gmra.mrb[0].mxu1 %v47123_v48 }
 0x2fc   :  { %41995 = vmatpush1.bf16.xpose.msra.mxu1 %v41994_v30  ;;  %29172 = vmatmul.mubr.f32.vlgmr.msra.gmra.mrb[0].mxu0 %v47037_v26  ;;  %v966_v26 = vrot.slane %v44599_v12, %v44898_v17  ;;  %v245_v30 = vld [vmem:[#allocation5 + $0xf8] sm:$0xff] }
 0x2fd   :  { %42947 = vmatpush1.bf16.xpose.msra.mxu0 %v47226_v45  ;;  %9507 = vmatprep.mubr.f32.mxu1 %v47116_v47  ;;  %v9755_v14 = vand.u32 4294901760, %v245_v30 }
 0x2fe   :  { %41997 = vmatprep.subr.bf16.mxu1 %v47129_v56  ;;  %29250 = vmatprep.mubr.f32.mxu0 %v29249_v29  ;;  %v984_v44 = vcombine.high %v966_v26, %v980_v32  ;;  %v244_v29 = vld [vmem:[#allocation5 + $0xf0] sm:$0xff]  ;;  %v983_v39 = vcombine.low %v966_v26, %v980_v32 }
 0x2ff   :  { %42949 = vmatprep.subr.bf16.mxu0 %v42948_v7  ;;  %v402_v7 = vld [vmem:[#allocation5 + $0x5e0] sm:$0x7f]  ;;  %v47263_v47 = vsub.f32 %v245_v30, %v9755_v14  ;;  %v9757_v38 = vand.u32 4294901760, %v244_v29  ;;  %v42960_v30 = vpack.c.bf16 %v29275_v54, %v29263_v51 }
 0x300   :  { %v47261_v15 = vand.u32 4294901760, %v984_v44  ;;  %v9761_v59 = vand.u32 4294901760, %v402_v7  ;;  %v47279_v12 = vand.u32 4294901760, %v983_v39 }
 0x301   :  { %v9841_v58 = vand.u32 4294901760, %v47263_v47  ;;  %v47281_v36 = vsub.f32 %v244_v29, %v9757_v38 }
 0x302   :  { %v47272_v57 = vsub.f32 %v984_v44, %v47261_v15 }
 0x303   :  { %9510 = vmatmul.mubr.f32.vlgmr.msra.gmra.mrb[0].mxu1 %v47146_v33  ;;  %v9842_v26 = vsub.f32 %v47263_v47, %v9841_v58  ;;  %v9847_v44 = vand.u32 4294901760, %v47281_v36 }
 0x304   :  { %41999 = vmatpush1.bf16.xpose.msra.mxu1 %v47161_v8  ;;  %29256 = vmatmul.mubr.f32.vlgmr.msra.gmra.mrb[0].mxu0 %v29255_v25  ;;  %v47283_v25 = vsub.f32 %v402_v7, %v9761_v59  ;;  %v47317_v7 = vpack.c.bf16 %v9761_v59, %v9757_v38 }
 0x305   :  { %42951 = vmatpush1.bf16.xpose.msra.mxu0 %v42950_v28  ;;  %9586 = vmatprep.mubr.f32.mxu1 %v9327_v50  ;;  %v47265_v50 = vsub.f32 %v403_v37, %v9759_v24  ;;  %v47285_v28 = vpack.c.bf16 %v9759_v24, %v9755_v14  ;;  %v47302_v37 = vsub.f32 %v983_v39, %v47279_v12  ;;  %v325_v24 = vld [vmem:[#allocation5 + $0x378] sm:$0xff] }
 0x306   :  { %42001 = vmatprep.subr.bf16.mxu1 %v42000_v4  ;;  %29346 = vmatprep.mubr.f32.mxu0 %v47173_v55  ;;  %v9859_v14 = vand.u32 4294901760, %v47283_v25 }
 0x307   :  { %42953 = vmatprep.subr.bf16.mxu0 %v42952_v1  ;;  %v9853_v33 = vand.u32 4294901760, %v47265_v50  ;;  %v1700_v1 = vrot.slane %v44602_v2, %v44898_v17  ;;  %v9831_v54 = vand.u32 4294901760, %v47302_v37  ;;  %v324_v2 = vld [vmem:[#allocation5 + $0x370] sm:$0xff] }
 0x308   :  { %v9860_v39 = vsub.f32 %v47283_v25, %v9859_v14 }
 0x309   :  { %v9854_v32 = vsub.f32 %v47265_v50, %v9853_v33  ;;  %v9832_v38 = vsub.f32 %v47302_v37, %v9831_v54 }
 0x30a   :  { %v9861_v62 = vand.u32 4294901760, %v9860_v39 }
 0x30b   :  { %9590 = vmatmul.mubr.f32.vlgmr.msra.gmra.mrb[0].mxu1 %v9333_v35  ;;  %v44601_v35 = vld [vmem:[#allocation2 + $0xdc] ss:$316 sps:$4 sm:$0xff]   ;;  %v9855_v42 = vand.u32 4294901760, %v9854_v32 }
 0x30c   :  { %42003 = vmatpush1.bf16.xpose.msra.mxu1 %v42002_v63  ;;  %29348 = vmatmul.mubr.f32.vlgmr.msra.gmra.mrb[0].mxu0 %v47193_v6  ;;  %v1686_v4 = vrot.slane %v44601_v35, %v44898_v17  ;;  %v483_v63 = vld [vmem:[#allocation5 + $0x868] sm:$0x7f] }
 0x30d   :  { %42955 = vmatpush1.bf16.xpose.msra.mxu0 %v42954_v0  ;;  %9672 = vmatprep.mubr.f32.mxu1 %v47105_v16  ;;  %v29675_v0 = vand.u32 4294901760, %v325_v24  ;;  %v29679_v29 = vand.u32 4294901760, %v483_v63 }
 0x30e   :  { %42005 = vmatprep.subr.bf16.mxu1 %v47129_v56  ;;  %29427 = vmatprep.mubr.f32.mxu0 %v47188_v43  ;;  %v9825_v56 = vand.u32 4294901760, %v47272_v57  ;;  %v1704_v51 = vcombine.high %v1686_v4, %v1700_v1  ;;  %v42962_v43 = vpack.c.bf16 %v29281_v46, %v29269_v21  ;;  %v1703_v21 = vcombine.low %v1686_v4, %v1700_v1 }
 0x30f   :  { %42957 = vmatprep.subr.bf16.mxu0 %v47202_v3  ;;  %v47335_v59 = vsub.f32 %v325_v24, %v29675_v0  ;;  %v29677_v46 = vand.u32 4294901760, %v324_v2 }
 0x310   :  { %v9826_v9 = vsub.f32 %v47272_v57, %v9825_v56  ;;  %v47329_v32 = vand.u32 4294901760, %v1704_v51 }
 0x311   :  { %v47351_v4 = vsub.f32 %v324_v2, %v29677_v46 }
 0x312   :  { %v47344_v24 = vsub.f32 %v1704_v51, %v47329_v32 }
 0x313   :  { %9674 = vmatmul.mubr.f32.vlgmr.msra.gmra.mrb[0].mxu1 %v47123_v48 }
 0x314   :  { %42007 = vmatpush1.bf16.xpose.msra.mxu1 %v47161_v8  ;;  %29430 = vmatmul.mubr.f32.vlgmr.msra.gmra.mrb[0].mxu0 %v47212_v13  ;;  %v9843_v8 = vand.u32 4294901760, %v9842_v26  ;;  %v482_v26 = vld [vmem:[#allocation5 + $0x860] sm:$0x7f]  ;;  %v29745_v51 = vand.u32 4294901760, %v47344_v24 }
 0x315   :  { %42959 = vmatpush1.bf16.xpose.msra.mxu0 %v47226_v45  ;;  %9748 = vmatprep.mubr.f32.mxu1 %v47105_v16  ;;  %v9848_v16 = vsub.f32 %v47281_v36, %v9847_v44 }
 0x316   :  { %42009 = vmatprep.subr.bf16.mxu1 %v47285_v28  ;;  %29506 = vmatprep.mubr.f32.mxu0 %v29247_v10  ;;  %v9827_v10 = vand.u32 4294901760, %v9826_v9  ;;  %v42012_v35 = vpack.c.bf16 %v9855_v42, %v9843_v8  ;;  %v29761_v9 = vand.u32 4294901760, %v47335_v59  ;;  %v47349_v8 = vand.u32 4294901760, %v1703_v21 }
 0x317   :  { %42961 = vmatprep.subr.bf16.mxu0 %v42960_v30  ;;  %v47337_v30 = vsub.f32 %v483_v63, %v29679_v29  ;;  %v9849_v31 = vand.u32 4294901760, %v9848_v16  ;;  %v9833_v63 = vand.u32 4294901760, %v9832_v38  ;;  %v42016_v42 = vpack.c.bf16 %v47265_v50, %v47263_v47 }
 0x318   :  { %v47358_v16 = vpack.c.bf16 %v29679_v29, %v29675_v0  ;;  %v29767_v0 = vand.u32 4294901760, %v47351_v4 }
 0x319   :  { %v29773_v13 = vand.u32 4294901760, %v47337_v30 }
 0x31b   :  { %9750 = vmatmul.mubr.f32.vlgmr.msra.gmra.mrb[0].mxu1 %v47123_v48  ;;  %v29681_v48 = vand.u32 4294901760, %v482_v26  ;;  %v29774_v39 = vsub.f32 %v47337_v30, %v29773_v13 }
 0x31c   :  { %42011 = vmatpush1.bf16.xpose.msra.mxu1 %v47317_v7  ;;  %29510 = vmatmul.mubr.f32.vlgmr.msra.gmra.mrb[0].mxu0 %v29253_v11  ;;  %v42014_v11 = vpack.c.bf16 %v9861_v62, %v9849_v31  ;;  %v29768_v31 = vsub.f32 %v47351_v4, %v29767_v0 }
 0x31d   :  { %42963 = vmatpush1.bf16.xpose.msra.mxu0 %v42962_v43  ;;  %9828 = vmatprep.mubr.f32.mxu1 %v9827_v10  ;;  %v47353_v1 = vsub.f32 %v482_v26, %v29681_v48  ;;  %v47368_v43 = vsub.f32 %v1703_v21, %v47349_v8  ;;  %v29746_v10 = vsub.f32 %v47344_v24, %v29745_v51  ;;  %v29775_v2 = vand.u32 4294901760, %v29774_v39 }
 0x31e   :  { %42013 = vmatprep.subr.bf16.mxu1 %v42012_v35  ;;  %29592 = vmatprep.mubr.f32.mxu0 %v47173_v55  ;;  %v47382_v38 = vpack.c.bf16 %v29681_v48, %v29677_v46  ;;  %v29769_v48 = vand.u32 4294901760, %v29768_v31  ;;  %v405_v31 = vld [vmem:[#allocation5 + $0x5f8] sm:$0x7f] }
 0x31f   :  { %42965 = vmatprep.subr.bf16.mxu0 %v47202_v3  ;;  %v29762_v3 = vsub.f32 %v47335_v59, %v29761_v9  ;;  %v29779_v29 = vand.u32 4294901760, %v47353_v1  ;;  %v29751_v26 = vand.u32 4294901760, %v47368_v43  ;;  %v29747_v62 = vand.u32 4294901760, %v29746_v10 }
 0x320   :  { %v10257_v50 = vand.u32 4294901760, %v405_v31 }
 0x321   :  { %v29763_v35 = vand.u32 4294901760, %v29762_v3  ;;  %v29752_v46 = vsub.f32 %v47368_v43, %v29751_v26 }
 0x323   :  { %9834 = vmatmul.mubr.f32.vlgmr.msra.gmra.mrb[0].mxu1 %v9833_v63  ;;  %v42972_v21 = vpack.c.bf16 %v29775_v2, %v29763_v35  ;;  %v29753_v3 = vand.u32 4294901760, %v29752_v46  ;;  %v42024_v35 = vpack.c.bf16 %v9853_v33, %v9841_v58  ;;  %v42976_v2 = vpack.c.bf16 %v47337_v30, %v47335_v59 }
 0x324   :  { %42015 = vmatpush1.bf16.xpose.msra.mxu1 %v42014_v11  ;;  %29594 = vmatmul.mubr.f32.vlgmr.msra.gmra.mrb[0].mxu0 %v47193_v6  ;;  %v44603_v11 = vld [vmem:[#allocation2 + $0x40] ss:$316 sps:$4 sm:$0xff]   ;;  %v42026_v58 = vpack.c.bf16 %v9859_v14, %v9847_v44  ;;  %v42978_v33 = vpack.c.bf16 %v47353_v1, %v47351_v4 }
 0x325   :  { %42967 = vmatpush1.bf16.xpose.msra.mxu0 %v47226_v45  ;;  %9924 = vmatprep.mubr.f32.mxu1 %v47261_v15  ;;  %v42018_v45 = vpack.c.bf16 %v47283_v25, %v47281_v36 }
 0x326   :  { %42017 = vmatprep.subr.bf16.mxu1 %v42016_v42  ;;  %29668 = vmatprep.mubr.f32.mxu0 %v47173_v55  ;;  %v29780_v55 = vsub.f32 %v47353_v1, %v29779_v29  ;;  %v44605_v42 = vld [vmem:[#allocation2 + $0x2b8] ss:$316 sps:$4 sm:$0xff]  }
 0x327   :  { %42969 = vmatprep.subr.bf16.mxu0 %v47358_v16  ;;  %v1009_v10 = vrot.slane %v44605_v42, %v44898_v17 }
 0x328   :  { %v29781_v63 = vand.u32 4294901760, %v29780_v55 }
 0x32a   :  { %v42974_v39 = vpack.c.bf16 %v29781_v63, %v29769_v48  ;;  %v44609_v63 = vld [vmem:[#allocation2 + $0x358] ss:$316 sps:$4 sm:$0xff]  }
 0x32b   :  { %9926 = vmatmul.mubr.f32.vlgmr.msra.gmra.mrb[0].mxu1 %v47279_v12 }
 0x32c   :  { %42019 = vmatpush1.bf16.xpose.msra.mxu1 %v42018_v45  ;;  %29670 = vmatmul.mubr.f32.vlgmr.msra.gmra.mrb[0].mxu0 %v47193_v6  ;;  %v995_v6 = vrot.slane %v44603_v11, %v44898_v17  ;;  %v247_v45 = vld [vmem:[#allocation5 + $0x108] sm:$0xff] }
 0x32d   :  { %42971 = vmatpush1.bf16.xpose.msra.mxu0 %v47382_v38  ;;  %10005 = vmatprep.mubr.f32.mxu1 %v47272_v57  ;;  %v10253_v47 = vand.u32 4294901760, %v247_v45 }
 0x32e   :  { %42021 = vmatprep.subr.bf16.mxu1 %v47285_v28  ;;  %29748 = vmatprep.mubr.f32.mxu0 %v29747_v62  ;;  %v1018_v55 = vcombine.high %v995_v6, %v1009_v10  ;;  %v246_v62 = vld [vmem:[#allocation5 + $0x100] sm:$0xff]  ;;  %v1017_v48 = vcombine.low %v995_v6, %v1009_v10 }
 0x32f   :  { %42973 = vmatprep.subr.bf16.mxu0 %v42972_v21  ;;  %v404_v21 = vld [vmem:[#allocation5 + $0x5f0] sm:$0x7f]  ;;  %v47419_v57 = vsub.f32 %v247_v45, %v10253_v47  ;;  %v10255_v36 = vand.u32 4294901760, %v246_v62  ;;  %v42984_v45 = vpack.c.bf16 %v29773_v13, %v29761_v9 }
 0x330   :  { %v47417_v46 = vand.u32 4294901760, %v1018_v55  ;;  %v10259_v25 = vand.u32 4294901760, %v404_v21  ;;  %v47435_v11 = vand.u32 4294901760, %v1017_v48 }
 0x331   :  { %v10339_v14 = vand.u32 4294901760, %v47419_v57  ;;  %v47437_v42 = vsub.f32 %v246_v62, %v10255_v36 }
 0x332   :  { %v47428_v44 = vsub.f32 %v1018_v55, %v47417_v46 }
 0x333   :  { %10008 = vmatmul.mubr.f32.vlgmr.msra.gmra.mrb[0].mxu1 %v47302_v37  ;;  %v10340_v6 = vsub.f32 %v47419_v57, %v10339_v14  ;;  %v10345_v55 = vand.u32 4294901760, %v47437_v42 }
 0x334   :  { %42023 = vmatpush1.bf16.xpose.msra.mxu1 %v47317_v7  ;;  %29754 = vmatmul.mubr.f32.vlgmr.msra.gmra.mrb[0].mxu0 %v29753_v3  ;;  %v47439_v3 = vsub.f32 %v404_v21, %v10259_v25  ;;  %v47473_v21 = vpack.c.bf16 %v10259_v25, %v10255_v36 }
 0x335   :  { %42975 = vmatpush1.bf16.xpose.msra.mxu0 %v42974_v39  ;;  %10084 = vmatprep.mubr.f32.mxu1 %v9825_v56  ;;  %v47421_v56 = vsub.f32 %v405_v31, %v10257_v50  ;;  %v47441_v39 = vpack.c.bf16 %v10257_v50, %v10253_v47  ;;  %v47458_v31 = vsub.f32 %v1017_v48, %v47435_v11  ;;  %v327_v50 = vld [vmem:[#allocation5 + $0x388] sm:$0xff] }
 0x336   :  { %42025 = vmatprep.subr.bf16.mxu1 %v42024_v35  ;;  %29844 = vmatprep.mubr.f32.mxu0 %v47329_v32  ;;  %v10357_v47 = vand.u32 4294901760, %v47439_v3 }
 0x337   :  { %42977 = vmatprep.subr.bf16.mxu0 %v42976_v2  ;;  %v10351_v37 = vand.u32 4294901760, %v47421_v56  ;;  %v1729_v2 = vrot.slane %v44609_v63, %v44898_v17  ;;  %v10329_v13 = vand.u32 4294901760, %v47458_v31  ;;  %v326_v63 = vld [vmem:[#allocation5 + $0x380] sm:$0xff] }
 0x338   :  { %v10358_v48 = vsub.f32 %v47439_v3, %v10357_v47 }
 0x339   :  { %v10352_v10 = vsub.f32 %v47421_v56, %v10351_v37  ;;  %v10330_v36 = vsub.f32 %v47458_v31, %v10329_v13 }
 0x33a   :  { %v10359_v1 = vand.u32 4294901760, %v10358_v48 }
 0x33b   :  { %10088 = vmatmul.mubr.f32.vlgmr.msra.gmra.mrb[0].mxu1 %v9831_v54  ;;  %v44607_v54 = vld [vmem:[#allocation2 + $0xe0] ss:$316 sps:$4 sm:$0xff]   ;;  %v10353_v30 = vand.u32 4294901760, %v10352_v10 }
 0x33c   :  { %42027 = vmatpush1.bf16.xpose.msra.mxu1 %v42026_v58  ;;  %29846 = vmatmul.mubr.f32.vlgmr.msra.gmra.mrb[0].mxu0 %v47349_v8  ;;  %v1715_v35 = vrot.slane %v44607_v54, %v44898_v17  ;;  %v485_v58 = vld [vmem:[#allocation5 + $0x878] sm:$0x7f] }
 0x33d   :  { %42979 = vmatpush1.bf16.xpose.msra.mxu0 %v42978_v33  ;;  %10170 = vmatprep.mubr.f32.mxu1 %v47261_v15  ;;  %v30173_v33 = vand.u32 4294901760, %v327_v50  ;;  %v30177_v62 = vand.u32 4294901760, %v485_v58 }
 0x33e   :  { %42029 = vmatprep.subr.bf16.mxu1 %v47285_v28  ;;  %29925 = vmatprep.mubr.f32.mxu0 %v47344_v24  ;;  %v10323_v28 = vand.u32 4294901760, %v47428_v44  ;;  %v1738_v9 = vcombine.high %v1715_v35, %v1729_v2  ;;  %v42986_v24 = vpack.c.bf16 %v29779_v29, %v29767_v0  ;;  %v1737_v0 = vcombine.low %v1715_v35, %v1729_v2 }
 0x33f   :  { %42981 = vmatprep.subr.bf16.mxu0 %v47358_v16  ;;  %v47491_v25 = vsub.f32 %v327_v50, %v30173_v33  ;;  %v30175_v29 = vand.u32 4294901760, %v326_v63 }
 0x340   :  { %v10324_v59 = vsub.f32 %v47428_v44, %v10323_v28  ;;  %v47485_v10 = vand.u32 4294901760, %v1738_v9 }
 0x341   :  { %v47507_v35 = vsub.f32 %v326_v63, %v30175_v29 }
 0x342   :  { %v47500_v50 = vsub.f32 %v1738_v9, %v47485_v10 }
 0x343   :  { %10172 = vmatmul.mubr.f32.vlgmr.msra.gmra.mrb[0].mxu1 %v47279_v12 }
 0x344   :  { %42031 = vmatpush1.bf16.xpose.msra.mxu1 %v47317_v7  ;;  %29928 = vmatmul.mubr.f32.vlgmr.msra.gmra.mrb[0].mxu0 %v47368_v43  ;;  %v10341_v7 = vand.u32 4294901760, %v10340_v6  ;;  %v484_v6 = vld [vmem:[#allocation5 + $0x870] sm:$0x7f]  ;;  %v30243_v9 = vand.u32 4294901760, %v47500_v50 }
 0x345   :  { %42983 = vmatpush1.bf16.xpose.msra.mxu0 %v47382_v38  ;;  %10246 = vmatprep.mubr.f32.mxu1 %v47261_v15  ;;  %v10346_v15 = vsub.f32 %v47437_v42, %v10345_v55 }
 0x346   :  { %42033 = vmatprep.subr.bf16.mxu1 %v47441_v39  ;;  %30004 = vmatprep.mubr.f32.mxu0 %v29745_v51  ;;  %v10325_v51 = vand.u32 4294901760, %v10324_v59  ;;  %v42036_v54 = vpack.c.bf16 %v10353_v30, %v10341_v7  ;;  %v30259_v59 = vand.u32 4294901760, %v47491_v25  ;;  %v47505_v7 = vand.u32 4294901760, %v1737_v0 }
 0x347   :  { %42985 = vmatprep.subr.bf16.mxu0 %v42984_v45  ;;  %v47493_v45 = vsub.f32 %v485_v58, %v30177_v62  ;;  %v10347_v4 = vand.u32 4294901760, %v10346_v15  ;;  %v10331_v58 = vand.u32 4294901760, %v10330_v36  ;;  %v42040_v30 = vpack.c.bf16 %v47421_v56, %v47419_v57 }
 0x348   :  { %v47514_v15 = vpack.c.bf16 %v30177_v62, %v30173_v33  ;;  %v30265_v33 = vand.u32 4294901760, %v47507_v35 }
 0x349   :  { %v30271_v43 = vand.u32 4294901760, %v47493_v45 }
 0x34b   :  { %10248 = vmatmul.mubr.f32.vlgmr.msra.gmra.mrb[0].mxu1 %v47279_v12  ;;  %v30179_v12 = vand.u32 4294901760, %v484_v6  ;;  %v30272_v48 = vsub.f32 %v47493_v45, %v30271_v43 }
 0x34c   :  { %42035 = vmatpush1.bf16.xpose.msra.mxu1 %v47473_v21  ;;  %30008 = vmatmul.mubr.f32.vlgmr.msra.gmra.mrb[0].mxu0 %v29751_v26  ;;  %v42038_v26 = vpack.c.bf16 %v10359_v1, %v10347_v4  ;;  %v30266_v4 = vsub.f32 %v47507_v35, %v30265_v33 }
 0x34d   :  { %42987 = vmatpush1.bf16.xpose.msra.mxu0 %v42986_v24  ;;  %10326 = vmatprep.mubr.f32.mxu1 %v10325_v51  ;;  %v47509_v2 = vsub.f32 %v484_v6, %v30179_v12  ;;  %v47524_v24 = vsub.f32 %v1737_v0, %v47505_v7  ;;  %v30244_v51 = vsub.f32 %v47500_v50, %v30243_v9  ;;  %v30273_v63 = vand.u32 4294901760, %v30272_v48 }
 0x34e   :  { %42037 = vmatprep.subr.bf16.mxu1 %v42036_v54  ;;  %30090 = vmatprep.mubr.f32.mxu0 %v47329_v32  ;;  %v47538_v36 = vpack.c.bf16 %v30179_v12, %v30175_v29  ;;  %v30267_v12 = vand.u32 4294901760, %v30266_v4  ;;  %v407_v4 = vld [vmem:[#allocation5 + $0x608] sm:$0x7f] }
 0x34f   :  { %42989 = vmatprep.subr.bf16.mxu0 %v47358_v16  ;;  %v30260_v16 = vsub.f32 %v47491_v25, %v30259_v59  ;;  %v30277_v62 = vand.u32 4294901760, %v47509_v2  ;;  %v30249_v6 = vand.u32 4294901760, %v47524_v24  ;;  %v30245_v1 = vand.u32 4294901760, %v30244_v51 }
 0x350   :  { %v10755_v56 = vand.u32 4294901760, %v407_v4 }
 0x351   :  { %v30261_v54 = vand.u32 4294901760, %v30260_v16  ;;  %v30250_v29 = vsub.f32 %v47524_v24, %v30249_v6 }
 0x353   :  { %10332 = vmatmul.mubr.f32.vlgmr.msra.gmra.mrb[0].mxu1 %v10331_v58  ;;  %v42996_v0 = vpack.c.bf16 %v30273_v63, %v30261_v54  ;;  %v30251_v16 = vand.u32 4294901760, %v30250_v29  ;;  %v42048_v54 = vpack.c.bf16 %v10351_v37, %v10339_v14  ;;  %v43000_v63 = vpack.c.bf16 %v47493_v45, %v47491_v25 }
 0x354   :  { %42039 = vmatpush1.bf16.xpose.msra.mxu1 %v42038_v26  ;;  %30092 = vmatmul.mubr.f32.vlgmr.msra.gmra.mrb[0].mxu0 %v47349_v8  ;;  %v44611_v26 = vld [vmem:[#allocation2 + $0x44] ss:$316 sps:$4 sm:$0xff]   ;;  %v42050_v14 = vpack.c.bf16 %v10357_v47, %v10345_v55  ;;  %v43002_v37 = vpack.c.bf16 %v47509_v2, %v47507_v35 }
 0x355   :  { %42991 = vmatpush1.bf16.xpose.msra.mxu0 %v47382_v38  ;;  %10422 = vmatprep.mubr.f32.mxu1 %v47417_v46  ;;  %v42042_v38 = vpack.c.bf16 %v47439_v3, %v47437_v42 }
 0x356   :  { %42041 = vmatprep.subr.bf16.mxu1 %v42040_v30  ;;  %30166 = vmatprep.mubr.f32.mxu0 %v47329_v32  ;;  %v30278_v32 = vsub.f32 %v47509_v2, %v30277_v62  ;;  %v44612_v30 = vld [vmem:[#allocation2 + $0x2bc] ss:$316 sps:$4 sm:$0xff]  }
 0x357   :  { %42993 = vmatprep.subr.bf16.mxu0 %v47514_v15  ;;  %v1016_v51 = vrot.slane %v44612_v30, %v44898_v17 }
 0x358   :  { %v30279_v58 = vand.u32 4294901760, %v30278_v32 }
 0x35a   :  { %v42998_v48 = vpack.c.bf16 %v30279_v58, %v30267_v12  ;;  %v44614_v58 = vld [vmem:[#allocation2 + $0x35c] ss:$316 sps:$4 sm:$0xff]  }
 0x35b   :  { %10424 = vmatmul.mubr.f32.vlgmr.msra.gmra.mrb[0].mxu1 %v47435_v11 }
 0x35c   :  { %42043 = vmatpush1.bf16.xpose.msra.mxu1 %v42042_v38  ;;  %30168 = vmatmul.mubr.f32.vlgmr.msra.gmra.mrb[0].mxu0 %v47349_v8  ;;  %v1002_v8 = vrot.slane %v44611_v26, %v44898_v17  ;;  %v249_v38 = vld [vmem:[#allocation5 + $0x118] sm:$0xff] }
 0x35d   :  { %42995 = vmatpush1.bf16.xpose.msra.mxu0 %v47538_v36  ;;  %10503 = vmatprep.mubr.f32.mxu1 %v47428_v44  ;;  %v10751_v57 = vand.u32 4294901760, %v249_v38 }
 0x35e   :  { %42045 = vmatprep.subr.bf16.mxu1 %v47441_v39  ;;  %30246 = vmatprep.mubr.f32.mxu0 %v30245_v1  ;;  %v1020_v32 = vcombine.high %v1002_v8, %v1016_v51  ;;  %v248_v1 = vld [vmem:[#allocation5 + $0x110] sm:$0xff]  ;;  %v1019_v12 = vcombine.low %v1002_v8, %v1016_v51 }
 0x35f   :  { %42997 = vmatprep.subr.bf16.mxu0 %v42996_v0  ;;  %v406_v0 = vld [vmem:[#allocation5 + $0x600] sm:$0x7f]  ;;  %v47575_v44 = vsub.f32 %v249_v38, %v10751_v57  ;;  %v10753_v42 = vand.u32 4294901760, %v248_v1  ;;  %v43008_v38 = vpack.c.bf16 %v30271_v43, %v30259_v59 }
 0x360   :  { %v47573_v29 = vand.u32 4294901760, %v1020_v32  ;;  %v10757_v3 = vand.u32 4294901760, %v406_v0  ;;  %v47591_v26 = vand.u32 4294901760, %v1019_v12 }
 0x361   :  { %v10837_v47 = vand.u32 4294901760, %v47575_v44  ;;  %v47593_v30 = vsub.f32 %v248_v1, %v10753_v42 }
 0x362   :  { %v47584_v55 = vsub.f32 %v1020_v32, %v47573_v29 }
 0x363   :  { %10506 = vmatmul.mubr.f32.vlgmr.msra.gmra.mrb[0].mxu1 %v47458_v31  ;;  %v10838_v8 = vsub.f32 %v47575_v44, %v10837_v47  ;;  %v10843_v32 = vand.u32 4294901760, %v47593_v30 }
 0x364   :  { %42047 = vmatpush1.bf16.xpose.msra.mxu1 %v47473_v21  ;;  %30252 = vmatmul.mubr.f32.vlgmr.msra.gmra.mrb[0].mxu0 %v30251_v16  ;;  %v47595_v16 = vsub.f32 %v406_v0, %v10757_v3  ;;  %v47629_v0 = vpack.c.bf16 %v10757_v3, %v10753_v42 }
 0x365   :  { %42999 = vmatpush1.bf16.xpose.msra.mxu0 %v42998_v48  ;;  %10582 = vmatprep.mubr.f32.mxu1 %v10323_v28  ;;  %v47577_v28 = vsub.f32 %v407_v4, %v10755_v56  ;;  %v47597_v48 = vpack.c.bf16 %v10755_v56, %v10751_v57  ;;  %v47614_v4 = vsub.f32 %v1019_v12, %v47591_v26  ;;  %v329_v56 = vld [vmem:[#allocation5 + $0x398] sm:$0xff] }
 0x366   :  { %42049 = vmatprep.subr.bf16.mxu1 %v42048_v54  ;;  %30342 = vmatprep.mubr.f32.mxu0 %v47485_v10  ;;  %v10855_v57 = vand.u32 4294901760, %v47595_v16 }
 0x367   :  { %43001 = vmatprep.subr.bf16.mxu0 %v43000_v63  ;;  %v10849_v31 = vand.u32 4294901760, %v47577_v28  ;;  %v1736_v63 = vrot.slane %v44614_v58, %v44898_v17  ;;  %v10827_v43 = vand.u32 4294901760, %v47614_v4  ;;  %v328_v58 = vld [vmem:[#allocation5 + $0x390] sm:$0xff] }
 0x368   :  { %v10856_v12 = vsub.f32 %v47595_v16, %v10855_v57 }
 0x369   :  { %v10850_v51 = vsub.f32 %v47577_v28, %v10849_v31  ;;  %v10828_v42 = vsub.f32 %v47614_v4, %v10827_v43 }
 0x36a   :  { %v10857_v2 = vand.u32 4294901760, %v10856_v12 }
 0x36b   :  { %10586 = vmatmul.mubr.f32.vlgmr.msra.gmra.mrb[0].mxu1 %v10329_v13  ;;  %v44613_v13 = vld [vmem:[#allocation2 + $0xe4] ss:$316 sps:$4 sm:$0xff]   ;;  %v10851_v45 = vand.u32 4294901760, %v10850_v51 }
 0x36c   :  { %42051 = vmatpush1.bf16.xpose.msra.mxu1 %v42050_v14  ;;  %30344 = vmatmul.mubr.f32.vlgmr.msra.gmra.mrb[0].mxu0 %v47505_v7  ;;  %v1722_v54 = vrot.slane %v44613_v13, %v44898_v17  ;;  %v487_v14 = vld [vmem:[#allocation5 + $0x888] sm:$0x7f] }
 0x36d   :  { %43003 = vmatpush1.bf16.xpose.msra.mxu0 %v43002_v37  ;;  %10668 = vmatprep.mubr.f32.mxu1 %v47417_v46  ;;  %v30671_v37 = vand.u32 4294901760, %v329_v56  ;;  %v30675_v1 = vand.u32 4294901760, %v487_v14 }
 0x36e   :  { %42053 = vmatprep.subr.bf16.mxu1 %v47441_v39  ;;  %30423 = vmatprep.mubr.f32.mxu0 %v47500_v50  ;;  %v10821_v39 = vand.u32 4294901760, %v47584_v55  ;;  %v1740_v59 = vcombine.high %v1722_v54, %v1736_v63  ;;  %v43010_v50 = vpack.c.bf16 %v30277_v62, %v30265_v33  ;;  %v1739_v33 = vcombine.low %v1722_v54, %v1736_v63 }
 0x36f   :  { %43005 = vmatprep.subr.bf16.mxu0 %v47514_v15  ;;  %v47647_v3 = vsub.f32 %v329_v56, %v30671_v37  ;;  %v30673_v62 = vand.u32 4294901760, %v328_v58 }
 0x370   :  { %v10822_v25 = vsub.f32 %v47584_v55, %v10821_v39  ;;  %v47641_v51 = vand.u32 4294901760, %v1740_v59 }
 0x371   :  { %v47663_v54 = vsub.f32 %v328_v58, %v30673_v62 }
 0x372   :  { %v47656_v56 = vsub.f32 %v1740_v59, %v47641_v51 }
 0x373   :  { %10670 = vmatmul.mubr.f32.vlgmr.msra.gmra.mrb[0].mxu1 %v47435_v11 }
 0x374   :  { %42055 = vmatpush1.bf16.xpose.msra.mxu1 %v47473_v21  ;;  %30426 = vmatmul.mubr.f32.vlgmr.msra.gmra.mrb[0].mxu0 %v47524_v24  ;;  %v10839_v21 = vand.u32 4294901760, %v10838_v8  ;;  %v486_v8 = vld [vmem:[#allocation5 + $0x880] sm:$0x7f]  ;;  %v30741_v59 = vand.u32 4294901760, %v47656_v56 }
 0x375   :  { %43007 = vmatpush1.bf16.xpose.msra.mxu0 %v47538_v36  ;;  %10744 = vmatprep.mubr.f32.mxu1 %v47417_v46  ;;  %v10844_v46 = vsub.f32 %v47593_v30, %v10843_v32 }
 0x376   :  { %42057 = vmatprep.subr.bf16.mxu1 %v47597_v48  ;;  %30502 = vmatprep.mubr.f32.mxu0 %v30243_v9  ;;  %v10823_v9 = vand.u32 4294901760, %v10822_v25  ;;  %v42060_v13 = vpack.c.bf16 %v10851_v45, %v10839_v21  ;;  %v30757_v25 = vand.u32 4294901760, %v47647_v3  ;;  %v47661_v21 = vand.u32 4294901760, %v1739_v33 }
 0x377   :  { %43009 = vmatprep.subr.bf16.mxu0 %v43008_v38  ;;  %v47649_v38 = vsub.f32 %v487_v14, %v30675_v1  ;;  %v10845_v35 = vand.u32 4294901760, %v10844_v46  ;;  %v10829_v14 = vand.u32 4294901760, %v10828_v42  ;;  %v42064_v45 = vpack.c.bf16 %v47577_v28, %v47575_v44 }
 0x378   :  { %v47670_v46 = vpack.c.bf16 %v30675_v1, %v30671_v37  ;;  %v30763_v37 = vand.u32 4294901760, %v47663_v54 }
 0x379   :  { %v30769_v24 = vand.u32 4294901760, %v47649_v38 }
 0x37b   :  { %10746 = vmatmul.mubr.f32.vlgmr.msra.gmra.mrb[0].mxu1 %v47435_v11  ;;  %v30677_v11 = vand.u32 4294901760, %v486_v8  ;;  %v30770_v12 = vsub.f32 %v47649_v38, %v30769_v24 }
 0x37c   :  { %42059 = vmatpush1.bf16.xpose.msra.mxu1 %v47629_v0  ;;  %30506 = vmatmul.mubr.f32.vlgmr.msra.gmra.mrb[0].mxu0 %v30249_v6  ;;  %v42062_v6 = vpack.c.bf16 %v10857_v2, %v10845_v35  ;;  %v30764_v35 = vsub.f32 %v47663_v54, %v30763_v37 }
 0x37d   :  { %43011 = vmatpush1.bf16.xpose.msra.mxu0 %v43010_v50  ;;  %10824 = vmatprep.mubr.f32.mxu1 %v10823_v9  ;;  %v47665_v63 = vsub.f32 %v486_v8, %v30677_v11  ;;  %v47680_v50 = vsub.f32 %v1739_v33, %v47661_v21  ;;  %v30742_v9 = vsub.f32 %v47656_v56, %v30741_v59  ;;  %v30771_v58 = vand.u32 4294901760, %v30770_v12 }
 0x37e   :  { %42061 = vmatprep.subr.bf16.mxu1 %v42060_v13  ;;  %30588 = vmatprep.mubr.f32.mxu0 %v47485_v10  ;;  %v47694_v42 = vpack.c.bf16 %v30677_v11, %v30673_v62  ;;  %v30765_v11 = vand.u32 4294901760, %v30764_v35  ;;  %v409_v35 = vld [vmem:[#allocation5 + $0x618] sm:$0x7f] }
 0x37f   :  { %43013 = vmatprep.subr.bf16.mxu0 %v47514_v15  ;;  %v30758_v15 = vsub.f32 %v47647_v3, %v30757_v25  ;;  %v30775_v1 = vand.u32 4294901760, %v47665_v63  ;;  %v30747_v8 = vand.u32 4294901760, %v47680_v50  ;;  %v30743_v2 = vand.u32 4294901760, %v30742_v9 }
 0x380   :  { %v11253_v28 = vand.u32 4294901760, %v409_v35 }
 0x381   :  { %v30759_v13 = vand.u32 4294901760, %v30758_v15  ;;  %v30748_v62 = vsub.f32 %v47680_v50, %v30747_v8 }
 0x383   :  { %10830 = vmatmul.mubr.f32.vlgmr.msra.gmra.mrb[0].mxu1 %v10829_v14  ;;  %v43020_v33 = vpack.c.bf16 %v30771_v58, %v30759_v13  ;;  %v30749_v15 = vand.u32 4294901760, %v30748_v62  ;;  %v42072_v13 = vpack.c.bf16 %v10849_v31, %v10837_v47  ;;  %v43024_v58 = vpack.c.bf16 %v47649_v38, %v47647_v3 }
 0x384   :  { %42063 = vmatpush1.bf16.xpose.msra.mxu1 %v42062_v6  ;;  %30590 = vmatmul.mubr.f32.vlgmr.msra.gmra.mrb[0].mxu0 %v47505_v7  ;;  %v44615_v6 = vld [vmem:[#allocation2 + $0x48] ss:$316 sps:$4 sm:$0xff]   ;;  %v42074_v47 = vpack.c.bf16 %v10855_v57, %v10843_v32  ;;  %v43026_v31 = vpack.c.bf16 %v47665_v63, %v47663_v54 }
 0x385   :  { %43015 = vmatpush1.bf16.xpose.msra.mxu0 %v47538_v36  ;;  %10920 = vmatprep.mubr.f32.mxu1 %v47573_v29  ;;  %v42066_v36 = vpack.c.bf16 %v47595_v16, %v47593_v30 }
 0x386   :  { %42065 = vmatprep.subr.bf16.mxu1 %v42064_v45  ;;  %30664 = vmatprep.mubr.f32.mxu0 %v47485_v10  ;;  %v30776_v10 = vsub.f32 %v47665_v63, %v30775_v1  ;;  %v44617_v45 = vld [vmem:[#allocation2 + $0x2c0] ss:$316 sps:$4 sm:$0xff]  }
 0x387   :  { %43017 = vmatprep.subr.bf16.mxu0 %v47670_v46  ;;  %v1045_v9 = vrot.slane %v44617_v45, %v44898_v17 }
 0x388   :  { %v30777_v14 = vand.u32 4294901760, %v30776_v10 }
 0x38a   :  { %v43022_v12 = vpack.c.bf16 %v30777_v14, %v30765_v11  ;;  %v44621_v14 = vld [vmem:[#allocation2 + $0x360] ss:$316 sps:$4 sm:$0xff]  }
 0x38b   :  { %10922 = vmatmul.mubr.f32.vlgmr.msra.gmra.mrb[0].mxu1 %v47591_v26 }
 0x38c   :  { %42067 = vmatpush1.bf16.xpose.msra.mxu1 %v42066_v36  ;;  %30666 = vmatmul.mubr.f32.vlgmr.msra.gmra.mrb[0].mxu0 %v47505_v7  ;;  %v1031_v7 = vrot.slane %v44615_v6, %v44898_v17  ;;  %v251_v36 = vld [vmem:[#allocation5 + $0x128] sm:$0xff] }
 0x38d   :  { %43019 = vmatpush1.bf16.xpose.msra.mxu0 %v47694_v42  ;;  %11001 = vmatprep.mubr.f32.mxu1 %v47584_v55  ;;  %v11249_v44 = vand.u32 4294901760, %v251_v36 }
 0x38e   :  { %42069 = vmatprep.subr.bf16.mxu1 %v47597_v48  ;;  %30744 = vmatprep.mubr.f32.mxu0 %v30743_v2  ;;  %v1054_v10 = vcombine.high %v1031_v7, %v1045_v9  ;;  %v250_v2 = vld [vmem:[#allocation5 + $0x120] sm:$0xff]  ;;  %v1053_v11 = vcombine.low %v1031_v7, %v1045_v9 }
 0x38f   :  { %43021 = vmatprep.subr.bf16.mxu0 %v43020_v33  ;;  %v408_v33 = vld [vmem:[#allocation5 + $0x610] sm:$0x7f]  ;;  %v47731_v55 = vsub.f32 %v251_v36, %v11249_v44  ;;  %v11251_v30 = vand.u32 4294901760, %v250_v2  ;;  %v43032_v36 = vpack.c.bf16 %v30769_v24, %v30757_v25 }
 0x390   :  { %v47729_v62 = vand.u32 4294901760, %v1054_v10  ;;  %v11255_v16 = vand.u32 4294901760, %v408_v33  ;;  %v47747_v6 = vand.u32 4294901760, %v1053_v11 }
 0x391   :  { %v11335_v57 = vand.u32 4294901760, %v47731_v55  ;;  %v47749_v45 = vsub.f32 %v250_v2, %v11251_v30 }
 0x392   :  { %v47740_v32 = vsub.f32 %v1054_v10, %v47729_v62 }
 0x393   :  { %11004 = vmatmul.mubr.f32.vlgmr.msra.gmra.mrb[0].mxu1 %v47614_v4  ;;  %v11336_v7 = vsub.f32 %v47731_v55, %v11335_v57  ;;  %v11341_v10 = vand.u32 4294901760, %v47749_v45 }
 0x394   :  { %42071 = vmatpush1.bf16.xpose.msra.mxu1 %v47629_v0  ;;  %30750 = vmatmul.mubr.f32.vlgmr.msra.gmra.mrb[0].mxu0 %v30749_v15  ;;  %v47751_v15 = vsub.f32 %v408_v33, %v11255_v16  ;;  %v47785_v33 = vpack.c.bf16 %v11255_v16, %v11251_v30 }
 0x395   :  { %43023 = vmatpush1.bf16.xpose.msra.mxu0 %v43022_v12  ;;  %11080 = vmatprep.mubr.f32.mxu1 %v10821_v39  ;;  %v47733_v39 = vsub.f32 %v409_v35, %v11253_v28  ;;  %v47753_v12 = vpack.c.bf16 %v11253_v28, %v11249_v44  ;;  %v47770_v35 = vsub.f32 %v1053_v11, %v47747_v6  ;;  %v331_v28 = vld [vmem:[#allocation5 + $0x3a8] sm:$0xff] }
 0x396   :  { %42073 = vmatprep.subr.bf16.mxu1 %v42072_v13  ;;  %30840 = vmatprep.mubr.f32.mxu0 %v47641_v51  ;;  %v11353_v44 = vand.u32 4294901760, %v47751_v15 }
 0x397   :  { %43025 = vmatprep.subr.bf16.mxu0 %v43024_v58  ;;  %v11347_v4 = vand.u32 4294901760, %v47733_v39  ;;  %v1765_v58 = vrot.slane %v44621_v14, %v44898_v17  ;;  %v11325_v24 = vand.u32 4294901760, %v47770_v35  ;;  %v330_v14 = vld [vmem:[#allocation5 + $0x3a0] sm:$0xff] }
 0x398   :  { %v11354_v11 = vsub.f32 %v47751_v15, %v11353_v44 }
 0x399   :  { %v11348_v9 = vsub.f32 %v47733_v39, %v11347_v4  ;;  %v11326_v30 = vsub.f32 %v47770_v35, %v11325_v24 }
 0x39a   :  { %v11355_v63 = vand.u32 4294901760, %v11354_v11 }
 0x39b   :  { %11084 = vmatmul.mubr.f32.vlgmr.msra.gmra.mrb[0].mxu1 %v10827_v43  ;;  %v44619_v43 = vld [vmem:[#allocation2 + $0xe8] ss:$316 sps:$4 sm:$0xff]   ;;  %v11349_v38 = vand.u32 4294901760, %v11348_v9 }
 0x39c   :  { %42075 = vmatpush1.bf16.xpose.msra.mxu1 %v42074_v47  ;;  %30842 = vmatmul.mubr.f32.vlgmr.msra.gmra.mrb[0].mxu0 %v47661_v21  ;;  %v1751_v13 = vrot.slane %v44619_v43, %v44898_v17  ;;  %v489_v47 = vld [vmem:[#allocation5 + $0x898] sm:$0x7f] }
 0x39d   :  { %43027 = vmatpush1.bf16.xpose.msra.mxu0 %v43026_v31  ;;  %11166 = vmatprep.mubr.f32.mxu1 %v47573_v29  ;;  %v31169_v31 = vand.u32 4294901760, %v331_v28  ;;  %v31173_v2 = vand.u32 4294901760, %v489_v47 }
 0x39e   :  { %42077 = vmatprep.subr.bf16.mxu1 %v47597_v48  ;;  %30921 = vmatprep.mubr.f32.mxu0 %v47656_v56  ;;  %v11319_v48 = vand.u32 4294901760, %v47740_v32  ;;  %v1774_v25 = vcombine.high %v1751_v13, %v1765_v58  ;;  %v43034_v56 = vpack.c.bf16 %v30775_v1, %v30763_v37  ;;  %v1773_v37 = vcombine.low %v1751_v13, %v1765_v58 }
 0x39f   :  { %43029 = vmatprep.subr.bf16.mxu0 %v47670_v46  ;;  %v47803_v16 = vsub.f32 %v331_v28, %v31169_v31  ;;  %v31171_v1 = vand.u32 4294901760, %v330_v14 }
 0x3a0   :  { %v11320_v3 = vsub.f32 %v47740_v32, %v11319_v48  ;;  %v47797_v9 = vand.u32 4294901760, %v1774_v25 }
 0x3a1   :  { %v47819_v13 = vsub.f32 %v330_v14, %v31171_v1 }
 0x3a2   :  { %v47812_v28 = vsub.f32 %v1774_v25, %v47797_v9 }
 0x3a3   :  { %11168 = vmatmul.mubr.f32.vlgmr.msra.gmra.mrb[0].mxu1 %v47591_v26 }
 0x3a4   :  { %42079 = vmatpush1.bf16.xpose.msra.mxu1 %v47629_v0  ;;  %30924 = vmatmul.mubr.f32.vlgmr.msra.gmra.mrb[0].mxu0 %v47680_v50  ;;  %v11337_v0 = vand.u32 4294901760, %v11336_v7  ;;  %v488_v7 = vld [vmem:[#allocation5 + $0x890] sm:$0x7f]  ;;  %v31239_v25 = vand.u32 4294901760, %v47812_v28 }
 0x3a5   :  { %43031 = vmatpush1.bf16.xpose.msra.mxu0 %v47694_v42  ;;  %11242 = vmatprep.mubr.f32.mxu1 %v47573_v29  ;;  %v11342_v29 = vsub.f32 %v47749_v45, %v11341_v10 }
 0x3a6   :  { %42081 = vmatprep.subr.bf16.mxu1 %v47753_v12  ;;  %31000 = vmatprep.mubr.f32.mxu0 %v30741_v59  ;;  %v11321_v59 = vand.u32 4294901760, %v11320_v3  ;;  %v42084_v43 = vpack.c.bf16 %v11349_v38, %v11337_v0  ;;  %v31255_v3 = vand.u32 4294901760, %v47803_v16  ;;  %v47817_v0 = vand.u32 4294901760, %v1773_v37 }
 0x3a7   :  { %43033 = vmatprep.subr.bf16.mxu0 %v43032_v36  ;;  %v47805_v36 = vsub.f32 %v489_v47, %v31173_v2  ;;  %v11343_v54 = vand.u32 4294901760, %v11342_v29  ;;  %v11327_v47 = vand.u32 4294901760, %v11326_v30  ;;  %v42088_v38 = vpack.c.bf16 %v47733_v39, %v47731_v55 }
 0x3a8   :  { %v47826_v29 = vpack.c.bf16 %v31173_v2, %v31169_v31  ;;  %v31261_v31 = vand.u32 4294901760, %v47819_v13 }
 0x3a9   :  { %v31267_v50 = vand.u32 4294901760, %v47805_v36 }
 0x3ab   :  { %11244 = vmatmul.mubr.f32.vlgmr.msra.gmra.mrb[0].mxu1 %v47591_v26  ;;  %v31175_v26 = vand.u32 4294901760, %v488_v7  ;;  %v31268_v11 = vsub.f32 %v47805_v36, %v31267_v50 }
 0x3ac   :  { %42083 = vmatpush1.bf16.xpose.msra.mxu1 %v47785_v33  ;;  %31004 = vmatmul.mubr.f32.vlgmr.msra.gmra.mrb[0].mxu0 %v30747_v8  ;;  %v42086_v8 = vpack.c.bf16 %v11355_v63, %v11343_v54  ;;  %v31262_v54 = vsub.f32 %v47819_v13, %v31261_v31 }
 0x3ad   :  { %43035 = vmatpush1.bf16.xpose.msra.mxu0 %v43034_v56  ;;  %11322 = vmatprep.mubr.f32.mxu1 %v11321_v59  ;;  %v47821_v58 = vsub.f32 %v488_v7, %v31175_v26  ;;  %v47836_v56 = vsub.f32 %v1773_v37, %v47817_v0  ;;  %v31240_v59 = vsub.f32 %v47812_v28, %v31239_v25  ;;  %v31269_v14 = vand.u32 4294901760, %v31268_v11 }
 0x3ae   :  { %42085 = vmatprep.subr.bf16.mxu1 %v42084_v43  ;;  %31086 = vmatprep.mubr.f32.mxu0 %v47641_v51  ;;  %v47850_v30 = vpack.c.bf16 %v31175_v26, %v31171_v1  ;;  %v31263_v26 = vand.u32 4294901760, %v31262_v54  ;;  %v411_v54 = vld [vmem:[#allocation5 + $0x628] sm:$0x7f] }
 0x3af   :  { %43037 = vmatprep.subr.bf16.mxu0 %v47670_v46  ;;  %v31256_v46 = vsub.f32 %v47803_v16, %v31255_v3  ;;  %v31273_v2 = vand.u32 4294901760, %v47821_v58  ;;  %v31245_v7 = vand.u32 4294901760, %v47836_v56  ;;  %v31241_v63 = vand.u32 4294901760, %v31240_v59 }
 0x3b0   :  { %v11751_v39 = vand.u32 4294901760, %v411_v54 }
 0x3b1   :  { %v31257_v43 = vand.u32 4294901760, %v31256_v46  ;;  %v31246_v1 = vsub.f32 %v47836_v56, %v31245_v7 }
 0x3b3   :  { %11328 = vmatmul.mubr.f32.vlgmr.msra.gmra.mrb[0].mxu1 %v11327_v47  ;;  %v43044_v37 = vpack.c.bf16 %v31269_v14, %v31257_v43  ;;  %v31247_v46 = vand.u32 4294901760, %v31246_v1  ;;  %v42096_v43 = vpack.c.bf16 %v11347_v4, %v11335_v57  ;;  %v43048_v14 = vpack.c.bf16 %v47805_v36, %v47803_v16 }
 0x3b4   :  { %42087 = vmatpush1.bf16.xpose.msra.mxu1 %v42086_v8  ;;  %31088 = vmatmul.mubr.f32.vlgmr.msra.gmra.mrb[0].mxu0 %v47661_v21  ;;  %v44623_v8 = vld [vmem:[#allocation2 + $0x4c] ss:$316 sps:$4 sm:$0xff]   ;;  %v42098_v57 = vpack.c.bf16 %v11353_v44, %v11341_v10  ;;  %v43050_v4 = vpack.c.bf16 %v47821_v58, %v47819_v13 }
 0x3b5   :  { %43039 = vmatpush1.bf16.xpose.msra.mxu0 %v47694_v42  ;;  %11418 = vmatprep.mubr.f32.mxu1 %v47729_v62  ;;  %v42090_v42 = vpack.c.bf16 %v47751_v15, %v47749_v45 }
 0x3b6   :  { %42089 = vmatprep.subr.bf16.mxu1 %v42088_v38  ;;  %31162 = vmatprep.mubr.f32.mxu0 %v47641_v51  ;;  %v31274_v51 = vsub.f32 %v47821_v58, %v31273_v2  ;;  %v44624_v38 = vld [vmem:[#allocation2 + $0x2c4] ss:$316 sps:$4 sm:$0xff]  }
 0x3b7   :  { %43041 = vmatprep.subr.bf16.mxu0 %v47826_v29  ;;  %v1052_v59 = vrot.slane %v44624_v38, %v44898_v17 }
 0x3b8   :  { %v31275_v47 = vand.u32 4294901760, %v31274_v51 }
 0x3ba   :  { %v43046_v11 = vpack.c.bf16 %v31275_v47, %v31263_v26  ;;  %v44626_v47 = vld [vmem:[#allocation2 + $0x364] ss:$316 sps:$4 sm:$0xff]  }
 0x3bb   :  { %11420 = vmatmul.mubr.f32.vlgmr.msra.gmra.mrb[0].mxu1 %v47747_v6 }
 0x3bc   :  { %42091 = vmatpush1.bf16.xpose.msra.mxu1 %v42090_v42  ;;  %31164 = vmatmul.mubr.f32.vlgmr.msra.gmra.mrb[0].mxu0 %v47661_v21  ;;  %v1038_v21 = vrot.slane %v44623_v8, %v44898_v17  ;;  %v253_v42 = vld [vmem:[#allocation5 + $0x138] sm:$0xff] }
 0x3bd   :  { %43043 = vmatpush1.bf16.xpose.msra.mxu0 %v47850_v30  ;;  %11499 = vmatprep.mubr.f32.mxu1 %v47740_v32  ;;  %v11747_v55 = vand.u32 4294901760, %v253_v42 }
 0x3be   :  { %42093 = vmatprep.subr.bf16.mxu1 %v47753_v12  ;;  %31242 = vmatprep.mubr.f32.mxu0 %v31241_v63  ;;  %v1056_v51 = vcombine.high %v1038_v21, %v1052_v59  ;;  %v252_v63 = vld [vmem:[#allocation5 + $0x130] sm:$0xff]  ;;  %v1055_v26 = vcombine.low %v1038_v21, %v1052_v59 }
 0x3bf   :  { %43045 = vmatprep.subr.bf16.mxu0 %v43044_v37  ;;  %v410_v37 = vld [vmem:[#allocation5 + $0x620] sm:$0x7f]  ;;  %v47887_v32 = vsub.f32 %v253_v42, %v11747_v55  ;;  %v11749_v45 = vand.u32 4294901760, %v252_v63  ;;  %v43056_v42 = vpack.c.bf16 %v31267_v50, %v31255_v3 }
 0x3c0   :  { %v47885_v1 = vand.u32 4294901760, %v1056_v51  ;;  %v11753_v15 = vand.u32 4294901760, %v410_v37  ;;  %v47903_v8 = vand.u32 4294901760, %v1055_v26 }
 0x3c1   :  { %v11833_v44 = vand.u32 4294901760, %v47887_v32  ;;  %v47905_v38 = vsub.f32 %v252_v63, %v11749_v45 }
 0x3c2   :  { %v47896_v10 = vsub.f32 %v1056_v51, %v47885_v1 }
 0x3c3   :  { %11502 = vmatmul.mubr.f32.vlgmr.msra.gmra.mrb[0].mxu1 %v47770_v35  ;;  %v11834_v21 = vsub.f32 %v47887_v32, %v11833_v44  ;;  %v11839_v51 = vand.u32 4294901760, %v47905_v38 }
 0x3c4   :  { %42095 = vmatpush1.bf16.xpose.msra.mxu1 %v47785_v33  ;;  %31248 = vmatmul.mubr.f32.vlgmr.msra.gmra.mrb[0].mxu0 %v31247_v46  ;;  %v47907_v46 = vsub.f32 %v410_v37, %v11753_v15  ;;  %v47941_v37 = vpack.c.bf16 %v11753_v15, %v11749_v45 }
 0x3c5   :  { %43047 = vmatpush1.bf16.xpose.msra.mxu0 %v43046_v11  ;;  %11578 = vmatprep.mubr.f32.mxu1 %v11319_v48  ;;  %v47889_v48 = vsub.f32 %v411_v54, %v11751_v39  ;;  %v47909_v11 = vpack.c.bf16 %v11751_v39, %v11747_v55  ;;  %v47926_v54 = vsub.f32 %v1055_v26, %v47903_v8  ;;  %v333_v39 = vld [vmem:[#allocation5 + $0x3b8] sm:$0xff] }
 0x3c6   :  { %42097 = vmatprep.subr.bf16.mxu1 %v42096_v43  ;;  %31338 = vmatprep.mubr.f32.mxu0 %v47797_v9  ;;  %v11851_v55 = vand.u32 4294901760, %v47907_v46 }
 0x3c7   :  { %43049 = vmatprep.subr.bf16.mxu0 %v43048_v14  ;;  %v11845_v35 = vand.u32 4294901760, %v47889_v48  ;;  %v1772_v14 = vrot.slane %v44626_v47, %v44898_v17  ;;  %v11823_v50 = vand.u32 4294901760, %v47926_v54  ;;  %v332_v47 = vld [vmem:[#allocation5 + $0x3b0] sm:$0xff] }
 0x3c8   :  { %v11852_v26 = vsub.f32 %v47907_v46, %v11851_v55 }
 0x3c9   :  { %v11846_v59 = vsub.f32 %v47889_v48, %v11845_v35  ;;  %v11824_v45 = vsub.f32 %v47926_v54, %v11823_v50 }
 0x3ca   :  { %v11853_v58 = vand.u32 4294901760, %v11852_v26 }
 0x3cb   :  { %11582 = vmatmul.mubr.f32.vlgmr.msra.gmra.mrb[0].mxu1 %v11325_v24  ;;  %v44625_v24 = vld [vmem:[#allocation2 + $0xec] ss:$316 sps:$4 sm:$0xff]   ;;  %v11847_v36 = vand.u32 4294901760, %v11846_v59 }
 0x3cc   :  { %42099 = vmatpush1.bf16.xpose.msra.mxu1 %v42098_v57  ;;  %31340 = vmatmul.mubr.f32.vlgmr.msra.gmra.mrb[0].mxu0 %v47817_v0  ;;  %v1758_v43 = vrot.slane %v44625_v24, %v44898_v17  ;;  %v491_v57 = vld [vmem:[#allocation5 + $0x8a8] sm:$0x7f] }
 0x3cd   :  { %43051 = vmatpush1.bf16.xpose.msra.mxu0 %v43050_v4  ;;  %11664 = vmatprep.mubr.f32.mxu1 %v47729_v62  ;;  %v31667_v4 = vand.u32 4294901760, %v333_v39  ;;  %v31671_v63 = vand.u32 4294901760, %v491_v57 }
 0x3ce   :  { %42101 = vmatprep.subr.bf16.mxu1 %v47753_v12  ;;  %31419 = vmatprep.mubr.f32.mxu0 %v47812_v28  ;;  %v11817_v12 = vand.u32 4294901760, %v47896_v10  ;;  %v1776_v3 = vcombine.high %v1758_v43, %v1772_v14  ;;  %v43058_v28 = vpack.c.bf16 %v31273_v2, %v31261_v31  ;;  %v1775_v31 = vcombine.low %v1758_v43, %v1772_v14 }
 0x3cf   :  { %43053 = vmatprep.subr.bf16.mxu0 %v47826_v29  ;;  %v47959_v15 = vsub.f32 %v333_v39, %v31667_v4  ;;  %v31669_v2 = vand.u32 4294901760, %v332_v47 }
 0x3d0   :  { %v11818_v16 = vsub.f32 %v47896_v10, %v11817_v12  ;;  %v47953_v59 = vand.u32 4294901760, %v1776_v3 }
 0x3d1   :  { %v47975_v43 = vsub.f32 %v332_v47, %v31669_v2 }
 0x3d2   :  { %v47968_v39 = vsub.f32 %v1776_v3, %v47953_v59 }
 0x3d3   :  { %11666 = vmatmul.mubr.f32.vlgmr.msra.gmra.mrb[0].mxu1 %v47747_v6 }
 0x3d4   :  { %42103 = vmatpush1.bf16.xpose.msra.mxu1 %v47785_v33  ;;  %31422 = vmatmul.mubr.f32.vlgmr.msra.gmra.mrb[0].mxu0 %v47836_v56  ;;  %v11835_v33 = vand.u32 4294901760, %v11834_v21  ;;  %v490_v21 = vld [vmem:[#allocation5 + $0x8a0] sm:$0x7f]  ;;  %v31737_v3 = vand.u32 4294901760, %v47968_v39 }
 0x3d5   :  { %43055 = vmatpush1.bf16.xpose.msra.mxu0 %v47850_v30  ;;  %11740 = vmatprep.mubr.f32.mxu1 %v47729_v62  ;;  %v11840_v62 = vsub.f32 %v47905_v38, %v11839_v51 }
 0x3d6   :  { %42105 = vmatprep.subr.bf16.mxu1 %v47909_v11  ;;  %31498 = vmatprep.mubr.f32.mxu0 %v31239_v25  ;;  %v11819_v25 = vand.u32 4294901760, %v11818_v16  ;;  %v42108_v24 = vpack.c.bf16 %v11847_v36, %v11835_v33  ;;  %v31753_v16 = vand.u32 4294901760, %v47959_v15  ;;  %v47973_v33 = vand.u32 4294901760, %v1775_v31 }
 0x3d7   :  { %43057 = vmatprep.subr.bf16.mxu0 %v43056_v42  ;;  %v47961_v42 = vsub.f32 %v491_v57, %v31671_v63  ;;  %v11841_v13 = vand.u32 4294901760, %v11840_v62  ;;  %v11825_v57 = vand.u32 4294901760, %v11824_v45  ;;  %v42112_v36 = vpack.c.bf16 %v47889_v48, %v47887_v32 }
 0x3d8   :  { %v47982_v62 = vpack.c.bf16 %v31671_v63, %v31667_v4  ;;  %v31759_v4 = vand.u32 4294901760, %v47975_v43 }
 0x3d9   :  { %v31765_v56 = vand.u32 4294901760, %v47961_v42 }
 0x3db   :  { %11742 = vmatmul.mubr.f32.vlgmr.msra.gmra.mrb[0].mxu1 %v47747_v6  ;;  %v31673_v6 = vand.u32 4294901760, %v490_v21  ;;  %v31766_v26 = vsub.f32 %v47961_v42, %v31765_v56 }
 0x3dc   :  { %42107 = vmatpush1.bf16.xpose.msra.mxu1 %v47941_v37  ;;  %31502 = vmatmul.mubr.f32.vlgmr.msra.gmra.mrb[0].mxu0 %v31245_v7  ;;  %v42110_v7 = vpack.c.bf16 %v11853_v58, %v11841_v13  ;;  %v31760_v13 = vsub.f32 %v47975_v43, %v31759_v4 }
 0x3dd   :  { %43059 = vmatpush1.bf16.xpose.msra.mxu0 %v43058_v28  ;;  %11820 = vmatprep.mubr.f32.mxu1 %v11819_v25  ;;  %v47977_v14 = vsub.f32 %v490_v21, %v31673_v6  ;;  %v47992_v28 = vsub.f32 %v1775_v31, %v47973_v33  ;;  %v31738_v25 = vsub.f32 %v47968_v39, %v31737_v3  ;;  %v31767_v47 = vand.u32 4294901760, %v31766_v26 }
 0x3de   :  { %42109 = vmatprep.subr.bf16.mxu1 %v42108_v24  ;;  %31584 = vmatprep.mubr.f32.mxu0 %v47797_v9  ;;  %v48006_v45 = vpack.c.bf16 %v31673_v6, %v31669_v2  ;;  %v31761_v6 = vand.u32 4294901760, %v31760_v13  ;;  %v413_v13 = vld [vmem:[#allocation5 + $0x638] sm:$0x7f] }
 0x3df   :  { %43061 = vmatprep.subr.bf16.mxu0 %v47826_v29  ;;  %v31754_v29 = vsub.f32 %v47959_v15, %v31753_v16  ;;  %v31771_v63 = vand.u32 4294901760, %v47977_v14  ;;  %v31743_v21 = vand.u32 4294901760, %v47992_v28  ;;  %v31739_v58 = vand.u32 4294901760, %v31738_v25 }
 0x3e0   :  { %v12249_v48 = vand.u32 4294901760, %v413_v13 }
 0x3e1   :  { %v31755_v24 = vand.u32 4294901760, %v31754_v29  ;;  %v31744_v2 = vsub.f32 %v47992_v28, %v31743_v21 }
 0x3e3   :  { %11826 = vmatmul.mubr.f32.vlgmr.msra.gmra.mrb[0].mxu1 %v11825_v57  ;;  %v43068_v31 = vpack.c.bf16 %v31767_v47, %v31755_v24  ;;  %v31745_v29 = vand.u32 4294901760, %v31744_v2  ;;  %v42120_v24 = vpack.c.bf16 %v11845_v35, %v11833_v44  ;;  %v43072_v47 = vpack.c.bf16 %v47961_v42, %v47959_v15 }
 0x3e4   :  { %42111 = vmatpush1.bf16.xpose.msra.mxu1 %v42110_v7  ;;  %31586 = vmatmul.mubr.f32.vlgmr.msra.gmra.mrb[0].mxu0 %v47817_v0  ;;  %v44627_v7 = vld [vmem:[#allocation2 + $0x50] ss:$316 sps:$4 sm:$0xff]   ;;  %v42122_v44 = vpack.c.bf16 %v11851_v55, %v11839_v51  ;;  %v43074_v35 = vpack.c.bf16 %v47977_v14, %v47975_v43 }
 0x3e5   :  { %43063 = vmatpush1.bf16.xpose.msra.mxu0 %v47850_v30  ;;  %11916 = vmatprep.mubr.f32.mxu1 %v47885_v1  ;;  %v42114_v30 = vpack.c.bf16 %v47907_v46, %v47905_v38 }
 0x3e6   :  { %42113 = vmatprep.subr.bf16.mxu1 %v42112_v36  ;;  %31660 = vmatprep.mubr.f32.mxu0 %v47797_v9  ;;  %v31772_v9 = vsub.f32 %v47977_v14, %v31771_v63  ;;  %v44629_v36 = vld [vmem:[#allocation2 + $0x2c8] ss:$316 sps:$4 sm:$0xff]  }
 0x3e7   :  { %43065 = vmatprep.subr.bf16.mxu0 %v47982_v62  ;;  %v1081_v25 = vrot.slane %v44629_v36, %v44898_v17 }
 0x3e8   :  { %v31773_v57 = vand.u32 4294901760, %v31772_v9 }
 0x3ea   :  { %v43070_v26 = vpack.c.bf16 %v31773_v57, %v31761_v6  ;;  %v44633_v57 = vld [vmem:[#allocation2 + $0x368] ss:$316 sps:$4 sm:$0xff]  }
 0x3eb   :  { %11918 = vmatmul.mubr.f32.vlgmr.msra.gmra.mrb[0].mxu1 %v47903_v8 }
 0x3ec   :  { %42115 = vmatpush1.bf16.xpose.msra.mxu1 %v42114_v30  ;;  %31662 = vmatmul.mubr.f32.vlgmr.msra.gmra.mrb[0].mxu0 %v47817_v0  ;;  %v1067_v0 = vrot.slane %v44627_v7, %v44898_v17  ;;  %v255_v30 = vld [vmem:[#allocation5 + $0x148] sm:$0xff] }
 0x3ed   :  { %43067 = vmatpush1.bf16.xpose.msra.mxu0 %v48006_v45  ;;  %11997 = vmatprep.mubr.f32.mxu1 %v47896_v10  ;;  %v12245_v32 = vand.u32 4294901760, %v255_v30 }
 0x3ee   :  { %42117 = vmatprep.subr.bf16.mxu1 %v47909_v11  ;;  %31740 = vmatprep.mubr.f32.mxu0 %v31739_v58  ;;  %v1090_v9 = vcombine.high %v1067_v0, %v1081_v25  ;;  %v254_v58 = vld [vmem:[#allocation5 + $0x140] sm:$0xff]  ;;  %v1089_v6 = vcombine.low %v1067_v0, %v1081_v25 }
 0x3ef   :  { %43069 = vmatprep.subr.bf16.mxu0 %v43068_v31  ;;  %v412_v31 = vld [vmem:[#allocation5 + $0x630] sm:$0x7f]  ;;  %v48043_v10 = vsub.f32 %v255_v30, %v12245_v32  ;;  %v12247_v38 = vand.u32 4294901760, %v254_v58  ;;  %v43080_v30 = vpack.c.bf16 %v31765_v56, %v31753_v16 }
 0x3f0   :  { %v48041_v2 = vand.u32 4294901760, %v1090_v9  ;;  %v12251_v46 = vand.u32 4294901760, %v412_v31  ;;  %v48059_v7 = vand.u32 4294901760, %v1089_v6 }
 0x3f1   :  { %v12331_v55 = vand.u32 4294901760, %v48043_v10  ;;  %v48061_v36 = vsub.f32 %v254_v58, %v12247_v38 }
 0x3f2   :  { %v48052_v51 = vsub.f32 %v1090_v9, %v48041_v2 }
 0x3f3   :  { %12000 = vmatmul.mubr.f32.vlgmr.msra.gmra.mrb[0].mxu1 %v47926_v54  ;;  %v12332_v0 = vsub.f32 %v48043_v10, %v12331_v55  ;;  %v12337_v9 = vand.u32 4294901760, %v48061_v36 }
 0x3f4   :  { %42119 = vmatpush1.bf16.xpose.msra.mxu1 %v47941_v37  ;;  %31746 = vmatmul.mubr.f32.vlgmr.msra.gmra.mrb[0].mxu0 %v31745_v29  ;;  %v48063_v29 = vsub.f32 %v412_v31, %v12251_v46  ;;  %v48097_v31 = vpack.c.bf16 %v12251_v46, %v12247_v38 }
 0x3f5   :  { %43071 = vmatpush1.bf16.xpose.msra.mxu0 %v43070_v26  ;;  %12076 = vmatprep.mubr.f32.mxu1 %v11817_v12  ;;  %v48045_v12 = vsub.f32 %v413_v13, %v12249_v48  ;;  %v48065_v26 = vpack.c.bf16 %v12249_v48, %v12245_v32  ;;  %v48082_v13 = vsub.f32 %v1089_v6, %v48059_v7  ;;  %v335_v48 = vld [vmem:[#allocation5 + $0x3c8] sm:$0xff] }
 0x3f6   :  { %42121 = vmatprep.subr.bf16.mxu1 %v42120_v24  ;;  %31836 = vmatprep.mubr.f32.mxu0 %v47953_v59  ;;  %v12349_v32 = vand.u32 4294901760, %v48063_v29 }
 0x3f7   :  { %43073 = vmatprep.subr.bf16.mxu0 %v43072_v47  ;;  %v12343_v54 = vand.u32 4294901760, %v48045_v12  ;;  %v1801_v47 = vrot.slane %v44633_v57, %v44898_v17  ;;  %v12321_v56 = vand.u32 4294901760, %v48082_v13  ;;  %v334_v57 = vld [vmem:[#allocation5 + $0x3c0] sm:$0xff] }
 0x3f8   :  { %v12350_v6 = vsub.f32 %v48063_v29, %v12349_v32 }
 0x3f9   :  { %v12344_v25 = vsub.f32 %v48045_v12, %v12343_v54  ;;  %v12322_v38 = vsub.f32 %v48082_v13, %v12321_v56 }
 0x3fa   :  { %v12351_v14 = vand.u32 4294901760, %v12350_v6 }
 0x3fb   :  { %12080 = vmatmul.mubr.f32.vlgmr.msra.gmra.mrb[0].mxu1 %v11823_v50  ;;  %v44631_v50 = vld [vmem:[#allocation2 + $0xf0] ss:$316 sps:$4 sm:$0xff]   ;;  %v12345_v42 = vand.u32 4294901760, %v12344_v25 }
 0x3fc   :  { %42123 = vmatpush1.bf16.xpose.msra.mxu1 %v42122_v44  ;;  %31838 = vmatmul.mubr.f32.vlgmr.msra.gmra.mrb[0].mxu0 %v47973_v33  ;;  %v1787_v24 = vrot.slane %v44631_v50, %v44898_v17  ;;  %v493_v44 = vld [vmem:[#allocation5 + $0x8b8] sm:$0x7f] }
 0x3fd   :  { %43075 = vmatpush1.bf16.xpose.msra.mxu0 %v43074_v35  ;;  %12162 = vmatprep.mubr.f32.mxu1 %v47885_v1  ;;  %v32165_v35 = vand.u32 4294901760, %v335_v48  ;;  %v32169_v58 = vand.u32 4294901760, %v493_v44 }
 0x3fe   :  { %42125 = vmatprep.subr.bf16.mxu1 %v47909_v11  ;;  %31917 = vmatprep.mubr.f32.mxu0 %v47968_v39  ;;  %v12315_v11 = vand.u32 4294901760, %v48052_v51  ;;  %v1810_v16 = vcombine.high %v1787_v24, %v1801_v47  ;;  %v43082_v39 = vpack.c.bf16 %v31771_v63, %v31759_v4  ;;  %v1809_v4 = vcombine.low %v1787_v24, %v1801_v47 }
 0x3ff   :  { %43077 = vmatprep.subr.bf16.mxu0 %v47982_v62  ;;  %v48115_v46 = vsub.f32 %v335_v48, %v32165_v35  ;;  %v32167_v63 = vand.u32 4294901760, %v334_v57 }
 0x400   :  { %v12316_v15 = vsub.f32 %v48052_v51, %v12315_v11  ;;  %v48109_v25 = vand.u32 4294901760, %v1810_v16 }
 0x401   :  { %v48131_v24 = vsub.f32 %v334_v57, %v32167_v63 }
 0x402   :  { %v48124_v48 = vsub.f32 %v1810_v16, %v48109_v25 }
 0x403   :  { %12164 = vmatmul.mubr.f32.vlgmr.msra.gmra.mrb[0].mxu1 %v47903_v8 }
 0x404   :  { %42127 = vmatpush1.bf16.xpose.msra.mxu1 %v47941_v37  ;;  %31920 = vmatmul.mubr.f32.vlgmr.msra.gmra.mrb[0].mxu0 %v47992_v28  ;;  %v12333_v37 = vand.u32 4294901760, %v12332_v0  ;;  %v492_v0 = vld [vmem:[#allocation5 + $0x8b0] sm:$0x7f]  ;;  %v32235_v16 = vand.u32 4294901760, %v48124_v48 }
 0x405   :  { %43079 = vmatpush1.bf16.xpose.msra.mxu0 %v48006_v45  ;;  %12238 = vmatprep.mubr.f32.mxu1 %v47885_v1  ;;  %v12338_v1 = vsub.f32 %v48061_v36, %v12337_v9 }
 0x406   :  { %42129 = vmatprep.subr.bf16.mxu1 %v48065_v26  ;;  %31996 = vmatprep.mubr.f32.mxu0 %v31737_v3  ;;  %v12317_v3 = vand.u32 4294901760, %v12316_v15  ;;  %v42132_v50 = vpack.c.bf16 %v12345_v42, %v12333_v37  ;;  %v32251_v15 = vand.u32 4294901760, %v48115_v46  ;;  %v48129_v37 = vand.u32 4294901760, %v1809_v4 }
 0x407   :  { %43081 = vmatprep.subr.bf16.mxu0 %v43080_v30  ;;  %v48117_v30 = vsub.f32 %v493_v44, %v32169_v58  ;;  %v12339_v43 = vand.u32 4294901760, %v12338_v1  ;;  %v12323_v44 = vand.u32 4294901760, %v12322_v38  ;;  %v42136_v42 = vpack.c.bf16 %v48045_v12, %v48043_v10 }
 0x408   :  { %v48138_v1 = vpack.c.bf16 %v32169_v58, %v32165_v35  ;;  %v32257_v35 = vand.u32 4294901760, %v48131_v24 }
 0x409   :  { %v32263_v28 = vand.u32 4294901760, %v48117_v30 }
 0x40b   :  { %12240 = vmatmul.mubr.f32.vlgmr.msra.gmra.mrb[0].mxu1 %v47903_v8  ;;  %v32171_v8 = vand.u32 4294901760, %v492_v0  ;;  %v32264_v6 = vsub.f32 %v48117_v30, %v32263_v28 }
 0x40c   :  { %42131 = vmatpush1.bf16.xpose.msra.mxu1 %v48097_v31  ;;  %32000 = vmatmul.mubr.f32.vlgmr.msra.gmra.mrb[0].mxu0 %v31743_v21  ;;  %v42134_v21 = vpack.c.bf16 %v12351_v14, %v12339_v43  ;;  %v32258_v43 = vsub.f32 %v48131_v24, %v32257_v35 }
 0x40d   :  { %43083 = vmatpush1.bf16.xpose.msra.mxu0 %v43082_v39  ;;  %12318 = vmatprep.mubr.f32.mxu1 %v12317_v3  ;;  %v48133_v47 = vsub.f32 %v492_v0, %v32171_v8  ;;  %v48148_v39 = vsub.f32 %v1809_v4, %v48129_v37  ;;  %v32236_v3 = vsub.f32 %v48124_v48, %v32235_v16  ;;  %v32265_v57 = vand.u32 4294901760, %v32264_v6 }
 0x40e   :  { %42133 = vmatprep.subr.bf16.mxu1 %v42132_v50  ;;  %32082 = vmatprep.mubr.f32.mxu0 %v47953_v59  ;;  %v48162_v38 = vpack.c.bf16 %v32171_v8, %v32167_v63  ;;  %v32259_v8 = vand.u32 4294901760, %v32258_v43  ;;  %v415_v43 = vld [vmem:[#allocation5 + $0x648] sm:$0x7f] }
 0x40f   :  { %43085 = vmatprep.subr.bf16.mxu0 %v47982_v62  ;;  %v32252_v62 = vsub.f32 %v48115_v46, %v32251_v15  ;;  %v32269_v58 = vand.u32 4294901760, %v48133_v47  ;;  %v32241_v0 = vand.u32 4294901760, %v48148_v39  ;;  %v32237_v14 = vand.u32 4294901760, %v32236_v3 }
 0x410   :  { %v12747_v12 = vand.u32 4294901760, %v415_v43 }
 0x411   :  { %v32253_v50 = vand.u32 4294901760, %v32252_v62  ;;  %v32242_v63 = vsub.f32 %v48148_v39, %v32241_v0 }
 0x413   :  { %12324 = vmatmul.mubr.f32.vlgmr.msra.gmra.mrb[0].mxu1 %v12323_v44  ;;  %v43092_v4 = vpack.c.bf16 %v32265_v57, %v32253_v50  ;;  %v32243_v62 = vand.u32 4294901760, %v32242_v63  ;;  %v42144_v50 = vpack.c.bf16 %v12343_v54, %v12331_v55  ;;  %v43096_v57 = vpack.c.bf16 %v48117_v30, %v48115_v46 }
 0x414   :  { %42135 = vmatpush1.bf16.xpose.msra.mxu1 %v42134_v21  ;;  %32084 = vmatmul.mubr.f32.vlgmr.msra.gmra.mrb[0].mxu0 %v47973_v33  ;;  %v44635_v21 = vld [vmem:[#allocation2 + $0x54] ss:$316 sps:$4 sm:$0xff]   ;;  %v42146_v55 = vpack.c.bf16 %v12349_v32, %v12337_v9  ;;  %v43098_v54 = vpack.c.bf16 %v48133_v47, %v48131_v24 }
 0x415   :  { %43087 = vmatpush1.bf16.xpose.msra.mxu0 %v48006_v45  ;;  %12414 = vmatprep.mubr.f32.mxu1 %v48041_v2  ;;  %v42138_v45 = vpack.c.bf16 %v48063_v29, %v48061_v36 }
 0x416   :  { %42137 = vmatprep.subr.bf16.mxu1 %v42136_v42  ;;  %32158 = vmatprep.mubr.f32.mxu0 %v47953_v59  ;;  %v32270_v59 = vsub.f32 %v48133_v47, %v32269_v58  ;;  %v44636_v42 = vld [vmem:[#allocation2 + $0x2cc] ss:$316 sps:$4 sm:$0xff]  }
 0x417   :  { %43089 = vmatprep.subr.bf16.mxu0 %v48138_v1  ;;  %v1088_v3 = vrot.slane %v44636_v42, %v44898_v17 }
 0x418   :  { %v32271_v44 = vand.u32 4294901760, %v32270_v59 }
 0x41a   :  { %v43094_v6 = vpack.c.bf16 %v32271_v44, %v32259_v8  ;;  %v44638_v44 = vld [vmem:[#allocation2 + $0x36c] ss:$316 sps:$4 sm:$0xff]  }
 0x41b   :  { %12416 = vmatmul.mubr.f32.vlgmr.msra.gmra.mrb[0].mxu1 %v48059_v7 }
 0x41c   :  { %42139 = vmatpush1.bf16.xpose.msra.mxu1 %v42138_v45  ;;  %32160 = vmatmul.mubr.f32.vlgmr.msra.gmra.mrb[0].mxu0 %v47973_v33  ;;  %v1074_v33 = vrot.slane %v44635_v21, %v44898_v17  ;;  %v257_v45 = vld [vmem:[#allocation5 + $0x158] sm:$0xff] }
 0x41d   :  { %43091 = vmatpush1.bf16.xpose.msra.mxu0 %v48162_v38  ;;  %12495 = vmatprep.mubr.f32.mxu1 %v48052_v51  ;;  %v12743_v10 = vand.u32 4294901760, %v257_v45 }
 0x41e   :  { %42141 = vmatprep.subr.bf16.mxu1 %v48065_v26  ;;  %32238 = vmatprep.mubr.f32.mxu0 %v32237_v14  ;;  %v1092_v59 = vcombine.high %v1074_v33, %v1088_v3  ;;  %v256_v14 = vld [vmem:[#allocation5 + $0x150] sm:$0xff]  ;;  %v1091_v8 = vcombine.low %v1074_v33, %v1088_v3 }
 0x41f   :  { %43093 = vmatprep.subr.bf16.mxu0 %v43092_v4  ;;  %v414_v4 = vld [vmem:[#allocation5 + $0x640] sm:$0x7f]  ;;  %v48199_v51 = vsub.f32 %v257_v45, %v12743_v10  ;;  %v12745_v36 = vand.u32 4294901760, %v256_v14  ;;  %v43104_v45 = vpack.c.bf16 %v32263_v28, %v32251_v15 }
 0x420   :  { %v48197_v63 = vand.u32 4294901760, %v1092_v59  ;;  %v12749_v29 = vand.u32 4294901760, %v414_v4  ;;  %v48215_v21 = vand.u32 4294901760, %v1091_v8 }
 0x421   :  { %v12829_v32 = vand.u32 4294901760, %v48199_v51  ;;  %v48217_v42 = vsub.f32 %v256_v14, %v12745_v36 }
 0x422   :  { %v48208_v9 = vsub.f32 %v1092_v59, %v48197_v63 }
 0x423   :  { %12498 = vmatmul.mubr.f32.vlgmr.msra.gmra.mrb[0].mxu1 %v48082_v13  ;;  %v12830_v33 = vsub.f32 %v48199_v51, %v12829_v32  ;;  %v12835_v59 = vand.u32 4294901760, %v48217_v42 }
 0x424   :  { %42143 = vmatpush1.bf16.xpose.msra.mxu1 %v48097_v31  ;;  %32244 = vmatmul.mubr.f32.vlgmr.msra.gmra.mrb[0].mxu0 %v32243_v62  ;;  %v48219_v62 = vsub.f32 %v414_v4, %v12749_v29  ;;  %v48253_v4 = vpack.c.bf16 %v12749_v29, %v12745_v36 }
 0x425   :  { %43095 = vmatpush1.bf16.xpose.msra.mxu0 %v43094_v6  ;;  %12574 = vmatprep.mubr.f32.mxu1 %v12315_v11  ;;  %v48201_v11 = vsub.f32 %v415_v43, %v12747_v12  ;;  %v48221_v6 = vpack.c.bf16 %v12747_v12, %v12743_v10  ;;  %v48238_v43 = vsub.f32 %v1091_v8, %v48215_v21  ;;  %v337_v12 = vld [vmem:[#allocation5 + $0x3d8] sm:$0xff] }
 0x426   :  { %42145 = vmatprep.subr.bf16.mxu1 %v42144_v50  ;;  %32334 = vmatprep.mubr.f32.mxu0 %v48109_v25  ;;  %v12847_v10 = vand.u32 4294901760, %v48219_v62 }
 0x427   :  { %43097 = vmatprep.subr.bf16.mxu0 %v43096_v57  ;;  %v12841_v13 = vand.u32 4294901760, %v48201_v11  ;;  %v1808_v57 = vrot.slane %v44638_v44, %v44898_v17  ;;  %v12819_v28 = vand.u32 4294901760, %v48238_v43  ;;  %v336_v44 = vld [vmem:[#allocation5 + $0x3d0] sm:$0xff] }
 0x428   :  { %v12848_v8 = vsub.f32 %v48219_v62, %v12847_v10 }
 0x429   :  { %v12842_v3 = vsub.f32 %v48201_v11, %v12841_v13  ;;  %v12820_v36 = vsub.f32 %v48238_v43, %v12819_v28 }
 0x42a   :  { %v12849_v47 = vand.u32 4294901760, %v12848_v8 }
 0x42b   :  { %12578 = vmatmul.mubr.f32.vlgmr.msra.gmra.mrb[0].mxu1 %v12321_v56  ;;  %v44637_v56 = vld [vmem:[#allocation2 + $0xf4] ss:$316 sps:$4 sm:$0xff]   ;;  %v12843_v30 = vand.u32 4294901760, %v12842_v3 }
 0x42c   :  { %42147 = vmatpush1.bf16.xpose.msra.mxu1 %v42146_v55  ;;  %32336 = vmatmul.mubr.f32.vlgmr.msra.gmra.mrb[0].mxu0 %v48129_v37  ;;  %v1794_v50 = vrot.slane %v44637_v56, %v44898_v17  ;;  %v495_v55 = vld [vmem:[#allocation5 + $0x8c8] sm:$0x7f] }
 0x42d   :  { %43099 = vmatpush1.bf16.xpose.msra.mxu0 %v43098_v54  ;;  %12660 = vmatprep.mubr.f32.mxu1 %v48041_v2  ;;  %v32663_v54 = vand.u32 4294901760, %v337_v12  ;;  %v32667_v14 = vand.u32 4294901760, %v495_v55 }
 0x42e   :  { %42149 = vmatprep.subr.bf16.mxu1 %v48065_v26  ;;  %32415 = vmatprep.mubr.f32.mxu0 %v48124_v48  ;;  %v12813_v26 = vand.u32 4294901760, %v48208_v9  ;;  %v1812_v15 = vcombine.high %v1794_v50, %v1808_v57  ;;  %v43106_v48 = vpack.c.bf16 %v32269_v58, %v32257_v35  ;;  %v1811_v35 = vcombine.low %v1794_v50, %v1808_v57 }
 0x42f   :  { %43101 = vmatprep.subr.bf16.mxu0 %v48138_v1  ;;  %v48271_v29 = vsub.f32 %v337_v12, %v32663_v54  ;;  %v32665_v58 = vand.u32 4294901760, %v336_v44 }
 0x430   :  { %v12814_v46 = vsub.f32 %v48208_v9, %v12813_v26  ;;  %v48265_v3 = vand.u32 4294901760, %v1812_v15 }
 0x431   :  { %v48287_v50 = vsub.f32 %v336_v44, %v32665_v58 }
 0x432   :  { %v48280_v12 = vsub.f32 %v1812_v15, %v48265_v3 }
 0x433   :  { %12662 = vmatmul.mubr.f32.vlgmr.msra.gmra.mrb[0].mxu1 %v48059_v7 }
 0x434   :  { %42151 = vmatpush1.bf16.xpose.msra.mxu1 %v48097_v31  ;;  %32418 = vmatmul.mubr.f32.vlgmr.msra.gmra.mrb[0].mxu0 %v48148_v39  ;;  %v12831_v31 = vand.u32 4294901760, %v12830_v33  ;;  %v494_v33 = vld [vmem:[#allocation5 + $0x8c0] sm:$0x7f]  ;;  %v32733_v15 = vand.u32 4294901760, %v48280_v12 }
 0x435   :  { %43103 = vmatpush1.bf16.xpose.msra.mxu0 %v48162_v38  ;;  %12736 = vmatprep.mubr.f32.mxu1 %v48041_v2  ;;  %v12836_v2 = vsub.f32 %v48217_v42, %v12835_v59 }
 0x436   :  { %42153 = vmatprep.subr.bf16.mxu1 %v48221_v6  ;;  %32494 = vmatprep.mubr.f32.mxu0 %v32235_v16  ;;  %v12815_v16 = vand.u32 4294901760, %v12814_v46  ;;  %v42156_v56 = vpack.c.bf16 %v12843_v30, %v12831_v31  ;;  %v32749_v46 = vand.u32 4294901760, %v48271_v29  ;;  %v48285_v31 = vand.u32 4294901760, %v1811_v35 }
 0x437   :  { %43105 = vmatprep.subr.bf16.mxu0 %v43104_v45  ;;  %v48273_v45 = vsub.f32 %v495_v55, %v32667_v14  ;;  %v12837_v24 = vand.u32 4294901760, %v12836_v2  ;;  %v12821_v55 = vand.u32 4294901760, %v12820_v36  ;;  %v42160_v30 = vpack.c.bf16 %v48201_v11, %v48199_v51 }
 0x438   :  { %v48294_v2 = vpack.c.bf16 %v32667_v14, %v32663_v54  ;;  %v32755_v54 = vand.u32 4294901760, %v48287_v50 }
 0x439   :  { %v32761_v39 = vand.u32 4294901760, %v48273_v45 }
 0x43b   :  { %12738 = vmatmul.mubr.f32.vlgmr.msra.gmra.mrb[0].mxu1 %v48059_v7  ;;  %v32669_v7 = vand.u32 4294901760, %v494_v33  ;;  %v32762_v8 = vsub.f32 %v48273_v45, %v32761_v39 }
 0x43c   :  { %42155 = vmatpush1.bf16.xpose.msra.mxu1 %v48253_v4  ;;  %32498 = vmatmul.mubr.f32.vlgmr.msra.gmra.mrb[0].mxu0 %v32241_v0  ;;  %v42158_v0 = vpack.c.bf16 %v12849_v47, %v12837_v24  ;;  %v32756_v24 = vsub.f32 %v48287_v50, %v32755_v54 }
 0x43d   :  { %43107 = vmatpush1.bf16.xpose.msra.mxu0 %v43106_v48  ;;  %12816 = vmatprep.mubr.f32.mxu1 %v12815_v16  ;;  %v48289_v57 = vsub.f32 %v494_v33, %v32669_v7  ;;  %v48304_v48 = vsub.f32 %v1811_v35, %v48285_v31  ;;  %v32734_v16 = vsub.f32 %v48280_v12, %v32733_v15  ;;  %v32763_v44 = vand.u32 4294901760, %v32762_v8 }
 0x43e   :  { %42157 = vmatprep.subr.bf16.mxu1 %v42156_v56  ;;  %32580 = vmatprep.mubr.f32.mxu0 %v48109_v25  ;;  %v48318_v36 = vpack.c.bf16 %v32669_v7, %v32665_v58  ;;  %v32757_v7 = vand.u32 4294901760, %v32756_v24  ;;  %v417_v24 = vld [vmem:[#allocation5 + $0x658] sm:$0x7f] }
 0x43f   :  { %43109 = vmatprep.subr.bf16.mxu0 %v48138_v1  ;;  %v32750_v1 = vsub.f32 %v48271_v29, %v32749_v46  ;;  %v32767_v14 = vand.u32 4294901760, %v48289_v57  ;;  %v32739_v33 = vand.u32 4294901760, %v48304_v48  ;;  %v32735_v47 = vand.u32 4294901760, %v32734_v16 }
 0x440   :  { %v13245_v11 = vand.u32 4294901760, %v417_v24 }
 0x441   :  { %v32751_v56 = vand.u32 4294901760, %v32750_v1  ;;  %v32740_v58 = vsub.f32 %v48304_v48, %v32739_v33 }
 0x443   :  { %12822 = vmatmul.mubr.f32.vlgmr.msra.gmra.mrb[0].mxu1 %v12821_v55  ;;  %v43116_v35 = vpack.c.bf16 %v32763_v44, %v32751_v56  ;;  %v32741_v1 = vand.u32 4294901760, %v32740_v58  ;;  %v42168_v56 = vpack.c.bf16 %v12841_v13, %v12829_v32  ;;  %v43120_v44 = vpack.c.bf16 %v48273_v45, %v48271_v29 }
 0x444   :  { %42159 = vmatpush1.bf16.xpose.msra.mxu1 %v42158_v0  ;;  %32582 = vmatmul.mubr.f32.vlgmr.msra.gmra.mrb[0].mxu0 %v48129_v37  ;;  %v44639_v0 = vld [vmem:[#allocation2 + $0x58] ss:$316 sps:$4 sm:$0xff]   ;;  %v42170_v32 = vpack.c.bf16 %v12847_v10, %v12835_v59  ;;  %v43122_v13 = vpack.c.bf16 %v48289_v57, %v48287_v50 }
 0x445   :  { %43111 = vmatpush1.bf16.xpose.msra.mxu0 %v48162_v38  ;;  %12912 = vmatprep.mubr.f32.mxu1 %v48197_v63  ;;  %v42162_v38 = vpack.c.bf16 %v48219_v62, %v48217_v42 }
 0x446   :  { %42161 = vmatprep.subr.bf16.mxu1 %v42160_v30  ;;  %32656 = vmatprep.mubr.f32.mxu0 %v48109_v25  ;;  %v32768_v25 = vsub.f32 %v48289_v57, %v32767_v14  ;;  %v44641_v30 = vld [vmem:[#allocation2 + $0x2d0] ss:$316 sps:$4 sm:$0xff]  }
 0x447   :  { %43113 = vmatprep.subr.bf16.mxu0 %v48294_v2  ;;  %v1117_v16 = vrot.slane %v44641_v30, %v44898_v17 }
 0x448   :  { %v32769_v55 = vand.u32 4294901760, %v32768_v25 }
 0x44a   :  { %v43118_v8 = vpack.c.bf16 %v32769_v55, %v32757_v7  ;;  %v44645_v55 = vld [vmem:[#allocation2 + $0x370] ss:$316 sps:$4 sm:$0xff]  }
 0x44b   :  { %12914 = vmatmul.mubr.f32.vlgmr.msra.gmra.mrb[0].mxu1 %v48215_v21 }
 0x44c   :  { %42163 = vmatpush1.bf16.xpose.msra.mxu1 %v42162_v38  ;;  %32658 = vmatmul.mubr.f32.vlgmr.msra.gmra.mrb[0].mxu0 %v48129_v37  ;;  %v1103_v37 = vrot.slane %v44639_v0, %v44898_v17  ;;  %v259_v38 = vld [vmem:[#allocation5 + $0x168] sm:$0xff] }
 0x44d   :  { %43115 = vmatpush1.bf16.xpose.msra.mxu0 %v48318_v36  ;;  %12993 = vmatprep.mubr.f32.mxu1 %v48208_v9  ;;  %v13241_v51 = vand.u32 4294901760, %v259_v38 }
 0x44e   :  { %42165 = vmatprep.subr.bf16.mxu1 %v48221_v6  ;;  %32736 = vmatprep.mubr.f32.mxu0 %v32735_v47  ;;  %v1126_v25 = vcombine.high %v1103_v37, %v1117_v16  ;;  %v258_v47 = vld [vmem:[#allocation5 + $0x160] sm:$0xff]  ;;  %v1125_v7 = vcombine.low %v1103_v37, %v1117_v16 }
 0x44f   :  { %43117 = vmatprep.subr.bf16.mxu0 %v43116_v35  ;;  %v416_v35 = vld [vmem:[#allocation5 + $0x650] sm:$0x7f]  ;;  %v48355_v9 = vsub.f32 %v259_v38, %v13241_v51  ;;  %v13243_v42 = vand.u32 4294901760, %v258_v47  ;;  %v43128_v38 = vpack.c.bf16 %v32761_v39, %v32749_v46 }
 0x450   :  { %v48353_v58 = vand.u32 4294901760, %v1126_v25  ;;  %v13247_v62 = vand.u32 4294901760, %v416_v35  ;;  %v48371_v0 = vand.u32 4294901760, %v1125_v7 }
 0x451   :  { %v13327_v10 = vand.u32 4294901760, %v48355_v9  ;;  %v48373_v30 = vsub.f32 %v258_v47, %v13243_v42 }
 0x452   :  { %v48364_v59 = vsub.f32 %v1126_v25, %v48353_v58 }
 0x453   :  { %12996 = vmatmul.mubr.f32.vlgmr.msra.gmra.mrb[0].mxu1 %v48238_v43  ;;  %v13328_v37 = vsub.f32 %v48355_v9, %v13327_v10  ;;  %v13333_v25 = vand.u32 4294901760, %v48373_v30 }
 0x454   :  { %42167 = vmatpush1.bf16.xpose.msra.mxu1 %v48253_v4  ;;  %32742 = vmatmul.mubr.f32.vlgmr.msra.gmra.mrb[0].mxu0 %v32741_v1  ;;  %v48375_v1 = vsub.f32 %v416_v35, %v13247_v62  ;;  %v48409_v35 = vpack.c.bf16 %v13247_v62, %v13243_v42 }
 0x455   :  { %43119 = vmatpush1.bf16.xpose.msra.mxu0 %v43118_v8  ;;  %13072 = vmatprep.mubr.f32.mxu1 %v12813_v26  ;;  %v48357_v26 = vsub.f32 %v417_v24, %v13245_v11  ;;  %v48377_v8 = vpack.c.bf16 %v13245_v11, %v13241_v51  ;;  %v48394_v24 = vsub.f32 %v1125_v7, %v48371_v0  ;;  %v339_v11 = vld [vmem:[#allocation5 + $0x3e8] sm:$0xff] }
 0x456   :  { %42169 = vmatprep.subr.bf16.mxu1 %v42168_v56  ;;  %32832 = vmatprep.mubr.f32.mxu0 %v48265_v3  ;;  %v13345_v51 = vand.u32 4294901760, %v48375_v1 }
 0x457   :  { %43121 = vmatprep.subr.bf16.mxu0 %v43120_v44  ;;  %v13339_v43 = vand.u32 4294901760, %v48357_v26  ;;  %v1837_v44 = vrot.slane %v44645_v55, %v44898_v17  ;;  %v13317_v39 = vand.u32 4294901760, %v48394_v24  ;;  %v338_v55 = vld [vmem:[#allocation5 + $0x3e0] sm:$0xff] }
 0x458   :  { %v13346_v7 = vsub.f32 %v48375_v1, %v13345_v51 }
 0x459   :  { %v13340_v16 = vsub.f32 %v48357_v26, %v13339_v43  ;;  %v13318_v42 = vsub.f32 %v48394_v24, %v13317_v39 }
 0x45a   :  { %v13347_v57 = vand.u32 4294901760, %v13346_v7 }
 0x45b   :  { %13076 = vmatmul.mubr.f32.vlgmr.msra.gmra.mrb[0].mxu1 %v12819_v28  ;;  %v44643_v28 = vld [vmem:[#allocation2 + $0xf8] ss:$316 sps:$4 sm:$0xff]   ;;  %v13341_v45 = vand.u32 4294901760, %v13340_v16 }
 0x45c   :  { %42171 = vmatpush1.bf16.xpose.msra.mxu1 %v42170_v32  ;;  %32834 = vmatmul.mubr.f32.vlgmr.msra.gmra.mrb[0].mxu0 %v48285_v31  ;;  %v1823_v56 = vrot.slane %v44643_v28, %v44898_v17  ;;  %v497_v32 = vld [vmem:[#allocation5 + $0x8d8] sm:$0x7f] }
 0x45d   :  { %43123 = vmatpush1.bf16.xpose.msra.mxu0 %v43122_v13  ;;  %13158 = vmatprep.mubr.f32.mxu1 %v48197_v63  ;;  %v33161_v13 = vand.u32 4294901760, %v339_v11  ;;  %v33165_v47 = vand.u32 4294901760, %v497_v32 }
 0x45e   :  { %42173 = vmatprep.subr.bf16.mxu1 %v48221_v6  ;;  %32913 = vmatprep.mubr.f32.mxu0 %v48280_v12  ;;  %v13311_v6 = vand.u32 4294901760, %v48364_v59  ;;  %v1846_v46 = vcombine.high %v1823_v56, %v1837_v44  ;;  %v43130_v12 = vpack.c.bf16 %v32767_v14, %v32755_v54  ;;  %v1845_v54 = vcombine.low %v1823_v56, %v1837_v44 }
 0x45f   :  { %43125 = vmatprep.subr.bf16.mxu0 %v48294_v2  ;;  %v48427_v62 = vsub.f32 %v339_v11, %v33161_v13  ;;  %v33163_v14 = vand.u32 4294901760, %v338_v55 }
 0x460   :  { %v13312_v29 = vsub.f32 %v48364_v59, %v13311_v6  ;;  %v48421_v16 = vand.u32 4294901760, %v1846_v46 }
 0x461   :  { %v48443_v56 = vsub.f32 %v338_v55, %v33163_v14 }
 0x462   :  { %v48436_v11 = vsub.f32 %v1846_v46, %v48421_v16 }
 0x463   :  { %13160 = vmatmul.mubr.f32.vlgmr.msra.gmra.mrb[0].mxu1 %v48215_v21 }
 0x464   :  { %42175 = vmatpush1.bf16.xpose.msra.mxu1 %v48253_v4  ;;  %32916 = vmatmul.mubr.f32.vlgmr.msra.gmra.mrb[0].mxu0 %v48304_v48  ;;  %v13329_v4 = vand.u32 4294901760, %v13328_v37  ;;  %v496_v37 = vld [vmem:[#allocation5 + $0x8d0] sm:$0x7f]  ;;  %v33231_v46 = vand.u32 4294901760, %v48436_v11 }
 0x465   :  { %43127 = vmatpush1.bf16.xpose.msra.mxu0 %v48318_v36  ;;  %13234 = vmatprep.mubr.f32.mxu1 %v48197_v63  ;;  %v13334_v63 = vsub.f32 %v48373_v30, %v13333_v25 }
 0x466   :  { %42177 = vmatprep.subr.bf16.mxu1 %v48377_v8  ;;  %32992 = vmatprep.mubr.f32.mxu0 %v32733_v15  ;;  %v13313_v15 = vand.u32 4294901760, %v13312_v29  ;;  %v42180_v28 = vpack.c.bf16 %v13341_v45, %v13329_v4  ;;  %v33247_v29 = vand.u32 4294901760, %v48427_v62  ;;  %v48441_v4 = vand.u32 4294901760, %v1845_v54 }
 0x467   :  { %43129 = vmatprep.subr.bf16.mxu0 %v43128_v38  ;;  %v48429_v38 = vsub.f32 %v497_v32, %v33165_v47  ;;  %v13335_v50 = vand.u32 4294901760, %v13334_v63  ;;  %v13319_v32 = vand.u32 4294901760, %v13318_v42  ;;  %v42184_v45 = vpack.c.bf16 %v48357_v26, %v48355_v9 }
 0x468   :  { %v48450_v63 = vpack.c.bf16 %v33165_v47, %v33161_v13  ;;  %v33253_v13 = vand.u32 4294901760, %v48443_v56 }
 0x469   :  { %v33259_v48 = vand.u32 4294901760, %v48429_v38 }
 0x46b   :  { %13236 = vmatmul.mubr.f32.vlgmr.msra.gmra.mrb[0].mxu1 %v48215_v21  ;;  %v33167_v21 = vand.u32 4294901760, %v496_v37  ;;  %v33260_v7 = vsub.f32 %v48429_v38, %v33259_v48 }
 0x46c   :  { %42179 = vmatpush1.bf16.xpose.msra.mxu1 %v48409_v35  ;;  %32996 = vmatmul.mubr.f32.vlgmr.msra.gmra.mrb[0].mxu0 %v32739_v33  ;;  %v42182_v33 = vpack.c.bf16 %v13347_v57, %v13335_v50  ;;  %v33254_v50 = vsub.f32 %v48443_v56, %v33253_v13 }
 0x46d   :  { %43131 = vmatpush1.bf16.xpose.msra.mxu0 %v43130_v12  ;;  %13314 = vmatprep.mubr.f32.mxu1 %v13313_v15  ;;  %v48445_v44 = vsub.f32 %v496_v37, %v33167_v21  ;;  %v48460_v12 = vsub.f32 %v1845_v54, %v48441_v4  ;;  %v33232_v15 = vsub.f32 %v48436_v11, %v33231_v46  ;;  %v33261_v55 = vand.u32 4294901760, %v33260_v7 }
 0x46e   :  { %42181 = vmatprep.subr.bf16.mxu1 %v42180_v28  ;;  %33078 = vmatprep.mubr.f32.mxu0 %v48265_v3  ;;  %v48474_v42 = vpack.c.bf16 %v33167_v21, %v33163_v14  ;;  %v33255_v21 = vand.u32 4294901760, %v33254_v50  ;;  %v419_v50 = vld [vmem:[#allocation5 + $0x668] sm:$0x7f] }
 0x46f   :  { %43133 = vmatprep.subr.bf16.mxu0 %v48294_v2  ;;  %v33248_v2 = vsub.f32 %v48427_v62, %v33247_v29  ;;  %v33265_v47 = vand.u32 4294901760, %v48445_v44  ;;  %v33237_v37 = vand.u32 4294901760, %v48460_v12  ;;  %v33233_v57 = vand.u32 4294901760, %v33232_v15 }
 0x470   :  { %v13743_v26 = vand.u32 4294901760, %v419_v50 }
 0x471   :  { %v33249_v28 = vand.u32 4294901760, %v33248_v2  ;;  %v33238_v14 = vsub.f32 %v48460_v12, %v33237_v37 }
 0x473   :  { %13320 = vmatmul.mubr.f32.vlgmr.msra.gmra.mrb[0].mxu1 %v13319_v32  ;;  %v43140_v54 = vpack.c.bf16 %v33261_v55, %v33249_v28  ;;  %v33239_v2 = vand.u32 4294901760, %v33238_v14  ;;  %v42192_v28 = vpack.c.bf16 %v13339_v43, %v13327_v10  ;;  %v43144_v55 = vpack.c.bf16 %v48429_v38, %v48427_v62 }
 0x474   :  { %42183 = vmatpush1.bf16.xpose.msra.mxu1 %v42182_v33  ;;  %33080 = vmatmul.mubr.f32.vlgmr.msra.gmra.mrb[0].mxu0 %v48285_v31  ;;  %v44647_v33 = vld [vmem:[#allocation2 + $0x5c] ss:$316 sps:$4 sm:$0xff]   ;;  %v42194_v10 = vpack.c.bf16 %v13345_v51, %v13333_v25  ;;  %v43146_v43 = vpack.c.bf16 %v48445_v44, %v48443_v56 }
 0x475   :  { %43135 = vmatpush1.bf16.xpose.msra.mxu0 %v48318_v36  ;;  %13410 = vmatprep.mubr.f32.mxu1 %v48353_v58  ;;  %v42186_v36 = vpack.c.bf16 %v48375_v1, %v48373_v30 }
 0x476   :  { %42185 = vmatprep.subr.bf16.mxu1 %v42184_v45  ;;  %33154 = vmatprep.mubr.f32.mxu0 %v48265_v3  ;;  %v33266_v3 = vsub.f32 %v48445_v44, %v33265_v47  ;;  %v44648_v45 = vld [vmem:[#allocation2 + $0x2d4] ss:$316 sps:$4 sm:$0xff]  }
 0x477   :  { %43137 = vmatprep.subr.bf16.mxu0 %v48450_v63  ;;  %v1124_v15 = vrot.slane %v44648_v45, %v44898_v17 }
 0x478   :  { %v33267_v32 = vand.u32 4294901760, %v33266_v3 }
 0x47a   :  { %v43142_v7 = vpack.c.bf16 %v33267_v32, %v33255_v21  ;;  %v44650_v32 = vld [vmem:[#allocation2 + $0x374] ss:$316 sps:$4 sm:$0xff]  }
 0x47b   :  { %13412 = vmatmul.mubr.f32.vlgmr.msra.gmra.mrb[0].mxu1 %v48371_v0 }
 0x47c   :  { %42187 = vmatpush1.bf16.xpose.msra.mxu1 %v42186_v36  ;;  %33156 = vmatmul.mubr.f32.vlgmr.msra.gmra.mrb[0].mxu0 %v48285_v31  ;;  %v1110_v31 = vrot.slane %v44647_v33, %v44898_v17  ;;  %v261_v36 = vld [vmem:[#allocation5 + $0x178] sm:$0xff] }
 0x47d   :  { %43139 = vmatpush1.bf16.xpose.msra.mxu0 %v48474_v42  ;;  %13491 = vmatprep.mubr.f32.mxu1 %v48364_v59  ;;  %v13739_v9 = vand.u32 4294901760, %v261_v36 }
 0x47e   :  { %42189 = vmatprep.subr.bf16.mxu1 %v48377_v8  ;;  %33234 = vmatprep.mubr.f32.mxu0 %v33233_v57  ;;  %v1128_v3 = vcombine.high %v1110_v31, %v1124_v15  ;;  %v260_v57 = vld [vmem:[#allocation5 + $0x170] sm:$0xff]  ;;  %v1127_v21 = vcombine.low %v1110_v31, %v1124_v15 }
 0x47f   :  { %43141 = vmatprep.subr.bf16.mxu0 %v43140_v54  ;;  %v418_v54 = vld [vmem:[#allocation5 + $0x660] sm:$0x7f]  ;;  %v48511_v59 = vsub.f32 %v261_v36, %v13739_v9  ;;  %v13741_v30 = vand.u32 4294901760, %v260_v57  ;;  %v43152_v36 = vpack.c.bf16 %v33259_v48, %v33247_v29 }
 0x480   :  { %v48509_v14 = vand.u32 4294901760, %v1128_v3  ;;  %v13745_v1 = vand.u32 4294901760, %v418_v54  ;;  %v48527_v33 = vand.u32 4294901760, %v1127_v21 }
 0x481   :  { %v13825_v51 = vand.u32 4294901760, %v48511_v59  ;;  %v48529_v45 = vsub.f32 %v260_v57, %v13741_v30 }
 0x482   :  { %v48520_v25 = vsub.f32 %v1128_v3, %v48509_v14 }
 0x483   :  { %13494 = vmatmul.mubr.f32.vlgmr.msra.gmra.mrb[0].mxu1 %v48394_v24  ;;  %v13826_v31 = vsub.f32 %v48511_v59, %v13825_v51  ;;  %v13831_v3 = vand.u32 4294901760, %v48529_v45 }
 0x484   :  { %42191 = vmatpush1.bf16.xpose.msra.mxu1 %v48409_v35  ;;  %33240 = vmatmul.mubr.f32.vlgmr.msra.gmra.mrb[0].mxu0 %v33239_v2  ;;  %v48531_v2 = vsub.f32 %v418_v54, %v13745_v1  ;;  %v48565_v54 = vpack.c.bf16 %v13745_v1, %v13741_v30 }
 0x485   :  { %43143 = vmatpush1.bf16.xpose.msra.mxu0 %v43142_v7  ;;  %13570 = vmatprep.mubr.f32.mxu1 %v13311_v6  ;;  %v48513_v6 = vsub.f32 %v419_v50, %v13743_v26  ;;  %v48533_v7 = vpack.c.bf16 %v13743_v26, %v13739_v9  ;;  %v48550_v50 = vsub.f32 %v1127_v21, %v48527_v33  ;;  %v341_v26 = vld [vmem:[#allocation5 + $0x3f8] sm:$0xff] }
 0x486   :  { %42193 = vmatprep.subr.bf16.mxu1 %v42192_v28  ;;  %33330 = vmatprep.mubr.f32.mxu0 %v48421_v16  ;;  %v13843_v9 = vand.u32 4294901760, %v48531_v2 }
 0x487   :  { %43145 = vmatprep.subr.bf16.mxu0 %v43144_v55  ;;  %v13837_v24 = vand.u32 4294901760, %v48513_v6  ;;  %v1844_v55 = vrot.slane %v44650_v32, %v44898_v17  ;;  %v13815_v48 = vand.u32 4294901760, %v48550_v50  ;;  %v340_v32 = vld [vmem:[#allocation5 + $0x3f0] sm:$0xff] }
 0x488   :  { %v13844_v21 = vsub.f32 %v48531_v2, %v13843_v9 }
 0x489   :  { %v13838_v15 = vsub.f32 %v48513_v6, %v13837_v24  ;;  %v13816_v30 = vsub.f32 %v48550_v50, %v13815_v48 }
 0x48a   :  { %v13845_v44 = vand.u32 4294901760, %v13844_v21 }
 0x48b   :  { %13574 = vmatmul.mubr.f32.vlgmr.msra.gmra.mrb[0].mxu1 %v13317_v39  ;;  %v44649_v39 = vld [vmem:[#allocation2 + $0xfc] ss:$316 sps:$4 sm:$0xff]   ;;  %v13839_v38 = vand.u32 4294901760, %v13838_v15 }
 0x48c   :  { %42195 = vmatpush1.bf16.xpose.msra.mxu1 %v42194_v10  ;;  %33332 = vmatmul.mubr.f32.vlgmr.msra.gmra.mrb[0].mxu0 %v48441_v4  ;;  %v1830_v28 = vrot.slane %v44649_v39, %v44898_v17  ;;  %v499_v10 = vld [vmem:[#allocation5 + $0x8e8] sm:$0x7f] }
 0x48d   :  { %43147 = vmatpush1.bf16.xpose.msra.mxu0 %v43146_v43  ;;  %13656 = vmatprep.mubr.f32.mxu1 %v48353_v58  ;;  %v33659_v43 = vand.u32 4294901760, %v341_v26  ;;  %v33663_v57 = vand.u32 4294901760, %v499_v10 }
 0x48e   :  { %42197 = vmatprep.subr.bf16.mxu1 %v48377_v8  ;;  %33411 = vmatprep.mubr.f32.mxu0 %v48436_v11  ;;  %v13809_v8 = vand.u32 4294901760, %v48520_v25  ;;  %v1848_v29 = vcombine.high %v1830_v28, %v1844_v55  ;;  %v43154_v11 = vpack.c.bf16 %v33265_v47, %v33253_v13  ;;  %v1847_v13 = vcombine.low %v1830_v28, %v1844_v55 }
 0x48f   :  { %43149 = vmatprep.subr.bf16.mxu0 %v48450_v63  ;;  %v48583_v1 = vsub.f32 %v341_v26, %v33659_v43  ;;  %v33661_v47 = vand.u32 4294901760, %v340_v32 }
 0x490   :  { %v13810_v62 = vsub.f32 %v48520_v25, %v13809_v8  ;;  %v48577_v15 = vand.u32 4294901760, %v1848_v29 }
 0x491   :  { %v48599_v28 = vsub.f32 %v340_v32, %v33661_v47 }
 0x492   :  { %v48592_v26 = vsub.f32 %v1848_v29, %v48577_v15 }
 0x493   :  { %13658 = vmatmul.mubr.f32.vlgmr.msra.gmra.mrb[0].mxu1 %v48371_v0 }
 0x494   :  { %42199 = vmatpush1.bf16.xpose.msra.mxu1 %v48409_v35  ;;  %33414 = vmatmul.mubr.f32.vlgmr.msra.gmra.mrb[0].mxu0 %v48460_v12  ;;  %v13827_v35 = vand.u32 4294901760, %v13826_v31  ;;  %v498_v31 = vld [vmem:[#allocation5 + $0x8e0] sm:$0x7f]  ;;  %v33729_v29 = vand.u32 4294901760, %v48592_v26 }
 0x495   :  { %43151 = vmatpush1.bf16.xpose.msra.mxu0 %v48474_v42  ;;  %13732 = vmatprep.mubr.f32.mxu1 %v48353_v58  ;;  %v13832_v58 = vsub.f32 %v48529_v45, %v13831_v3 }
 0x496   :  { %42201 = vmatprep.subr.bf16.mxu1 %v48533_v7  ;;  %33490 = vmatprep.mubr.f32.mxu0 %v33231_v46  ;;  %v13811_v46 = vand.u32 4294901760, %v13810_v62  ;;  %v42204_v39 = vpack.c.bf16 %v13839_v38, %v13827_v35  ;;  %v33745_v62 = vand.u32 4294901760, %v48583_v1  ;;  %v48597_v35 = vand.u32 4294901760, %v1847_v13 }
 0x497   :  { %43153 = vmatprep.subr.bf16.mxu0 %v43152_v36  ;;  %v48585_v36 = vsub.f32 %v499_v10, %v33663_v57  ;;  %v13833_v56 = vand.u32 4294901760, %v13832_v58  ;;  %v13817_v10 = vand.u32 4294901760, %v13816_v30  ;;  %v42208_v38 = vpack.c.bf16 %v48513_v6, %v48511_v59 }
 0x498   :  { %v48606_v58 = vpack.c.bf16 %v33663_v57, %v33659_v43  ;;  %v33751_v43 = vand.u32 4294901760, %v48599_v28 }
 0x499   :  { %v33757_v12 = vand.u32 4294901760, %v48585_v36 }
 0x49b   :  { %13734 = vmatmul.mubr.f32.vlgmr.msra.gmra.mrb[0].mxu1 %v48371_v0  ;;  %v33665_v0 = vand.u32 4294901760, %v498_v31  ;;  %v33758_v21 = vsub.f32 %v48585_v36, %v33757_v12 }
 0x49c   :  { %42203 = vmatpush1.bf16.xpose.msra.mxu1 %v48565_v54  ;;  %33494 = vmatmul.mubr.f32.vlgmr.msra.gmra.mrb[0].mxu0 %v33237_v37  ;;  %v42206_v37 = vpack.c.bf16 %v13845_v44, %v13833_v56  ;;  %v33752_v56 = vsub.f32 %v48599_v28, %v33751_v43 }
 0x49d   :  { %43155 = vmatpush1.bf16.xpose.msra.mxu0 %v43154_v11  ;;  %13812 = vmatprep.mubr.f32.mxu1 %v13811_v46  ;;  %v48601_v55 = vsub.f32 %v498_v31, %v33665_v0  ;;  %v48616_v11 = vsub.f32 %v1847_v13, %v48597_v35  ;;  %v33730_v46 = vsub.f32 %v48592_v26, %v33729_v29  ;;  %v33759_v32 = vand.u32 4294901760, %v33758_v21 }
 0x49e   :  { %42205 = vmatprep.subr.bf16.mxu1 %v42204_v39  ;;  %33576 = vmatprep.mubr.f32.mxu0 %v48421_v16  ;;  %v48630_v30 = vpack.c.bf16 %v33665_v0, %v33661_v47  ;;  %v33753_v0 = vand.u32 4294901760, %v33752_v56  ;;  %v421_v56 = vld [vmem:[#allocation5 + $0x678] sm:$0x7f] }
 0x49f   :  { %43157 = vmatprep.subr.bf16.mxu0 %v48450_v63  ;;  %v33746_v63 = vsub.f32 %v48583_v1, %v33745_v62  ;;  %v33763_v57 = vand.u32 4294901760, %v48601_v55  ;;  %v33735_v31 = vand.u32 4294901760, %v48616_v11  ;;  %v33731_v44 = vand.u32 4294901760, %v33730_v46 }
 0x4a0   :  { %v14241_v6 = vand.u32 4294901760, %v421_v56 }
 0x4a1   :  { %v33747_v39 = vand.u32 4294901760, %v33746_v63  ;;  %v33736_v47 = vsub.f32 %v48616_v11, %v33735_v31 }
 0x4a3   :  { %13818 = vmatmul.mubr.f32.vlgmr.msra.gmra.mrb[0].mxu1 %v13817_v10  ;;  %v43164_v13 = vpack.c.bf16 %v33759_v32, %v33747_v39  ;;  %v33737_v63 = vand.u32 4294901760, %v33736_v47  ;;  %v42216_v39 = vpack.c.bf16 %v13837_v24, %v13825_v51  ;;  %v43168_v32 = vpack.c.bf16 %v48585_v36, %v48583_v1 }
 0x4a4   :  { %42207 = vmatpush1.bf16.xpose.msra.mxu1 %v42206_v37  ;;  %33578 = vmatmul.mubr.f32.vlgmr.msra.gmra.mrb[0].mxu0 %v48441_v4  ;;  %v44651_v37 = vld [vmem:[#allocation2 + $0x60] ss:$316 sps:$4 sm:$0xff]   ;;  %v42218_v51 = vpack.c.bf16 %v13843_v9, %v13831_v3  ;;  %v43170_v24 = vpack.c.bf16 %v48601_v55, %v48599_v28 }
 0x4a5   :  { %43159 = vmatpush1.bf16.xpose.msra.mxu0 %v48474_v42  ;;  %13908 = vmatprep.mubr.f32.mxu1 %v48509_v14  ;;  %v42210_v42 = vpack.c.bf16 %v48531_v2, %v48529_v45 }
 0x4a6   :  { %42209 = vmatprep.subr.bf16.mxu1 %v42208_v38  ;;  %33652 = vmatprep.mubr.f32.mxu0 %v48421_v16  ;;  %v33764_v16 = vsub.f32 %v48601_v55, %v33763_v57  ;;  %v44653_v38 = vld [vmem:[#allocation2 + $0x2d8] ss:$316 sps:$4 sm:$0xff]  }
 0x4a7   :  { %43161 = vmatprep.subr.bf16.mxu0 %v48606_v58  ;;  %v1153_v46 = vrot.slane %v44653_v38, %v44898_v17 }
 0x4a8   :  { %v33765_v10 = vand.u32 4294901760, %v33764_v16 }
 0x4aa   :  { %v43166_v21 = vpack.c.bf16 %v33765_v10, %v33753_v0  ;;  %v44657_v10 = vld [vmem:[#allocation2 + $0x378] ss:$316 sps:$4 sm:$0xff]  }
 0x4ab   :  { %13910 = vmatmul.mubr.f32.vlgmr.msra.gmra.mrb[0].mxu1 %v48527_v33 }
 0x4ac   :  { %42211 = vmatpush1.bf16.xpose.msra.mxu1 %v42210_v42  ;;  %33654 = vmatmul.mubr.f32.vlgmr.msra.gmra.mrb[0].mxu0 %v48441_v4  ;;  %v1139_v4 = vrot.slane %v44651_v37, %v44898_v17  ;;  %v263_v42 = vld [vmem:[#allocation5 + $0x188] sm:$0xff] }
 0x4ad   :  { %43163 = vmatpush1.bf16.xpose.msra.mxu0 %v48630_v30  ;;  %13989 = vmatprep.mubr.f32.mxu1 %v48520_v25  ;;  %v14237_v59 = vand.u32 4294901760, %v263_v42 }
 0x4ae   :  { %42213 = vmatprep.subr.bf16.mxu1 %v48533_v7  ;;  %33732 = vmatprep.mubr.f32.mxu0 %v33731_v44  ;;  %v1162_v16 = vcombine.high %v1139_v4, %v1153_v46  ;;  %v262_v44 = vld [vmem:[#allocation5 + $0x180] sm:$0xff]  ;;  %v1161_v0 = vcombine.low %v1139_v4, %v1153_v46 }
 0x4af   :  { %43165 = vmatprep.subr.bf16.mxu0 %v43164_v13  ;;  %v420_v13 = vld [vmem:[#allocation5 + $0x670] sm:$0x7f]  ;;  %v48667_v25 = vsub.f32 %v263_v42, %v14237_v59  ;;  %v14239_v45 = vand.u32 4294901760, %v262_v44  ;;  %v43176_v42 = vpack.c.bf16 %v33757_v12, %v33745_v62 }
 0x4b0   :  { %v48665_v47 = vand.u32 4294901760, %v1162_v16  ;;  %v14243_v2 = vand.u32 4294901760, %v420_v13  ;;  %v48683_v37 = vand.u32 4294901760, %v1161_v0 }
 0x4b1   :  { %v14323_v9 = vand.u32 4294901760, %v48667_v25  ;;  %v48685_v38 = vsub.f32 %v262_v44, %v14239_v45 }
 0x4b2   :  { %v48676_v3 = vsub.f32 %v1162_v16, %v48665_v47 }
 0x4b3   :  { %13992 = vmatmul.mubr.f32.vlgmr.msra.gmra.mrb[0].mxu1 %v48550_v50  ;;  %v14324_v4 = vsub.f32 %v48667_v25, %v14323_v9  ;;  %v14329_v16 = vand.u32 4294901760, %v48685_v38 }
 0x4b4   :  { %42215 = vmatpush1.bf16.xpose.msra.mxu1 %v48565_v54  ;;  %33738 = vmatmul.mubr.f32.vlgmr.msra.gmra.mrb[0].mxu0 %v33737_v63  ;;  %v48687_v63 = vsub.f32 %v420_v13, %v14243_v2  ;;  %v48721_v13 = vpack.c.bf16 %v14243_v2, %v14239_v45 }
 0x4b5   :  { %43167 = vmatpush1.bf16.xpose.msra.mxu0 %v43166_v21  ;;  %14068 = vmatprep.mubr.f32.mxu1 %v13809_v8  ;;  %v48669_v8 = vsub.f32 %v421_v56, %v14241_v6  ;;  %v48689_v21 = vpack.c.bf16 %v14241_v6, %v14237_v59  ;;  %v48706_v56 = vsub.f32 %v1161_v0, %v48683_v37  ;;  %v343_v6 = vld [vmem:[#allocation5 + $0x408] sm:$0xff] }
 0x4b6   :  { %42217 = vmatprep.subr.bf16.mxu1 %v42216_v39  ;;  %33828 = vmatprep.mubr.f32.mxu0 %v48577_v15  ;;  %v14341_v59 = vand.u32 4294901760, %v48687_v63 }
 0x4b7   :  { %43169 = vmatprep.subr.bf16.mxu0 %v43168_v32  ;;  %v14335_v50 = vand.u32 4294901760, %v48669_v8  ;;  %v1873_v32 = vrot.slane %v44657_v10, %v44898_v17  ;;  %v14313_v12 = vand.u32 4294901760, %v48706_v56  ;;  %v342_v10 = vld [vmem:[#allocation5 + $0x400] sm:$0xff] }
 0x4b8   :  { %v14342_v0 = vsub.f32 %v48687_v63, %v14341_v59 }
 0x4b9   :  { %v14336_v46 = vsub.f32 %v48669_v8, %v14335_v50  ;;  %v14314_v45 = vsub.f32 %v48706_v56, %v14313_v12 }
 0x4ba   :  { %v14343_v55 = vand.u32 4294901760, %v14342_v0 }
 0x4bb   :  { %14072 = vmatmul.mubr.f32.vlgmr.msra.gmra.mrb[0].mxu1 %v13815_v48  ;;  %v44655_v48 = vld [vmem:[#allocation2 + $0x100] ss:$316 sps:$4 sm:$0xff]   ;;  %v14337_v36 = vand.u32 4294901760, %v14336_v46 }
 0x4bc   :  { %42219 = vmatpush1.bf16.xpose.msra.mxu1 %v42218_v51  ;;  %33830 = vmatmul.mubr.f32.vlgmr.msra.gmra.mrb[0].mxu0 %v48597_v35  ;;  %v1859_v39 = vrot.slane %v44655_v48, %v44898_v17  ;;  %v501_v51 = vld [vmem:[#allocation5 + $0x8f8] sm:$0x7f] }
 0x4bd   :  { %43171 = vmatpush1.bf16.xpose.msra.mxu0 %v43170_v24  ;;  %14154 = vmatprep.mubr.f32.mxu1 %v48509_v14  ;;  %v34157_v24 = vand.u32 4294901760, %v343_v6  ;;  %v34161_v44 = vand.u32 4294901760, %v501_v51 }
 0x4be   :  { %42221 = vmatprep.subr.bf16.mxu1 %v48533_v7  ;;  %33909 = vmatprep.mubr.f32.mxu0 %v48592_v26  ;;  %v14307_v7 = vand.u32 4294901760, %v48676_v3  ;;  %v1882_v62 = vcombine.high %v1859_v39, %v1873_v32  ;;  %v43178_v26 = vpack.c.bf16 %v33763_v57, %v33751_v43  ;;  %v1881_v43 = vcombine.low %v1859_v39, %v1873_v32 }
 0x4bf   :  { %43173 = vmatprep.subr.bf16.mxu0 %v48606_v58  ;;  %v48739_v2 = vsub.f32 %v343_v6, %v34157_v24  ;;  %v34159_v57 = vand.u32 4294901760, %v342_v10 }
 0x4c0   :  { %v14308_v1 = vsub.f32 %v48676_v3, %v14307_v7  ;;  %v48733_v46 = vand.u32 4294901760, %v1882_v62 }
 0x4c1   :  { %v48755_v39 = vsub.f32 %v342_v10, %v34159_v57 }
 0x4c2   :  { %v48748_v6 = vsub.f32 %v1882_v62, %v48733_v46 }
 0x4c3   :  { %14156 = vmatmul.mubr.f32.vlgmr.msra.gmra.mrb[0].mxu1 %v48527_v33 }
 0x4c4   :  { %42223 = vmatpush1.bf16.xpose.msra.mxu1 %v48565_v54  ;;  %33912 = vmatmul.mubr.f32.vlgmr.msra.gmra.mrb[0].mxu0 %v48616_v11  ;;  %v14325_v54 = vand.u32 4294901760, %v14324_v4  ;;  %v500_v4 = vld [vmem:[#allocation5 + $0x8f0] sm:$0x7f]  ;;  %v34227_v62 = vand.u32 4294901760, %v48748_v6 }
 0x4c5   :  { %43175 = vmatpush1.bf16.xpose.msra.mxu0 %v48630_v30  ;;  %14230 = vmatprep.mubr.f32.mxu1 %v48509_v14  ;;  %v14330_v14 = vsub.f32 %v48685_v38, %v14329_v16 }
 0x4c6   :  { %42225 = vmatprep.subr.bf16.mxu1 %v48689_v21  ;;  %33988 = vmatprep.mubr.f32.mxu0 %v33729_v29  ;;  %v14309_v29 = vand.u32 4294901760, %v14308_v1  ;;  %v42228_v48 = vpack.c.bf16 %v14337_v36, %v14325_v54  ;;  %v34243_v1 = vand.u32 4294901760, %v48739_v2  ;;  %v48753_v54 = vand.u32 4294901760, %v1881_v43 }
 0x4c7   :  { %43177 = vmatprep.subr.bf16.mxu0 %v43176_v42  ;;  %v48741_v42 = vsub.f32 %v501_v51, %v34161_v44  ;;  %v14331_v28 = vand.u32 4294901760, %v14330_v14  ;;  %v14315_v51 = vand.u32 4294901760, %v14314_v45  ;;  %v42232_v36 = vpack.c.bf16 %v48669_v8, %v48667_v25 }
 0x4c8   :  { %v48762_v14 = vpack.c.bf16 %v34161_v44, %v34157_v24  ;;  %v34249_v24 = vand.u32 4294901760, %v48755_v39 }
 0x4c9   :  { %v34255_v11 = vand.u32 4294901760, %v48741_v42 }
 0x4cb   :  { %14232 = vmatmul.mubr.f32.vlgmr.msra.gmra.mrb[0].mxu1 %v48527_v33  ;;  %v34163_v33 = vand.u32 4294901760, %v500_v4  ;;  %v34256_v0 = vsub.f32 %v48741_v42, %v34255_v11 }
 0x4cc   :  { %42227 = vmatpush1.bf16.xpose.msra.mxu1 %v48721_v13  ;;  %33992 = vmatmul.mubr.f32.vlgmr.msra.gmra.mrb[0].mxu0 %v33735_v31  ;;  %v42230_v31 = vpack.c.bf16 %v14343_v55, %v14331_v28  ;;  %v34250_v28 = vsub.f32 %v48755_v39, %v34249_v24 }
 0x4cd   :  { %43179 = vmatpush1.bf16.xpose.msra.mxu0 %v43178_v26  ;;  %14310 = vmatprep.mubr.f32.mxu1 %v14309_v29  ;;  %v48757_v32 = vsub.f32 %v500_v4, %v34163_v33  ;;  %v48772_v26 = vsub.f32 %v1881_v43, %v48753_v54  ;;  %v34228_v29 = vsub.f32 %v48748_v6, %v34227_v62  ;;  %v34257_v10 = vand.u32 4294901760, %v34256_v0 }
 0x4ce   :  { %42229 = vmatprep.subr.bf16.mxu1 %v42228_v48  ;;  %34074 = vmatprep.mubr.f32.mxu0 %v48577_v15  ;;  %v48786_v45 = vpack.c.bf16 %v34163_v33, %v34159_v57  ;;  %v34251_v33 = vand.u32 4294901760, %v34250_v28  ;;  %v423_v28 = vld [vmem:[#allocation5 + $0x688] sm:$0x7f] }
 0x4cf   :  { %43181 = vmatprep.subr.bf16.mxu0 %v48606_v58  ;;  %v34244_v58 = vsub.f32 %v48739_v2, %v34243_v1  ;;  %v34261_v44 = vand.u32 4294901760, %v48757_v32  ;;  %v34233_v4 = vand.u32 4294901760, %v48772_v26  ;;  %v34229_v55 = vand.u32 4294901760, %v34228_v29 }
 0x4d0   :  { %v14739_v8 = vand.u32 4294901760, %v423_v28 }
 0x4d1   :  { %v34245_v48 = vand.u32 4294901760, %v34244_v58  ;;  %v34234_v57 = vsub.f32 %v48772_v26, %v34233_v4 }
 0x4d3   :  { %14316 = vmatmul.mubr.f32.vlgmr.msra.gmra.mrb[0].mxu1 %v14315_v51  ;;  %v43188_v43 = vpack.c.bf16 %v34257_v10, %v34245_v48  ;;  %v34235_v58 = vand.u32 4294901760, %v34234_v57  ;;  %v42240_v48 = vpack.c.bf16 %v14335_v50, %v14323_v9  ;;  %v43192_v10 = vpack.c.bf16 %v48741_v42, %v48739_v2 }
 0x4d4   :  { %42231 = vmatpush1.bf16.xpose.msra.mxu1 %v42230_v31  ;;  %34076 = vmatmul.mubr.f32.vlgmr.msra.gmra.mrb[0].mxu0 %v48597_v35  ;;  %v44659_v31 = vld [vmem:[#allocation2 + $0x64] ss:$316 sps:$4 sm:$0xff]   ;;  %v42242_v9 = vpack.c.bf16 %v14341_v59, %v14329_v16  ;;  %v43194_v50 = vpack.c.bf16 %v48757_v32, %v48755_v39 }
 0x4d5   :  { %43183 = vmatpush1.bf16.xpose.msra.mxu0 %v48630_v30  ;;  %14406 = vmatprep.mubr.f32.mxu1 %v48665_v47  ;;  %v42234_v30 = vpack.c.bf16 %v48687_v63, %v48685_v38 }
 0x4d6   :  { %42233 = vmatprep.subr.bf16.mxu1 %v42232_v36  ;;  %34150 = vmatprep.mubr.f32.mxu0 %v48577_v15  ;;  %v34262_v15 = vsub.f32 %v48757_v32, %v34261_v44  ;;  %v44660_v36 = vld [vmem:[#allocation2 + $0x2dc] ss:$316 sps:$4 sm:$0xff]  }
 0x4d7   :  { %43185 = vmatprep.subr.bf16.mxu0 %v48762_v14  ;;  %v1160_v29 = vrot.slane %v44660_v36, %v44898_v17 }
 0x4d8   :  { %v34263_v51 = vand.u32 4294901760, %v34262_v15 }
 0x4da   :  { %v43190_v0 = vpack.c.bf16 %v34263_v51, %v34251_v33  ;;  %v44662_v51 = vld [vmem:[#allocation2 + $0x37c] ss:$316 sps:$4 sm:$0xff]  }
 0x4db   :  { %14408 = vmatmul.mubr.f32.vlgmr.msra.gmra.mrb[0].mxu1 %v48683_v37 }
 0x4dc   :  { %42235 = vmatpush1.bf16.xpose.msra.mxu1 %v42234_v30  ;;  %34152 = vmatmul.mubr.f32.vlgmr.msra.gmra.mrb[0].mxu0 %v48597_v35  ;;  %v1146_v35 = vrot.slane %v44659_v31, %v44898_v17  ;;  %v265_v30 = vld [vmem:[#allocation5 + $0x198] sm:$0xff] }
 0x4dd   :  { %43187 = vmatpush1.bf16.xpose.msra.mxu0 %v48786_v45  ;;  %14487 = vmatprep.mubr.f32.mxu1 %v48676_v3  ;;  %v14735_v25 = vand.u32 4294901760, %v265_v30 }
 0x4de   :  { %42237 = vmatprep.subr.bf16.mxu1 %v48689_v21  ;;  %34230 = vmatprep.mubr.f32.mxu0 %v34229_v55  ;;  %v1164_v15 = vcombine.high %v1146_v35, %v1160_v29  ;;  %v264_v55 = vld [vmem:[#allocation5 + $0x190] sm:$0xff]  ;;  %v1163_v33 = vcombine.low %v1146_v35, %v1160_v29 }
 0x4df   :  { %43189 = vmatprep.subr.bf16.mxu0 %v43188_v43  ;;  %v422_v43 = vld [vmem:[#allocation5 + $0x680] sm:$0x7f]  ;;  %v48823_v3 = vsub.f32 %v265_v30, %v14735_v25  ;;  %v14737_v38 = vand.u32 4294901760, %v264_v55  ;;  %v43200_v30 = vpack.c.bf16 %v34255_v11, %v34243_v1 }
 0x4e0   :  { %v48821_v57 = vand.u32 4294901760, %v1164_v15  ;;  %v14741_v63 = vand.u32 4294901760, %v422_v43  ;;  %v48839_v31 = vand.u32 4294901760, %v1163_v33 }
 0x4e1   :  { %v14821_v59 = vand.u32 4294901760, %v48823_v3  ;;  %v48841_v36 = vsub.f32 %v264_v55, %v14737_v38 }
 0x4e2   :  { %v48832_v16 = vsub.f32 %v1164_v15, %v48821_v57 }
 0x4e3   :  { %14490 = vmatmul.mubr.f32.vlgmr.msra.gmra.mrb[0].mxu1 %v48706_v56  ;;  %v14822_v35 = vsub.f32 %v48823_v3, %v14821_v59  ;;  %v14827_v15 = vand.u32 4294901760, %v48841_v36 }
 0x4e4   :  { %42239 = vmatpush1.bf16.xpose.msra.mxu1 %v48721_v13  ;;  %34236 = vmatmul.mubr.f32.vlgmr.msra.gmra.mrb[0].mxu0 %v34235_v58  ;;  %v48843_v58 = vsub.f32 %v422_v43, %v14741_v63  ;;  %v48877_v43 = vpack.c.bf16 %v14741_v63, %v14737_v38 }
 0x4e5   :  { %43191 = vmatpush1.bf16.xpose.msra.mxu0 %v43190_v0  ;;  %14566 = vmatprep.mubr.f32.mxu1 %v14307_v7  ;;  %v48825_v7 = vsub.f32 %v423_v28, %v14739_v8  ;;  %v48845_v0 = vpack.c.bf16 %v14739_v8, %v14735_v25  ;;  %v48862_v28 = vsub.f32 %v1163_v33, %v48839_v31  ;;  %v345_v8 = vld [vmem:[#allocation5 + $0x418] sm:$0xff] }
 0x4e6   :  { %42241 = vmatprep.subr.bf16.mxu1 %v42240_v48  ;;  %34326 = vmatprep.mubr.f32.mxu0 %v48733_v46  ;;  %v14839_v25 = vand.u32 4294901760, %v48843_v58 }
 0x4e7   :  { %43193 = vmatprep.subr.bf16.mxu0 %v43192_v10  ;;  %v14833_v56 = vand.u32 4294901760, %v48825_v7  ;;  %v1880_v10 = vrot.slane %v44662_v51, %v44898_v17  ;;  %v14811_v11 = vand.u32 4294901760, %v48862_v28  ;;  %v344_v51 = vld [vmem:[#allocation5 + $0x410] sm:$0xff] }
 0x4e8   :  { %v14840_v33 = vsub.f32 %v48843_v58, %v14839_v25 }
 0x4e9   :  { %v14834_v29 = vsub.f32 %v48825_v7, %v14833_v56  ;;  %v14812_v38 = vsub.f32 %v48862_v28, %v14811_v11 }
 0x4ea   :  { %v14841_v32 = vand.u32 4294901760, %v14840_v33 }
 0x4eb   :  { %14570 = vmatmul.mubr.f32.vlgmr.msra.gmra.mrb[0].mxu1 %v14313_v12  ;;  %v44661_v12 = vld [vmem:[#allocation2 + $0x104] ss:$316 sps:$4 sm:$0xff]   ;;  %v14835_v42 = vand.u32 4294901760, %v14834_v29 }
 0x4ec   :  { %42243 = vmatpush1.bf16.xpose.msra.mxu1 %v42242_v9  ;;  %34328 = vmatmul.mubr.f32.vlgmr.msra.gmra.mrb[0].mxu0 %v48753_v54  ;;  %v1866_v48 = vrot.slane %v44661_v12, %v44898_v17  ;;  %v503_v9 = vld [vmem:[#allocation5 + $0x908] sm:$0x7f] }
 0x4ed   :  { %43195 = vmatpush1.bf16.xpose.msra.mxu0 %v43194_v50  ;;  %14652 = vmatprep.mubr.f32.mxu1 %v48665_v47  ;;  %v34655_v50 = vand.u32 4294901760, %v345_v8  ;;  %v34659_v55 = vand.u32 4294901760, %v503_v9 }
 0x4ee   :  { %42245 = vmatprep.subr.bf16.mxu1 %v48689_v21  ;;  %34407 = vmatprep.mubr.f32.mxu0 %v48748_v6  ;;  %v14805_v21 = vand.u32 4294901760, %v48832_v16  ;;  %v1884_v1 = vcombine.high %v1866_v48, %v1880_v10  ;;  %v43202_v6 = vpack.c.bf16 %v34261_v44, %v34249_v24  ;;  %v1883_v24 = vcombine.low %v1866_v48, %v1880_v10 }
 0x4ef   :  { %43197 = vmatprep.subr.bf16.mxu0 %v48762_v14  ;;  %v48895_v63 = vsub.f32 %v345_v8, %v34655_v50  ;;  %v34657_v44 = vand.u32 4294901760, %v344_v51 }
 0x4f0   :  { %v14806_v2 = vsub.f32 %v48832_v16, %v14805_v21  ;;  %v48889_v29 = vand.u32 4294901760, %v1884_v1 }
 0x4f1   :  { %v48911_v48 = vsub.f32 %v344_v51, %v34657_v44 }
 0x4f2   :  { %v48904_v8 = vsub.f32 %v1884_v1, %v48889_v29 }
 0x4f3   :  { %14654 = vmatmul.mubr.f32.vlgmr.msra.gmra.mrb[0].mxu1 %v48683_v37 }
 0x4f4   :  { %42247 = vmatpush1.bf16.xpose.msra.mxu1 %v48721_v13  ;;  %34410 = vmatmul.mubr.f32.vlgmr.msra.gmra.mrb[0].mxu0 %v48772_v26  ;;  %v14823_v13 = vand.u32 4294901760, %v14822_v35  ;;  %v502_v35 = vld [vmem:[#allocation5 + $0x900] sm:$0x7f]  ;;  %v34725_v1 = vand.u32 4294901760, %v48904_v8 }
 0x4f5   :  { %43199 = vmatpush1.bf16.xpose.msra.mxu0 %v48786_v45  ;;  %14728 = vmatprep.mubr.f32.mxu1 %v48665_v47  ;;  %v14828_v47 = vsub.f32 %v48841_v36, %v14827_v15 }
 0x4f6   :  { %42249 = vmatprep.subr.bf16.mxu1 %v48845_v0  ;;  %34486 = vmatprep.mubr.f32.mxu0 %v34227_v62  ;;  %v14807_v62 = vand.u32 4294901760, %v14806_v2  ;;  %v42252_v12 = vpack.c.bf16 %v14835_v42, %v14823_v13  ;;  %v34741_v2 = vand.u32 4294901760, %v48895_v63  ;;  %v48909_v13 = vand.u32 4294901760, %v1883_v24 }
 0x4f7   :  { %43201 = vmatprep.subr.bf16.mxu0 %v43200_v30  ;;  %v48897_v30 = vsub.f32 %v503_v9, %v34659_v55  ;;  %v14829_v39 = vand.u32 4294901760, %v14828_v47  ;;  %v14813_v9 = vand.u32 4294901760, %v14812_v38  ;;  %v42256_v42 = vpack.c.bf16 %v48825_v7, %v48823_v3 }
 0x4f8   :  { %v48918_v47 = vpack.c.bf16 %v34659_v55, %v34655_v50  ;;  %v34747_v50 = vand.u32 4294901760, %v48911_v48 }
 0x4f9   :  { %v34753_v26 = vand.u32 4294901760, %v48897_v30 }
 0x4fb   :  { %14730 = vmatmul.mubr.f32.vlgmr.msra.gmra.mrb[0].mxu1 %v48683_v37  ;;  %v34661_v37 = vand.u32 4294901760, %v502_v35  ;;  %v34754_v33 = vsub.f32 %v48897_v30, %v34753_v26 }
 0x4fc   :  { %42251 = vmatpush1.bf16.xpose.msra.mxu1 %v48877_v43  ;;  %34490 = vmatmul.mubr.f32.vlgmr.msra.gmra.mrb[0].mxu0 %v34233_v4  ;;  %v42254_v4 = vpack.c.bf16 %v14841_v32, %v14829_v39  ;;  %v34748_v39 = vsub.f32 %v48911_v48, %v34747_v50 }
 0x4fd   :  { %43203 = vmatpush1.bf16.xpose.msra.mxu0 %v43202_v6  ;;  %14808 = vmatprep.mubr.f32.mxu1 %v14807_v62  ;;  %v48913_v10 = vsub.f32 %v502_v35, %v34661_v37  ;;  %v48928_v6 = vsub.f32 %v1883_v24, %v48909_v13  ;;  %v34726_v62 = vsub.f32 %v48904_v8, %v34725_v1  ;;  %v34755_v51 = vand.u32 4294901760, %v34754_v33 }
 0x4fe   :  { %42253 = vmatprep.subr.bf16.mxu1 %v42252_v12  ;;  %34572 = vmatprep.mubr.f32.mxu0 %v48733_v46  ;;  %v48942_v38 = vpack.c.bf16 %v34661_v37, %v34657_v44  ;;  %v34749_v37 = vand.u32 4294901760, %v34748_v39  ;;  %v425_v39 = vld [vmem:[#allocation5 + $0x698] sm:$0x7f] }
 0x4ff   :  { %43205 = vmatprep.subr.bf16.mxu0 %v48762_v14  ;;  %v34742_v14 = vsub.f32 %v48895_v63, %v34741_v2  ;;  %v34759_v55 = vand.u32 4294901760, %v48913_v10  ;;  %v34731_v35 = vand.u32 4294901760, %v48928_v6  ;;  %v34727_v32 = vand.u32 4294901760, %v34726_v62 }
 0x500   :  { %v15237_v7 = vand.u32 4294901760, %v425_v39 }
 0x501   :  { %v34743_v12 = vand.u32 4294901760, %v34742_v14  ;;  %v34732_v44 = vsub.f32 %v48928_v6, %v34731_v35 }
 0x503   :  { %14814 = vmatmul.mubr.f32.vlgmr.msra.gmra.mrb[0].mxu1 %v14813_v9  ;;  %v43212_v24 = vpack.c.bf16 %v34755_v51, %v34743_v12  ;;  %v34733_v14 = vand.u32 4294901760, %v34732_v44  ;;  %v42264_v12 = vpack.c.bf16 %v14833_v56, %v14821_v59  ;;  %v43216_v51 = vpack.c.bf16 %v48897_v30, %v48895_v63 }
 0x504   :  { %42255 = vmatpush1.bf16.xpose.msra.mxu1 %v42254_v4  ;;  %34574 = vmatmul.mubr.f32.vlgmr.msra.gmra.mrb[0].mxu0 %v48753_v54  ;;  %v44663_v4 = vld [vmem:[#allocation2 + $0x68] ss:$316 sps:$4 sm:$0xff]   ;;  %v42266_v59 = vpack.c.bf16 %v14839_v25, %v14827_v15  ;;  %v43218_v56 = vpack.c.bf16 %v48913_v10, %v48911_v48 }
 0x505   :  { %43207 = vmatpush1.bf16.xpose.msra.mxu0 %v48786_v45  ;;  %14904 = vmatprep.mubr.f32.mxu1 %v48821_v57  ;;  %v42258_v45 = vpack.c.bf16 %v48843_v58, %v48841_v36 }
 0x506   :  { %42257 = vmatprep.subr.bf16.mxu1 %v42256_v42  ;;  %34648 = vmatprep.mubr.f32.mxu0 %v48733_v46  ;;  %v34760_v46 = vsub.f32 %v48913_v10, %v34759_v55  ;;  %v44665_v42 = vld [vmem:[#allocation2 + $0x2e0] ss:$316 sps:$4 sm:$0xff]  }
 0x507   :  { %43209 = vmatprep.subr.bf16.mxu0 %v48918_v47  ;;  %v1189_v62 = vrot.slane %v44665_v42, %v44898_v17 }
 0x508   :  { %v34761_v9 = vand.u32 4294901760, %v34760_v46 }
 0x50a   :  { %v43214_v33 = vpack.c.bf16 %v34761_v9, %v34749_v37  ;;  %v44669_v9 = vld [vmem:[#allocation2 + $0x380] ss:$316 sps:$4 sm:$0xff]  }
 0x50b   :  { %14906 = vmatmul.mubr.f32.vlgmr.msra.gmra.mrb[0].mxu1 %v48839_v31 }
 0x50c   :  { %42259 = vmatpush1.bf16.xpose.msra.mxu1 %v42258_v45  ;;  %34650 = vmatmul.mubr.f32.vlgmr.msra.gmra.mrb[0].mxu0 %v48753_v54  ;;  %v1175_v54 = vrot.slane %v44663_v4, %v44898_v17  ;;  %v267_v45 = vld [vmem:[#allocation5 + $0x1a8] sm:$0xff] }
 0x50d   :  { %43211 = vmatpush1.bf16.xpose.msra.mxu0 %v48942_v38  ;;  %14985 = vmatprep.mubr.f32.mxu1 %v48832_v16  ;;  %v15233_v3 = vand.u32 4294901760, %v267_v45 }
 0x50e   :  { %42261 = vmatprep.subr.bf16.mxu1 %v48845_v0  ;;  %34728 = vmatprep.mubr.f32.mxu0 %v34727_v32  ;;  %v1198_v46 = vcombine.high %v1175_v54, %v1189_v62  ;;  %v266_v32 = vld [vmem:[#allocation5 + $0x1a0] sm:$0xff]  ;;  %v1197_v37 = vcombine.low %v1175_v54, %v1189_v62 }
 0x50f   :  { %43213 = vmatprep.subr.bf16.mxu0 %v43212_v24  ;;  %v424_v24 = vld [vmem:[#allocation5 + $0x690] sm:$0x7f]  ;;  %v48979_v16 = vsub.f32 %v267_v45, %v15233_v3  ;;  %v15235_v36 = vand.u32 4294901760, %v266_v32  ;;  %v43224_v45 = vpack.c.bf16 %v34753_v26, %v34741_v2 }
 0x510   :  { %v48977_v44 = vand.u32 4294901760, %v1198_v46  ;;  %v15239_v58 = vand.u32 4294901760, %v424_v24  ;;  %v48995_v4 = vand.u32 4294901760, %v1197_v37 }
 0x511   :  { %v15319_v25 = vand.u32 4294901760, %v48979_v16  ;;  %v48997_v42 = vsub.f32 %v266_v32, %v15235_v36 }
 0x512   :  { %v48988_v15 = vsub.f32 %v1198_v46, %v48977_v44 }
 0x513   :  { %14988 = vmatmul.mubr.f32.vlgmr.msra.gmra.mrb[0].mxu1 %v48862_v28  ;;  %v15320_v54 = vsub.f32 %v48979_v16, %v15319_v25  ;;  %v15325_v46 = vand.u32 4294901760, %v48997_v42 }
 0x514   :  { %42263 = vmatpush1.bf16.xpose.msra.mxu1 %v48877_v43  ;;  %34734 = vmatmul.mubr.f32.vlgmr.msra.gmra.mrb[0].mxu0 %v34733_v14  ;;  %v48999_v14 = vsub.f32 %v424_v24, %v15239_v58  ;;  %v49033_v24 = vpack.c.bf16 %v15239_v58, %v15235_v36 }
 0x515   :  { %43215 = vmatpush1.bf16.xpose.msra.mxu0 %v43214_v33  ;;  %15064 = vmatprep.mubr.f32.mxu1 %v14805_v21  ;;  %v48981_v21 = vsub.f32 %v425_v39, %v15237_v7  ;;  %v49001_v33 = vpack.c.bf16 %v15237_v7, %v15233_v3  ;;  %v49018_v39 = vsub.f32 %v1197_v37, %v48995_v4  ;;  %v347_v7 = vld [vmem:[#allocation5 + $0x428] sm:$0xff] }
 0x516   :  { %42265 = vmatprep.subr.bf16.mxu1 %v42264_v12  ;;  %34824 = vmatprep.mubr.f32.mxu0 %v48889_v29  ;;  %v15337_v3 = vand.u32 4294901760, %v48999_v14 }
 0x517   :  { %43217 = vmatprep.subr.bf16.mxu0 %v43216_v51  ;;  %v15331_v28 = vand.u32 4294901760, %v48981_v21  ;;  %v1909_v51 = vrot.slane %v44669_v9, %v44898_v17  ;;  %v15309_v26 = vand.u32 4294901760, %v49018_v39  ;;  %v346_v9 = vld [vmem:[#allocation5 + $0x420] sm:$0xff] }
 0x518   :  { %v15338_v37 = vsub.f32 %v48999_v14, %v15337_v3 }
 0x519   :  { %v15332_v62 = vsub.f32 %v48981_v21, %v15331_v28  ;;  %v15310_v36 = vsub.f32 %v49018_v39, %v15309_v26 }
 0x51a   :  { %v15339_v10 = vand.u32 4294901760, %v15338_v37 }
 0x51b   :  { %15068 = vmatmul.mubr.f32.vlgmr.msra.gmra.mrb[0].mxu1 %v14811_v11  ;;  %v44667_v11 = vld [vmem:[#allocation2 + $0x108] ss:$316 sps:$4 sm:$0xff]   ;;  %v15333_v30 = vand.u32 4294901760, %v15332_v62 }
 0x51c   :  { %42267 = vmatpush1.bf16.xpose.msra.mxu1 %v42266_v59  ;;  %34826 = vmatmul.mubr.f32.vlgmr.msra.gmra.mrb[0].mxu0 %v48909_v13  ;;  %v1895_v12 = vrot.slane %v44667_v11, %v44898_v17  ;;  %v505_v59 = vld [vmem:[#allocation5 + $0x918] sm:$0x7f] }
 0x51d   :  { %43219 = vmatpush1.bf16.xpose.msra.mxu0 %v43218_v56  ;;  %15150 = vmatprep.mubr.f32.mxu1 %v48821_v57  ;;  %v35153_v56 = vand.u32 4294901760, %v347_v7  ;;  %v35157_v32 = vand.u32 4294901760, %v505_v59 }
 0x51e   :  { %42269 = vmatprep.subr.bf16.mxu1 %v48845_v0  ;;  %34905 = vmatprep.mubr.f32.mxu0 %v48904_v8  ;;  %v15303_v0 = vand.u32 4294901760, %v48988_v15  ;;  %v1918_v2 = vcombine.high %v1895_v12, %v1909_v51  ;;  %v43226_v8 = vpack.c.bf16 %v34759_v55, %v34747_v50  ;;  %v1917_v50 = vcombine.low %v1895_v12, %v1909_v51 }
 0x51f   :  { %43221 = vmatprep.subr.bf16.mxu0 %v48918_v47  ;;  %v49051_v58 = vsub.f32 %v347_v7, %v35153_v56  ;;  %v35155_v55 = vand.u32 4294901760, %v346_v9 }
 0x520   :  { %v15304_v63 = vsub.f32 %v48988_v15, %v15303_v0  ;;  %v49045_v62 = vand.u32 4294901760, %v1918_v2 }
 0x521   :  { %v49067_v12 = vsub.f32 %v346_v9, %v35155_v55 }
 0x522   :  { %v49060_v7 = vsub.f32 %v1918_v2, %v49045_v62 }
 0x523   :  { %15152 = vmatmul.mubr.f32.vlgmr.msra.gmra.mrb[0].mxu1 %v48839_v31 }
 0x524   :  { %42271 = vmatpush1.bf16.xpose.msra.mxu1 %v48877_v43  ;;  %34908 = vmatmul.mubr.f32.vlgmr.msra.gmra.mrb[0].mxu0 %v48928_v6  ;;  %v15321_v43 = vand.u32 4294901760, %v15320_v54  ;;  %v504_v54 = vld [vmem:[#allocation5 + $0x910] sm:$0x7f]  ;;  %v35223_v2 = vand.u32 4294901760, %v49060_v7 }
 0x525   :  { %43223 = vmatpush1.bf16.xpose.msra.mxu0 %v48942_v38  ;;  %15226 = vmatprep.mubr.f32.mxu1 %v48821_v57  ;;  %v15326_v57 = vsub.f32 %v48997_v42, %v15325_v46 }
 0x526   :  { %42273 = vmatprep.subr.bf16.mxu1 %v49001_v33  ;;  %34984 = vmatprep.mubr.f32.mxu0 %v34725_v1  ;;  %v15305_v1 = vand.u32 4294901760, %v15304_v63  ;;  %v42276_v11 = vpack.c.bf16 %v15333_v30, %v15321_v43  ;;  %v35239_v63 = vand.u32 4294901760, %v49051_v58  ;;  %v49065_v43 = vand.u32 4294901760, %v1917_v50 }
 0x527   :  { %43225 = vmatprep.subr.bf16.mxu0 %v43224_v45  ;;  %v49053_v45 = vsub.f32 %v505_v59, %v35157_v32  ;;  %v15327_v48 = vand.u32 4294901760, %v15326_v57  ;;  %v15311_v59 = vand.u32 4294901760, %v15310_v36  ;;  %v42280_v30 = vpack.c.bf16 %v48981_v21, %v48979_v16 }
 0x528   :  { %v49074_v57 = vpack.c.bf16 %v35157_v32, %v35153_v56  ;;  %v35245_v56 = vand.u32 4294901760, %v49067_v12 }
 0x529   :  { %v35251_v6 = vand.u32 4294901760, %v49053_v45 }
 0x52b   :  { %15228 = vmatmul.mubr.f32.vlgmr.msra.gmra.mrb[0].mxu1 %v48839_v31  ;;  %v35159_v31 = vand.u32 4294901760, %v504_v54  ;;  %v35252_v37 = vsub.f32 %v49053_v45, %v35251_v6 }
 0x52c   :  { %42275 = vmatpush1.bf16.xpose.msra.mxu1 %v49033_v24  ;;  %34988 = vmatmul.mubr.f32.vlgmr.msra.gmra.mrb[0].mxu0 %v34731_v35  ;;  %v42278_v35 = vpack.c.bf16 %v15339_v10, %v15327_v48  ;;  %v35246_v48 = vsub.f32 %v49067_v12, %v35245_v56 }
 0x52d   :  { %43227 = vmatpush1.bf16.xpose.msra.mxu0 %v43226_v8  ;;  %15306 = vmatprep.mubr.f32.mxu1 %v15305_v1  ;;  %v49069_v51 = vsub.f32 %v504_v54, %v35159_v31  ;;  %v49084_v8 = vsub.f32 %v1917_v50, %v49065_v43  ;;  %v35224_v1 = vsub.f32 %v49060_v7, %v35223_v2  ;;  %v35253_v9 = vand.u32 4294901760, %v35252_v37 }
 0x52e   :  { %42277 = vmatprep.subr.bf16.mxu1 %v42276_v11  ;;  %35070 = vmatprep.mubr.f32.mxu0 %v48889_v29  ;;  %v49098_v36 = vpack.c.bf16 %v35159_v31, %v35155_v55  ;;  %v35247_v31 = vand.u32 4294901760, %v35246_v48  ;;  %v427_v48 = vld [vmem:[#allocation5 + $0x6a8] sm:$0x7f] }
 0x52f   :  { %43229 = vmatprep.subr.bf16.mxu0 %v48918_v47  ;;  %v35240_v47 = vsub.f32 %v49051_v58, %v35239_v63  ;;  %v35257_v32 = vand.u32 4294901760, %v49069_v51  ;;  %v35229_v54 = vand.u32 4294901760, %v49084_v8  ;;  %v35225_v10 = vand.u32 4294901760, %v35224_v1 }
 0x530   :  { %v15735_v21 = vand.u32 4294901760, %v427_v48 }
 0x531   :  { %v35241_v11 = vand.u32 4294901760, %v35240_v47  ;;  %v35230_v55 = vsub.f32 %v49084_v8, %v35229_v54 }
 0x533   :  { %15312 = vmatmul.mubr.f32.vlgmr.msra.gmra.mrb[0].mxu1 %v15311_v59  ;;  %v43236_v50 = vpack.c.bf16 %v35253_v9, %v35241_v11  ;;  %v35231_v47 = vand.u32 4294901760, %v35230_v55  ;;  %v42288_v11 = vpack.c.bf16 %v15331_v28, %v15319_v25  ;;  %v43240_v9 = vpack.c.bf16 %v49053_v45, %v49051_v58 }
 0x534   :  { %42279 = vmatpush1.bf16.xpose.msra.mxu1 %v42278_v35  ;;  %35072 = vmatmul.mubr.f32.vlgmr.msra.gmra.mrb[0].mxu0 %v48909_v13  ;;  %v44671_v35 = vld [vmem:[#allocation2 + $0x6c] ss:$316 sps:$4 sm:$0xff]   ;;  %v42290_v25 = vpack.c.bf16 %v15337_v3, %v15325_v46  ;;  %v43242_v28 = vpack.c.bf16 %v49069_v51, %v49067_v12 }
 0x535   :  { %43231 = vmatpush1.bf16.xpose.msra.mxu0 %v48942_v38  ;;  %15402 = vmatprep.mubr.f32.mxu1 %v48977_v44  ;;  %v42282_v38 = vpack.c.bf16 %v48999_v14, %v48997_v42 }
 0x536   :  { %42281 = vmatprep.subr.bf16.mxu1 %v42280_v30  ;;  %35146 = vmatprep.mubr.f32.mxu0 %v48889_v29  ;;  %v35258_v29 = vsub.f32 %v49069_v51, %v35257_v32  ;;  %v44672_v30 = vld [vmem:[#allocation2 + $0x2e4] ss:$316 sps:$4 sm:$0xff]  }
 0x537   :  { %43233 = vmatprep.subr.bf16.mxu0 %v49074_v57  ;;  %v1196_v1 = vrot.slane %v44672_v30, %v44898_v17 }
 0x538   :  { %v35259_v59 = vand.u32 4294901760, %v35258_v29 }
 0x53a   :  { %v43238_v37 = vpack.c.bf16 %v35259_v59, %v35247_v31  ;;  %v44674_v59 = vld [vmem:[#allocation2 + $0x384] ss:$316 sps:$4 sm:$0xff]  }
 0x53b   :  { %15404 = vmatmul.mubr.f32.vlgmr.msra.gmra.mrb[0].mxu1 %v48995_v4 }
 0x53c   :  { %42283 = vmatpush1.bf16.xpose.msra.mxu1 %v42282_v38  ;;  %35148 = vmatmul.mubr.f32.vlgmr.msra.gmra.mrb[0].mxu0 %v48909_v13  ;;  %v1182_v13 = vrot.slane %v44671_v35, %v44898_v17  ;;  %v269_v38 = vld [vmem:[#allocation5 + $0x1b8] sm:$0xff] }
 0x53d   :  { %43235 = vmatpush1.bf16.xpose.msra.mxu0 %v49098_v36  ;;  %15483 = vmatprep.mubr.f32.mxu1 %v48988_v15  ;;  %v15731_v16 = vand.u32 4294901760, %v269_v38 }
 0x53e   :  { %42285 = vmatprep.subr.bf16.mxu1 %v49001_v33  ;;  %35226 = vmatprep.mubr.f32.mxu0 %v35225_v10  ;;  %v1200_v29 = vcombine.high %v1182_v13, %v1196_v1  ;;  %v268_v10 = vld [vmem:[#allocation5 + $0x1b0] sm:$0xff]  ;;  %v1199_v31 = vcombine.low %v1182_v13, %v1196_v1 }
 0x53f   :  { %43237 = vmatprep.subr.bf16.mxu0 %v43236_v50  ;;  %v426_v50 = vld [vmem:[#allocation5 + $0x6a0] sm:$0x7f]  ;;  %v49135_v15 = vsub.f32 %v269_v38, %v15731_v16  ;;  %v15733_v42 = vand.u32 4294901760, %v268_v10  ;;  %v43248_v38 = vpack.c.bf16 %v35251_v6, %v35239_v63 }
 0x540   :  { %v49133_v55 = vand.u32 4294901760, %v1200_v29  ;;  %v15737_v14 = vand.u32 4294901760, %v426_v50  ;;  %v49151_v35 = vand.u32 4294901760, %v1199_v31 }
 0x541   :  { %v15817_v3 = vand.u32 4294901760, %v49135_v15  ;;  %v49153_v30 = vsub.f32 %v268_v10, %v15733_v42 }
 0x542   :  { %v49144_v46 = vsub.f32 %v1200_v29, %v49133_v55 }
 0x543   :  { %15486 = vmatmul.mubr.f32.vlgmr.msra.gmra.mrb[0].mxu1 %v49018_v39  ;;  %v15818_v13 = vsub.f32 %v49135_v15, %v15817_v3  ;;  %v15823_v29 = vand.u32 4294901760, %v49153_v30 }
 0x544   :  { %42287 = vmatpush1.bf16.xpose.msra.mxu1 %v49033_v24  ;;  %35232 = vmatmul.mubr.f32.vlgmr.msra.gmra.mrb[0].mxu0 %v35231_v47  ;;  %v49155_v47 = vsub.f32 %v426_v50, %v15737_v14  ;;  %v49189_v50 = vpack.c.bf16 %v15737_v14, %v15733_v42 }
 0x545   :  { %43239 = vmatpush1.bf16.xpose.msra.mxu0 %v43238_v37  ;;  %15562 = vmatprep.mubr.f32.mxu1 %v15303_v0  ;;  %v49137_v0 = vsub.f32 %v427_v48, %v15735_v21  ;;  %v49157_v37 = vpack.c.bf16 %v15735_v21, %v15731_v16  ;;  %v49174_v48 = vsub.f32 %v1199_v31, %v49151_v35  ;;  %v349_v21 = vld [vmem:[#allocation5 + $0x438] sm:$0xff] }
 0x546   :  { %42289 = vmatprep.subr.bf16.mxu1 %v42288_v11  ;;  %35322 = vmatprep.mubr.f32.mxu0 %v49045_v62  ;;  %v15835_v16 = vand.u32 4294901760, %v49155_v47 }
 0x547   :  { %43241 = vmatprep.subr.bf16.mxu0 %v43240_v9  ;;  %v15829_v39 = vand.u32 4294901760, %v49137_v0  ;;  %v1916_v9 = vrot.slane %v44674_v59, %v44898_v17  ;;  %v15807_v6 = vand.u32 4294901760, %v49174_v48  ;;  %v348_v59 = vld [vmem:[#allocation5 + $0x430] sm:$0xff] }
 0x548   :  { %v15836_v31 = vsub.f32 %v49155_v47, %v15835_v16 }
 0x549   :  { %v15830_v1 = vsub.f32 %v49137_v0, %v15829_v39  ;;  %v15808_v42 = vsub.f32 %v49174_v48, %v15807_v6 }
 0x54a   :  { %v15837_v51 = vand.u32 4294901760, %v15836_v31 }
 0x54b   :  { %15566 = vmatmul.mubr.f32.vlgmr.msra.gmra.mrb[0].mxu1 %v15309_v26  ;;  %v44673_v26 = vld [vmem:[#allocation2 + $0x10c] ss:$316 sps:$4 sm:$0xff]   ;;  %v15831_v45 = vand.u32 4294901760, %v15830_v1 }
 0x54c   :  { %42291 = vmatpush1.bf16.xpose.msra.mxu1 %v42290_v25  ;;  %35324 = vmatmul.mubr.f32.vlgmr.msra.gmra.mrb[0].mxu0 %v49065_v43  ;;  %v1902_v11 = vrot.slane %v44673_v26, %v44898_v17  ;;  %v507_v25 = vld [vmem:[#allocation5 + $0x928] sm:$0x7f] }
 0x54d   :  { %43243 = vmatpush1.bf16.xpose.msra.mxu0 %v43242_v28  ;;  %15648 = vmatprep.mubr.f32.mxu1 %v48977_v44  ;;  %v35651_v28 = vand.u32 4294901760, %v349_v21  ;;  %v35655_v10 = vand.u32 4294901760, %v507_v25 }
 0x54e   :  { %42293 = vmatprep.subr.bf16.mxu1 %v49001_v33  ;;  %35403 = vmatprep.mubr.f32.mxu0 %v49060_v7  ;;  %v15801_v33 = vand.u32 4294901760, %v49144_v46  ;;  %v1920_v63 = vcombine.high %v1902_v11, %v1916_v9  ;;  %v43250_v7 = vpack.c.bf16 %v35257_v32, %v35245_v56  ;;  %v1919_v56 = vcombine.low %v1902_v11, %v1916_v9 }
 0x54f   :  { %43245 = vmatprep.subr.bf16.mxu0 %v49074_v57  ;;  %v49207_v14 = vsub.f32 %v349_v21, %v35651_v28  ;;  %v35653_v32 = vand.u32 4294901760, %v348_v59 }
 0x550   :  { %v15802_v58 = vsub.f32 %v49144_v46, %v15801_v33  ;;  %v49201_v1 = vand.u32 4294901760, %v1920_v63 }
 0x551   :  { %v49223_v11 = vsub.f32 %v348_v59, %v35653_v32 }
 0x552   :  { %v49216_v21 = vsub.f32 %v1920_v63, %v49201_v1 }
 0x553   :  { %15650 = vmatmul.mubr.f32.vlgmr.msra.gmra.mrb[0].mxu1 %v48995_v4 }
 0x554   :  { %42295 = vmatpush1.bf16.xpose.msra.mxu1 %v49033_v24  ;;  %35406 = vmatmul.mubr.f32.vlgmr.msra.gmra.mrb[0].mxu0 %v49084_v8  ;;  %v15819_v24 = vand.u32 4294901760, %v15818_v13  ;;  %v506_v13 = vld [vmem:[#allocation5 + $0x920] sm:$0x7f]  ;;  %v35721_v63 = vand.u32 4294901760, %v49216_v21 }
 0x555   :  { %43247 = vmatpush1.bf16.xpose.msra.mxu0 %v49098_v36  ;;  %15724 = vmatprep.mubr.f32.mxu1 %v48977_v44  ;;  %v15824_v44 = vsub.f32 %v49153_v30, %v15823_v29 }
 0x556   :  { %42297 = vmatprep.subr.bf16.mxu1 %v49157_v37  ;;  %35482 = vmatprep.mubr.f32.mxu0 %v35223_v2  ;;  %v15803_v2 = vand.u32 4294901760, %v15802_v58  ;;  %v42300_v26 = vpack.c.bf16 %v15831_v45, %v15819_v24  ;;  %v35737_v58 = vand.u32 4294901760, %v49207_v14  ;;  %v49221_v24 = vand.u32 4294901760, %v1919_v56 }
 0x557   :  { %43249 = vmatprep.subr.bf16.mxu0 %v43248_v38  ;;  %v49209_v38 = vsub.f32 %v507_v25, %v35655_v10  ;;  %v15825_v12 = vand.u32 4294901760, %v15824_v44  ;;  %v15809_v25 = vand.u32 4294901760, %v15808_v42  ;;  %v42304_v45 = vpack.c.bf16 %v49137_v0, %v49135_v15 }
 0x558   :  { %v49230_v44 = vpack.c.bf16 %v35655_v10, %v35651_v28  ;;  %v35743_v28 = vand.u32 4294901760, %v49223_v11 }
 0x559   :  { %v35749_v8 = vand.u32 4294901760, %v49209_v38 }
 0x55b   :  { %15726 = vmatmul.mubr.f32.vlgmr.msra.gmra.mrb[0].mxu1 %v48995_v4  ;;  %v35657_v4 = vand.u32 4294901760, %v506_v13  ;;  %v35750_v31 = vsub.f32 %v49209_v38, %v35749_v8 }
 0x55c   :  { %42299 = vmatpush1.bf16.xpose.msra.mxu1 %v49189_v50  ;;  %35486 = vmatmul.mubr.f32.vlgmr.msra.gmra.mrb[0].mxu0 %v35229_v54  ;;  %v42302_v54 = vpack.c.bf16 %v15837_v51, %v15825_v12  ;;  %v35744_v12 = vsub.f32 %v49223_v11, %v35743_v28 }
 0x55d   :  { %43251 = vmatpush1.bf16.xpose.msra.mxu0 %v43250_v7  ;;  %15804 = vmatprep.mubr.f32.mxu1 %v15803_v2  ;;  %v49225_v9 = vsub.f32 %v506_v13, %v35657_v4  ;;  %v49240_v7 = vsub.f32 %v1919_v56, %v49221_v24  ;;  %v35722_v2 = vsub.f32 %v49216_v21, %v35721_v63  ;;  %v35751_v59 = vand.u32 4294901760, %v35750_v31 }
 0x55e   :  { %42301 = vmatprep.subr.bf16.mxu1 %v42300_v26  ;;  %35568 = vmatprep.mubr.f32.mxu0 %v49045_v62  ;;  %v49254_v42 = vpack.c.bf16 %v35657_v4, %v35653_v32  ;;  %v35745_v4 = vand.u32 4294901760, %v35744_v12  ;;  %v429_v12 = vld [vmem:[#allocation5 + $0x6b8] sm:$0x7f] }
 0x55f   :  { %43253 = vmatprep.subr.bf16.mxu0 %v49074_v57  ;;  %v35738_v57 = vsub.f32 %v49207_v14, %v35737_v58  ;;  %v35755_v10 = vand.u32 4294901760, %v49225_v9  ;;  %v35727_v13 = vand.u32 4294901760, %v49240_v7  ;;  %v35723_v51 = vand.u32 4294901760, %v35722_v2 }
 0x560   :  { %v16233_v0 = vand.u32 4294901760, %v429_v12 }
 0x561   :  { %v35739_v26 = vand.u32 4294901760, %v35738_v57  ;;  %v35728_v32 = vsub.f32 %v49240_v7, %v35727_v13 }
 0x563   :  { %15810 = vmatmul.mubr.f32.vlgmr.msra.gmra.mrb[0].mxu1 %v15809_v25  ;;  %v43260_v56 = vpack.c.bf16 %v35751_v59, %v35739_v26  ;;  %v35729_v57 = vand.u32 4294901760, %v35728_v32  ;;  %v42312_v26 = vpack.c.bf16 %v15829_v39, %v15817_v3  ;;  %v43264_v59 = vpack.c.bf16 %v49209_v38, %v49207_v14 }
 0x564   :  { %42303 = vmatpush1.bf16.xpose.msra.mxu1 %v42302_v54  ;;  %35570 = vmatmul.mubr.f32.vlgmr.msra.gmra.mrb[0].mxu0 %v49065_v43  ;;  %v44675_v54 = vld [vmem:[#allocation2 + $0x70] ss:$316 sps:$4 sm:$0xff]   ;;  %v42314_v3 = vpack.c.bf16 %v15835_v16, %v15823_v29  ;;  %v43266_v39 = vpack.c.bf16 %v49225_v9, %v49223_v11 }
 0x565   :  { %43255 = vmatpush1.bf16.xpose.msra.mxu0 %v49098_v36  ;;  %15900 = vmatprep.mubr.f32.mxu1 %v49133_v55  ;;  %v42306_v36 = vpack.c.bf16 %v49155_v47, %v49153_v30 }
 0x566   :  { %42305 = vmatprep.subr.bf16.mxu1 %v42304_v45  ;;  %35644 = vmatprep.mubr.f32.mxu0 %v49045_v62  ;;  %v35756_v62 = vsub.f32 %v49225_v9, %v35755_v10  ;;  %v44677_v45 = vld [vmem:[#allocation2 + $0x2e8] ss:$316 sps:$4 sm:$0xff]  }
 0x567   :  { %43257 = vmatprep.subr.bf16.mxu0 %v49230_v44  ;;  %v1225_v2 = vrot.slane %v44677_v45, %v44898_v17 }
 0x568   :  { %v35757_v25 = vand.u32 4294901760, %v35756_v62 }
 0x56a   :  { %v43262_v31 = vpack.c.bf16 %v35757_v25, %v35745_v4  ;;  %v44681_v25 = vld [vmem:[#allocation2 + $0x388] ss:$316 sps:$4 sm:$0xff]  }
 0x56b   :  { %15902 = vmatmul.mubr.f32.vlgmr.msra.gmra.mrb[0].mxu1 %v49151_v35 }
 0x56c   :  { %42307 = vmatpush1.bf16.xpose.msra.mxu1 %v42306_v36  ;;  %35646 = vmatmul.mubr.f32.vlgmr.msra.gmra.mrb[0].mxu0 %v49065_v43  ;;  %v1211_v43 = vrot.slane %v44675_v54, %v44898_v17  ;;  %v271_v36 = vld [vmem:[#allocation5 + $0x1c8] sm:$0xff] }
 0x56d   :  { %43259 = vmatpush1.bf16.xpose.msra.mxu0 %v49254_v42  ;;  %15981 = vmatprep.mubr.f32.mxu1 %v49144_v46  ;;  %v16229_v15 = vand.u32 4294901760, %v271_v36 }
 0x56e   :  { %42309 = vmatprep.subr.bf16.mxu1 %v49157_v37  ;;  %35724 = vmatprep.mubr.f32.mxu0 %v35723_v51  ;;  %v1234_v62 = vcombine.high %v1211_v43, %v1225_v2  ;;  %v270_v51 = vld [vmem:[#allocation5 + $0x1c0] sm:$0xff]  ;;  %v1233_v4 = vcombine.low %v1211_v43, %v1225_v2 }
 0x56f   :  { %43261 = vmatprep.subr.bf16.mxu0 %v43260_v56  ;;  %v428_v56 = vld [vmem:[#allocation5 + $0x6b0] sm:$0x7f]  ;;  %v49291_v46 = vsub.f32 %v271_v36, %v16229_v15  ;;  %v16231_v30 = vand.u32 4294901760, %v270_v51  ;;  %v43272_v36 = vpack.c.bf16 %v35749_v8, %v35737_v58 }
 0x570   :  { %v49289_v32 = vand.u32 4294901760, %v1234_v62  ;;  %v16235_v47 = vand.u32 4294901760, %v428_v56  ;;  %v49307_v54 = vand.u32 4294901760, %v1233_v4 }
 0x571   :  { %v16315_v16 = vand.u32 4294901760, %v49291_v46  ;;  %v49309_v45 = vsub.f32 %v270_v51, %v16231_v30 }
 0x572   :  { %v49300_v29 = vsub.f32 %v1234_v62, %v49289_v32 }
 0x573   :  { %15984 = vmatmul.mubr.f32.vlgmr.msra.gmra.mrb[0].mxu1 %v49174_v48  ;;  %v16316_v43 = vsub.f32 %v49291_v46, %v16315_v16  ;;  %v16321_v62 = vand.u32 4294901760, %v49309_v45 }
 0x574   :  { %42311 = vmatpush1.bf16.xpose.msra.mxu1 %v49189_v50  ;;  %35730 = vmatmul.mubr.f32.vlgmr.msra.gmra.mrb[0].mxu0 %v35729_v57  ;;  %v49311_v57 = vsub.f32 %v428_v56, %v16235_v47  ;;  %v49345_v56 = vpack.c.bf16 %v16235_v47, %v16231_v30 }
 0x575   :  { %43263 = vmatpush1.bf16.xpose.msra.mxu0 %v43262_v31  ;;  %16060 = vmatprep.mubr.f32.mxu1 %v15801_v33  ;;  %v49293_v33 = vsub.f32 %v429_v12, %v16233_v0  ;;  %v49313_v31 = vpack.c.bf16 %v16233_v0, %v16229_v15  ;;  %v49330_v12 = vsub.f32 %v1233_v4, %v49307_v54  ;;  %v351_v0 = vld [vmem:[#allocation5 + $0x448] sm:$0xff] }
 0x576   :  { %42313 = vmatprep.subr.bf16.mxu1 %v42312_v26  ;;  %35820 = vmatprep.mubr.f32.mxu0 %v49201_v1  ;;  %v16333_v15 = vand.u32 4294901760, %v49311_v57 }
 0x577   :  { %43265 = vmatprep.subr.bf16.mxu0 %v43264_v59  ;;  %v16327_v48 = vand.u32 4294901760, %v49293_v33  ;;  %v1945_v59 = vrot.slane %v44681_v25, %v44898_v17  ;;  %v16305_v8 = vand.u32 4294901760, %v49330_v12  ;;  %v350_v25 = vld [vmem:[#allocation5 + $0x440] sm:$0xff] }
 0x578   :  { %v16334_v4 = vsub.f32 %v49311_v57, %v16333_v15 }
 0x579   :  { %v16328_v2 = vsub.f32 %v49293_v33, %v16327_v48  ;;  %v16306_v30 = vsub.f32 %v49330_v12, %v16305_v8 }
 0x57a   :  { %v16335_v9 = vand.u32 4294901760, %v16334_v4 }
 0x57b   :  { %16064 = vmatmul.mubr.f32.vlgmr.msra.gmra.mrb[0].mxu1 %v15807_v6  ;;  %v44679_v6 = vld [vmem:[#allocation2 + $0x110] ss:$316 sps:$4 sm:$0xff]   ;;  %v16329_v38 = vand.u32 4294901760, %v16328_v2 }
 0x57c   :  { %42315 = vmatpush1.bf16.xpose.msra.mxu1 %v42314_v3  ;;  %35822 = vmatmul.mubr.f32.vlgmr.msra.gmra.mrb[0].mxu0 %v49221_v24  ;;  %v1931_v26 = vrot.slane %v44679_v6, %v44898_v17  ;;  %v509_v3 = vld [vmem:[#allocation5 + $0x938] sm:$0x7f] }
 0x57d   :  { %43267 = vmatpush1.bf16.xpose.msra.mxu0 %v43266_v39  ;;  %16146 = vmatprep.mubr.f32.mxu1 %v49133_v55  ;;  %v36149_v39 = vand.u32 4294901760, %v351_v0  ;;  %v36153_v51 = vand.u32 4294901760, %v509_v3 }
 0x57e   :  { %42317 = vmatprep.subr.bf16.mxu1 %v49157_v37  ;;  %35901 = vmatprep.mubr.f32.mxu0 %v49216_v21  ;;  %v16299_v37 = vand.u32 4294901760, %v49300_v29  ;;  %v1954_v58 = vcombine.high %v1931_v26, %v1945_v59  ;;  %v43274_v21 = vpack.c.bf16 %v35755_v10, %v35743_v28  ;;  %v1953_v28 = vcombine.low %v1931_v26, %v1945_v59 }
 0x57f   :  { %43269 = vmatprep.subr.bf16.mxu0 %v49230_v44  ;;  %v49363_v47 = vsub.f32 %v351_v0, %v36149_v39  ;;  %v36151_v10 = vand.u32 4294901760, %v350_v25 }
 0x580   :  { %v16300_v14 = vsub.f32 %v49300_v29, %v16299_v37  ;;  %v49357_v2 = vand.u32 4294901760, %v1954_v58 }
 0x581   :  { %v49379_v26 = vsub.f32 %v350_v25, %v36151_v10 }
 0x582   :  { %v49372_v0 = vsub.f32 %v1954_v58, %v49357_v2 }
 0x583   :  { %16148 = vmatmul.mubr.f32.vlgmr.msra.gmra.mrb[0].mxu1 %v49151_v35 }
 0x584   :  { %42319 = vmatpush1.bf16.xpose.msra.mxu1 %v49189_v50  ;;  %35904 = vmatmul.mubr.f32.vlgmr.msra.gmra.mrb[0].mxu0 %v49240_v7  ;;  %v16317_v50 = vand.u32 4294901760, %v16316_v43  ;;  %v508_v43 = vld [vmem:[#allocation5 + $0x930] sm:$0x7f]  ;;  %v36219_v58 = vand.u32 4294901760, %v49372_v0 }
 0x585   :  { %43271 = vmatpush1.bf16.xpose.msra.mxu0 %v49254_v42  ;;  %16222 = vmatprep.mubr.f32.mxu1 %v49133_v55  ;;  %v16322_v55 = vsub.f32 %v49309_v45, %v16321_v62 }
 0x586   :  { %42321 = vmatprep.subr.bf16.mxu1 %v49313_v31  ;;  %35980 = vmatprep.mubr.f32.mxu0 %v35721_v63  ;;  %v16301_v63 = vand.u32 4294901760, %v16300_v14  ;;  %v42324_v6 = vpack.c.bf16 %v16329_v38, %v16317_v50  ;;  %v36235_v14 = vand.u32 4294901760, %v49363_v47  ;;  %v49377_v50 = vand.u32 4294901760, %v1953_v28 }
 0x587   :  { %43273 = vmatprep.subr.bf16.mxu0 %v43272_v36  ;;  %v49365_v36 = vsub.f32 %v509_v3, %v36153_v51  ;;  %v16323_v11 = vand.u32 4294901760, %v16322_v55  ;;  %v16307_v3 = vand.u32 4294901760, %v16306_v30  ;;  %v42328_v38 = vpack.c.bf16 %v49293_v33, %v49291_v46 }
 0x588   :  { %v49386_v55 = vpack.c.bf16 %v36153_v51, %v36149_v39  ;;  %v36241_v39 = vand.u32 4294901760, %v49379_v26 }
 0x589   :  { %v36247_v7 = vand.u32 4294901760, %v49365_v36 }
 0x58b   :  { %16224 = vmatmul.mubr.f32.vlgmr.msra.gmra.mrb[0].mxu1 %v49151_v35  ;;  %v36155_v35 = vand.u32 4294901760, %v508_v43  ;;  %v36248_v4 = vsub.f32 %v49365_v36, %v36247_v7 }
 0x58c   :  { %42323 = vmatpush1.bf16.xpose.msra.mxu1 %v49345_v56  ;;  %35984 = vmatmul.mubr.f32.vlgmr.msra.gmra.mrb[0].mxu0 %v35727_v13  ;;  %v42326_v13 = vpack.c.bf16 %v16335_v9, %v16323_v11  ;;  %v36242_v11 = vsub.f32 %v49379_v26, %v36241_v39 }
 0x58d   :  { %43275 = vmatpush1.bf16.xpose.msra.mxu0 %v43274_v21  ;;  %16302 = vmatprep.mubr.f32.mxu1 %v16301_v63  ;;  %v49381_v59 = vsub.f32 %v508_v43, %v36155_v35  ;;  %v49396_v21 = vsub.f32 %v1953_v28, %v49377_v50  ;;  %v36220_v63 = vsub.f32 %v49372_v0, %v36219_v58  ;;  %v36249_v25 = vand.u32 4294901760, %v36248_v4 }
 0x58e   :  { %42325 = vmatprep.subr.bf16.mxu1 %v42324_v6  ;;  %36066 = vmatprep.mubr.f32.mxu0 %v49201_v1  ;;  %v49410_v30 = vpack.c.bf16 %v36155_v35, %v36151_v10  ;;  %v36243_v35 = vand.u32 4294901760, %v36242_v11  ;;  %v431_v11 = vld [vmem:[#allocation5 + $0x6c8] sm:$0x7f] }
 0x58f   :  { %43277 = vmatprep.subr.bf16.mxu0 %v49230_v44  ;;  %v36236_v44 = vsub.f32 %v49363_v47, %v36235_v14  ;;  %v36253_v51 = vand.u32 4294901760, %v49381_v59  ;;  %v36225_v43 = vand.u32 4294901760, %v49396_v21  ;;  %v36221_v9 = vand.u32 4294901760, %v36220_v63 }
 0x590   :  { %v16731_v33 = vand.u32 4294901760, %v431_v11 }
 0x591   :  { %v36237_v6 = vand.u32 4294901760, %v36236_v44  ;;  %v36226_v10 = vsub.f32 %v49396_v21, %v36225_v43 }
 0x593   :  { %16308 = vmatmul.mubr.f32.vlgmr.msra.gmra.mrb[0].mxu1 %v16307_v3  ;;  %v43284_v28 = vpack.c.bf16 %v36249_v25, %v36237_v6  ;;  %v36227_v44 = vand.u32 4294901760, %v36226_v10  ;;  %v42336_v6 = vpack.c.bf16 %v16327_v48, %v16315_v16  ;;  %v43288_v25 = vpack.c.bf16 %v49365_v36, %v49363_v47 }
 0x594   :  { %42327 = vmatpush1.bf16.xpose.msra.mxu1 %v42326_v13  ;;  %36068 = vmatmul.mubr.f32.vlgmr.msra.gmra.mrb[0].mxu0 %v49221_v24  ;;  %v44683_v13 = vld [vmem:[#allocation2 + $0x74] ss:$316 sps:$4 sm:$0xff]   ;;  %v42338_v16 = vpack.c.bf16 %v16333_v15, %v16321_v62  ;;  %v43290_v48 = vpack.c.bf16 %v49381_v59, %v49379_v26 }
 0x595   :  { %43279 = vmatpush1.bf16.xpose.msra.mxu0 %v49254_v42  ;;  %16398 = vmatprep.mubr.f32.mxu1 %v49289_v32  ;;  %v42330_v42 = vpack.c.bf16 %v49311_v57, %v49309_v45 }
 0x596   :  { %42329 = vmatprep.subr.bf16.mxu1 %v42328_v38  ;;  %36142 = vmatprep.mubr.f32.mxu0 %v49201_v1  ;;  %v36254_v1 = vsub.f32 %v49381_v59, %v36253_v51  ;;  %v44684_v38 = vld [vmem:[#allocation2 + $0x2ec] ss:$316 sps:$4 sm:$0xff]  }
 0x597   :  { %43281 = vmatprep.subr.bf16.mxu0 %v49386_v55  ;;  %v1232_v63 = vrot.slane %v44684_v38, %v44898_v17 }
 0x598   :  { %v36255_v3 = vand.u32 4294901760, %v36254_v1 }
 0x59a   :  { %v43286_v4 = vpack.c.bf16 %v36255_v3, %v36243_v35  ;;  %v44686_v3 = vld [vmem:[#allocation2 + $0x38c] ss:$316 sps:$4 sm:$0xff]  }
 0x59b   :  { %16400 = vmatmul.mubr.f32.vlgmr.msra.gmra.mrb[0].mxu1 %v49307_v54 }
 0x59c   :  { %42331 = vmatpush1.bf16.xpose.msra.mxu1 %v42330_v42  ;;  %36144 = vmatmul.mubr.f32.vlgmr.msra.gmra.mrb[0].mxu0 %v49221_v24  ;;  %v1218_v24 = vrot.slane %v44683_v13, %v44898_v17  ;;  %v273_v42 = vld [vmem:[#allocation5 + $0x1d8] sm:$0xff] }
 0x59d   :  { %43283 = vmatpush1.bf16.xpose.msra.mxu0 %v49410_v30  ;;  %16479 = vmatprep.mubr.f32.mxu1 %v49300_v29  ;;  %v16727_v46 = vand.u32 4294901760, %v273_v42 }
 0x59e   :  { %42333 = vmatprep.subr.bf16.mxu1 %v49313_v31  ;;  %36222 = vmatprep.mubr.f32.mxu0 %v36221_v9  ;;  %v1236_v1 = vcombine.high %v1218_v24, %v1232_v63  ;;  %v272_v9 = vld [vmem:[#allocation5 + $0x1d0] sm:$0xff]  ;;  %v1235_v35 = vcombine.low %v1218_v24, %v1232_v63 }
 0x59f   :  { %43285 = vmatprep.subr.bf16.mxu0 %v43284_v28  ;;  %v430_v28 = vld [vmem:[#allocation5 + $0x6c0] sm:$0x7f]  ;;  %v49447_v29 = vsub.f32 %v273_v42, %v16727_v46  ;;  %v16729_v45 = vand.u32 4294901760, %v272_v9  ;;  %v43296_v42 = vpack.c.bf16 %v36247_v7, %v36235_v14 }
 0x5a0   :  { %v49445_v10 = vand.u32 4294901760, %v1236_v1  ;;  %v16733_v57 = vand.u32 4294901760, %v430_v28  ;;  %v49463_v13 = vand.u32 4294901760, %v1235_v35 }
 0x5a1   :  { %v16813_v15 = vand.u32 4294901760, %v49447_v29  ;;  %v49465_v38 = vsub.f32 %v272_v9, %v16729_v45 }
 0x5a2   :  { %v49456_v62 = vsub.f32 %v1236_v1, %v49445_v10 }
 0x5a3   :  { %16482 = vmatmul.mubr.f32.vlgmr.msra.gmra.mrb[0].mxu1 %v49330_v12  ;;  %v16814_v24 = vsub.f32 %v49447_v29, %v16813_v15  ;;  %v16819_v1 = vand.u32 4294901760, %v49465_v38 }
 0x5a4   :  { %42335 = vmatpush1.bf16.xpose.msra.mxu1 %v49345_v56  ;;  %36228 = vmatmul.mubr.f32.vlgmr.msra.gmra.mrb[0].mxu0 %v36227_v44  ;;  %v49467_v44 = vsub.f32 %v430_v28, %v16733_v57  ;;  %v49501_v28 = vpack.c.bf16 %v16733_v57, %v16729_v45 }
 0x5a5   :  { %43287 = vmatpush1.bf16.xpose.msra.mxu0 %v43286_v4  ;;  %16558 = vmatprep.mubr.f32.mxu1 %v16299_v37  ;;  %v49449_v37 = vsub.f32 %v431_v11, %v16731_v33  ;;  %v49469_v4 = vpack.c.bf16 %v16731_v33, %v16727_v46  ;;  %v49486_v11 = vsub.f32 %v1235_v35, %v49463_v13  ;;  %v353_v33 = vld [vmem:[#allocation5 + $0x458] sm:$0xff] }
 0x5a6   :  { %42337 = vmatprep.subr.bf16.mxu1 %v42336_v6  ;;  %36318 = vmatprep.mubr.f32.mxu0 %v49357_v2  ;;  %v16831_v46 = vand.u32 4294901760, %v49467_v44 }
 0x5a7   :  { %43289 = vmatprep.subr.bf16.mxu0 %v43288_v25  ;;  %v16825_v12 = vand.u32 4294901760, %v49449_v37  ;;  %v1952_v25 = vrot.slane %v44686_v3, %v44898_v17  ;;  %v16803_v7 = vand.u32 4294901760, %v49486_v11  ;;  %v352_v3 = vld [vmem:[#allocation5 + $0x450] sm:$0xff] }
 0x5a8   :  { %v16832_v35 = vsub.f32 %v49467_v44, %v16831_v46 }
 0x5a9   :  { %v16826_v63 = vsub.f32 %v49449_v37, %v16825_v12  ;;  %v16804_v45 = vsub.f32 %v49486_v11, %v16803_v7 }
 0x5aa   :  { %v16833_v59 = vand.u32 4294901760, %v16832_v35 }
 0x5ab   :  { %16562 = vmatmul.mubr.f32.vlgmr.msra.gmra.mrb[0].mxu1 %v16305_v8  ;;  %v44685_v8 = vld [vmem:[#allocation2 + $0x114] ss:$316 sps:$4 sm:$0xff]   ;;  %v16827_v36 = vand.u32 4294901760, %v16826_v63 }
 0x5ac   :  { %42339 = vmatpush1.bf16.xpose.msra.mxu1 %v42338_v16  ;;  %36320 = vmatmul.mubr.f32.vlgmr.msra.gmra.mrb[0].mxu0 %v49377_v50  ;;  %v1938_v6 = vrot.slane %v44685_v8, %v44898_v17  ;;  %v511_v16 = vld [vmem:[#allocation5 + $0x948] sm:$0x7f] }
 0x5ad   :  { %43291 = vmatpush1.bf16.xpose.msra.mxu0 %v43290_v48  ;;  %16644 = vmatprep.mubr.f32.mxu1 %v49289_v32  ;;  %v36647_v48 = vand.u32 4294901760, %v353_v33  ;;  %v36651_v9 = vand.u32 4294901760, %v511_v16 }
 0x5ae   :  { %42341 = vmatprep.subr.bf16.mxu1 %v49313_v31  ;;  %36399 = vmatprep.mubr.f32.mxu0 %v49372_v0  ;;  %v16797_v31 = vand.u32 4294901760, %v49456_v62  ;;  %v1956_v14 = vcombine.high %v1938_v6, %v1952_v25  ;;  %v43298_v0 = vpack.c.bf16 %v36253_v51, %v36241_v39  ;;  %v1955_v39 = vcombine.low %v1938_v6, %v1952_v25 }
 0x5af   :  { %43293 = vmatprep.subr.bf16.mxu0 %v49386_v55  ;;  %v49519_v57 = vsub.f32 %v353_v33, %v36647_v48  ;;  %v36649_v51 = vand.u32 4294901760, %v352_v3 }
 0x5b0   :  { %v16798_v47 = vsub.f32 %v49456_v62, %v16797_v31  ;;  %v49513_v63 = vand.u32 4294901760, %v1956_v14 }
 0x5b1   :  { %v49535_v6 = vsub.f32 %v352_v3, %v36649_v51 }
 0x5b2   :  { %v49528_v33 = vsub.f32 %v1956_v14, %v49513_v63 }
 0x5b3   :  { %16646 = vmatmul.mubr.f32.vlgmr.msra.gmra.mrb[0].mxu1 %v49307_v54 }
 0x5b4   :  { %42343 = vmatpush1.bf16.xpose.msra.mxu1 %v49345_v56  ;;  %36402 = vmatmul.mubr.f32.vlgmr.msra.gmra.mrb[0].mxu0 %v49396_v21  ;;  %v16815_v56 = vand.u32 4294901760, %v16814_v24  ;;  %v510_v24 = vld [vmem:[#allocation5 + $0x940] sm:$0x7f]  ;;  %v36717_v14 = vand.u32 4294901760, %v49528_v33 }
 0x5b5   :  { %43295 = vmatpush1.bf16.xpose.msra.mxu0 %v49410_v30  ;;  %16720 = vmatprep.mubr.f32.mxu1 %v49289_v32  ;;  %v16820_v32 = vsub.f32 %v49465_v38, %v16819_v1 }
 0x5b6   :  { %42345 = vmatprep.subr.bf16.mxu1 %v49469_v4  ;;  %36478 = vmatprep.mubr.f32.mxu0 %v36219_v58  ;;  %v16799_v58 = vand.u32 4294901760, %v16798_v47  ;;  %v42348_v8 = vpack.c.bf16 %v16827_v36, %v16815_v56  ;;  %v36733_v47 = vand.u32 4294901760, %v49519_v57  ;;  %v49533_v56 = vand.u32 4294901760, %v1955_v39 }
 0x5b7   :  { %43297 = vmatprep.subr.bf16.mxu0 %v43296_v42  ;;  %v49521_v42 = vsub.f32 %v511_v16, %v36651_v9  ;;  %v16821_v26 = vand.u32 4294901760, %v16820_v32  ;;  %v16805_v16 = vand.u32 4294901760, %v16804_v45  ;;  %v42352_v36 = vpack.c.bf16 %v49449_v37, %v49447_v29 }
 0x5b8   :  { %v49542_v32 = vpack.c.bf16 %v36651_v9, %v36647_v48  ;;  %v36739_v48 = vand.u32 4294901760, %v49535_v6 }
 0x5b9   :  { %v36745_v21 = vand.u32 4294901760, %v49521_v42 }
 0x5bb   :  { %16722 = vmatmul.mubr.f32.vlgmr.msra.gmra.mrb[0].mxu1 %v49307_v54  ;;  %v36653_v54 = vand.u32 4294901760, %v510_v24  ;;  %v36746_v35 = vsub.f32 %v49521_v42, %v36745_v21 }
 0x5bc   :  { %42347 = vmatpush1.bf16.xpose.msra.mxu1 %v49501_v28  ;;  %36482 = vmatmul.mubr.f32.vlgmr.msra.gmra.mrb[0].mxu0 %v36225_v43  ;;  %v42350_v43 = vpack.c.bf16 %v16833_v59, %v16821_v26  ;;  %v36740_v26 = vsub.f32 %v49535_v6, %v36739_v48 }
 0x5bd   :  { %43299 = vmatpush1.bf16.xpose.msra.mxu0 %v43298_v0  ;;  %16800 = vmatprep.mubr.f32.mxu1 %v16799_v58  ;;  %v49537_v25 = vsub.f32 %v510_v24, %v36653_v54  ;;  %v49552_v0 = vsub.f32 %v1955_v39, %v49533_v56  ;;  %v36718_v58 = vsub.f32 %v49528_v33, %v36717_v14  ;;  %v36747_v3 = vand.u32 4294901760, %v36746_v35 }
 0x5be   :  { %42349 = vmatprep.subr.bf16.mxu1 %v42348_v8  ;;  %36564 = vmatprep.mubr.f32.mxu0 %v49357_v2  ;;  %v49566_v45 = vpack.c.bf16 %v36653_v54, %v36649_v51  ;;  %v36741_v54 = vand.u32 4294901760, %v36740_v26  ;;  %v433_v26 = vld [vmem:[#allocation5 + $0x6d8] sm:$0x7f] }
 0x5bf   :  { %43301 = vmatprep.subr.bf16.mxu0 %v49386_v55  ;;  %v36734_v55 = vsub.f32 %v49519_v57, %v36733_v47  ;;  %v36751_v9 = vand.u32 4294901760, %v49537_v25  ;;  %v36723_v24 = vand.u32 4294901760, %v49552_v0  ;;  %v36719_v59 = vand.u32 4294901760, %v36718_v58 }
 0x5c0   :  { %v17229_v37 = vand.u32 4294901760, %v433_v26 }
 0x5c1   :  { %v36735_v8 = vand.u32 4294901760, %v36734_v55  ;;  %v36724_v51 = vsub.f32 %v49552_v0, %v36723_v24 }
 0x5c3   :  { %16806 = vmatmul.mubr.f32.vlgmr.msra.gmra.mrb[0].mxu1 %v16805_v16  ;;  %v43308_v39 = vpack.c.bf16 %v36747_v3, %v36735_v8  ;;  %v36725_v55 = vand.u32 4294901760, %v36724_v51  ;;  %v42360_v8 = vpack.c.bf16 %v16825_v12, %v16813_v15  ;;  %v43312_v3 = vpack.c.bf16 %v49521_v42, %v49519_v57 }
 0x5c4   :  { %42351 = vmatpush1.bf16.xpose.msra.mxu1 %v42350_v43  ;;  %36566 = vmatmul.mubr.f32.vlgmr.msra.gmra.mrb[0].mxu0 %v49377_v50  ;;  %v44687_v43 = vld [vmem:[#allocation2 + $0x78] ss:$316 sps:$4 sm:$0xff]   ;;  %v42362_v15 = vpack.c.bf16 %v16831_v46, %v16819_v1  ;;  %v43314_v12 = vpack.c.bf16 %v49537_v25, %v49535_v6 }
 0x5c5   :  { %43303 = vmatpush1.bf16.xpose.msra.mxu0 %v49410_v30  ;;  %16896 = vmatprep.mubr.f32.mxu1 %v49445_v10  ;;  %v42354_v30 = vpack.c.bf16 %v49467_v44, %v49465_v38 }
 0x5c6   :  { %42353 = vmatprep.subr.bf16.mxu1 %v42352_v36  ;;  %36640 = vmatprep.mubr.f32.mxu0 %v49357_v2  ;;  %v36752_v2 = vsub.f32 %v49537_v25, %v36751_v9  ;;  %v44689_v36 = vld [vmem:[#allocation2 + $0x2f0] ss:$316 sps:$4 sm:$0xff]  }
 0x5c7   :  { %43305 = vmatprep.subr.bf16.mxu0 %v49542_v32  ;;  %v1261_v58 = vrot.slane %v44689_v36, %v44898_v17 }
 0x5c8   :  { %v36753_v16 = vand.u32 4294901760, %v36752_v2 }
 0x5ca   :  { %v43310_v35 = vpack.c.bf16 %v36753_v16, %v36741_v54  ;;  %v44693_v16 = vld [vmem:[#allocation2 + $0x390] ss:$316 sps:$4 sm:$0xff]  }
 0x5cb   :  { %16898 = vmatmul.mubr.f32.vlgmr.msra.gmra.mrb[0].mxu1 %v49463_v13 }
 0x5cc   :  { %42355 = vmatpush1.bf16.xpose.msra.mxu1 %v42354_v30  ;;  %36642 = vmatmul.mubr.f32.vlgmr.msra.gmra.mrb[0].mxu0 %v49377_v50  ;;  %v1247_v50 = vrot.slane %v44687_v43, %v44898_v17  ;;  %v275_v30 = vld [vmem:[#allocation5 + $0x1e8] sm:$0xff] }
 0x5cd   :  { %43307 = vmatpush1.bf16.xpose.msra.mxu0 %v49566_v45  ;;  %16977 = vmatprep.mubr.f32.mxu1 %v49456_v62  ;;  %v17225_v29 = vand.u32 4294901760, %v275_v30 }
 0x5ce   :  { %42357 = vmatprep.subr.bf16.mxu1 %v49469_v4  ;;  %36720 = vmatprep.mubr.f32.mxu0 %v36719_v59  ;;  %v1270_v2 = vcombine.high %v1247_v50, %v1261_v58  ;;  %v274_v59 = vld [vmem:[#allocation5 + $0x1e0] sm:$0xff]  ;;  %v1269_v54 = vcombine.low %v1247_v50, %v1261_v58 }
 0x5cf   :  { %43309 = vmatprep.subr.bf16.mxu0 %v43308_v39  ;;  %v432_v39 = vld [vmem:[#allocation5 + $0x6d0] sm:$0x7f]  ;;  %v49603_v62 = vsub.f32 %v275_v30, %v17225_v29  ;;  %v17227_v38 = vand.u32 4294901760, %v274_v59  ;;  %v43320_v30 = vpack.c.bf16 %v36745_v21, %v36733_v47 }
 0x5d0   :  { %v49601_v51 = vand.u32 4294901760, %v1270_v2  ;;  %v17231_v44 = vand.u32 4294901760, %v432_v39  ;;  %v49619_v43 = vand.u32 4294901760, %v1269_v54 }
 0x5d1   :  { %v17311_v46 = vand.u32 4294901760, %v49603_v62  ;;  %v49621_v36 = vsub.f32 %v274_v59, %v17227_v38 }
 0x5d2   :  { %v49612_v1 = vsub.f32 %v1270_v2, %v49601_v51 }
 0x5d3   :  { %16980 = vmatmul.mubr.f32.vlgmr.msra.gmra.mrb[0].mxu1 %v49486_v11  ;;  %v17312_v50 = vsub.f32 %v49603_v62, %v17311_v46  ;;  %v17317_v2 = vand.u32 4294901760, %v49621_v36 }
 0x5d4   :  { %42359 = vmatpush1.bf16.xpose.msra.mxu1 %v49501_v28  ;;  %36726 = vmatmul.mubr.f32.vlgmr.msra.gmra.mrb[0].mxu0 %v36725_v55  ;;  %v49623_v55 = vsub.f32 %v432_v39, %v17231_v44  ;;  %v49657_v39 = vpack.c.bf16 %v17231_v44, %v17227_v38 }
 0x5d5   :  { %43311 = vmatpush1.bf16.xpose.msra.mxu0 %v43310_v35  ;;  %17056 = vmatprep.mubr.f32.mxu1 %v16797_v31  ;;  %v49605_v31 = vsub.f32 %v433_v26, %v17229_v37  ;;  %v49625_v35 = vpack.c.bf16 %v17229_v37, %v17225_v29  ;;  %v49642_v26 = vsub.f32 %v1269_v54, %v49619_v43  ;;  %v355_v37 = vld [vmem:[#allocation5 + $0x468] sm:$0xff] }
 0x5d6   :  { %42361 = vmatprep.subr.bf16.mxu1 %v42360_v8  ;;  %36816 = vmatprep.mubr.f32.mxu0 %v49513_v63  ;;  %v17329_v29 = vand.u32 4294901760, %v49623_v55 }
 0x5d7   :  { %43313 = vmatprep.subr.bf16.mxu0 %v43312_v3  ;;  %v17323_v11 = vand.u32 4294901760, %v49605_v31  ;;  %v1981_v3 = vrot.slane %v44693_v16, %v44898_v17  ;;  %v17301_v21 = vand.u32 4294901760, %v49642_v26  ;;  %v354_v16 = vld [vmem:[#allocation5 + $0x460] sm:$0xff] }
 0x5d8   :  { %v17330_v54 = vsub.f32 %v49623_v55, %v17329_v29 }
 0x5d9   :  { %v17324_v58 = vsub.f32 %v49605_v31, %v17323_v11  ;;  %v17302_v38 = vsub.f32 %v49642_v26, %v17301_v21 }
 0x5da   :  { %v17331_v25 = vand.u32 4294901760, %v17330_v54 }
 0x5db   :  { %17060 = vmatmul.mubr.f32.vlgmr.msra.gmra.mrb[0].mxu1 %v16803_v7  ;;  %v44691_v7 = vld [vmem:[#allocation2 + $0x118] ss:$316 sps:$4 sm:$0xff]   ;;  %v17325_v42 = vand.u32 4294901760, %v17324_v58 }
 0x5dc   :  { %42363 = vmatpush1.bf16.xpose.msra.mxu1 %v42362_v15  ;;  %36818 = vmatmul.mubr.f32.vlgmr.msra.gmra.mrb[0].mxu0 %v49533_v56  ;;  %v1967_v8 = vrot.slane %v44691_v7, %v44898_v17  ;;  %v513_v15 = vld [vmem:[#allocation5 + $0x958] sm:$0x7f] }
 0x5dd   :  { %43315 = vmatpush1.bf16.xpose.msra.mxu0 %v43314_v12  ;;  %17142 = vmatprep.mubr.f32.mxu1 %v49445_v10  ;;  %v37145_v12 = vand.u32 4294901760, %v355_v37  ;;  %v37149_v59 = vand.u32 4294901760, %v513_v15 }
 0x5de   :  { %42365 = vmatprep.subr.bf16.mxu1 %v49469_v4  ;;  %36897 = vmatprep.mubr.f32.mxu0 %v49528_v33  ;;  %v17295_v4 = vand.u32 4294901760, %v49612_v1  ;;  %v1990_v47 = vcombine.high %v1967_v8, %v1981_v3  ;;  %v43322_v33 = vpack.c.bf16 %v36751_v9, %v36739_v48  ;;  %v1989_v48 = vcombine.low %v1967_v8, %v1981_v3 }
 0x5df   :  { %43317 = vmatprep.subr.bf16.mxu0 %v49542_v32  ;;  %v49675_v44 = vsub.f32 %v355_v37, %v37145_v12  ;;  %v37147_v9 = vand.u32 4294901760, %v354_v16 }
 0x5e0   :  { %v17296_v57 = vsub.f32 %v49612_v1, %v17295_v4  ;;  %v49669_v58 = vand.u32 4294901760, %v1990_v47 }
 0x5e1   :  { %v49691_v8 = vsub.f32 %v354_v16, %v37147_v9 }
 0x5e2   :  { %v49684_v37 = vsub.f32 %v1990_v47, %v49669_v58 }
 0x5e3   :  { %17144 = vmatmul.mubr.f32.vlgmr.msra.gmra.mrb[0].mxu1 %v49463_v13 }
 0x5e4   :  { %42367 = vmatpush1.bf16.xpose.msra.mxu1 %v49501_v28  ;;  %36900 = vmatmul.mubr.f32.vlgmr.msra.gmra.mrb[0].mxu0 %v49552_v0  ;;  %v17313_v28 = vand.u32 4294901760, %v17312_v50  ;;  %v512_v50 = vld [vmem:[#allocation5 + $0x950] sm:$0x7f]  ;;  %v37215_v47 = vand.u32 4294901760, %v49684_v37 }
 0x5e5   :  { %43319 = vmatpush1.bf16.xpose.msra.mxu0 %v49566_v45  ;;  %17218 = vmatprep.mubr.f32.mxu1 %v49445_v10  ;;  %v17318_v10 = vsub.f32 %v49621_v36, %v17317_v2 }
 0x5e6   :  { %42369 = vmatprep.subr.bf16.mxu1 %v49625_v35  ;;  %36976 = vmatprep.mubr.f32.mxu0 %v36717_v14  ;;  %v17297_v14 = vand.u32 4294901760, %v17296_v57  ;;  %v42372_v7 = vpack.c.bf16 %v17325_v42, %v17313_v28  ;;  %v37231_v57 = vand.u32 4294901760, %v49675_v44  ;;  %v49689_v28 = vand.u32 4294901760, %v1989_v48 }
 0x5e7   :  { %43321 = vmatprep.subr.bf16.mxu0 %v43320_v30  ;;  %v49677_v30 = vsub.f32 %v513_v15, %v37149_v59  ;;  %v17319_v6 = vand.u32 4294901760, %v17318_v10  ;;  %v17303_v15 = vand.u32 4294901760, %v17302_v38  ;;  %v42376_v42 = vpack.c.bf16 %v49605_v31, %v49603_v62 }
 0x5e8   :  { %v49698_v10 = vpack.c.bf16 %v37149_v59, %v37145_v12  ;;  %v37237_v12 = vand.u32 4294901760, %v49691_v8 }
 0x5e9   :  { %v37243_v0 = vand.u32 4294901760, %v49677_v30 }
 0x5eb   :  { %17220 = vmatmul.mubr.f32.vlgmr.msra.gmra.mrb[0].mxu1 %v49463_v13  ;;  %v37151_v13 = vand.u32 4294901760, %v512_v50  ;;  %v37244_v54 = vsub.f32 %v49677_v30, %v37243_v0 }
 0x5ec   :  { %42371 = vmatpush1.bf16.xpose.msra.mxu1 %v49657_v39  ;;  %36980 = vmatmul.mubr.f32.vlgmr.msra.gmra.mrb[0].mxu0 %v36723_v24  ;;  %v42374_v24 = vpack.c.bf16 %v17331_v25, %v17319_v6  ;;  %v37238_v6 = vsub.f32 %v49691_v8, %v37237_v12 }
 0x5ed   :  { %43323 = vmatpush1.bf16.xpose.msra.mxu0 %v43322_v33  ;;  %17298 = vmatprep.mubr.f32.mxu1 %v17297_v14  ;;  %v49693_v3 = vsub.f32 %v512_v50, %v37151_v13  ;;  %v49708_v33 = vsub.f32 %v1989_v48, %v49689_v28  ;;  %v37216_v14 = vsub.f32 %v49684_v37, %v37215_v47  ;;  %v37245_v16 = vand.u32 4294901760, %v37244_v54 }
 0x5ee   :  { %42373 = vmatprep.subr.bf16.mxu1 %v42372_v7  ;;  %37062 = vmatprep.mubr.f32.mxu0 %v49513_v63  ;;  %v49722_v38 = vpack.c.bf16 %v37151_v13, %v37147_v9  ;;  %v37239_v13 = vand.u32 4294901760, %v37238_v6  ;;  %v435_v6 = vld [vmem:[#allocation5 + $0x6e8] sm:$0x7f] }
 0x5ef   :  { %43325 = vmatprep.subr.bf16.mxu0 %v49542_v32  ;;  %v37232_v32 = vsub.f32 %v49675_v44, %v37231_v57  ;;  %v37249_v59 = vand.u32 4294901760, %v49693_v3  ;;  %v37221_v50 = vand.u32 4294901760, %v49708_v33  ;;  %v37217_v25 = vand.u32 4294901760, %v37216_v14 }
 0x5f0   :  { %v17727_v31 = vand.u32 4294901760, %v435_v6 }
 0x5f1   :  { %v37233_v7 = vand.u32 4294901760, %v37232_v32  ;;  %v37222_v9 = vsub.f32 %v49708_v33, %v37221_v50 }
 0x5f3   :  { %17304 = vmatmul.mubr.f32.vlgmr.msra.gmra.mrb[0].mxu1 %v17303_v15  ;;  %v43332_v48 = vpack.c.bf16 %v37245_v16, %v37233_v7  ;;  %v37223_v32 = vand.u32 4294901760, %v37222_v9  ;;  %v42384_v7 = vpack.c.bf16 %v17323_v11, %v17311_v46  ;;  %v43336_v16 = vpack.c.bf16 %v49677_v30, %v49675_v44 }
 0x5f4   :  { %42375 = vmatpush1.bf16.xpose.msra.mxu1 %v42374_v24  ;;  %37064 = vmatmul.mubr.f32.vlgmr.msra.gmra.mrb[0].mxu0 %v49533_v56  ;;  %v44695_v24 = vld [vmem:[#allocation2 + $0x7c] ss:$316 sps:$4 sm:$0xff]   ;;  %v42386_v46 = vpack.c.bf16 %v17329_v29, %v17317_v2  ;;  %v43338_v11 = vpack.c.bf16 %v49693_v3, %v49691_v8 }
 0x5f5   :  { %43327 = vmatpush1.bf16.xpose.msra.mxu0 %v49566_v45  ;;  %17394 = vmatprep.mubr.f32.mxu1 %v49601_v51  ;;  %v42378_v45 = vpack.c.bf16 %v49623_v55, %v49621_v36 }
 0x5f6   :  { %42377 = vmatprep.subr.bf16.mxu1 %v42376_v42  ;;  %37138 = vmatprep.mubr.f32.mxu0 %v49513_v63  ;;  %v37250_v63 = vsub.f32 %v49693_v3, %v37249_v59  ;;  %v44696_v42 = vld [vmem:[#allocation2 + $0x2f4] ss:$316 sps:$4 sm:$0xff]  }
 0x5f7   :  { %43329 = vmatprep.subr.bf16.mxu0 %v49698_v10  ;;  %v1268_v14 = vrot.slane %v44696_v42, %v44898_v17 }
 0x5f8   :  { %v37251_v15 = vand.u32 4294901760, %v37250_v63 }
 0x5fa   :  { %v43334_v54 = vpack.c.bf16 %v37251_v15, %v37239_v13  ;;  %v44698_v15 = vld [vmem:[#allocation2 + $0x394] ss:$316 sps:$4 sm:$0xff]  }
 0x5fb   :  { %17396 = vmatmul.mubr.f32.vlgmr.msra.gmra.mrb[0].mxu1 %v49619_v43 }
 0x5fc   :  { %42379 = vmatpush1.bf16.xpose.msra.mxu1 %v42378_v45  ;;  %37140 = vmatmul.mubr.f32.vlgmr.msra.gmra.mrb[0].mxu0 %v49533_v56  ;;  %v1254_v56 = vrot.slane %v44695_v24, %v44898_v17  ;;  %v277_v45 = vld [vmem:[#allocation5 + $0x1f8] sm:$0xff] }
 0x5fd   :  { %43331 = vmatpush1.bf16.xpose.msra.mxu0 %v49722_v38  ;;  %17475 = vmatprep.mubr.f32.mxu1 %v49612_v1  ;;  %v17723_v62 = vand.u32 4294901760, %v277_v45 }
 0x5fe   :  { %42381 = vmatprep.subr.bf16.mxu1 %v49625_v35  ;;  %37218 = vmatprep.mubr.f32.mxu0 %v37217_v25  ;;  %v1272_v63 = vcombine.high %v1254_v56, %v1268_v14  ;;  %v276_v25 = vld [vmem:[#allocation5 + $0x1f0] sm:$0xff]  ;;  %v1271_v13 = vcombine.low %v1254_v56, %v1268_v14 }
 0x5ff   :  { %43333 = vmatprep.subr.bf16.mxu0 %v43332_v48  ;;  %v434_v48 = vld [vmem:[#allocation5 + $0x6e0] sm:$0x7f]  ;;  %v49759_v1 = vsub.f32 %v277_v45, %v17723_v62  ;;  %v17725_v36 = vand.u32 4294901760, %v276_v25  ;;  %v43344_v45 = vpack.c.bf16 %v37243_v0, %v37231_v57 }
 0x600   :  { %v49757_v9 = vand.u32 4294901760, %v1272_v63  ;;  %v17729_v55 = vand.u32 4294901760, %v434_v48  ;;  %v49775_v24 = vand.u32 4294901760, %v1271_v13 }
 0x601   :  { %v17809_v29 = vand.u32 4294901760, %v49759_v1  ;;  %v49777_v42 = vsub.f32 %v276_v25, %v17725_v36 }
 0x602   :  { %v49768_v2 = vsub.f32 %v1272_v63, %v49757_v9 }
 0x603   :  { %17478 = vmatmul.mubr.f32.vlgmr.msra.gmra.mrb[0].mxu1 %v49642_v26  ;;  %v17810_v56 = vsub.f32 %v49759_v1, %v17809_v29  ;;  %v17815_v63 = vand.u32 4294901760, %v49777_v42 }
 0x604   :  { %42383 = vmatpush1.bf16.xpose.msra.mxu1 %v49657_v39  ;;  %37224 = vmatmul.mubr.f32.vlgmr.msra.gmra.mrb[0].mxu0 %v37223_v32  ;;  %v49779_v32 = vsub.f32 %v434_v48, %v17729_v55  ;;  %v49813_v48 = vpack.c.bf16 %v17729_v55, %v17725_v36 }
 0x605   :  { %43335 = vmatpush1.bf16.xpose.msra.mxu0 %v43334_v54  ;;  %17554 = vmatprep.mubr.f32.mxu1 %v17295_v4  ;;  %v49761_v4 = vsub.f32 %v435_v6, %v17727_v31  ;;  %v49781_v54 = vpack.c.bf16 %v17727_v31, %v17723_v62  ;;  %v49798_v6 = vsub.f32 %v1271_v13, %v49775_v24  ;;  %v357_v31 = vld [vmem:[#allocation5 + $0x478] sm:$0xff] }
 0x606   :  { %42385 = vmatprep.subr.bf16.mxu1 %v42384_v7  ;;  %37314 = vmatprep.mubr.f32.mxu0 %v49669_v58  ;;  %v17827_v62 = vand.u32 4294901760, %v49779_v32 }
 0x607   :  { %43337 = vmatprep.subr.bf16.mxu0 %v43336_v16  ;;  %v17821_v26 = vand.u32 4294901760, %v49761_v4  ;;  %v1988_v16 = vrot.slane %v44698_v15, %v44898_v17  ;;  %v17799_v0 = vand.u32 4294901760, %v49798_v6  ;;  %v356_v15 = vld [vmem:[#allocation5 + $0x470] sm:$0xff] }
 0x608   :  { %v17828_v13 = vsub.f32 %v49779_v32, %v17827_v62 }
 0x609   :  { %v17822_v14 = vsub.f32 %v49761_v4, %v17821_v26  ;;  %v17800_v36 = vsub.f32 %v49798_v6, %v17799_v0 }
 0x60a   :  { %v17829_v3 = vand.u32 4294901760, %v17828_v13 }
 0x60b   :  { %17558 = vmatmul.mubr.f32.vlgmr.msra.gmra.mrb[0].mxu1 %v17301_v21  ;;  %v44697_v21 = vld [vmem:[#allocation2 + $0x11c] ss:$316 sps:$4 sm:$0xff]   ;;  %v17823_v30 = vand.u32 4294901760, %v17822_v14 }
 0x60c   :  { %42387 = vmatpush1.bf16.xpose.msra.mxu1 %v42386_v46  ;;  %37316 = vmatmul.mubr.f32.vlgmr.msra.gmra.mrb[0].mxu0 %v49689_v28  ;;  %v1974_v7 = vrot.slane %v44697_v21, %v44898_v17  ;;  %v515_v46 = vld [vmem:[#allocation5 + $0x968] sm:$0x7f] }
 0x60d   :  { %43339 = vmatpush1.bf16.xpose.msra.mxu0 %v43338_v11  ;;  %17640 = vmatprep.mubr.f32.mxu1 %v49601_v51  ;;  %v37643_v11 = vand.u32 4294901760, %v357_v31  ;;  %v37647_v25 = vand.u32 4294901760, %v515_v46 }
 0x60e   :  { %42389 = vmatprep.subr.bf16.mxu1 %v49625_v35  ;;  %37395 = vmatprep.mubr.f32.mxu0 %v49684_v37  ;;  %v17793_v35 = vand.u32 4294901760, %v49768_v2  ;;  %v1992_v57 = vcombine.high %v1974_v7, %v1988_v16  ;;  %v43346_v37 = vpack.c.bf16 %v37249_v59, %v37237_v12  ;;  %v1991_v12 = vcombine.low %v1974_v7, %v1988_v16 }
 0x60f   :  { %43341 = vmatprep.subr.bf16.mxu0 %v49698_v10  ;;  %v49831_v55 = vsub.f32 %v357_v31, %v37643_v11  ;;  %v37645_v59 = vand.u32 4294901760, %v356_v15 }
 0x610   :  { %v17794_v44 = vsub.f32 %v49768_v2, %v17793_v35  ;;  %v49825_v14 = vand.u32 4294901760, %v1992_v57 }
 0x611   :  { %v49847_v7 = vsub.f32 %v356_v15, %v37645_v59 }
 0x612   :  { %v49840_v31 = vsub.f32 %v1992_v57, %v49825_v14 }
 0x613   :  { %17642 = vmatmul.mubr.f32.vlgmr.msra.gmra.mrb[0].mxu1 %v49619_v43 }
 0x614   :  { %42391 = vmatpush1.bf16.xpose.msra.mxu1 %v49657_v39  ;;  %37398 = vmatmul.mubr.f32.vlgmr.msra.gmra.mrb[0].mxu0 %v49708_v33  ;;  %v17811_v39 = vand.u32 4294901760, %v17810_v56  ;;  %v514_v56 = vld [vmem:[#allocation5 + $0x960] sm:$0x7f]  ;;  %v37713_v57 = vand.u32 4294901760, %v49840_v31 }
 0x615   :  { %43343 = vmatpush1.bf16.xpose.msra.mxu0 %v49722_v38  ;;  %17716 = vmatprep.mubr.f32.mxu1 %v49601_v51  ;;  %v17816_v51 = vsub.f32 %v49777_v42, %v17815_v63 }
 0x616   :  { %42393 = vmatprep.subr.bf16.mxu1 %v49781_v54  ;;  %37474 = vmatprep.mubr.f32.mxu0 %v37215_v47  ;;  %v17795_v47 = vand.u32 4294901760, %v17794_v44  ;;  %v42396_v21 = vpack.c.bf16 %v17823_v30, %v17811_v39  ;;  %v37729_v44 = vand.u32 4294901760, %v49831_v55  ;;  %v49845_v39 = vand.u32 4294901760, %v1991_v12 }
 0x617   :  { %43345 = vmatprep.subr.bf16.mxu0 %v43344_v45  ;;  %v49833_v45 = vsub.f32 %v515_v46, %v37647_v25  ;;  %v17817_v8 = vand.u32 4294901760, %v17816_v51  ;;  %v17801_v46 = vand.u32 4294901760, %v17800_v36  ;;  %v42400_v30 = vpack.c.bf16 %v49761_v4, %v49759_v1 }
 0x618   :  { %v49854_v51 = vpack.c.bf16 %v37647_v25, %v37643_v11  ;;  %v37735_v11 = vand.u32 4294901760, %v49847_v7 }
 0x619   :  { %v37741_v33 = vand.u32 4294901760, %v49833_v45 }
 0x61b   :  { %17718 = vmatmul.mubr.f32.vlgmr.msra.gmra.mrb[0].mxu1 %v49619_v43  ;;  %v37649_v43 = vand.u32 4294901760, %v514_v56  ;;  %v37742_v13 = vsub.f32 %v49833_v45, %v37741_v33 }
 0x61c   :  { %42395 = vmatpush1.bf16.xpose.msra.mxu1 %v49813_v48  ;;  %37478 = vmatmul.mubr.f32.vlgmr.msra.gmra.mrb[0].mxu0 %v37221_v50  ;;  %v42398_v50 = vpack.c.bf16 %v17829_v3, %v17817_v8  ;;  %v37736_v8 = vsub.f32 %v49847_v7, %v37735_v11 }
 0x61d   :  { %43347 = vmatpush1.bf16.xpose.msra.mxu0 %v43346_v37  ;;  %17796 = vmatprep.mubr.f32.mxu1 %v17795_v47  ;;  %v49849_v16 = vsub.f32 %v514_v56, %v37649_v43  ;;  %v49864_v37 = vsub.f32 %v1991_v12, %v49845_v39  ;;  %v37714_v47 = vsub.f32 %v49840_v31, %v37713_v57  ;;  %v37743_v15 = vand.u32 4294901760, %v37742_v13 }
 0x61e   :  { %42397 = vmatprep.subr.bf16.mxu1 %v42396_v21  ;;  %37560 = vmatprep.mubr.f32.mxu0 %v49669_v58  ;;  %v49878_v36 = vpack.c.bf16 %v37649_v43, %v37645_v59  ;;  %v37737_v43 = vand.u32 4294901760, %v37736_v8  ;;  %v437_v8 = vld [vmem:[#allocation5 + $0x6f8] sm:$0x7f] }
 0x61f   :  { %43349 = vmatprep.subr.bf16.mxu0 %v49698_v10  ;;  %v37730_v10 = vsub.f32 %v49831_v55, %v37729_v44  ;;  %v37747_v25 = vand.u32 4294901760, %v49849_v16  ;;  %v37719_v56 = vand.u32 4294901760, %v49864_v37  ;;  %v37715_v3 = vand.u32 4294901760, %v37714_v47 }
 0x620   :  { %v18225_v4 = vand.u32 4294901760, %v437_v8 }
 0x621   :  { %v37731_v21 = vand.u32 4294901760, %v37730_v10  ;;  %v37720_v59 = vsub.f32 %v49864_v37, %v37719_v56 }
 0x623   :  { %17802 = vmatmul.mubr.f32.vlgmr.msra.gmra.mrb[0].mxu1 %v17801_v46  ;;  %v43356_v12 = vpack.c.bf16 %v37743_v15, %v37731_v21  ;;  %v37721_v10 = vand.u32 4294901760, %v37720_v59  ;;  %v42408_v21 = vpack.c.bf16 %v17821_v26, %v17809_v29  ;;  %v43360_v15 = vpack.c.bf16 %v49833_v45, %v49831_v55 }
 0x624   :  { %42399 = vmatpush1.bf16.xpose.msra.mxu1 %v42398_v50  ;;  %37562 = vmatmul.mubr.f32.vlgmr.msra.gmra.mrb[0].mxu0 %v49689_v28  ;;  %v44699_v50 = vld [vmem:[#allocation2 + $0x80] ss:$316 sps:$4 sm:$0xff]   ;;  %v42410_v29 = vpack.c.bf16 %v17827_v62, %v17815_v63  ;;  %v43362_v26 = vpack.c.bf16 %v49849_v16, %v49847_v7 }
 0x625   :  { %43351 = vmatpush1.bf16.xpose.msra.mxu0 %v49722_v38  ;;  %17892 = vmatprep.mubr.f32.mxu1 %v49757_v9  ;;  %v42402_v38 = vpack.c.bf16 %v49779_v32, %v49777_v42 }
 0x626   :  { %42401 = vmatprep.subr.bf16.mxu1 %v42400_v30  ;;  %37636 = vmatprep.mubr.f32.mxu0 %v49669_v58  ;;  %v37748_v58 = vsub.f32 %v49849_v16, %v37747_v25  ;;  %v44701_v30 = vld [vmem:[#allocation2 + $0x2f8] ss:$316 sps:$4 sm:$0xff]  }
 0x627   :  { %43353 = vmatprep.subr.bf16.mxu0 %v49854_v51  ;;  %v1297_v47 = vrot.slane %v44701_v30, %v44898_v17 }
 0x628   :  { %v37749_v46 = vand.u32 4294901760, %v37748_v58 }
 0x62a   :  { %v43358_v13 = vpack.c.bf16 %v37749_v46, %v37737_v43  ;;  %v44705_v46 = vld [vmem:[#allocation2 + $0x398] ss:$316 sps:$4 sm:$0xff]  }
 0x62b   :  { %17894 = vmatmul.mubr.f32.vlgmr.msra.gmra.mrb[0].mxu1 %v49775_v24 }
 0x62c   :  { %42403 = vmatpush1.bf16.xpose.msra.mxu1 %v42402_v38  ;;  %37638 = vmatmul.mubr.f32.vlgmr.msra.gmra.mrb[0].mxu0 %v49689_v28  ;;  %v1283_v28 = vrot.slane %v44699_v50, %v44898_v17  ;;  %v279_v38 = vld [vmem:[#allocation5 + $0x208] sm:$0xff] }
 0x62d   :  { %43355 = vmatpush1.bf16.xpose.msra.mxu0 %v49878_v36  ;;  %17973 = vmatprep.mubr.f32.mxu1 %v49768_v2  ;;  %v18221_v1 = vand.u32 4294901760, %v279_v38 }
 0x62e   :  { %42405 = vmatprep.subr.bf16.mxu1 %v49781_v54  ;;  %37716 = vmatprep.mubr.f32.mxu0 %v37715_v3  ;;  %v1306_v58 = vcombine.high %v1283_v28, %v1297_v47  ;;  %v278_v3 = vld [vmem:[#allocation5 + $0x200] sm:$0xff]  ;;  %v1305_v43 = vcombine.low %v1283_v28, %v1297_v47 }
 0x62f   :  { %43357 = vmatprep.subr.bf16.mxu0 %v43356_v12  ;;  %v436_v12 = vld [vmem:[#allocation5 + $0x6f0] sm:$0x7f]  ;;  %v49915_v2 = vsub.f32 %v279_v38, %v18221_v1  ;;  %v18223_v42 = vand.u32 4294901760, %v278_v3  ;;  %v43368_v38 = vpack.c.bf16 %v37741_v33, %v37729_v44 }
 0x630   :  { %v49913_v59 = vand.u32 4294901760, %v1306_v58  ;;  %v18227_v32 = vand.u32 4294901760, %v436_v12  ;;  %v49931_v50 = vand.u32 4294901760, %v1305_v43 }
 0x631   :  { %v18307_v62 = vand.u32 4294901760, %v49915_v2  ;;  %v49933_v30 = vsub.f32 %v278_v3, %v18223_v42 }
 0x632   :  { %v49924_v63 = vsub.f32 %v1306_v58, %v49913_v59 }
 0x633   :  { %17976 = vmatmul.mubr.f32.vlgmr.msra.gmra.mrb[0].mxu1 %v49798_v6  ;;  %v18308_v28 = vsub.f32 %v49915_v2, %v18307_v62  ;;  %v18313_v58 = vand.u32 4294901760, %v49933_v30 }
 0x634   :  { %42407 = vmatpush1.bf16.xpose.msra.mxu1 %v49813_v48  ;;  %37722 = vmatmul.mubr.f32.vlgmr.msra.gmra.mrb[0].mxu0 %v37721_v10  ;;  %v49935_v10 = vsub.f32 %v436_v12, %v18227_v32  ;;  %v49969_v12 = vpack.c.bf16 %v18227_v32, %v18223_v42 }
 0x635   :  { %43359 = vmatpush1.bf16.xpose.msra.mxu0 %v43358_v13  ;;  %18052 = vmatprep.mubr.f32.mxu1 %v17793_v35  ;;  %v49917_v35 = vsub.f32 %v437_v8, %v18225_v4  ;;  %v49937_v13 = vpack.c.bf16 %v18225_v4, %v18221_v1  ;;  %v49954_v8 = vsub.f32 %v1305_v43, %v49931_v50  ;;  %v359_v4 = vld [vmem:[#allocation5 + $0x488] sm:$0xff] }
 0x636   :  { %42409 = vmatprep.subr.bf16.mxu1 %v42408_v21  ;;  %37812 = vmatprep.mubr.f32.mxu0 %v49825_v14  ;;  %v18325_v1 = vand.u32 4294901760, %v49935_v10 }
 0x637   :  { %43361 = vmatprep.subr.bf16.mxu0 %v43360_v15  ;;  %v18319_v6 = vand.u32 4294901760, %v49917_v35  ;;  %v2017_v15 = vrot.slane %v44705_v46, %v44898_v17  ;;  %v18297_v33 = vand.u32 4294901760, %v49954_v8  ;;  %v358_v46 = vld [vmem:[#allocation5 + $0x480] sm:$0xff] }
 0x638   :  { %v18326_v43 = vsub.f32 %v49935_v10, %v18325_v1 }
 0x639   :  { %v18320_v47 = vsub.f32 %v49917_v35, %v18319_v6  ;;  %v18298_v42 = vsub.f32 %v49954_v8, %v18297_v33 }
 0x63a   :  { %v18327_v16 = vand.u32 4294901760, %v18326_v43 }
 0x63b   :  { %18056 = vmatmul.mubr.f32.vlgmr.msra.gmra.mrb[0].mxu1 %v17799_v0  ;;  %v44703_v0 = vld [vmem:[#allocation2 + $0x120] ss:$316 sps:$4 sm:$0xff]   ;;  %v18321_v45 = vand.u32 4294901760, %v18320_v47 }
 0x63c   :  { %42411 = vmatpush1.bf16.xpose.msra.mxu1 %v42410_v29  ;;  %37814 = vmatmul.mubr.f32.vlgmr.msra.gmra.mrb[0].mxu0 %v49845_v39  ;;  %v2003_v21 = vrot.slane %v44703_v0, %v44898_v17  ;;  %v517_v29 = vld [vmem:[#allocation5 + $0x978] sm:$0x7f] }
 0x63d   :  { %43363 = vmatpush1.bf16.xpose.msra.mxu0 %v43362_v26  ;;  %18138 = vmatprep.mubr.f32.mxu1 %v49757_v9  ;;  %v38141_v26 = vand.u32 4294901760, %v359_v4  ;;  %v38145_v3 = vand.u32 4294901760, %v517_v29 }
 0x63e   :  { %42413 = vmatprep.subr.bf16.mxu1 %v49781_v54  ;;  %37893 = vmatprep.mubr.f32.mxu0 %v49840_v31  ;;  %v18291_v54 = vand.u32 4294901760, %v49924_v63  ;;  %v2026_v44 = vcombine.high %v2003_v21, %v2017_v15  ;;  %v43370_v31 = vpack.c.bf16 %v37747_v25, %v37735_v11  ;;  %v2025_v11 = vcombine.low %v2003_v21, %v2017_v15 }
 0x63f   :  { %43365 = vmatprep.subr.bf16.mxu0 %v49854_v51  ;;  %v49987_v32 = vsub.f32 %v359_v4, %v38141_v26  ;;  %v38143_v25 = vand.u32 4294901760, %v358_v46 }
 0x640   :  { %v18292_v55 = vsub.f32 %v49924_v63, %v18291_v54  ;;  %v49981_v47 = vand.u32 4294901760, %v2026_v44 }
 0x641   :  { %v50003_v21 = vsub.f32 %v358_v46, %v38143_v25 }
 0x642   :  { %v49996_v4 = vsub.f32 %v2026_v44, %v49981_v47 }
 0x643   :  { %18140 = vmatmul.mubr.f32.vlgmr.msra.gmra.mrb[0].mxu1 %v49775_v24 }
 0x644   :  { %42415 = vmatpush1.bf16.xpose.msra.mxu1 %v49813_v48  ;;  %37896 = vmatmul.mubr.f32.vlgmr.msra.gmra.mrb[0].mxu0 %v49864_v37  ;;  %v18309_v48 = vand.u32 4294901760, %v18308_v28  ;;  %v516_v28 = vld [vmem:[#allocation5 + $0x970] sm:$0x7f]  ;;  %v38211_v44 = vand.u32 4294901760, %v49996_v4 }
 0x645   :  { %43367 = vmatpush1.bf16.xpose.msra.mxu0 %v49878_v36  ;;  %18214 = vmatprep.mubr.f32.mxu1 %v49757_v9  ;;  %v18314_v9 = vsub.f32 %v49933_v30, %v18313_v58 }
 0x646   :  { %42417 = vmatprep.subr.bf16.mxu1 %v49937_v13  ;;  %37972 = vmatprep.mubr.f32.mxu0 %v37713_v57  ;;  %v18293_v57 = vand.u32 4294901760, %v18292_v55  ;;  %v42420_v0 = vpack.c.bf16 %v18321_v45, %v18309_v48  ;;  %v38227_v55 = vand.u32 4294901760, %v49987_v32  ;;  %v50001_v48 = vand.u32 4294901760, %v2025_v11 }
 0x647   :  { %43369 = vmatprep.subr.bf16.mxu0 %v43368_v38  ;;  %v49989_v38 = vsub.f32 %v517_v29, %v38145_v3  ;;  %v18315_v7 = vand.u32 4294901760, %v18314_v9  ;;  %v18299_v29 = vand.u32 4294901760, %v18298_v42  ;;  %v42424_v45 = vpack.c.bf16 %v49917_v35, %v49915_v2 }
 0x648   :  { %v50010_v9 = vpack.c.bf16 %v38145_v3, %v38141_v26  ;;  %v38233_v26 = vand.u32 4294901760, %v50003_v21 }
 0x649   :  { %v38239_v37 = vand.u32 4294901760, %v49989_v38 }
 0x64b   :  { %18216 = vmatmul.mubr.f32.vlgmr.msra.gmra.mrb[0].mxu1 %v49775_v24  ;;  %v38147_v24 = vand.u32 4294901760, %v516_v28  ;;  %v38240_v43 = vsub.f32 %v49989_v38, %v38239_v37 }
 0x64c   :  { %42419 = vmatpush1.bf16.xpose.msra.mxu1 %v49969_v12  ;;  %37976 = vmatmul.mubr.f32.vlgmr.msra.gmra.mrb[0].mxu0 %v37719_v56  ;;  %v42422_v56 = vpack.c.bf16 %v18327_v16, %v18315_v7  ;;  %v38234_v7 = vsub.f32 %v50003_v21, %v38233_v26 }
 0x64d   :  { %43371 = vmatpush1.bf16.xpose.msra.mxu0 %v43370_v31  ;;  %18294 = vmatprep.mubr.f32.mxu1 %v18293_v57  ;;  %v50005_v15 = vsub.f32 %v516_v28, %v38147_v24  ;;  %v50020_v31 = vsub.f32 %v2025_v11, %v50001_v48  ;;  %v38212_v57 = vsub.f32 %v49996_v4, %v38211_v44  ;;  %v38241_v46 = vand.u32 4294901760, %v38240_v43 }
 0x64e   :  { %42421 = vmatprep.subr.bf16.mxu1 %v42420_v0  ;;  %38058 = vmatprep.mubr.f32.mxu0 %v49825_v14  ;;  %v50034_v42 = vpack.c.bf16 %v38147_v24, %v38143_v25  ;;  %v38235_v24 = vand.u32 4294901760, %v38234_v7  ;;  %v439_v7 = vld [vmem:[#allocation5 + $0x708] sm:$0x7f] }
 0x64f   :  { %43373 = vmatprep.subr.bf16.mxu0 %v49854_v51  ;;  %v38228_v51 = vsub.f32 %v49987_v32, %v38227_v55  ;;  %v38245_v3 = vand.u32 4294901760, %v50005_v15  ;;  %v38217_v28 = vand.u32 4294901760, %v50020_v31  ;;  %v38213_v16 = vand.u32 4294901760, %v38212_v57 }
 0x650   :  { %v18723_v35 = vand.u32 4294901760, %v439_v7 }
 0x651   :  { %v38229_v0 = vand.u32 4294901760, %v38228_v51  ;;  %v38218_v25 = vsub.f32 %v50020_v31, %v38217_v28 }
 0x653   :  { %18300 = vmatmul.mubr.f32.vlgmr.msra.gmra.mrb[0].mxu1 %v18299_v29  ;;  %v43380_v11 = vpack.c.bf16 %v38241_v46, %v38229_v0  ;;  %v38219_v51 = vand.u32 4294901760, %v38218_v25  ;;  %v42432_v0 = vpack.c.bf16 %v18319_v6, %v18307_v62  ;;  %v43384_v46 = vpack.c.bf16 %v49989_v38, %v49987_v32 }
 0x654   :  { %42423 = vmatpush1.bf16.xpose.msra.mxu1 %v42422_v56  ;;  %38060 = vmatmul.mubr.f32.vlgmr.msra.gmra.mrb[0].mxu0 %v49845_v39  ;;  %v44707_v56 = vld [vmem:[#allocation2 + $0x84] ss:$316 sps:$4 sm:$0xff]   ;;  %v42434_v62 = vpack.c.bf16 %v18325_v1, %v18313_v58  ;;  %v43386_v6 = vpack.c.bf16 %v50005_v15, %v50003_v21 }
 0x655   :  { %43375 = vmatpush1.bf16.xpose.msra.mxu0 %v49878_v36  ;;  %18390 = vmatprep.mubr.f32.mxu1 %v49913_v59  ;;  %v42426_v36 = vpack.c.bf16 %v49935_v10, %v49933_v30 }
 0x656   :  { %42425 = vmatprep.subr.bf16.mxu1 %v42424_v45  ;;  %38134 = vmatprep.mubr.f32.mxu0 %v49825_v14  ;;  %v38246_v14 = vsub.f32 %v50005_v15, %v38245_v3  ;;  %v44708_v45 = vld [vmem:[#allocation2 + $0x2fc] ss:$316 sps:$4 sm:$0xff]  }
 0x657   :  { %43377 = vmatprep.subr.bf16.mxu0 %v50010_v9  ;;  %v1304_v57 = vrot.slane %v44708_v45, %v44898_v17 }
 0x658   :  { %v38247_v29 = vand.u32 4294901760, %v38246_v14 }
 0x65a   :  { %v43382_v43 = vpack.c.bf16 %v38247_v29, %v38235_v24  ;;  %v44710_v29 = vld [vmem:[#allocation2 + $0x39c] ss:$316 sps:$4 sm:$0xff]  }
 0x65b   :  { %18392 = vmatmul.mubr.f32.vlgmr.msra.gmra.mrb[0].mxu1 %v49931_v50 }
 0x65c   :  { %42427 = vmatpush1.bf16.xpose.msra.mxu1 %v42426_v36  ;;  %38136 = vmatmul.mubr.f32.vlgmr.msra.gmra.mrb[0].mxu0 %v49845_v39  ;;  %v1290_v39 = vrot.slane %v44707_v56, %v44898_v17  ;;  %v281_v36 = vld [vmem:[#allocation5 + $0x218] sm:$0xff] }
 0x65d   :  { %43379 = vmatpush1.bf16.xpose.msra.mxu0 %v50034_v42  ;;  %18471 = vmatprep.mubr.f32.mxu1 %v49924_v63  ;;  %v18719_v2 = vand.u32 4294901760, %v281_v36 }
 0x65e   :  { %42429 = vmatprep.subr.bf16.mxu1 %v49937_v13  ;;  %38214 = vmatprep.mubr.f32.mxu0 %v38213_v16  ;;  %v1308_v14 = vcombine.high %v1290_v39, %v1304_v57  ;;  %v280_v16 = vld [vmem:[#allocation5 + $0x210] sm:$0xff]  ;;  %v1307_v24 = vcombine.low %v1290_v39, %v1304_v57 }
 0x65f   :  { %43381 = vmatprep.subr.bf16.mxu0 %v43380_v11  ;;  %v438_v11 = vld [vmem:[#allocation5 + $0x700] sm:$0x7f]  ;;  %v50071_v63 = vsub.f32 %v281_v36, %v18719_v2  ;;  %v18721_v30 = vand.u32 4294901760, %v280_v16  ;;  %v43392_v36 = vpack.c.bf16 %v38239_v37, %v38227_v55 }
 0x660   :  { %v50069_v25 = vand.u32 4294901760, %v1308_v14  ;;  %v18725_v10 = vand.u32 4294901760, %v438_v11  ;;  %v50087_v56 = vand.u32 4294901760, %v1307_v24 }
 0x661   :  { %v18805_v1 = vand.u32 4294901760, %v50071_v63  ;;  %v50089_v45 = vsub.f32 %v280_v16, %v18721_v30 }
 0x662   :  { %v50080_v58 = vsub.f32 %v1308_v14, %v50069_v25 }
 0x663   :  { %18474 = vmatmul.mubr.f32.vlgmr.msra.gmra.mrb[0].mxu1 %v49954_v8  ;;  %v18806_v39 = vsub.f32 %v50071_v63, %v18805_v1  ;;  %v18811_v14 = vand.u32 4294901760, %v50089_v45 }
 0x664   :  { %42431 = vmatpush1.bf16.xpose.msra.mxu1 %v49969_v12  ;;  %38220 = vmatmul.mubr.f32.vlgmr.msra.gmra.mrb[0].mxu0 %v38219_v51  ;;  %v50091_v51 = vsub.f32 %v438_v11, %v18725_v10  ;;  %v50125_v11 = vpack.c.bf16 %v18725_v10, %v18721_v30 }
 0x665   :  { %43383 = vmatpush1.bf16.xpose.msra.mxu0 %v43382_v43  ;;  %18550 = vmatprep.mubr.f32.mxu1 %v18291_v54  ;;  %v50073_v54 = vsub.f32 %v439_v7, %v18723_v35  ;;  %v50093_v43 = vpack.c.bf16 %v18723_v35, %v18719_v2  ;;  %v50110_v7 = vsub.f32 %v1307_v24, %v50087_v56  ;;  %v361_v35 = vld [vmem:[#allocation5 + $0x498] sm:$0xff] }
 0x666   :  { %42433 = vmatprep.subr.bf16.mxu1 %v42432_v0  ;;  %38310 = vmatprep.mubr.f32.mxu0 %v49981_v47  ;;  %v18823_v2 = vand.u32 4294901760, %v50091_v51 }
 0x667   :  { %43385 = vmatprep.subr.bf16.mxu0 %v43384_v46  ;;  %v18817_v8 = vand.u32 4294901760, %v50073_v54  ;;  %v2024_v46 = vrot.slane %v44710_v29, %v44898_v17  ;;  %v18795_v37 = vand.u32 4294901760, %v50110_v7  ;;  %v360_v29 = vld [vmem:[#allocation5 + $0x490] sm:$0xff] }
 0x668   :  { %v18824_v24 = vsub.f32 %v50091_v51, %v18823_v2 }
 0x669   :  { %v18818_v57 = vsub.f32 %v50073_v54, %v18817_v8  ;;  %v18796_v30 = vsub.f32 %v50110_v7, %v18795_v37 }
 0x66a   :  { %v18825_v15 = vand.u32 4294901760, %v18824_v24 }
 0x66b   :  { %18554 = vmatmul.mubr.f32.vlgmr.msra.gmra.mrb[0].mxu1 %v18297_v33  ;;  %v44709_v33 = vld [vmem:[#allocation2 + $0x124] ss:$316 sps:$4 sm:$0xff]   ;;  %v18819_v38 = vand.u32 4294901760, %v18818_v57 }
 0x66c   :  { %42435 = vmatpush1.bf16.xpose.msra.mxu1 %v42434_v62  ;;  %38312 = vmatmul.mubr.f32.vlgmr.msra.gmra.mrb[0].mxu0 %v50001_v48  ;;  %v2010_v0 = vrot.slane %v44709_v33, %v44898_v17  ;;  %v519_v62 = vld [vmem:[#allocation5 + $0x988] sm:$0x7f] }
 0x66d   :  { %43387 = vmatpush1.bf16.xpose.msra.mxu0 %v43386_v6  ;;  %18636 = vmatprep.mubr.f32.mxu1 %v49913_v59  ;;  %v38639_v6 = vand.u32 4294901760, %v361_v35  ;;  %v38643_v16 = vand.u32 4294901760, %v519_v62 }
 0x66e   :  { %42437 = vmatprep.subr.bf16.mxu1 %v49937_v13  ;;  %38391 = vmatprep.mubr.f32.mxu0 %v49996_v4  ;;  %v18789_v13 = vand.u32 4294901760, %v50080_v58  ;;  %v2028_v55 = vcombine.high %v2010_v0, %v2024_v46  ;;  %v43394_v4 = vpack.c.bf16 %v38245_v3, %v38233_v26  ;;  %v2027_v26 = vcombine.low %v2010_v0, %v2024_v46 }
 0x66f   :  { %43389 = vmatprep.subr.bf16.mxu0 %v50010_v9  ;;  %v50143_v10 = vsub.f32 %v361_v35, %v38639_v6  ;;  %v38641_v3 = vand.u32 4294901760, %v360_v29 }
 0x670   :  { %v18790_v32 = vsub.f32 %v50080_v58, %v18789_v13  ;;  %v50137_v57 = vand.u32 4294901760, %v2028_v55 }
 0x671   :  { %v50159_v0 = vsub.f32 %v360_v29, %v38641_v3 }
 0x672   :  { %v50152_v35 = vsub.f32 %v2028_v55, %v50137_v57 }
 0x673   :  { %18638 = vmatmul.mubr.f32.vlgmr.msra.gmra.mrb[0].mxu1 %v49931_v50 }
 0x674   :  { %42439 = vmatpush1.bf16.xpose.msra.mxu1 %v49969_v12  ;;  %38394 = vmatmul.mubr.f32.vlgmr.msra.gmra.mrb[0].mxu0 %v50020_v31  ;;  %v18807_v12 = vand.u32 4294901760, %v18806_v39  ;;  %v518_v39 = vld [vmem:[#allocation5 + $0x980] sm:$0x7f]  ;;  %v38709_v55 = vand.u32 4294901760, %v50152_v35 }
 0x675   :  { %43391 = vmatpush1.bf16.xpose.msra.mxu0 %v50034_v42  ;;  %18712 = vmatprep.mubr.f32.mxu1 %v49913_v59  ;;  %v18812_v59 = vsub.f32 %v50089_v45, %v18811_v14 }
 0x676   :  { %42441 = vmatprep.subr.bf16.mxu1 %v50093_v43  ;;  %38470 = vmatprep.mubr.f32.mxu0 %v38211_v44  ;;  %v18791_v44 = vand.u32 4294901760, %v18790_v32  ;;  %v42444_v33 = vpack.c.bf16 %v18819_v38, %v18807_v12  ;;  %v38725_v32 = vand.u32 4294901760, %v50143_v10  ;;  %v50157_v12 = vand.u32 4294901760, %v2027_v26 }
 0x677   :  { %43393 = vmatprep.subr.bf16.mxu0 %v43392_v36  ;;  %v50145_v36 = vsub.f32 %v519_v62, %v38643_v16  ;;  %v18813_v21 = vand.u32 4294901760, %v18812_v59  ;;  %v18797_v62 = vand.u32 4294901760, %v18796_v30  ;;  %v42448_v38 = vpack.c.bf16 %v50073_v54, %v50071_v63 }
 0x678   :  { %v50166_v59 = vpack.c.bf16 %v38643_v16, %v38639_v6  ;;  %v38731_v6 = vand.u32 4294901760, %v50159_v0 }
 0x679   :  { %v38737_v31 = vand.u32 4294901760, %v50145_v36 }
 0x67b   :  { %18714 = vmatmul.mubr.f32.vlgmr.msra.gmra.mrb[0].mxu1 %v49931_v50  ;;  %v38645_v50 = vand.u32 4294901760, %v518_v39  ;;  %v38738_v24 = vsub.f32 %v50145_v36, %v38737_v31 }
 0x67c   :  { %42443 = vmatpush1.bf16.xpose.msra.mxu1 %v50125_v11  ;;  %38474 = vmatmul.mubr.f32.vlgmr.msra.gmra.mrb[0].mxu0 %v38217_v28  ;;  %v42446_v28 = vpack.c.bf16 %v18825_v15, %v18813_v21  ;;  %v38732_v21 = vsub.f32 %v50159_v0, %v38731_v6 }
 0x67d   :  { %43395 = vmatpush1.bf16.xpose.msra.mxu0 %v43394_v4  ;;  %18792 = vmatprep.mubr.f32.mxu1 %v18791_v44  ;;  %v50161_v46 = vsub.f32 %v518_v39, %v38645_v50  ;;  %v50176_v4 = vsub.f32 %v2027_v26, %v50157_v12  ;;  %v38710_v44 = vsub.f32 %v50152_v35, %v38709_v55  ;;  %v38739_v29 = vand.u32 4294901760, %v38738_v24 }
 0x67e   :  { %42445 = vmatprep.subr.bf16.mxu1 %v42444_v33  ;;  %38556 = vmatprep.mubr.f32.mxu0 %v49981_v47  ;;  %v50190_v30 = vpack.c.bf16 %v38645_v50, %v38641_v3  ;;  %v38733_v50 = vand.u32 4294901760, %v38732_v21  ;;  %v441_v21 = vld [vmem:[#allocation5 + $0x718] sm:$0x7f] }
 0x67f   :  { %43397 = vmatprep.subr.bf16.mxu0 %v50010_v9  ;;  %v38726_v9 = vsub.f32 %v50143_v10, %v38725_v32  ;;  %v38743_v16 = vand.u32 4294901760, %v50161_v46  ;;  %v38715_v39 = vand.u32 4294901760, %v50176_v4  ;;  %v38711_v15 = vand.u32 4294901760, %v38710_v44 }
 0x680   :  { %v19221_v54 = vand.u32 4294901760, %v441_v21 }
 0x681   :  { %v38727_v33 = vand.u32 4294901760, %v38726_v9  ;;  %v38716_v3 = vsub.f32 %v50176_v4, %v38715_v39 }
 0x683   :  { %18798 = vmatmul.mubr.f32.vlgmr.msra.gmra.mrb[0].mxu1 %v18797_v62  ;;  %v43404_v26 = vpack.c.bf16 %v38739_v29, %v38727_v33  ;;  %v38717_v9 = vand.u32 4294901760, %v38716_v3  ;;  %v42456_v33 = vpack.c.bf16 %v18817_v8, %v18805_v1  ;;  %v43408_v29 = vpack.c.bf16 %v50145_v36, %v50143_v10 }
 0x684   :  { %42447 = vmatpush1.bf16.xpose.msra.mxu1 %v42446_v28  ;;  %38558 = vmatmul.mubr.f32.vlgmr.msra.gmra.mrb[0].mxu0 %v50001_v48  ;;  %v44711_v28 = vld [vmem:[#allocation2 + $0x88] ss:$316 sps:$4 sm:$0xff]   ;;  %v42458_v1 = vpack.c.bf16 %v18823_v2, %v18811_v14  ;;  %v43410_v8 = vpack.c.bf16 %v50161_v46, %v50159_v0 }
 0x685   :  { %43399 = vmatpush1.bf16.xpose.msra.mxu0 %v50034_v42  ;;  %18888 = vmatprep.mubr.f32.mxu1 %v50069_v25  ;;  %v42450_v42 = vpack.c.bf16 %v50091_v51, %v50089_v45 }
 0x686   :  { %42449 = vmatprep.subr.bf16.mxu1 %v42448_v38  ;;  %38632 = vmatprep.mubr.f32.mxu0 %v49981_v47  ;;  %v38744_v47 = vsub.f32 %v50161_v46, %v38743_v16  ;;  %v44713_v38 = vld [vmem:[#allocation2 + $0x300] ss:$316 sps:$4 sm:$0xff]  }
 0x687   :  { %43401 = vmatprep.subr.bf16.mxu0 %v50166_v59  ;;  %v1333_v44 = vrot.slane %v44713_v38, %v44898_v17 }
 0x688   :  { %v38745_v62 = vand.u32 4294901760, %v38744_v47 }
 0x68a   :  { %v43406_v24 = vpack.c.bf16 %v38745_v62, %v38733_v50  ;;  %v44717_v62 = vld [vmem:[#allocation2 + $0x3a0] ss:$316 sps:$4 sm:$0xff]  }
 0x68b   :  { %18890 = vmatmul.mubr.f32.vlgmr.msra.gmra.mrb[0].mxu1 %v50087_v56 }
 0x68c   :  { %42451 = vmatpush1.bf16.xpose.msra.mxu1 %v42450_v42  ;;  %38634 = vmatmul.mubr.f32.vlgmr.msra.gmra.mrb[0].mxu0 %v50001_v48  ;;  %v1319_v48 = vrot.slane %v44711_v28, %v44898_v17  ;;  %v283_v42 = vld [vmem:[#allocation5 + $0x228] sm:$0xff] }
 0x68d   :  { %43403 = vmatpush1.bf16.xpose.msra.mxu0 %v50190_v30  ;;  %18969 = vmatprep.mubr.f32.mxu1 %v50080_v58  ;;  %v19217_v63 = vand.u32 4294901760, %v283_v42 }
 0x68e   :  { %42453 = vmatprep.subr.bf16.mxu1 %v50093_v43  ;;  %38712 = vmatprep.mubr.f32.mxu0 %v38711_v15  ;;  %v1342_v47 = vcombine.high %v1319_v48, %v1333_v44  ;;  %v282_v15 = vld [vmem:[#allocation5 + $0x220] sm:$0xff]  ;;  %v1341_v50 = vcombine.low %v1319_v48, %v1333_v44 }
 0x68f   :  { %43405 = vmatprep.subr.bf16.mxu0 %v43404_v26  ;;  %v440_v26 = vld [vmem:[#allocation5 + $0x710] sm:$0x7f]  ;;  %v50227_v58 = vsub.f32 %v283_v42, %v19217_v63  ;;  %v19219_v45 = vand.u32 4294901760, %v282_v15  ;;  %v43416_v42 = vpack.c.bf16 %v38737_v31, %v38725_v32 }
 0x690   :  { %v50225_v3 = vand.u32 4294901760, %v1342_v47  ;;  %v19223_v51 = vand.u32 4294901760, %v440_v26  ;;  %v50243_v28 = vand.u32 4294901760, %v1341_v50 }
 0x691   :  { %v19303_v2 = vand.u32 4294901760, %v50227_v58  ;;  %v50245_v38 = vsub.f32 %v282_v15, %v19219_v45 }
 0x692   :  { %v50236_v14 = vsub.f32 %v1342_v47, %v50225_v3 }
 0x693   :  { %18972 = vmatmul.mubr.f32.vlgmr.msra.gmra.mrb[0].mxu1 %v50110_v7  ;;  %v19304_v48 = vsub.f32 %v50227_v58, %v19303_v2  ;;  %v19309_v47 = vand.u32 4294901760, %v50245_v38 }
 0x694   :  { %42455 = vmatpush1.bf16.xpose.msra.mxu1 %v50125_v11  ;;  %38718 = vmatmul.mubr.f32.vlgmr.msra.gmra.mrb[0].mxu0 %v38717_v9  ;;  %v50247_v9 = vsub.f32 %v440_v26, %v19223_v51  ;;  %v50281_v26 = vpack.c.bf16 %v19223_v51, %v19219_v45 }
 0x695   :  { %43407 = vmatpush1.bf16.xpose.msra.mxu0 %v43406_v24  ;;  %19048 = vmatprep.mubr.f32.mxu1 %v18789_v13  ;;  %v50229_v13 = vsub.f32 %v441_v21, %v19221_v54  ;;  %v50249_v24 = vpack.c.bf16 %v19221_v54, %v19217_v63  ;;  %v50266_v21 = vsub.f32 %v1341_v50, %v50243_v28  ;;  %v363_v54 = vld [vmem:[#allocation5 + $0x4a8] sm:$0xff] }
 0x696   :  { %42457 = vmatprep.subr.bf16.mxu1 %v42456_v33  ;;  %38808 = vmatprep.mubr.f32.mxu0 %v50137_v57  ;;  %v19321_v63 = vand.u32 4294901760, %v50247_v9 }
 0x697   :  { %43409 = vmatprep.subr.bf16.mxu0 %v43408_v29  ;;  %v19315_v7 = vand.u32 4294901760, %v50229_v13  ;;  %v2053_v29 = vrot.slane %v44717_v62, %v44898_v17  ;;  %v19293_v31 = vand.u32 4294901760, %v50266_v21  ;;  %v362_v62 = vld [vmem:[#allocation5 + $0x4a0] sm:$0xff] }
 0x698   :  { %v19322_v50 = vsub.f32 %v50247_v9, %v19321_v63 }
 0x699   :  { %v19316_v44 = vsub.f32 %v50229_v13, %v19315_v7  ;;  %v19294_v45 = vsub.f32 %v50266_v21, %v19293_v31 }
 0x69a   :  { %v19323_v46 = vand.u32 4294901760, %v19322_v50 }
 0x69b   :  { %19052 = vmatmul.mubr.f32.vlgmr.msra.gmra.mrb[0].mxu1 %v18795_v37  ;;  %v44715_v37 = vld [vmem:[#allocation2 + $0x128] ss:$316 sps:$4 sm:$0xff]   ;;  %v19317_v36 = vand.u32 4294901760, %v19316_v44 }
 0x69c   :  { %42459 = vmatpush1.bf16.xpose.msra.mxu1 %v42458_v1  ;;  %38810 = vmatmul.mubr.f32.vlgmr.msra.gmra.mrb[0].mxu0 %v50157_v12  ;;  %v2039_v33 = vrot.slane %v44715_v37, %v44898_v17  ;;  %v521_v1 = vld [vmem:[#allocation5 + $0x998] sm:$0x7f] }
 0x69d   :  { %43411 = vmatpush1.bf16.xpose.msra.mxu0 %v43410_v8  ;;  %19134 = vmatprep.mubr.f32.mxu1 %v50069_v25  ;;  %v39137_v8 = vand.u32 4294901760, %v363_v54  ;;  %v39141_v15 = vand.u32 4294901760, %v521_v1 }
 0x69e   :  { %42461 = vmatprep.subr.bf16.mxu1 %v50093_v43  ;;  %38889 = vmatprep.mubr.f32.mxu0 %v50152_v35  ;;  %v19287_v43 = vand.u32 4294901760, %v50236_v14  ;;  %v2062_v32 = vcombine.high %v2039_v33, %v2053_v29  ;;  %v43418_v35 = vpack.c.bf16 %v38743_v16, %v38731_v6  ;;  %v2061_v6 = vcombine.low %v2039_v33, %v2053_v29 }
 0x69f   :  { %43413 = vmatprep.subr.bf16.mxu0 %v50166_v59  ;;  %v50299_v51 = vsub.f32 %v363_v54, %v39137_v8  ;;  %v39139_v16 = vand.u32 4294901760, %v362_v62 }
 0x6a0   :  { %v19288_v10 = vsub.f32 %v50236_v14, %v19287_v43  ;;  %v50293_v44 = vand.u32 4294901760, %v2062_v32 }
 0x6a1   :  { %v50315_v33 = vsub.f32 %v362_v62, %v39139_v16 }
 0x6a2   :  { %v50308_v54 = vsub.f32 %v2062_v32, %v50293_v44 }
 0x6a3   :  { %19136 = vmatmul.mubr.f32.vlgmr.msra.gmra.mrb[0].mxu1 %v50087_v56 }
 0x6a4   :  { %42463 = vmatpush1.bf16.xpose.msra.mxu1 %v50125_v11  ;;  %38892 = vmatmul.mubr.f32.vlgmr.msra.gmra.mrb[0].mxu0 %v50176_v4  ;;  %v19305_v11 = vand.u32 4294901760, %v19304_v48  ;;  %v520_v48 = vld [vmem:[#allocation5 + $0x990] sm:$0x7f]  ;;  %v39207_v32 = vand.u32 4294901760, %v50308_v54 }
 0x6a5   :  { %43415 = vmatpush1.bf16.xpose.msra.mxu0 %v50190_v30  ;;  %19210 = vmatprep.mubr.f32.mxu1 %v50069_v25  ;;  %v19310_v25 = vsub.f32 %v50245_v38, %v19309_v47 }
 0x6a6   :  { %42465 = vmatprep.subr.bf16.mxu1 %v50249_v24  ;;  %38968 = vmatprep.mubr.f32.mxu0 %v38709_v55  ;;  %v19289_v55 = vand.u32 4294901760, %v19288_v10  ;;  %v42468_v37 = vpack.c.bf16 %v19317_v36, %v19305_v11  ;;  %v39223_v10 = vand.u32 4294901760, %v50299_v51  ;;  %v50313_v11 = vand.u32 4294901760, %v2061_v6 }
 0x6a7   :  { %43417 = vmatprep.subr.bf16.mxu0 %v43416_v42  ;;  %v50301_v42 = vsub.f32 %v521_v1, %v39141_v15  ;;  %v19311_v0 = vand.u32 4294901760, %v19310_v25  ;;  %v19295_v1 = vand.u32 4294901760, %v19294_v45  ;;  %v42472_v36 = vpack.c.bf16 %v50229_v13, %v50227_v58 }
 0x6a8   :  { %v50322_v25 = vpack.c.bf16 %v39141_v15, %v39137_v8  ;;  %v39229_v8 = vand.u32 4294901760, %v50315_v33 }
 0x6a9   :  { %v39235_v4 = vand.u32 4294901760, %v50301_v42 }
 0x6ab   :  { %19212 = vmatmul.mubr.f32.vlgmr.msra.gmra.mrb[0].mxu1 %v50087_v56  ;;  %v39143_v56 = vand.u32 4294901760, %v520_v48  ;;  %v39236_v50 = vsub.f32 %v50301_v42, %v39235_v4 }
 0x6ac   :  { %42467 = vmatpush1.bf16.xpose.msra.mxu1 %v50281_v26  ;;  %38972 = vmatmul.mubr.f32.vlgmr.msra.gmra.mrb[0].mxu0 %v38715_v39  ;;  %v42470_v39 = vpack.c.bf16 %v19323_v46, %v19311_v0  ;;  %v39230_v0 = vsub.f32 %v50315_v33, %v39229_v8 }
 0x6ad   :  { %43419 = vmatpush1.bf16.xpose.msra.mxu0 %v43418_v35  ;;  %19290 = vmatprep.mubr.f32.mxu1 %v19289_v55  ;;  %v50317_v29 = vsub.f32 %v520_v48, %v39143_v56  ;;  %v50332_v35 = vsub.f32 %v2061_v6, %v50313_v11  ;;  %v39208_v55 = vsub.f32 %v50308_v54, %v39207_v32  ;;  %v39237_v62 = vand.u32 4294901760, %v39236_v50 }
 0x6ae   :  { %42469 = vmatprep.subr.bf16.mxu1 %v42468_v37  ;;  %39054 = vmatprep.mubr.f32.mxu0 %v50137_v57  ;;  %v50346_v45 = vpack.c.bf16 %v39143_v56, %v39139_v16  ;;  %v39231_v56 = vand.u32 4294901760, %v39230_v0  ;;  %v443_v0 = vld [vmem:[#allocation5 + $0x728] sm:$0x7f] }
 0x6af   :  { %43421 = vmatprep.subr.bf16.mxu0 %v50166_v59  ;;  %v39224_v59 = vsub.f32 %v50299_v51, %v39223_v10  ;;  %v39241_v15 = vand.u32 4294901760, %v50317_v29  ;;  %v39213_v48 = vand.u32 4294901760, %v50332_v35  ;;  %v39209_v46 = vand.u32 4294901760, %v39208_v55 }
 0x6b0   :  { %v19719_v13 = vand.u32 4294901760, %v443_v0 }
 0x6b1   :  { %v39225_v37 = vand.u32 4294901760, %v39224_v59  ;;  %v39214_v16 = vsub.f32 %v50332_v35, %v39213_v48 }
 0x6b3   :  { %19296 = vmatmul.mubr.f32.vlgmr.msra.gmra.mrb[0].mxu1 %v19295_v1  ;;  %v43428_v6 = vpack.c.bf16 %v39237_v62, %v39225_v37  ;;  %v39215_v59 = vand.u32 4294901760, %v39214_v16  ;;  %v42480_v37 = vpack.c.bf16 %v19315_v7, %v19303_v2  ;;  %v43432_v62 = vpack.c.bf16 %v50301_v42, %v50299_v51 }
 0x6b4   :  { %42471 = vmatpush1.bf16.xpose.msra.mxu1 %v42470_v39  ;;  %39056 = vmatmul.mubr.f32.vlgmr.msra.gmra.mrb[0].mxu0 %v50157_v12  ;;  %v44719_v39 = vld [vmem:[#allocation2 + $0x8c] ss:$316 sps:$4 sm:$0xff]   ;;  %v42482_v2 = vpack.c.bf16 %v19321_v63, %v19309_v47  ;;  %v43434_v7 = vpack.c.bf16 %v50317_v29, %v50315_v33 }
 0x6b5   :  { %43423 = vmatpush1.bf16.xpose.msra.mxu0 %v50190_v30  ;;  %19386 = vmatprep.mubr.f32.mxu1 %v50225_v3  ;;  %v42474_v30 = vpack.c.bf16 %v50247_v9, %v50245_v38 }
 0x6b6   :  { %42473 = vmatprep.subr.bf16.mxu1 %v42472_v36  ;;  %39130 = vmatprep.mubr.f32.mxu0 %v50137_v57  ;;  %v39242_v57 = vsub.f32 %v50317_v29, %v39241_v15  ;;  %v44720_v36 = vld [vmem:[#allocation2 + $0x304] ss:$316 sps:$4 sm:$0xff]  }
 0x6b7   :  { %43425 = vmatprep.subr.bf16.mxu0 %v50322_v25  ;;  %v1340_v55 = vrot.slane %v44720_v36, %v44898_v17 }
 0x6b8   :  { %v39243_v1 = vand.u32 4294901760, %v39242_v57 }
 0x6ba   :  { %v43430_v50 = vpack.c.bf16 %v39243_v1, %v39231_v56  ;;  %v44722_v1 = vld [vmem:[#allocation2 + $0x3a4] ss:$316 sps:$4 sm:$0xff]  }
 0x6bb   :  { %19388 = vmatmul.mubr.f32.vlgmr.msra.gmra.mrb[0].mxu1 %v50243_v28 }
 0x6bc   :  { %42475 = vmatpush1.bf16.xpose.msra.mxu1 %v42474_v30  ;;  %39132 = vmatmul.mubr.f32.vlgmr.msra.gmra.mrb[0].mxu0 %v50157_v12  ;;  %v1326_v12 = vrot.slane %v44719_v39, %v44898_v17  ;;  %v285_v30 = vld [vmem:[#allocation5 + $0x238] sm:$0xff] }
 0x6bd   :  { %43427 = vmatpush1.bf16.xpose.msra.mxu0 %v50346_v45  ;;  %19467 = vmatprep.mubr.f32.mxu1 %v50236_v14  ;;  %v19715_v58 = vand.u32 4294901760, %v285_v30 }
 0x6be   :  { %42477 = vmatprep.subr.bf16.mxu1 %v50249_v24  ;;  %39210 = vmatprep.mubr.f32.mxu0 %v39209_v46  ;;  %v1344_v57 = vcombine.high %v1326_v12, %v1340_v55  ;;  %v284_v46 = vld [vmem:[#allocation5 + $0x230] sm:$0xff]  ;;  %v1343_v56 = vcombine.low %v1326_v12, %v1340_v55 }
 0x6bf   :  { %43429 = vmatprep.subr.bf16.mxu0 %v43428_v6  ;;  %v442_v6 = vld [vmem:[#allocation5 + $0x720] sm:$0x7f]  ;;  %v50383_v14 = vsub.f32 %v285_v30, %v19715_v58  ;;  %v19717_v38 = vand.u32 4294901760, %v284_v46  ;;  %v43440_v30 = vpack.c.bf16 %v39235_v4, %v39223_v10 }
 0x6c0   :  { %v50381_v16 = vand.u32 4294901760, %v1344_v57  ;;  %v19721_v9 = vand.u32 4294901760, %v442_v6  ;;  %v50399_v39 = vand.u32 4294901760, %v1343_v56 }
 0x6c1   :  { %v19801_v63 = vand.u32 4294901760, %v50383_v14  ;;  %v50401_v36 = vsub.f32 %v284_v46, %v19717_v38 }
 0x6c2   :  { %v50392_v47 = vsub.f32 %v1344_v57, %v50381_v16 }
 0x6c3   :  { %19470 = vmatmul.mubr.f32.vlgmr.msra.gmra.mrb[0].mxu1 %v50266_v21  ;;  %v19802_v12 = vsub.f32 %v50383_v14, %v19801_v63  ;;  %v19807_v57 = vand.u32 4294901760, %v50401_v36 }
 0x6c4   :  { %42479 = vmatpush1.bf16.xpose.msra.mxu1 %v50281_v26  ;;  %39216 = vmatmul.mubr.f32.vlgmr.msra.gmra.mrb[0].mxu0 %v39215_v59  ;;  %v50403_v59 = vsub.f32 %v442_v6, %v19721_v9  ;;  %v50437_v6 = vpack.c.bf16 %v19721_v9, %v19717_v38 }
 0x6c5   :  { %43431 = vmatpush1.bf16.xpose.msra.mxu0 %v43430_v50  ;;  %19546 = vmatprep.mubr.f32.mxu1 %v19287_v43  ;;  %v50385_v43 = vsub.f32 %v443_v0, %v19719_v13  ;;  %v50405_v50 = vpack.c.bf16 %v19719_v13, %v19715_v58  ;;  %v50422_v0 = vsub.f32 %v1343_v56, %v50399_v39  ;;  %v365_v13 = vld [vmem:[#allocation5 + $0x4b8] sm:$0xff] }
 0x6c6   :  { %42481 = vmatprep.subr.bf16.mxu1 %v42480_v37  ;;  %39306 = vmatprep.mubr.f32.mxu0 %v50293_v44  ;;  %v19819_v58 = vand.u32 4294901760, %v50403_v59 }
 0x6c7   :  { %43433 = vmatprep.subr.bf16.mxu0 %v43432_v62  ;;  %v19813_v21 = vand.u32 4294901760, %v50385_v43  ;;  %v2060_v62 = vrot.slane %v44722_v1, %v44898_v17  ;;  %v19791_v4 = vand.u32 4294901760, %v50422_v0  ;;  %v364_v1 = vld [vmem:[#allocation5 + $0x4b0] sm:$0xff] }
 0x6c8   :  { %v19820_v56 = vsub.f32 %v50403_v59, %v19819_v58 }
 0x6c9   :  { %v19814_v55 = vsub.f32 %v50385_v43, %v19813_v21  ;;  %v19792_v38 = vsub.f32 %v50422_v0, %v19791_v4 }
 0x6ca   :  { %v19821_v29 = vand.u32 4294901760, %v19820_v56 }
 0x6cb   :  { %19550 = vmatmul.mubr.f32.vlgmr.msra.gmra.mrb[0].mxu1 %v19293_v31  ;;  %v44721_v31 = vld [vmem:[#allocation2 + $0x12c] ss:$316 sps:$4 sm:$0xff]   ;;  %v19815_v42 = vand.u32 4294901760, %v19814_v55 }
 0x6cc   :  { %42483 = vmatpush1.bf16.xpose.msra.mxu1 %v42482_v2  ;;  %39308 = vmatmul.mubr.f32.vlgmr.msra.gmra.mrb[0].mxu0 %v50313_v11  ;;  %v2046_v37 = vrot.slane %v44721_v31, %v44898_v17  ;;  %v523_v2 = vld [vmem:[#allocation5 + $0x9a8] sm:$0x7f] }
 0x6cd   :  { %43435 = vmatpush1.bf16.xpose.msra.mxu0 %v43434_v7  ;;  %19632 = vmatprep.mubr.f32.mxu1 %v50225_v3  ;;  %v39635_v7 = vand.u32 4294901760, %v365_v13  ;;  %v39639_v46 = vand.u32 4294901760, %v523_v2 }
 0x6ce   :  { %42485 = vmatprep.subr.bf16.mxu1 %v50249_v24  ;;  %39387 = vmatprep.mubr.f32.mxu0 %v50308_v54  ;;  %v19785_v24 = vand.u32 4294901760, %v50392_v47  ;;  %v2064_v10 = vcombine.high %v2046_v37, %v2060_v62  ;;  %v43442_v54 = vpack.c.bf16 %v39241_v15, %v39229_v8  ;;  %v2063_v8 = vcombine.low %v2046_v37, %v2060_v62 }
 0x6cf   :  { %43437 = vmatprep.subr.bf16.mxu0 %v50322_v25  ;;  %v50455_v9 = vsub.f32 %v365_v13, %v39635_v7  ;;  %v39637_v15 = vand.u32 4294901760, %v364_v1 }
 0x6d0   :  { %v19786_v51 = vsub.f32 %v50392_v47, %v19785_v24  ;;  %v50449_v55 = vand.u32 4294901760, %v2064_v10 }
 0x6d1   :  { %v50471_v37 = vsub.f32 %v364_v1, %v39637_v15 }
 0x6d2   :  { %v50464_v13 = vsub.f32 %v2064_v10, %v50449_v55 }
 0x6d3   :  { %19634 = vmatmul.mubr.f32.vlgmr.msra.gmra.mrb[0].mxu1 %v50243_v28 }
 0x6d4   :  { %42487 = vmatpush1.bf16.xpose.msra.mxu1 %v50281_v26  ;;  %39390 = vmatmul.mubr.f32.vlgmr.msra.gmra.mrb[0].mxu0 %v50332_v35  ;;  %v19803_v26 = vand.u32 4294901760, %v19802_v12  ;;  %v522_v12 = vld [vmem:[#allocation5 + $0x9a0] sm:$0x7f]  ;;  %v39705_v10 = vand.u32 4294901760, %v50464_v13 }
 0x6d5   :  { %43439 = vmatpush1.bf16.xpose.msra.mxu0 %v50346_v45  ;;  %19708 = vmatprep.mubr.f32.mxu1 %v50225_v3  ;;  %v19808_v3 = vsub.f32 %v50401_v36, %v19807_v57 }
 0x6d6   :  { %42489 = vmatprep.subr.bf16.mxu1 %v50405_v50  ;;  %39466 = vmatprep.mubr.f32.mxu0 %v39207_v32  ;;  %v19787_v32 = vand.u32 4294901760, %v19786_v51  ;;  %v42492_v31 = vpack.c.bf16 %v19815_v42, %v19803_v26  ;;  %v39721_v51 = vand.u32 4294901760, %v50455_v9  ;;  %v50469_v26 = vand.u32 4294901760, %v2063_v8 }
 0x6d7   :  { %43441 = vmatprep.subr.bf16.mxu0 %v43440_v30  ;;  %v50457_v30 = vsub.f32 %v523_v2, %v39639_v46  ;;  %v19809_v33 = vand.u32 4294901760, %v19808_v3  ;;  %v19793_v2 = vand.u32 4294901760, %v19792_v38  ;;  %v42496_v42 = vpack.c.bf16 %v50385_v43, %v50383_v14 }
 0x6d8   :  { %v50478_v3 = vpack.c.bf16 %v39639_v46, %v39635_v7  ;;  %v39727_v7 = vand.u32 4294901760, %v50471_v37 }
 0x6d9   :  { %v39733_v35 = vand.u32 4294901760, %v50457_v30 }
 0x6db   :  { %19710 = vmatmul.mubr.f32.vlgmr.msra.gmra.mrb[0].mxu1 %v50243_v28  ;;  %v39641_v28 = vand.u32 4294901760, %v522_v12  ;;  %v39734_v56 = vsub.f32 %v50457_v30, %v39733_v35 }
 0x6dc   :  { %42491 = vmatpush1.bf16.xpose.msra.mxu1 %v50437_v6  ;;  %39470 = vmatmul.mubr.f32.vlgmr.msra.gmra.mrb[0].mxu0 %v39213_v48  ;;  %v42494_v48 = vpack.c.bf16 %v19821_v29, %v19809_v33  ;;  %v39728_v33 = vsub.f32 %v50471_v37, %v39727_v7 }
 0x6dd   :  { %43443 = vmatpush1.bf16.xpose.msra.mxu0 %v43442_v54  ;;  %19788 = vmatprep.mubr.f32.mxu1 %v19787_v32  ;;  %v50473_v62 = vsub.f32 %v522_v12, %v39641_v28  ;;  %v50488_v54 = vsub.f32 %v2063_v8, %v50469_v26  ;;  %v39706_v32 = vsub.f32 %v50464_v13, %v39705_v10  ;;  %v39735_v1 = vand.u32 4294901760, %v39734_v56 }
 0x6de   :  { %42493 = vmatprep.subr.bf16.mxu1 %v42492_v31  ;;  %39552 = vmatprep.mubr.f32.mxu0 %v50293_v44  ;;  %v50502_v38 = vpack.c.bf16 %v39641_v28, %v39637_v15  ;;  %v39729_v28 = vand.u32 4294901760, %v39728_v33  ;;  %v445_v33 = vld [vmem:[#allocation5 + $0x738] sm:$0x7f] }
 0x6df   :  { %43445 = vmatprep.subr.bf16.mxu0 %v50322_v25  ;;  %v39722_v25 = vsub.f32 %v50455_v9, %v39721_v51  ;;  %v39739_v46 = vand.u32 4294901760, %v50473_v62  ;;  %v39711_v12 = vand.u32 4294901760, %v50488_v54  ;;  %v39707_v29 = vand.u32 4294901760, %v39706_v32 }
 0x6e0   :  { %v20217_v43 = vand.u32 4294901760, %v445_v33 }
 0x6e1   :  { %v39723_v31 = vand.u32 4294901760, %v39722_v25  ;;  %v39712_v15 = vsub.f32 %v50488_v54, %v39711_v12 }
 0x6e3   :  { %19794 = vmatmul.mubr.f32.vlgmr.msra.gmra.mrb[0].mxu1 %v19793_v2  ;;  %v43452_v8 = vpack.c.bf16 %v39735_v1, %v39723_v31  ;;  %v39713_v25 = vand.u32 4294901760, %v39712_v15  ;;  %v42504_v31 = vpack.c.bf16 %v19813_v21, %v19801_v63  ;;  %v43456_v1 = vpack.c.bf16 %v50457_v30, %v50455_v9 }
 0x6e4   :  { %42495 = vmatpush1.bf16.xpose.msra.mxu1 %v42494_v48  ;;  %39554 = vmatmul.mubr.f32.vlgmr.msra.gmra.mrb[0].mxu0 %v50313_v11  ;;  %v44723_v48 = vld [vmem:[#allocation2 + $0x90] ss:$316 sps:$4 sm:$0xff]   ;;  %v42506_v63 = vpack.c.bf16 %v19819_v58, %v19807_v57  ;;  %v43458_v21 = vpack.c.bf16 %v50473_v62, %v50471_v37 }
 0x6e5   :  { %43447 = vmatpush1.bf16.xpose.msra.mxu0 %v50346_v45  ;;  %19884 = vmatprep.mubr.f32.mxu1 %v50381_v16  ;;  %v42498_v45 = vpack.c.bf16 %v50403_v59, %v50401_v36 }
 0x6e6   :  { %42497 = vmatprep.subr.bf16.mxu1 %v42496_v42  ;;  %39628 = vmatprep.mubr.f32.mxu0 %v50293_v44  ;;  %v39740_v44 = vsub.f32 %v50473_v62, %v39739_v46  ;;  %v44725_v42 = vld [vmem:[#allocation2 + $0x308] ss:$316 sps:$4 sm:$0xff]  }
 0x6e7   :  { %43449 = vmatprep.subr.bf16.mxu0 %v50478_v3  ;;  %v1369_v32 = vrot.slane %v44725_v42, %v44898_v17 }
 0x6e8   :  { %v39741_v2 = vand.u32 4294901760, %v39740_v44 }
 0x6ea   :  { %v43454_v56 = vpack.c.bf16 %v39741_v2, %v39729_v28  ;;  %v44729_v2 = vld [vmem:[#allocation2 + $0x3a8] ss:$316 sps:$4 sm:$0xff]  }
 0x6eb   :  { %19886 = vmatmul.mubr.f32.vlgmr.msra.gmra.mrb[0].mxu1 %v50399_v39 }
 0x6ec   :  { %42499 = vmatpush1.bf16.xpose.msra.mxu1 %v42498_v45  ;;  %39630 = vmatmul.mubr.f32.vlgmr.msra.gmra.mrb[0].mxu0 %v50313_v11  ;;  %v1355_v11 = vrot.slane %v44723_v48, %v44898_v17  ;;  %v287_v45 = vld [vmem:[#allocation5 + $0x248] sm:$0xff] }
 0x6ed   :  { %43451 = vmatpush1.bf16.xpose.msra.mxu0 %v50502_v38  ;;  %19965 = vmatprep.mubr.f32.mxu1 %v50392_v47  ;;  %v20213_v14 = vand.u32 4294901760, %v287_v45 }
 0x6ee   :  { %42501 = vmatprep.subr.bf16.mxu1 %v50405_v50  ;;  %39708 = vmatprep.mubr.f32.mxu0 %v39707_v29  ;;  %v1378_v44 = vcombine.high %v1355_v11, %v1369_v32  ;;  %v286_v29 = vld [vmem:[#allocation5 + $0x240] sm:$0xff]  ;;  %v1377_v28 = vcombine.low %v1355_v11, %v1369_v32 }
 0x6ef   :  { %43453 = vmatprep.subr.bf16.mxu0 %v43452_v8  ;;  %v444_v8 = vld [vmem:[#allocation5 + $0x730] sm:$0x7f]  ;;  %v50539_v47 = vsub.f32 %v287_v45, %v20213_v14  ;;  %v20215_v36 = vand.u32 4294901760, %v286_v29  ;;  %v43464_v45 = vpack.c.bf16 %v39733_v35, %v39721_v51 }
 0x6f0   :  { %v50537_v15 = vand.u32 4294901760, %v1378_v44  ;;  %v20219_v59 = vand.u32 4294901760, %v444_v8  ;;  %v50555_v48 = vand.u32 4294901760, %v1377_v28 }
 0x6f1   :  { %v20299_v58 = vand.u32 4294901760, %v50539_v47  ;;  %v50557_v42 = vsub.f32 %v286_v29, %v20215_v36 }
 0x6f2   :  { %v50548_v57 = vsub.f32 %v1378_v44, %v50537_v15 }
 0x6f3   :  { %19968 = vmatmul.mubr.f32.vlgmr.msra.gmra.mrb[0].mxu1 %v50422_v0  ;;  %v20300_v11 = vsub.f32 %v50539_v47, %v20299_v58  ;;  %v20305_v44 = vand.u32 4294901760, %v50557_v42 }
 0x6f4   :  { %42503 = vmatpush1.bf16.xpose.msra.mxu1 %v50437_v6  ;;  %39714 = vmatmul.mubr.f32.vlgmr.msra.gmra.mrb[0].mxu0 %v39713_v25  ;;  %v50559_v25 = vsub.f32 %v444_v8, %v20219_v59  ;;  %v50593_v8 = vpack.c.bf16 %v20219_v59, %v20215_v36 }
 0x6f5   :  { %43455 = vmatpush1.bf16.xpose.msra.mxu0 %v43454_v56  ;;  %20044 = vmatprep.mubr.f32.mxu1 %v19785_v24  ;;  %v50541_v24 = vsub.f32 %v445_v33, %v20217_v43  ;;  %v50561_v56 = vpack.c.bf16 %v20217_v43, %v20213_v14  ;;  %v50578_v33 = vsub.f32 %v1377_v28, %v50555_v48  ;;  %v367_v43 = vld [vmem:[#allocation5 + $0x4c8] sm:$0xff] }
 0x6f6   :  { %42505 = vmatprep.subr.bf16.mxu1 %v42504_v31  ;;  %39804 = vmatprep.mubr.f32.mxu0 %v50449_v55  ;;  %v20317_v14 = vand.u32 4294901760, %v50559_v25 }
 0x6f7   :  { %43457 = vmatprep.subr.bf16.mxu0 %v43456_v1  ;;  %v20311_v0 = vand.u32 4294901760, %v50541_v24  ;;  %v2089_v1 = vrot.slane %v44729_v2, %v44898_v17  ;;  %v20289_v35 = vand.u32 4294901760, %v50578_v33  ;;  %v366_v2 = vld [vmem:[#allocation5 + $0x4c0] sm:$0xff] }
 0x6f8   :  { %v20318_v28 = vsub.f32 %v50559_v25, %v20317_v14 }
 0x6f9   :  { %v20312_v32 = vsub.f32 %v50541_v24, %v20311_v0  ;;  %v20290_v36 = vsub.f32 %v50578_v33, %v20289_v35 }
 0x6fa   :  { %v20319_v62 = vand.u32 4294901760, %v20318_v28 }
 0x6fb   :  { %20048 = vmatmul.mubr.f32.vlgmr.msra.gmra.mrb[0].mxu1 %v19791_v4  ;;  %v44727_v4 = vld [vmem:[#allocation2 + $0x130] ss:$316 sps:$4 sm:$0xff]   ;;  %v20313_v30 = vand.u32 4294901760, %v20312_v32 }
 0x6fc   :  { %42507 = vmatpush1.bf16.xpose.msra.mxu1 %v42506_v63  ;;  %39806 = vmatmul.mubr.f32.vlgmr.msra.gmra.mrb[0].mxu0 %v50469_v26  ;;  %v2075_v31 = vrot.slane %v44727_v4, %v44898_v17  ;;  %v525_v63 = vld [vmem:[#allocation5 + $0x9b8] sm:$0x7f] }
 0x6fd   :  { %43459 = vmatpush1.bf16.xpose.msra.mxu0 %v43458_v21  ;;  %20130 = vmatprep.mubr.f32.mxu1 %v50381_v16  ;;  %v40133_v21 = vand.u32 4294901760, %v367_v43  ;;  %v40137_v29 = vand.u32 4294901760, %v525_v63 }
 0x6fe   :  { %42509 = vmatprep.subr.bf16.mxu1 %v50405_v50  ;;  %39885 = vmatprep.mubr.f32.mxu0 %v50464_v13  ;;  %v20283_v50 = vand.u32 4294901760, %v50548_v57  ;;  %v2098_v51 = vcombine.high %v2075_v31, %v2089_v1  ;;  %v43466_v13 = vpack.c.bf16 %v39739_v46, %v39727_v7  ;;  %v2097_v7 = vcombine.low %v2075_v31, %v2089_v1 }
 0x6ff   :  { %43461 = vmatprep.subr.bf16.mxu0 %v50478_v3  ;;  %v50611_v59 = vsub.f32 %v367_v43, %v40133_v21  ;;  %v40135_v46 = vand.u32 4294901760, %v366_v2 }
 0x700   :  { %v20284_v9 = vsub.f32 %v50548_v57, %v20283_v50  ;;  %v50605_v32 = vand.u32 4294901760, %v2098_v51 }
 0x701   :  { %v50627_v31 = vsub.f32 %v366_v2, %v40135_v46 }
 0x702   :  { %v50620_v43 = vsub.f32 %v2098_v51, %v50605_v32 }
 0x703   :  { %20132 = vmatmul.mubr.f32.vlgmr.msra.gmra.mrb[0].mxu1 %v50399_v39 }
 0x704   :  { %42511 = vmatpush1.bf16.xpose.msra.mxu1 %v50437_v6  ;;  %39888 = vmatmul.mubr.f32.vlgmr.msra.gmra.mrb[0].mxu0 %v50488_v54  ;;  %v20301_v6 = vand.u32 4294901760, %v20300_v11  ;;  %v524_v11 = vld [vmem:[#allocation5 + $0x9b0] sm:$0x7f]  ;;  %v40203_v51 = vand.u32 4294901760, %v50620_v43 }
 0x705   :  { %43463 = vmatpush1.bf16.xpose.msra.mxu0 %v50502_v38  ;;  %20206 = vmatprep.mubr.f32.mxu1 %v50381_v16  ;;  %v20306_v16 = vsub.f32 %v50557_v42, %v20305_v44 }
 0x706   :  { %42513 = vmatprep.subr.bf16.mxu1 %v50561_v56  ;;  %39964 = vmatprep.mubr.f32.mxu0 %v39705_v10  ;;  %v20285_v10 = vand.u32 4294901760, %v20284_v9  ;;  %v42516_v4 = vpack.c.bf16 %v20313_v30, %v20301_v6  ;;  %v40219_v9 = vand.u32 4294901760, %v50611_v59  ;;  %v50625_v6 = vand.u32 4294901760, %v2097_v7 }
 0x707   :  { %43465 = vmatprep.subr.bf16.mxu0 %v43464_v45  ;;  %v50613_v45 = vsub.f32 %v525_v63, %v40137_v29  ;;  %v20307_v37 = vand.u32 4294901760, %v20306_v16  ;;  %v20291_v63 = vand.u32 4294901760, %v20290_v36  ;;  %v42520_v30 = vpack.c.bf16 %v50541_v24, %v50539_v47 }
 0x708   :  { %v50634_v16 = vpack.c.bf16 %v40137_v29, %v40133_v21  ;;  %v40225_v21 = vand.u32 4294901760, %v50627_v31 }
 0x709   :  { %v40231_v54 = vand.u32 4294901760, %v50613_v45 }
 0x70b   :  { %20208 = vmatmul.mubr.f32.vlgmr.msra.gmra.mrb[0].mxu1 %v50399_v39  ;;  %v40139_v39 = vand.u32 4294901760, %v524_v11  ;;  %v40232_v28 = vsub.f32 %v50613_v45, %v40231_v54 }
 0x70c   :  { %42515 = vmatpush1.bf16.xpose.msra.mxu1 %v50593_v8  ;;  %39968 = vmatmul.mubr.f32.vlgmr.msra.gmra.mrb[0].mxu0 %v39711_v12  ;;  %v42518_v12 = vpack.c.bf16 %v20319_v62, %v20307_v37  ;;  %v40226_v37 = vsub.f32 %v50627_v31, %v40225_v21 }
 0x70d   :  { %43467 = vmatpush1.bf16.xpose.msra.mxu0 %v43466_v13  ;;  %20286 = vmatprep.mubr.f32.mxu1 %v20285_v10  ;;  %v50629_v1 = vsub.f32 %v524_v11, %v40139_v39  ;;  %v50644_v13 = vsub.f32 %v2097_v7, %v50625_v6  ;;  %v40204_v10 = vsub.f32 %v50620_v43, %v40203_v51  ;;  %v40233_v2 = vand.u32 4294901760, %v40232_v28 }
 0x70e   :  { %42517 = vmatprep.subr.bf16.mxu1 %v42516_v4  ;;  %40050 = vmatprep.mubr.f32.mxu0 %v50449_v55  ;;  %v50658_v36 = vpack.c.bf16 %v40139_v39, %v40135_v46  ;;  %v40227_v39 = vand.u32 4294901760, %v40226_v37  ;;  %v447_v37 = vld [vmem:[#allocation5 + $0x748] sm:$0x7f] }
 0x70f   :  { %43469 = vmatprep.subr.bf16.mxu0 %v50478_v3  ;;  %v40220_v3 = vsub.f32 %v50611_v59, %v40219_v9  ;;  %v40237_v29 = vand.u32 4294901760, %v50629_v1  ;;  %v40209_v11 = vand.u32 4294901760, %v50644_v13  ;;  %v40205_v62 = vand.u32 4294901760, %v40204_v10 }
 0x710   :  { %v20715_v24 = vand.u32 4294901760, %v447_v37 }
 0x711   :  { %v40221_v4 = vand.u32 4294901760, %v40220_v3  ;;  %v40210_v46 = vsub.f32 %v50644_v13, %v40209_v11 }
 0x713   :  { %20292 = vmatmul.mubr.f32.vlgmr.msra.gmra.mrb[0].mxu1 %v20291_v63  ;;  %v43476_v7 = vpack.c.bf16 %v40233_v2, %v40221_v4  ;;  %v40211_v3 = vand.u32 4294901760, %v40210_v46  ;;  %v42528_v4 = vpack.c.bf16 %v20311_v0, %v20299_v58  ;;  %v43480_v2 = vpack.c.bf16 %v50613_v45, %v50611_v59 }
 0x714   :  { %42519 = vmatpush1.bf16.xpose.msra.mxu1 %v42518_v12  ;;  %40052 = vmatmul.mubr.f32.vlgmr.msra.gmra.mrb[0].mxu0 %v50469_v26  ;;  %v44731_v12 = vld [vmem:[#allocation2 + $0x94] ss:$316 sps:$4 sm:$0xff]   ;;  %v42530_v58 = vpack.c.bf16 %v20317_v14, %v20305_v44  ;;  %v43482_v0 = vpack.c.bf16 %v50629_v1, %v50627_v31 }
 0x715   :  { %43471 = vmatpush1.bf16.xpose.msra.mxu0 %v50502_v38  ;;  %20382 = vmatprep.mubr.f32.mxu1 %v50537_v15  ;;  %v42522_v38 = vpack.c.bf16 %v50559_v25, %v50557_v42 }
 0x716   :  { %42521 = vmatprep.subr.bf16.mxu1 %v42520_v30  ;;  %40126 = vmatprep.mubr.f32.mxu0 %v50449_v55  ;;  %v40238_v55 = vsub.f32 %v50629_v1, %v40237_v29  ;;  %v44732_v30 = vld [vmem:[#allocation2 + $0x30c] ss:$316 sps:$4 sm:$0xff]  }
 0x717   :  { %43473 = vmatprep.subr.bf16.mxu0 %v50634_v16  ;;  %v1376_v10 = vrot.slane %v44732_v30, %v44898_v17 }
 0x718   :  { %v40239_v63 = vand.u32 4294901760, %v40238_v55 }
 0x71a   :  { %v43478_v28 = vpack.c.bf16 %v40239_v63, %v40227_v39  ;;  %v44734_v63 = vld [vmem:[#allocation2 + $0x3ac] ss:$316 sps:$4 sm:$0xff]  }
 0x71b   :  { %20384 = vmatmul.mubr.f32.vlgmr.msra.gmra.mrb[0].mxu1 %v50555_v48 }
 0x71c   :  { %42523 = vmatpush1.bf16.xpose.msra.mxu1 %v42522_v38  ;;  %40128 = vmatmul.mubr.f32.vlgmr.msra.gmra.mrb[0].mxu0 %v50469_v26  ;;  %v1362_v26 = vrot.slane %v44731_v12, %v44898_v17  ;;  %v289_v38 = vld [vmem:[#allocation5 + $0x258] sm:$0xff] }
 0x71d   :  { %43475 = vmatpush1.bf16.xpose.msra.mxu0 %v50658_v36  ;;  %20463 = vmatprep.mubr.f32.mxu1 %v50548_v57  ;;  %v20711_v47 = vand.u32 4294901760, %v289_v38 }
 0x71e   :  { %42525 = vmatprep.subr.bf16.mxu1 %v50561_v56  ;;  %40206 = vmatprep.mubr.f32.mxu0 %v40205_v62  ;;  %v1380_v55 = vcombine.high %v1362_v26, %v1376_v10  ;;  %v288_v62 = vld [vmem:[#allocation5 + $0x250] sm:$0xff]  ;;  %v1379_v39 = vcombine.low %v1362_v26, %v1376_v10 }
 0x71f   :  { %43477 = vmatprep.subr.bf16.mxu0 %v43476_v7  ;;  %v446_v7 = vld [vmem:[#allocation5 + $0x740] sm:$0x7f]  ;;  %v50695_v57 = vsub.f32 %v289_v38, %v20711_v47  ;;  %v20713_v42 = vand.u32 4294901760, %v288_v62  ;;  %v43488_v38 = vpack.c.bf16 %v40231_v54, %v40219_v9 }
 0x720   :  { %v50693_v46 = vand.u32 4294901760, %v1380_v55  ;;  %v20717_v25 = vand.u32 4294901760, %v446_v7  ;;  %v50711_v12 = vand.u32 4294901760, %v1379_v39 }
 0x721   :  { %v20797_v14 = vand.u32 4294901760, %v50695_v57  ;;  %v50713_v30 = vsub.f32 %v288_v62, %v20713_v42 }
 0x722   :  { %v50704_v44 = vsub.f32 %v1380_v55, %v50693_v46 }
 0x723   :  { %20466 = vmatmul.mubr.f32.vlgmr.msra.gmra.mrb[0].mxu1 %v50578_v33  ;;  %v20798_v26 = vsub.f32 %v50695_v57, %v20797_v14  ;;  %v20803_v55 = vand.u32 4294901760, %v50713_v30 }
 0x724   :  { %42527 = vmatpush1.bf16.xpose.msra.mxu1 %v50593_v8  ;;  %40212 = vmatmul.mubr.f32.vlgmr.msra.gmra.mrb[0].mxu0 %v40211_v3  ;;  %v50715_v3 = vsub.f32 %v446_v7, %v20717_v25  ;;  %v50749_v7 = vpack.c.bf16 %v20717_v25, %v20713_v42 }
 0x725   :  { %43479 = vmatpush1.bf16.xpose.msra.mxu0 %v43478_v28  ;;  %20542 = vmatprep.mubr.f32.mxu1 %v20283_v50  ;;  %v50697_v50 = vsub.f32 %v447_v37, %v20715_v24  ;;  %v50717_v28 = vpack.c.bf16 %v20715_v24, %v20711_v47  ;;  %v50734_v37 = vsub.f32 %v1379_v39, %v50711_v12  ;;  %v369_v24 = vld [vmem:[#allocation5 + $0x4d8] sm:$0xff] }
 0x726   :  { %42529 = vmatprep.subr.bf16.mxu1 %v42528_v4  ;;  %40302 = vmatprep.mubr.f32.mxu0 %v50605_v32  ;;  %v20815_v47 = vand.u32 4294901760, %v50715_v3 }
 0x727   :  { %43481 = vmatprep.subr.bf16.mxu0 %v43480_v2  ;;  %v20809_v33 = vand.u32 4294901760, %v50697_v50  ;;  %v2096_v2 = vrot.slane %v44734_v63, %v44898_v17  ;;  %v20787_v54 = vand.u32 4294901760, %v50734_v37  ;;  %v368_v63 = vld [vmem:[#allocation5 + $0x4d0] sm:$0xff] }
 0x728   :  { %v20816_v39 = vsub.f32 %v50715_v3, %v20815_v47 }
 0x729   :  { %v20810_v10 = vsub.f32 %v50697_v50, %v20809_v33  ;;  %v20788_v42 = vsub.f32 %v50734_v37, %v20787_v54 }
 0x72a   :  { %v20817_v1 = vand.u32 4294901760, %v20816_v39 }
 0x72b   :  { %20546 = vmatmul.mubr.f32.vlgmr.msra.gmra.mrb[0].mxu1 %v20289_v35  ;;  %v44733_v35 = vld [vmem:[#allocation2 + $0x134] ss:$316 sps:$4 sm:$0xff]   ;;  %v20811_v45 = vand.u32 4294901760, %v20810_v10 }
 0x72c   :  { %42531 = vmatpush1.bf16.xpose.msra.mxu1 %v42530_v58  ;;  %40304 = vmatmul.mubr.f32.vlgmr.msra.gmra.mrb[0].mxu0 %v50625_v6  ;;  %v2082_v4 = vrot.slane %v44733_v35, %v44898_v17  ;;  %v527_v58 = vld [vmem:[#allocation5 + $0x9c8] sm:$0x7f] }
 0x72d   :  { %43483 = vmatpush1.bf16.xpose.msra.mxu0 %v43482_v0  ;;  %20628 = vmatprep.mubr.f32.mxu1 %v50537_v15  ;;  %v40631_v0 = vand.u32 4294901760, %v369_v24  ;;  %v40635_v62 = vand.u32 4294901760, %v527_v58 }
 0x72e   :  { %42533 = vmatprep.subr.bf16.mxu1 %v50561_v56  ;;  %40383 = vmatprep.mubr.f32.mxu0 %v50620_v43  ;;  %v20781_v56 = vand.u32 4294901760, %v50704_v44  ;;  %v2100_v9 = vcombine.high %v2082_v4, %v2096_v2  ;;  %v43490_v43 = vpack.c.bf16 %v40237_v29, %v40225_v21  ;;  %v2099_v21 = vcombine.low %v2082_v4, %v2096_v2 }
 0x72f   :  { %43485 = vmatprep.subr.bf16.mxu0 %v50634_v16  ;;  %v50767_v25 = vsub.f32 %v369_v24, %v40631_v0  ;;  %v40633_v29 = vand.u32 4294901760, %v368_v63 }
 0x730   :  { %v20782_v59 = vsub.f32 %v50704_v44, %v20781_v56  ;;  %v50761_v10 = vand.u32 4294901760, %v2100_v9 }
 0x731   :  { %v50783_v4 = vsub.f32 %v368_v63, %v40633_v29 }
 0x732   :  { %v50776_v24 = vsub.f32 %v2100_v9, %v50761_v10 }
 0x733   :  { %20630 = vmatmul.mubr.f32.vlgmr.msra.gmra.mrb[0].mxu1 %v50555_v48 }
 0x734   :  { %42535 = vmatpush1.bf16.xpose.msra.mxu1 %v50593_v8  ;;  %40386 = vmatmul.mubr.f32.vlgmr.msra.gmra.mrb[0].mxu0 %v50644_v13  ;;  %v20799_v8 = vand.u32 4294901760, %v20798_v26  ;;  %v526_v26 = vld [vmem:[#allocation5 + $0x9c0] sm:$0x7f]  ;;  %v40701_v9 = vand.u32 4294901760, %v50776_v24 }
 0x735   :  { %43487 = vmatpush1.bf16.xpose.msra.mxu0 %v50658_v36  ;;  %20704 = vmatprep.mubr.f32.mxu1 %v50537_v15  ;;  %v20804_v15 = vsub.f32 %v50713_v30, %v20803_v55 }
 0x736   :  { %42537 = vmatprep.subr.bf16.mxu1 %v50717_v28  ;;  %40462 = vmatprep.mubr.f32.mxu0 %v40203_v51  ;;  %v20783_v51 = vand.u32 4294901760, %v20782_v59  ;;  %v42540_v35 = vpack.c.bf16 %v20811_v45, %v20799_v8  ;;  %v40717_v59 = vand.u32 4294901760, %v50767_v25  ;;  %v50781_v8 = vand.u32 4294901760, %v2099_v21 }
 0x737   :  { %43489 = vmatprep.subr.bf16.mxu0 %v43488_v38  ;;  %v50769_v38 = vsub.f32 %v527_v58, %v40635_v62  ;;  %v20805_v31 = vand.u32 4294901760, %v20804_v15  ;;  %v20789_v58 = vand.u32 4294901760, %v20788_v42  ;;  %v42544_v45 = vpack.c.bf16 %v50697_v50, %v50695_v57 }
 0x738   :  { %v50790_v15 = vpack.c.bf16 %v40635_v62, %v40631_v0  ;;  %v40723_v0 = vand.u32 4294901760, %v50783_v4 }
 0x739   :  { %v40729_v13 = vand.u32 4294901760, %v50769_v38 }
 0x73b   :  { %20706 = vmatmul.mubr.f32.vlgmr.msra.gmra.mrb[0].mxu1 %v50555_v48  ;;  %v40637_v48 = vand.u32 4294901760, %v526_v26  ;;  %v40730_v39 = vsub.f32 %v50769_v38, %v40729_v13 }
 0x73c   :  { %42539 = vmatpush1.bf16.xpose.msra.mxu1 %v50749_v7  ;;  %40466 = vmatmul.mubr.f32.vlgmr.msra.gmra.mrb[0].mxu0 %v40209_v11  ;;  %v42542_v11 = vpack.c.bf16 %v20817_v1, %v20805_v31  ;;  %v40724_v31 = vsub.f32 %v50783_v4, %v40723_v0 }
 0x73d   :  { %43491 = vmatpush1.bf16.xpose.msra.mxu0 %v43490_v43  ;;  %20784 = vmatprep.mubr.f32.mxu1 %v20783_v51  ;;  %v50785_v2 = vsub.f32 %v526_v26, %v40637_v48  ;;  %v50800_v43 = vsub.f32 %v2099_v21, %v50781_v8  ;;  %v40702_v51 = vsub.f32 %v50776_v24, %v40701_v9  ;;  %v40731_v63 = vand.u32 4294901760, %v40730_v39 }
 0x73e   :  { %42541 = vmatprep.subr.bf16.mxu1 %v42540_v35  ;;  %40548 = vmatprep.mubr.f32.mxu0 %v50605_v32  ;;  %v50814_v42 = vpack.c.bf16 %v40637_v48, %v40633_v29  ;;  %v44501_v48 = vld [vmem:[#allocation2 + $0x98] ss:$316 sps:$4 sm:$0xff]  }
 0x73f   :  { %43493 = vmatprep.subr.bf16.mxu0 %v50634_v16  ;;  %v40718_v16 = vsub.f32 %v50767_v25, %v40717_v59  ;;  %v40735_v62 = vand.u32 4294901760, %v50785_v2  ;;  %v40707_v26 = vand.u32 4294901760, %v50800_v43  ;;  %v40703_v1 = vand.u32 4294901760, %v40702_v51 }
 0x741   :  { %v40719_v35 = vand.u32 4294901760, %v40718_v16  ;;  %v40708_v29 = vsub.f32 %v50800_v43, %v40707_v26 }
 0x743   :  { %20790 = vmatmul.mubr.f32.vlgmr.msra.gmra.mrb[0].mxu1 %v20789_v58  ;;  %v43500_v21 = vpack.c.bf16 %v40731_v63, %v40719_v35  ;;  %v44504_v58 = vld [vmem:[#allocation2 + $0x310] ss:$316 sps:$4 sm:$0xff]   ;;  %v40709_v16 = vand.u32 4294901760, %v40708_v29  ;;  %v42552_v35 = vpack.c.bf16 %v20809_v33, %v20797_v14  ;;  %v43504_v63 = vpack.c.bf16 %v50769_v38, %v50767_v25 }
 0x744   :  { %42543 = vmatpush1.bf16.xpose.msra.mxu1 %v42542_v11  ;;  %40550 = vmatmul.mubr.f32.vlgmr.msra.gmra.mrb[0].mxu0 %v50625_v6  ;;  %v40725_v11 = vand.u32 4294901760, %v40724_v31  ;;  %v1405_v51 = vrot.slane %v44504_v58, %v44898_v17  ;;  %v449_v31 = vld [vmem:[#allocation5 + $0x758] sm:$0x7f]  ;;  %v42554_v14 = vpack.c.bf16 %v20815_v47, %v20803_v55  ;;  %v43506_v33 = vpack.c.bf16 %v50785_v2, %v50783_v4  ;;  %v44735_v58 = vld [vmem:[#allocation2 + $0x138] ss:$316 sps:$4 sm:$0xff]  }
 0x745   :  { %43495 = vmatpush1.bf16.xpose.msra.mxu0 %v50658_v36  ;;  %20880 = vmatprep.mubr.f32.mxu1 %v50693_v46  ;;  %v42546_v36 = vpack.c.bf16 %v50715_v3, %v50713_v30  ;;  %v21213_v50 = vand.u32 4294901760, %v449_v31  ;;  %v44736_v30 = vld [vmem:[#allocation2 + $0x3b0] ss:$316 sps:$4 sm:$0xff]  }
 0x746   :  { %42545 = vmatprep.subr.bf16.mxu1 %v42544_v45  ;;  %40624 = vmatprep.mubr.f32.mxu0 %v50605_v32  ;;  %v40736_v32 = vsub.f32 %v50785_v2, %v40735_v62 }
 0x747   :  { %43497 = vmatprep.subr.bf16.mxu0 %v50790_v15 }
 0x748   :  { %v40737_v45 = vand.u32 4294901760, %v40736_v32 }
 0x74a   :  { %v43502_v39 = vpack.c.bf16 %v40737_v45, %v40725_v11  ;;  %v2109_v45 = vrot.slane %v44735_v58, %v44898_v17 }
 0x74b   :  { %20882 = vmatmul.mubr.f32.vlgmr.msra.gmra.mrb[0].mxu1 %v50711_v12 }
 0x74c   :  { %42547 = vmatpush1.bf16.xpose.msra.mxu1 %v42546_v36  ;;  %40626 = vmatmul.mubr.f32.vlgmr.msra.gmra.mrb[0].mxu0 %v50625_v6  ;;  %v1391_v6 = vrot.slane %v44501_v48, %v44898_v17  ;;  %v291_v36 = vld [vmem:[#allocation5 + $0x268] sm:$0xff] }
 0x74d   :  { %43499 = vmatpush1.bf16.xpose.msra.mxu0 %v50814_v42  ;;  %20961 = vmatprep.mubr.f32.mxu1 %v50704_v44  ;;  %v21209_v57 = vand.u32 4294901760, %v291_v36 }
 0x74e   :  { %42549 = vmatprep.subr.bf16.mxu1 %v50717_v28  ;;  %40704 = vmatprep.mubr.f32.mxu0 %v40703_v1  ;;  %v1414_v32 = vcombine.high %v1391_v6, %v1405_v51  ;;  %v290_v1 = vld [vmem:[#allocation5 + $0x260] sm:$0xff]  ;;  %v1413_v48 = vcombine.low %v1391_v6, %v1405_v51  ;;  %v371_v51 = vld [vmem:[#allocation5 + $0x4e8] sm:$0xff] }
 0x74f   :  { %43501 = vmatprep.subr.bf16.mxu0 %v43500_v21  ;;  %v448_v21 = vld [vmem:[#allocation5 + $0x750] sm:$0x7f]  ;;  %v50851_v44 = vsub.f32 %v291_v36, %v21209_v57  ;;  %v21211_v3 = vand.u32 4294901760, %v290_v1 }
 0x750   :  { %v50849_v29 = vand.u32 4294901760, %v1414_v32  ;;  %v21215_v55 = vand.u32 4294901760, %v448_v21  ;;  %v50867_v11 = vand.u32 4294901760, %v1413_v48 }
 0x752   :  { %v50860_v47 = vsub.f32 %v1414_v32, %v50849_v29  ;;  %v50873_v6 = vsub.f32 %v448_v21, %v21215_v55  ;;  %v50890_v32 = vsub.f32 %v1413_v48, %v50867_v11  ;;  %v50908_v58 = vpack.c.bf16 %v21215_v55, %v21211_v3 }
 0x753   :  { %20964 = vmatmul.mubr.f32.vlgmr.msra.gmra.mrb[0].mxu1 %v50734_v37  ;;  %v21295_v37 = vand.u32 4294901760, %v50851_v44 }
 0x754   :  { %42551 = vmatpush1.bf16.xpose.msra.mxu1 %v50749_v7  ;;  %40710 = vmatmul.mubr.f32.vlgmr.msra.gmra.mrb[0].mxu0 %v40709_v16  ;;  %v2116_v16 = vrot.slane %v44736_v30, %v44898_v17  ;;  %v43512_v17 = vpack.c.bf16 %v40729_v13, %v40717_v59  ;;  %v21285_v59 = vand.u32 4294901760, %v50890_v32 }
 0x755   :  { %43503 = vmatpush1.bf16.xpose.msra.mxu0 %v43502_v39  ;;  %21040 = vmatprep.mubr.f32.mxu1 %v20781_v56  ;;  %v50853_v56 = vsub.f32 %v449_v31, %v21213_v50  ;;  %v50871_v39 = vsub.f32 %v290_v1, %v21211_v3  ;;  %v21296_v36 = vsub.f32 %v50851_v44, %v21295_v37 }
 0x756   :  { %42553 = vmatprep.subr.bf16.mxu1 %v42552_v35  ;;  %40800 = vmatprep.mubr.f32.mxu0 %v50761_v10  ;;  %v529_v35 = vld [vmem:[#allocation5 + $0x9d8] sm:$0x7f]  ;;  %v21286_v3 = vsub.f32 %v50890_v32, %v21285_v59 }
 0x757   :  { %43505 = vmatprep.subr.bf16.mxu0 %v43504_v63  ;;  %v50876_v63 = vpack.c.bf16 %v21213_v50, %v21209_v57  ;;  %v2118_v57 = vcombine.high %v2109_v45, %v2116_v16  ;;  %v21301_v50 = vand.u32 4294901760, %v50871_v39  ;;  %v2283_v1 = vsel %vm2276_vm0, %v529_v35, 0  ;;  %v370_v35 = vld [vmem:[#allocation5 + $0x4e0] sm:$0xff] }
 0x758   :  { %v41133_v21 = vand.u32 4294901760, %v2283_v1 }
 0x759   :  { %v2277_v48 = vsel %vm2276_vm0, %v2118_v57, 0 }
 0x75b   :  { %21044 = vmatmul.mubr.f32.vlgmr.msra.gmra.mrb[0].mxu1 %v20787_v54  ;;  %v21307_v54 = vand.u32 4294901760, %v50853_v56 }
 0x75c   :  { %42555 = vmatpush1.bf16.xpose.msra.mxu1 %v42554_v14  ;;  %40802 = vmatmul.mubr.f32.vlgmr.msra.gmra.mrb[0].mxu0 %v50781_v8  ;;  %v21313_v14 = vand.u32 4294901760, %v50873_v6 }
 0x75d   :  { %43507 = vmatpush1.bf16.xpose.msra.mxu0 %v43506_v33  ;;  %21126 = vmatprep.mubr.f32.mxu1 %v50693_v46  ;;  %v21308_v31 = vsub.f32 %v50853_v56, %v21307_v54  ;;  %v2280_v33 = vsel %vm2276_vm0, %v371_v51, 0 }
 0x75e   :  { %42557 = vmatprep.subr.bf16.mxu1 %v50717_v28  ;;  %40881 = vmatprep.mubr.f32.mxu0 %v50776_v24  ;;  %v21279_v28 = vand.u32 4294901760, %v50860_v47  ;;  %v41129_v13 = vand.u32 4294901760, %v2280_v33  ;;  %v21314_v24 = vsub.f32 %v50873_v6, %v21313_v14 }
 0x75f   :  { %43509 = vmatprep.subr.bf16.mxu0 %v50790_v15  ;;  %v21309_v38 = vand.u32 4294901760, %v21308_v31  ;;  %v50920_v31 = vand.u32 4294901760, %v2277_v48 }
 0x760   :  { %v21280_v25 = vsub.f32 %v50860_v47, %v21279_v28  ;;  %v50926_v55 = vsub.f32 %v2280_v33, %v41129_v13  ;;  %v21315_v2 = vand.u32 4294901760, %v21314_v24  ;;  %v21287_v33 = vand.u32 4294901760, %v21286_v3 }
 0x761   :  { %v50935_v57 = vsub.f32 %v2277_v48, %v50920_v31  ;;  %v50949_v48 = vpack.c.bf16 %v41133_v21, %v41129_v13 }
 0x762   :  { %v21281_v30 = vand.u32 4294901760, %v21280_v25 }
 0x763   :  { %21128 = vmatmul.mubr.f32.vlgmr.msra.gmra.mrb[0].mxu1 %v50711_v12 }
 0x764   :  { %42559 = vmatpush1.bf16.xpose.msra.mxu1 %v50749_v7  ;;  %40884 = vmatmul.mubr.f32.vlgmr.msra.gmra.mrb[0].mxu0 %v50800_v43  ;;  %v21297_v7 = vand.u32 4294901760, %v21296_v36  ;;  %v528_v36 = vld [vmem:[#allocation5 + $0x9d0] sm:$0x7f] }
 0x765   :  { %43511 = vmatpush1.bf16.xpose.msra.mxu0 %v50814_v42  ;;  %21202 = vmatprep.mubr.f32.mxu1 %v50693_v46  ;;  %v21302_v46 = vsub.f32 %v50871_v39, %v21301_v50 }
 0x766   :  { %42561 = vmatprep.subr.bf16.mxu1 %v50876_v63  ;;  %40960 = vmatprep.mubr.f32.mxu0 %v40701_v9  ;;  %v43514_v9 = vpack.c.bf16 %v40735_v62, %v40723_v0  ;;  %v42564_v51 = vpack.c.bf16 %v21309_v38, %v21297_v7  ;;  %v2117_v0 = vcombine.low %v2109_v45, %v2116_v16  ;;  %v41131_v62 = vand.u32 4294901760, %v370_v35 }
 0x767   :  { %43513 = vmatprep.subr.bf16.mxu0 %v43512_v17  ;;  %v50928_v17 = vsub.f32 %v2283_v1, %v41133_v21  ;;  %v21303_v4 = vand.u32 4294901760, %v21302_v46  ;;  %v41215_v1 = vand.u32 4294901760, %v50926_v55  ;;  %v42568_v7 = vpack.c.bf16 %v50853_v56, %v50851_v44 }
 0x768   :  { %v50940_v25 = vand.u32 4294901760, %v2117_v0  ;;  %v50942_v45 = vsub.f32 %v370_v35, %v41131_v62  ;;  %v41199_v38 = vand.u32 4294901760, %v50935_v57  ;;  %v42578_v44 = vpack.c.bf16 %v21313_v14, %v21301_v50 }
 0x769   :  { %v41227_v43 = vand.u32 4294901760, %v50928_v17 }
 0x76a   :  { %v50959_v24 = vsub.f32 %v2117_v0, %v50940_v25  ;;  %v41221_v13 = vand.u32 4294901760, %v50942_v45 }
 0x76b   :  { %21204 = vmatmul.mubr.f32.vlgmr.msra.gmra.mrb[0].mxu1 %v50711_v12  ;;  %v41135_v12 = vand.u32 4294901760, %v528_v36  ;;  %v41228_v46 = vsub.f32 %v50928_v17, %v41227_v43 }
 0x76c   :  { %42563 = vmatpush1.bf16.xpose.msra.mxu1 %v50908_v58  ;;  %40964 = vmatmul.mubr.f32.vlgmr.msra.gmra.mrb[0].mxu0 %v40707_v26  ;;  %v42566_v26 = vpack.c.bf16 %v21315_v2, %v21303_v4  ;;  %v41205_v35 = vand.u32 4294901760, %v50959_v24  ;;  %v41222_v3 = vsub.f32 %v50942_v45, %v41221_v13 }
 0x76d   :  { %43515 = vmatpush1.bf16.xpose.msra.mxu0 %v43514_v9  ;;  %21282 = vmatprep.mubr.f32.mxu1 %v21281_v30  ;;  %v50944_v16 = vsub.f32 %v528_v36, %v41135_v12  ;;  %v41200_v9 = vsub.f32 %v50935_v57, %v41199_v38  ;;  %v50973_v36 = vpack.c.bf16 %v41135_v12, %v41131_v62 }
 0x76e   :  { %42565 = vmatprep.subr.bf16.mxu1 %v42564_v51  ;;  %41046 = vmatprep.mubr.f32.mxu0 %v50761_v10  ;;  %v41229_v51 = vand.u32 4294901760, %v41228_v46  ;;  %v41206_v0 = vsub.f32 %v50959_v24, %v41205_v35  ;;  %v41223_v62 = vand.u32 4294901760, %v41222_v3 }
 0x76f   :  { %43517 = vmatprep.subr.bf16.mxu0 %v50790_v15  ;;  %v41216_v15 = vsub.f32 %v50926_v55, %v41215_v1  ;;  %v41233_v21 = vand.u32 4294901760, %v50944_v16  ;;  %v41201_v4 = vand.u32 4294901760, %v41200_v9  ;;  %v43530_v56 = vpack.c.bf16 %v50944_v16, %v50942_v45 }
 0x771   :  { %v41217_v30 = vand.u32 4294901760, %v41216_v15 }
 0x773   :  { %21288 = vmatmul.mubr.f32.vlgmr.msra.gmra.mrb[0].mxu1 %v21287_v33  ;;  %v43524_v2 = vpack.c.bf16 %v41229_v51, %v41217_v30  ;;  %v41207_v33 = vand.u32 4294901760, %v41206_v0 }
 0x774   :  { %42567 = vmatpush1.bf16.xpose.msra.mxu1 %v42566_v26  ;;  %41048 = vmatmul.mubr.f32.vlgmr.msra.gmra.mrb[0].mxu0 %v50781_v8 }
 0x775   :  { %43519 = vmatpush1.bf16.xpose.msra.mxu0 %v50814_v42  ;;  %21378 = vmatprep.mubr.f32.mxu1 %v50849_v29  ;;  %v42570_v42 = vpack.c.bf16 %v50873_v6, %v50871_v39  ;;  %v21778_v39 = vsub.f32 %v44955_v60, %v21777_v5  ;;  %v21800_v6 = vsub.f32 %v44908_v23, %v21799_v41 }
 0x776   :  { %42569 = vmatprep.subr.bf16.mxu1 %v42568_v7  ;;  %41122 = vmatprep.mubr.f32.mxu0 %v50761_v10  ;;  %v41234_v10 = vsub.f32 %v50944_v16, %v41233_v21  ;;  %v42576_v7 = vpack.c.bf16 %v21307_v54, %v21295_v37  ;;  %v21806_v37 = vsub.f32 %v44904_v20, %v21805_v40 }
 0x777   :  { %43521 = vmatprep.subr.bf16.mxu0 %v50949_v48  ;;  %v43536_v54 = vpack.c.bf16 %v41227_v43, %v41215_v1  ;;  %v21812_v5 = vsub.f32 %v44913_v27, %v21811_v49  ;;  %v21801_v41 = vand.u32 4294901760, %v21800_v6 }
 0x778   :  { %v41235_v12 = vand.u32 4294901760, %v41234_v10  ;;  %v21807_v40 = vand.u32 4294901760, %v21806_v37 }
 0x779   :  { %v21813_v50 = vand.u32 4294901760, %v21812_v5 }
 0x77a   :  { %v43526_v26 = vpack.c.bf16 %v41235_v12, %v41223_v62 }
 0x77b   :  { %21380 = vmatmul.mubr.f32.vlgmr.msra.gmra.mrb[0].mxu1 %v50867_v11  ;;  %v42590_v14 = vpack.c.bf16 %v21813_v50, %v21801_v41 }
 0x77c   :  { %42571 = vmatpush1.bf16.xpose.msra.mxu1 %v42570_v42  ;;  %41124 = vmatmul.mubr.f32.vlgmr.msra.gmra.mrb[0].mxu0 %v50781_v8  ;;  %v43528_v8 = vpack.c.bf16 %v50928_v17, %v50926_v55 }
 0x77d   :  { %43523 = vmatpush1.bf16.xpose.msra.mxu0 %v50973_v36  ;;  %21459 = vmatprep.mubr.f32.mxu1 %v50860_v47  ;;  %v21794_v47 = vsub.f32 %v44902_v19, %v21793_v34 }
 0x77e   :  { %42573 = vmatprep.subr.bf16.mxu1 %v50876_v63  ;;  %41202 = vmatprep.mubr.f32.mxu0 %v41201_v4 }
 0x77f   :  { %43525 = vmatprep.subr.bf16.mxu0 %v43524_v2  ;;  %v21795_v34 = vand.u32 4294901760, %v21794_v47 }
 0x783   :  { %21462 = vmatmul.mubr.f32.vlgmr.msra.gmra.mrb[0].mxu1 %v50890_v32 }
 0x784   :  { %42575 = vmatpush1.bf16.xpose.msra.mxu1 %v50908_v58  ;;  %41208 = vmatmul.mubr.f32.vlgmr.msra.gmra.mrb[0].mxu0 %v41207_v33 }
 0x785   :  { %43527 = vmatpush1.bf16.xpose.msra.mxu0 %v43526_v26  ;;  %21538 = vmatprep.mubr.f32.mxu1 %v21279_v28  ;;  %v42588_v28 = vpack.c.bf16 %v21807_v40, %v21795_v34 }
 0x786   :  { %42577 = vmatprep.subr.bf16.mxu1 %v42576_v7  ;;  %41298 = vmatprep.mubr.f32.mxu0 %v50920_v31 }
 0x787   :  { %43529 = vmatprep.subr.bf16.mxu0 %v43528_v8 }
 0x78b   :  { %21542 = vmatmul.mubr.f32.vlgmr.msra.gmra.mrb[0].mxu1 %v21285_v59  ;;  %v42592_v59 = vpack.c.bf16 %v44904_v20, %v44902_v19 }
 0x78c   :  { %42579 = vmatpush1.bf16.xpose.msra.mxu1 %v42578_v44  ;;  %41300 = vmatmul.mubr.f32.vlgmr.msra.gmra.mrb[0].mxu0 %v50940_v25 }
 0x78d   :  { %43531 = vmatpush1.bf16.xpose.msra.mxu0 %v43530_v56  ;;  %21624 = vmatprep.mubr.f32.mxu1 %v50849_v29 }
 0x78e   :  { %42581 = vmatprep.subr.bf16.mxu1 %v50876_v63  ;;  %41379 = vmatprep.mubr.f32.mxu0 %v50935_v57  ;;  %v51078_v63 = vand.u32 4294901760, %v44958_v61 }
 0x78f   :  { %43533 = vmatprep.subr.bf16.mxu0 %v50949_v48 }
 0x790   :  { %v21784_v32 = vsub.f32 %v44958_v61, %v51078_v63 }
 0x792   :  { %v21785_v49 = vand.u32 4294901760, %v21784_v32 }
 0x793   :  { %21626 = vmatmul.mubr.f32.vlgmr.msra.gmra.mrb[0].mxu1 %v50867_v11 }
 0x794   :  { %42583 = vmatpush1.bf16.xpose.msra.mxu1 %v50908_v58  ;;  %41382 = vmatmul.mubr.f32.vlgmr.msra.gmra.mrb[0].mxu0 %v50959_v24 }
 0x795   :  { %43535 = vmatpush1.bf16.xpose.msra.mxu0 %v50973_v36  ;;  %21700 = vmatprep.mubr.f32.mxu1 %v50849_v29  ;;  %v43538_v29 = vpack.c.bf16 %v41233_v21, %v41221_v13 }
 0x796   :  { %42585 = vmatprep.subr.bf16.mxu1 %v44900_v18  ;;  %41458 = vmatprep.mubr.f32.mxu0 %v41199_v38  ;;  %v21779_v18 = vand.u32 4294901760, %v21778_v39 }
 0x797   :  { %43537 = vmatprep.subr.bf16.mxu0 %v43536_v54 }
 0x79b   :  { %21702 = vmatmul.mubr.f32.vlgmr.msra.gmra.mrb[0].mxu1 %v50867_v11  ;;  %v41647_v11 = vld [vmem:[#allocation7] ss:$0 sm:$0xff] }
 0x79c   :  { %42587 = vmatpush1.bf16.xpose.msra.mxu1 %v44906_v22  ;;  %41462 = vmatmul.mubr.f32.vlgmr.msra.gmra.mrb[0].mxu0 %v41205_v35  ;;  %v42594_v22 = vpack.c.bf16 %v44913_v27, %v44908_v23 }
 0x79d   :  { %43539 = vmatpush1.bf16.xpose.msra.mxu0 %v43538_v29  ;;  %21780 = vmatprep.mubr.f32.mxu1 %v21779_v18 }
 0x79e   :  { %42589 = vmatprep.subr.bf16.mxu1 %v42588_v28  ;;  %41544 = vmatprep.mubr.f32.mxu0 %v50920_v31 }
 0x79f   :  { %43541 = vmatprep.subr.bf16.mxu0 %v50949_v48 }
 0x7a3   :  { %21786 = vmatmul.mubr.f32.vlgmr.msra.gmra.mrb[0].mxu1 %v21785_v49 }
 0x7a4   :  { %42591 = vmatpush1.bf16.xpose.msra.mxu1 %v42590_v14  ;;  %41546 = vmatmul.mubr.f32.vlgmr.msra.gmra.mrb[0].mxu0 %v50940_v25 }
 0x7a5   :  { %43543 = vmatpush1.bf16.xpose.msra.mxu0 %v50973_v36  ;;  %21876 = vmatprep.mubr.f32.mxu1 %v44945_v52 }
 0x7a6   :  { %42593 = vmatprep.subr.bf16.mxu1 %v42592_v59  ;;  %41620 = vmatprep.mubr.f32.mxu0 %v50920_v31 }
 0x7ab   :  { %21878 = vmatmul.mubr.f32.vlgmr.msra.gmra.mrb[0].mxu1 %v44947_v53 }
 0x7ac   :  { %42595 = vmatpush1.bf16.xpose.msra.mxu1 %v42594_v22  ;;  %41622 = vmatmul.mubr.f32.vlgmr.msra.gmra.mrb[0].mxu0 %v50940_v25 }
 0x7ad   :  { %21957 = vmatprep.mubr.f32.mxu1 %v44955_v60 }
 0x7b3   :  { %21960 = vmatmul.mubr.f32.vlgmr.msra.gmra.mrb[0].mxu1 %v44958_v61 }
 0x87f   :  { %v41623_v19 = vpop.f32.mrb[0].mxu0 }
 0x880   :  { %v41625_v20 = vpop.f32.mrb[1].mxu0 }
 0x886   :  { %v21961_v58 = vpop.f32.mrb[0].mxu1 }
 0x887   :  { %v43544_v52 = vadd.f32 %v41647_v11, %v21961_v58  ;;  %v21963_v55 = vpop.f32.mrb[1].mxu1 }
 0x889   :  { %v43545_v31 = vadd.f32 %v43544_v52, %v41623_v19 }
 0x88b   :  { %41628 = vst.msk [vmem:[#allocation8] sm:$0xff] %vm41627_vm1, %v43545_v31 }
 0x88c   :  { %41633 = vsyncadd [#allocation4], 96  ;;  %s44839_s2 = smov [#allocation8]  }
 0x88d   :  { %s41634_s25 = sshll.u32 %s44839_s2, 4  ;;  %s41635_s25 = int_to_ptr.vmem [resolvable:$true] %s41634_s25 }
 0x88e   :  { %s44803_s26 = scalar_lea.vmem %s41635_s25, 32  ;;  %s44807_s27 = scalar_lea.vmem %s41635_s25, 128 }
 0x88f   :  { %p44804_p10 = scmp.ne.s32.totalorder %s41635_s25, %s44803_s26  ;;  %p44808_p11 = scmp.lt.s32.totalorder %s41635_s25, %s41635_s25 }
 0x890   :  { %p44809_p12 = scmp.lt.s32.totalorder %s44807_s27, %s44803_s26 }
 0x892   :  { %p44810_p13 = por %p44809_p12, %p44808_p11 }
 0x894   :  { %p44811_p0 = pnand %p44810_p13, %p44804_p10 }
 0x896   :  { %44814 = shalt.err (!%p44811_p0)
}
 0x897   :  { %s44815_s30 = scalar_lea.hbm %s51076_s3, 32 }
 0x898   :  { %p44816_p1 = scmp.ne.s32.totalorder %s51076_s3, %s44815_s30  ;;  %p44819_p2 = scmp.lt.u32.totalorder %s44815_s30, %s51076_s3 }
 0x89a   :  { %p44821_p3 = pnand %p44819_p2, %p44816_p1 }
 0x89c   :  { %44824 = shalt.err (!%p44821_p3)
}
 0x89d   :  { %s44840_s8 = smov 32   ;;  %s44841_s1 = smov 2  }
 0x89e   :  { %41640 = dma.vmem_to_hbm [thread:$0]  %s41635_s25, 32, %s51076_s3, [#allocation4], %s44840_s8, %s44840_s8, %s44841_s1  }
 0x89f   :  { %44829 = dma.done.wait [#allocation4], 128  }
 0x8a0   :  { %44830 = vsyncadd [#allocation4], 4294967168 }
 0x8a1   :  { %41644 = vsyncpa [#allocation3], 1 }
 0x8a2   :  { %41645 = vsyncpa [#allocation6], 1 }
 0x8a3   :  { %41646 = vsyncpa [#allocation4], 1 }

</bundles_post_ra>
